<compile_context>
chip_gen: v7x
topology: tpu7x:2x2x1
jax: 0.10.0
libtpu: 0.0.40
codegen_flags: <defaults>
</compile_context>

<pallas_src>
import jax
import jax.numpy as jnp
from jax.experimental import pallas as pl
from jax.experimental.pallas import tpu as pltpu

# Keep reference (XLA) f32 matmuls accurate so the kernel can be compared tightly.
jax.config.update("jax_default_matmul_precision", "highest")

# ----------------------- module config (small demo shapes) -----------------------
BATCH = 2
SEQ = 8                      # n  (input sequence length)
DIM = 64                     # dim
HEADS = 4                    # heads (PerceiverAttention overrides dim_head = dim // heads)
DIM_HEAD = DIM // HEADS
INNER = DIM_HEAD * HEADS     # == DIM
DEPTH = 2
NUM_LATENTS = 8
NUM_MEAN_POOLED = 4          # num_latents_mean_pooled
M_LAT = NUM_MEAN_POOLED + NUM_LATENTS
NKV = SEQ + M_LAT            # stacked kv length (x rows + latent rows)
FF_MULT = 4
HIDDEN = DIM * FF_MULT
MAX_SEQ_LEN = 16
SCALE = DIM_HEAD ** -0.5
LN_EPS = 1e-5


# ----------------------------- shared math helpers -----------------------------
def _layer_norm(x, w, b):
    """F.layer_norm over the last axis, eps=1e-5 (b=None => zero bias buffer)."""
    mu = jnp.mean(x, axis=-1, keepdims=True)
    var = jnp.mean(jnp.square(x - mu), axis=-1, keepdims=True)
    y = (x - mu) * jax.lax.rsqrt(var + LN_EPS)
    y = y * w
    if b is not None:
        y = y + b
    return y


# TODO(synk): torch.nn.GELU() is the exact (erf) GELU; the tanh approximation is used here
# (and in the in-script reference) since erf lowering in Mosaic is not guaranteed.
def _gelu_tanh(x):
    return 0.5 * x * (1.0 + jnp.tanh(0.7978845608028654 * (x + 0.044715 * x * x * x)))


# --------------------------------- Pallas kernel ---------------------------------
def resampler_kernel(
    xp_ref,       # (1, SEQ, DIM)        x + pos_emb (per batch element)
    lat0_ref,     # (1, M_LAT, DIM)      initial latents (mean-pool proj + learned)
    ln_ref,       # (DEPTH, 7, DIM)      [lnx_w, lnx_b, lnl_w, lnl_b, oln_w, oln_b, ff_g1]
    wq_ref,       # (DEPTH, DIM, INNER)  to_q weight, 1/sqrt(dh) folded in
    wkv_ref,      # (DEPTH, DIM, 2*INNER) combined to_kv weight
    wo_ref,       # (DEPTH, INNER, DIM)  to_out linear weight
    ff_w1_ref,    # (DEPTH, DIM, HIDDEN)
    ff_g2_ref,    # (DEPTH, 1, HIDDEN)
    ff_w2_ref,    # (DEPTH, HIDDEN, DIM)
    out_ref,      # (1, M_LAT, DIM)
    kv_ref,       # VMEM scratch (NKV, DIM): stacked [x_norm ; latents_norm]
):
    xp = xp_ref[0]                      # (SEQ, DIM)
    lat = lat0_ref[0]                   # (M_LAT, DIM) residual stream, carried in values

    # DEPTH=2 is tiny & static -> Python unroll with constant layer indices.
    for l in range(DEPTH):
        ln = ln_ref[l]                  # (7, DIM)
        lnx_w, lnx_b = ln[0:1], ln[1:2]
        lnl_w, lnl_b = ln[2:3], ln[3:4]
        oln_w, oln_b = ln[4:5], ln[5:6]
        ff_g1 = ln[6:7]

        # --------------------------- PerceiverAttention ---------------------------
        xn = _layer_norm(xp, lnx_w, lnx_b)          # (SEQ, DIM)
        ln_lat = _layer_norm(lat, lnl_w, lnl_b)     # (M_LAT, DIM)

        # kv_input = cat([xn, ln_lat], dim=-2): two slice stores into one VMEM scratch.
        kv_ref[0:SEQ, :] = xn
        kv_ref[SEQ:, :] = ln_lat
        kv_in = kv_ref[...]                         # (NKV, DIM)

        # Full-width projections (single MXU matmuls).
        q = jnp.dot(ln_lat, wq_ref[l], preferred_element_type=jnp.float32)   # (M, INNER)
        kv = jnp.dot(kv_in, wkv_ref[l], preferred_element_type=jnp.float32)  # (NKV, 2*INNER)
        k = kv[:, :INNER]
        v = kv[:, INNER:]

        # Per-head score/softmax/PV on static lane slices (head-major columns, matching
        # rearrange 'b n (h d) -> b h n d').
        o_heads = []
        for h in range(HEADS):
            sl = slice(h * DIM_HEAD, (h + 1) * DIM_HEAD)
            s = jnp.einsum("md,nd->mn", q[:, sl], k[:, sl],
                           preferred_element_type=jnp.float32)               # (M, NKV)
            s = s - jnp.max(s, axis=-1, keepdims=True)
            p = jnp.exp(s)
            p = p / jnp.sum(p, axis=-1, keepdims=True)
            o_heads.append(jnp.dot(p, v[:, sl],
                                   preferred_element_type=jnp.float32))      # (M, DH)
        o = jnp.concatenate(o_heads, axis=-1)                                # (M, INNER)

        attn = jnp.dot(o, wo_ref[l], preferred_element_type=jnp.float32)     # (M, DIM)
        attn = _layer_norm(attn, oln_w, oln_b)                               # to_out LayerNorm
        lat = lat + attn                                                     # residual

        # ------------------------------- FeedForward -------------------------------
        t = _layer_norm(lat, ff_g1, None)
        t = jnp.dot(t, ff_w1_ref[l], preferred_element_type=jnp.float32)
        t = _gelu_tanh(t)
        t = _layer_norm(t, ff_g2_ref[l], None)
        t = jnp.dot(t, ff_w2_ref[l], preferred_element_type=jnp.float32)
        lat = lat + t                                                        # residual

    out_ref[0] = lat                    # single store per batch step


# ---------------------------------- wrapper ----------------------------------
def perceiver_resampler_pallas(x, params):
    B, N, D = x.shape
    assert (B, N, D) == (BATCH, SEQ, DIM)

    # Hoisted to XLA (one-time, tiny): x + pos_emb and the initial latents
    # [mean-pool projection ; learned latents].
    xp = x + params["pos_emb"][:N]                                           # (B, SEQ, D)
    mp = jnp.mean(x, axis=1)                                                 # masked_mean, all-ones mask
    mp = _layer_norm(mp, params["mp_gamma"], None)
    mpl = (mp @ params["mp_w_t"] + params["mp_b"]).reshape(B, NUM_MEAN_POOLED, D)
    lat0 = jnp.concatenate(
        [mpl, jnp.broadcast_to(params["latents"], (B, NUM_LATENTS, D))], axis=1)

    layers = params["layers"]
    stack = lambda f: jnp.stack([f(p) for p in layers])
    ln_pack = stack(lambda p: jnp.stack(                                     # (DEPTH, 7, D)
        [p["ln_x_w"], p["ln_x_b"], p["ln_l_w"], p["ln_l_b"],
         p["out_ln_w"], p["out_ln_b"], p["ff_g1"]]))
    wq = stack(lambda p: p["wq_t"] * SCALE)                                  # (DEPTH, D, INNER)
    wkv = stack(lambda p: p["wkv_t"])                                        # (DEPTH, D, 2*INNER)
    wo = stack(lambda p: p["wo_t"])                                          # (DEPTH, INNER, D)
    ff_w1 = stack(lambda p: p["ff_w1_t"])                                    # (DEPTH, D, HIDDEN)
    ff_g2 = stack(lambda p: p["ff_g2"].reshape(1, HIDDEN))                   # (DEPTH, 1, HIDDEN)
    ff_w2 = stack(lambda p: p["ff_w2_t"])                                    # (DEPTH, HIDDEN, D)

    operands = (xp, lat0, ln_pack, wq, wkv, wo, ff_w1, ff_g2, ff_w2)

    def resident(shape):
        # Full-array block with a constant block index: fetched once, stays in VMEM for
        # the whole grid (total stacked weights ~0.4 MiB f32, fits every generation).
        zeros = (0,) * len(shape)
        return pl.BlockSpec(shape, lambda b: zeros)

    in_specs = [
        pl.BlockSpec((1, N, D), lambda b: (b, 0, 0)),        # x + pos (per batch element)
        pl.BlockSpec((1, M_LAT, D), lambda b: (b, 0, 0)),    # initial latents
        resident((DEPTH, 7, D)),                             # packed LN vectors
        resident((DEPTH, D, INNER)),                         # Wq (scaled)
        resident((DEPTH, D, 2 * INNER)),                     # Wkv (combined)
        resident((DEPTH, INNER, D)),                         # Wout
        resident((DEPTH, D, HIDDEN)),                        # FF W1
        resident((DEPTH, 1, HIDDEN)),                        # FF LN2 gamma
        resident((DEPTH, HIDDEN, D)),                        # FF W2
    ]
    out_spec = pl.BlockSpec((1, M_LAT, D), lambda b: (b, 0, 0))

    flops_layer = (2 * M_LAT * D * INNER                     # Q projection
                   + 2 * NKV * D * 2 * INNER                 # combined KV projection
                   + 2 * 2 * M_LAT * NKV * INNER             # scores + PV (all heads)
                   + 2 * M_LAT * INNER * D                   # output projection
                   + 2 * 2 * M_LAT * D * HIDDEN)             # FF
    cost = pl.CostEstimate(
        flops=B * DEPTH * flops_layer,
        transcendentals=B * DEPTH * (HEADS * M_LAT * NKV + M_LAT * HIDDEN),
        bytes_accessed=sum(int(op.size) * op.dtype.itemsize for op in operands)
        + B * M_LAT * D * 4,
    )

    return pl.pallas_call(
        resampler_kernel,
        out_shape=jax.ShapeDtypeStruct((B, M_LAT, D), jnp.float32),
        grid_spec=pltpu.PrefetchScalarGridSpec(
            num_scalar_prefetch=0,
            grid=(B,),                                       # batch only; depth is in-kernel
            in_specs=in_specs,
            out_specs=out_spec,
            scratch_shapes=[pltpu.VMEM((NKV, D), jnp.float32)],   # stacked kv_input
        ),
        compiler_params=pltpu.CompilerParams(
            dimension_semantics=("parallel",)),
        cost_estimate=cost,
    )(*operands)
    # TODO(synk): optional attention mask path (mask=None in this test) is not implemented.


# ------------------------- plain-JAX reference (torch math) -------------------------
def _ref_attention(xp, lat, p):
    B = xp.shape[0]
    xn = _layer_norm(xp, p["ln_x_w"], p["ln_x_b"])
    ln_l = _layer_norm(lat, p["ln_l_w"], p["ln_l_b"])
    q = ln_l @ p["wq_t"]
    kv_in = jnp.concatenate([xn, ln_l], axis=1)
    kv = kv_in @ p["wkv_t"]
    k, v = kv[..., :INNER], kv[..., INNER:]

    def split(t):
        return t.reshape(B, t.shape[1], HEADS, DIM_HEAD).transpose(0, 2, 1, 3)

    q, k, v = split(q) * SCALE, split(k), split(v)
    sim = jnp.einsum("bhid,bhjd->bhij", q, k)
    attn = jax.nn.softmax(sim, axis=-1)
    o = jnp.einsum("bhij,bhjd->bhid", attn, v)
    o = o.transpose(0, 2, 1, 3).reshape(B, -1, INNER)
    o = o @ p["wo_t"]
    return _layer_norm(o, p["out_ln_w"], p["out_ln_b"])


def _ref_feedforward(lat, p):
    t = _layer_norm(lat, p["ff_g1"], None)
    t = t @ p["ff_w1_t"]
    t = _gelu_tanh(t)
    t = _layer_norm(t, p["ff_g2"], None)
    return t @ p["ff_w2_t"]


def reference_forward(x, params):
    B, N, D = x.shape
    xp = x + params["pos_emb"][:N]
    mp = jnp.mean(x, axis=1)
    mp = _layer_norm(mp, params["mp_gamma"], None)
    mpl = (mp @ params["mp_w_t"] + params["mp_b"]).reshape(B, NUM_MEAN_POOLED, D)
    lat = jnp.concatenate(
        [mpl, jnp.broadcast_to(params["latents"], (B, NUM_LATENTS, D))], axis=1)
    for p in params["layers"]:
        lat = _ref_attention(xp, lat, p) + lat
        lat = _ref_feedforward(lat, p) + lat
    return lat


# ------------------------------------- main -------------------------------------
if __name__ == "__main__":
    key = jax.random.PRNGKey(0)
    keys = iter(jax.random.split(key, 64))
    nk = lambda: next(keys)

    def nrm(shape, scale=1.0):
        return scale * jax.random.normal(nk(), shape, dtype=jnp.float32)

    x = nrm((BATCH, SEQ, DIM))

    params = {
        "pos_emb": nrm((MAX_SEQ_LEN, DIM)),
        "latents": nrm((NUM_LATENTS, DIM)),
        "mp_gamma": 1.0 + 0.1 * nrm((DIM,)),
        "mp_w_t": nrm((DIM, NUM_MEAN_POOLED * DIM), DIM ** -0.5),
        "mp_b": 0.1 * nrm((NUM_MEAN_POOLED * DIM,)),
        "layers": [],
    }
    for _ in range(DEPTH):
        params["layers"].append({
            "ln_x_w": 1.0 + 0.1 * nrm((DIM,)),
            "ln_x_b": 0.1 * nrm((DIM,)),
            "ln_l_w": 1.0 + 0.1 * nrm((DIM,)),
            "ln_l_b": 0.1 * nrm((DIM,)),
            "wq_t": nrm((DIM, INNER), DIM ** -0.5),
            "wkv_t": nrm((DIM, 2 * INNER), DIM ** -0.5),
            "wo_t": nrm((INNER, DIM), INNER ** -0.5),
            "out_ln_w": 1.0 + 0.1 * nrm((DIM,)),
            "out_ln_b": 0.1 * nrm((DIM,)),
            "ff_g1": 1.0 + 0.1 * nrm((DIM,)),
            "ff_w1_t": nrm((DIM, HIDDEN), DIM ** -0.5),
            "ff_g2": 1.0 + 0.1 * nrm((HIDDEN,)),
            "ff_w2_t": nrm((HIDDEN, DIM), HIDDEN ** -0.5),
        })

    out = jax.block_until_ready(perceiver_resampler_pallas(x, params))
    ref = jax.block_until_ready(reference_forward(x, params))

    assert out.shape == (BATCH, M_LAT, DIM)
    max_err = float(jnp.max(jnp.abs(out - ref)))
    assert jnp.allclose(out, ref, atol=5e-4, rtol=5e-4), f"max abs err {max_err}"

    print("KERNEL_OK")
</pallas_src>

<mosaic_0001>
module attributes {stable_mosaic.version = 11 : i64} {
  func.func @resampler_kernel(%arg0: i32, %arg1: memref<1x8x64xf32, #tpu.memory_space<vmem>>, %arg2: memref<1x12x64xf32, #tpu.memory_space<vmem>>, %arg3: memref<2x7x64xf32, #tpu.memory_space<vmem>>, %arg4: memref<2x64x64xf32, #tpu.memory_space<vmem>>, %arg5: memref<2x64x128xf32, #tpu.memory_space<vmem>>, %arg6: memref<2x64x64xf32, #tpu.memory_space<vmem>>, %arg7: memref<2x64x256xf32, #tpu.memory_space<vmem>>, %arg8: memref<2x1x256xf32, #tpu.memory_space<vmem>>, %arg9: memref<2x256x64xf32, #tpu.memory_space<vmem>>, %arg10: memref<1x12x64xf32, #tpu.memory_space<vmem>>, %arg11: memref<20x64xf32, #tpu.memory_space<vmem>>) attributes {dimension_semantics = [#tpu.dimension_semantics<parallel>], iteration_bounds = array<i64: 2>, scalar_prefetch = 0 : i64, scratch_operands = 1 : i64, tpu.core_type = #tpu.core_type<tc>, window_params = [{transform_indices = @transform_0, window_bounds = array<i64: 1, 8, 64>}, {transform_indices = @transform_1, window_bounds = array<i64: 1, 12, 64>}, {pipeline_mode = #tpu.pipeline_mode<synchronous>, transform_indices = @transform_2, window_bounds = array<i64: 2, 7, 64>}, {pipeline_mode = #tpu.pipeline_mode<synchronous>, transform_indices = @transform_3, window_bounds = array<i64: 2, 64, 64>}, {pipeline_mode = #tpu.pipeline_mode<synchronous>, transform_indices = @transform_4, window_bounds = array<i64: 2, 64, 128>}, {pipeline_mode = #tpu.pipeline_mode<synchronous>, transform_indices = @transform_5, window_bounds = array<i64: 2, 64, 64>}, {pipeline_mode = #tpu.pipeline_mode<synchronous>, transform_indices = @transform_6, window_bounds = array<i64: 2, 64, 256>}, {pipeline_mode = #tpu.pipeline_mode<synchronous>, transform_indices = @transform_7, window_bounds = array<i64: 2, 1, 256>}, {pipeline_mode = #tpu.pipeline_mode<synchronous>, transform_indices = @transform_8, window_bounds = array<i64: 2, 256, 64>}, {transform_indices = @transform_9, window_bounds = array<i64: 1, 12, 64>}]} {
    %c0 = arith.constant 0 : index
    %c0_0 = arith.constant 0 : index
    %c0_1 = arith.constant 0 : index
    %0 = vector.load %arg1[%c0, %c0_0, %c0_1] : memref<1x8x64xf32, #tpu.memory_space<vmem>>, vector<1x8x64xf32>
    %1 = vector.shape_cast %0 : vector<1x8x64xf32> to vector<8x64xf32>
    %c0_2 = arith.constant 0 : index
    %c0_3 = arith.constant 0 : index
    %c0_4 = arith.constant 0 : index
    %2 = vector.load %arg2[%c0_2, %c0_3, %c0_4] : memref<1x12x64xf32, #tpu.memory_space<vmem>>, vector<1x12x64xf32>
    %3 = vector.shape_cast %2 : vector<1x12x64xf32> to vector<12x64xf32>
    %c0_5 = arith.constant 0 : index
    %c0_6 = arith.constant 0 : index
    %c0_7 = arith.constant 0 : index
    %4 = vector.load %arg3[%c0_5, %c0_6, %c0_7] : memref<2x7x64xf32, #tpu.memory_space<vmem>>, vector<1x7x64xf32>
    %5 = vector.shape_cast %4 : vector<1x7x64xf32> to vector<7x64xf32>
    %6 = vector.extract_strided_slice %5 {offsets = [0, 0], sizes = [1, 64], strides = [1, 1]} : vector<7x64xf32> to vector<1x64xf32>
    %7 = vector.extract_strided_slice %5 {offsets = [1, 0], sizes = [1, 64], strides = [1, 1]} : vector<7x64xf32> to vector<1x64xf32>
    %8 = vector.extract_strided_slice %5 {offsets = [2, 0], sizes = [1, 64], strides = [1, 1]} : vector<7x64xf32> to vector<1x64xf32>
    %9 = vector.extract_strided_slice %5 {offsets = [3, 0], sizes = [1, 64], strides = [1, 1]} : vector<7x64xf32> to vector<1x64xf32>
    %10 = vector.extract_strided_slice %5 {offsets = [4, 0], sizes = [1, 64], strides = [1, 1]} : vector<7x64xf32> to vector<1x64xf32>
    %11 = vector.extract_strided_slice %5 {offsets = [5, 0], sizes = [1, 64], strides = [1, 1]} : vector<7x64xf32> to vector<1x64xf32>
    %12 = vector.extract_strided_slice %5 {offsets = [6, 0], sizes = [1, 64], strides = [1, 1]} : vector<7x64xf32> to vector<1x64xf32>
    %cst = arith.constant dense<0.000000e+00> : vector<8xf32>
    %13 = vector.multi_reduction <add>, %1, %cst [1] : vector<8x64xf32> to vector<8xf32>
    %14 = vector.shape_cast %13 : vector<8xf32> to vector<8x1xf32>
    %cst_8 = arith.constant 6.400000e+01 : f32
    %15 = vector.broadcast %cst_8 : f32 to vector<8x1xf32>
    %16 = arith.divf %14, %15 : vector<8x1xf32>
    %17 = vector.broadcast %16 : vector<8x1xf32> to vector<8x64xf32>
    %18 = arith.subf %1, %17 : vector<8x64xf32>
    %19 = arith.mulf %18, %18 : vector<8x64xf32>
    %cst_9 = arith.constant dense<0.000000e+00> : vector<8xf32>
    %20 = vector.multi_reduction <add>, %19, %cst_9 [1] : vector<8x64xf32> to vector<8xf32>
    %21 = vector.shape_cast %20 : vector<8xf32> to vector<8x1xf32>
    %cst_10 = arith.constant 6.400000e+01 : f32
    %22 = vector.broadcast %cst_10 : f32 to vector<8x1xf32>
    %23 = arith.divf %21, %22 : vector<8x1xf32>
    %24 = vector.broadcast %16 : vector<8x1xf32> to vector<8x64xf32>
    %25 = arith.subf %1, %24 : vector<8x64xf32>
    %cst_11 = arith.constant 9.99999974E-6 : f32
    %26 = vector.broadcast %cst_11 : f32 to vector<8x1xf32>
    %27 = arith.addf %23, %26 : vector<8x1xf32>
    %28 = math.rsqrt %27 : vector<8x1xf32>
    %29 = vector.broadcast %28 : vector<8x1xf32> to vector<8x64xf32>
    %30 = arith.mulf %25, %29 : vector<8x64xf32>
    %31 = vector.broadcast %6 : vector<1x64xf32> to vector<8x64xf32>
    %32 = arith.mulf %30, %31 : vector<8x64xf32>
    %33 = vector.broadcast %7 : vector<1x64xf32> to vector<8x64xf32>
    %34 = arith.addf %32, %33 : vector<8x64xf32>
    %cst_12 = arith.constant dense<0.000000e+00> : vector<12xf32>
    %35 = vector.multi_reduction <add>, %3, %cst_12 [1] : vector<12x64xf32> to vector<12xf32>
    %36 = vector.shape_cast %35 : vector<12xf32> to vector<12x1xf32>
    %cst_13 = arith.constant 6.400000e+01 : f32
    %37 = vector.broadcast %cst_13 : f32 to vector<12x1xf32>
    %38 = arith.divf %36, %37 : vector<12x1xf32>
    %39 = vector.broadcast %38 : vector<12x1xf32> to vector<12x64xf32>
    %40 = arith.subf %3, %39 : vector<12x64xf32>
    %41 = arith.mulf %40, %40 : vector<12x64xf32>
    %cst_14 = arith.constant dense<0.000000e+00> : vector<12xf32>
    %42 = vector.multi_reduction <add>, %41, %cst_14 [1] : vector<12x64xf32> to vector<12xf32>
    %43 = vector.shape_cast %42 : vector<12xf32> to vector<12x1xf32>
    %cst_15 = arith.constant 6.400000e+01 : f32
    %44 = vector.broadcast %cst_15 : f32 to vector<12x1xf32>
    %45 = arith.divf %43, %44 : vector<12x1xf32>
    %46 = vector.broadcast %38 : vector<12x1xf32> to vector<12x64xf32>
    %47 = arith.subf %3, %46 : vector<12x64xf32>
    %cst_16 = arith.constant 9.99999974E-6 : f32
    %48 = vector.broadcast %cst_16 : f32 to vector<12x1xf32>
    %49 = arith.addf %45, %48 : vector<12x1xf32>
    %50 = math.rsqrt %49 : vector<12x1xf32>
    %51 = vector.broadcast %50 : vector<12x1xf32> to vector<12x64xf32>
    %52 = arith.mulf %47, %51 : vector<12x64xf32>
    %53 = vector.broadcast %8 : vector<1x64xf32> to vector<12x64xf32>
    %54 = arith.mulf %52, %53 : vector<12x64xf32>
    %55 = vector.broadcast %9 : vector<1x64xf32> to vector<12x64xf32>
    %56 = arith.addf %54, %55 : vector<12x64xf32>
    %c0_17 = arith.constant 0 : index
    %c0_18 = arith.constant 0 : index
    %57 = vector.load %arg11[%c0_17, %c0_18] : memref<20x64xf32, #tpu.memory_space<vmem>>, vector<8x64xf32>
    tpu.vector_store %arg11[%c0_17, %c0_18], %34 {strides = array<i32>} : memref<20x64xf32, #tpu.memory_space<vmem>>, vector<8x64xf32>,
    %c8 = arith.constant 8 : index
    %c0_19 = arith.constant 0 : index
    %58 = vector.load %arg11[%c8, %c0_19] : memref<20x64xf32, #tpu.memory_space<vmem>>, vector<12x64xf32>
    tpu.vector_store %arg11[%c8, %c0_19], %56 {strides = array<i32>} : memref<20x64xf32, #tpu.memory_space<vmem>>, vector<12x64xf32>,
    %c0_20 = arith.constant 0 : index
    %c0_21 = arith.constant 0 : index
    %59 = vector.load %arg11[%c0_20, %c0_21] : memref<20x64xf32, #tpu.memory_space<vmem>>, vector<20x64xf32>
    %c0_22 = arith.constant 0 : index
    %c0_23 = arith.constant 0 : index
    %c0_24 = arith.constant 0 : index
    %60 = vector.load %arg4[%c0_22, %c0_23, %c0_24] : memref<2x64x64xf32, #tpu.memory_space<vmem>>, vector<1x64x64xf32>
    %61 = vector.shape_cast %60 : vector<1x64x64xf32> to vector<64x64xf32>
    %cst_25 = arith.constant dense<0.000000e+00> : vector<12x64xf32>
    %62 = tpu.matmul %56, %61, %cst_25 {dimension_numbers = #tpu.dot_dimension_numbers<[1], [0], [0], [1], [0, 0, 1, 1], [], []>, precision = #tpu.contract_precision<fp32>} : vector<12x64xf32>, vector<64x64xf32>, vector<12x64xf32> -> vector<12x64xf32>
    %c0_26 = arith.constant 0 : index
    %c0_27 = arith.constant 0 : index
    %c0_28 = arith.constant 0 : index
    %63 = vector.load %arg5[%c0_26, %c0_27, %c0_28] : memref<2x64x128xf32, #tpu.memory_space<vmem>>, vector<1x64x128xf32>
    %64 = vector.shape_cast %63 : vector<1x64x128xf32> to vector<64x128xf32>
    %cst_29 = arith.constant dense<0.000000e+00> : vector<20x128xf32>
    %65 = tpu.matmul %59, %64, %cst_29 {dimension_numbers = #tpu.dot_dimension_numbers<[1], [0], [0], [1], [0, 0, 1, 1], [], []>, precision = #tpu.contract_precision<fp32>} : vector<20x64xf32>, vector<64x128xf32>, vector<20x128xf32> -> vector<20x128xf32>
    %66 = vector.extract_strided_slice %65 {offsets = [0, 0], sizes = [20, 64], strides = [1, 1]} : vector<20x128xf32> to vector<20x64xf32>
    %67 = vector.extract_strided_slice %65 {offsets = [0, 64], sizes = [20, 64], strides = [1, 1]} : vector<20x128xf32> to vector<20x64xf32>
    %68 = vector.extract_strided_slice %62 {offsets = [0, 0], sizes = [12, 16], strides = [1, 1]} : vector<12x64xf32> to vector<12x16xf32>
    %69 = vector.extract_strided_slice %66 {offsets = [0, 0], sizes = [20, 16], strides = [1, 1]} : vector<20x64xf32> to vector<20x16xf32>
    "tpu.trace_start"() <{level = 10 : i32, message = "md,nd->mn"}> : () -> ()
    %cst_30 = arith.constant dense<0.000000e+00> : vector<12x20xf32>
    %70 = tpu.matmul %68, %69, %cst_30 {dimension_numbers = #tpu.dot_dimension_numbers<[1], [1], [0], [0], [0, 0, 1, 0], [], []>, precision = #tpu.contract_precision<fp32>} : vector<12x16xf32>, vector<20x16xf32>, vector<12x20xf32> -> vector<12x20xf32>
    "tpu.trace_stop"() : () -> ()
    %cst_31 = arith.constant dense<0xFF800000> : vector<12xf32>
    %71 = vector.multi_reduction <maximumf>, %70, %cst_31 [1] : vector<12x20xf32> to vector<12xf32>
    %72 = vector.shape_cast %71 : vector<12xf32> to vector<12x1xf32>
    %73 = vector.broadcast %72 : vector<12x1xf32> to vector<12x20xf32>
    %74 = arith.subf %70, %73 : vector<12x20xf32>
    %75 = math.exp %74 : vector<12x20xf32>
    %cst_32 = arith.constant dense<0.000000e+00> : vector<12xf32>
    %76 = vector.multi_reduction <add>, %75, %cst_32 [1] : vector<12x20xf32> to vector<12xf32>
    %77 = vector.shape_cast %76 : vector<12xf32> to vector<12x1xf32>
    %78 = vector.broadcast %77 : vector<12x1xf32> to vector<12x20xf32>
    %79 = arith.divf %75, %78 : vector<12x20xf32>
    %80 = vector.extract_strided_slice %67 {offsets = [0, 0], sizes = [20, 16], strides = [1, 1]} : vector<20x64xf32> to vector<20x16xf32>
    %cst_33 = arith.constant dense<0.000000e+00> : vector<12x16xf32>
    %81 = tpu.matmul %79, %80, %cst_33 {dimension_numbers = #tpu.dot_dimension_numbers<[1], [0], [0], [1], [0, 0, 1, 1], [], []>, precision = #tpu.contract_precision<fp32>} : vector<12x20xf32>, vector<20x16xf32>, vector<12x16xf32> -> vector<12x16xf32>
    %82 = vector.extract_strided_slice %62 {offsets = [0, 16], sizes = [12, 16], strides = [1, 1]} : vector<12x64xf32> to vector<12x16xf32>
    %83 = vector.extract_strided_slice %66 {offsets = [0, 16], sizes = [20, 16], strides = [1, 1]} : vector<20x64xf32> to vector<20x16xf32>
    "tpu.trace_start"() <{level = 10 : i32, message = "md,nd->mn"}> : () -> ()
    %cst_34 = arith.constant dense<0.000000e+00> : vector<12x20xf32>
    %84 = tpu.matmul %82, %83, %cst_34 {dimension_numbers = #tpu.dot_dimension_numbers<[1], [1], [0], [0], [0, 0, 1, 0], [], []>, precision = #tpu.contract_precision<fp32>} : vector<12x16xf32>, vector<20x16xf32>, vector<12x20xf32> -> vector<12x20xf32>
    "tpu.trace_stop"() : () -> ()
    %cst_35 = arith.constant dense<0xFF800000> : vector<12xf32>
    %85 = vector.multi_reduction <maximumf>, %84, %cst_35 [1] : vector<12x20xf32> to vector<12xf32>
    %86 = vector.shape_cast %85 : vector<12xf32> to vector<12x1xf32>
    %87 = vector.broadcast %86 : vector<12x1xf32> to vector<12x20xf32>
    %88 = arith.subf %84, %87 : vector<12x20xf32>
    %89 = math.exp %88 : vector<12x20xf32>
    %cst_36 = arith.constant dense<0.000000e+00> : vector<12xf32>
    %90 = vector.multi_reduction <add>, %89, %cst_36 [1] : vector<12x20xf32> to vector<12xf32>
    %91 = vector.shape_cast %90 : vector<12xf32> to vector<12x1xf32>
    %92 = vector.broadcast %91 : vector<12x1xf32> to vector<12x20xf32>
    %93 = arith.divf %89, %92 : vector<12x20xf32>
    %94 = vector.extract_strided_slice %67 {offsets = [0, 16], sizes = [20, 16], strides = [1, 1]} : vector<20x64xf32> to vector<20x16xf32>
    %cst_37 = arith.constant dense<0.000000e+00> : vector<12x16xf32>
    %95 = tpu.matmul %93, %94, %cst_37 {dimension_numbers = #tpu.dot_dimension_numbers<[1], [0], [0], [1], [0, 0, 1, 1], [], []>, precision = #tpu.contract_precision<fp32>} : vector<12x20xf32>, vector<20x16xf32>, vector<12x16xf32> -> vector<12x16xf32>
    %96 = vector.extract_strided_slice %62 {offsets = [0, 32], sizes = [12, 16], strides = [1, 1]} : vector<12x64xf32> to vector<12x16xf32>
    %97 = vector.extract_strided_slice %66 {offsets = [0, 32], sizes = [20, 16], strides = [1, 1]} : vector<20x64xf32> to vector<20x16xf32>
    "tpu.trace_start"() <{level = 10 : i32, message = "md,nd->mn"}> : () -> ()
    %cst_38 = arith.constant dense<0.000000e+00> : vector<12x20xf32>
    %98 = tpu.matmul %96, %97, %cst_38 {dimension_numbers = #tpu.dot_dimension_numbers<[1], [1], [0], [0], [0, 0, 1, 0], [], []>, precision = #tpu.contract_precision<fp32>} : vector<12x16xf32>, vector<20x16xf32>, vector<12x20xf32> -> vector<12x20xf32>
    "tpu.trace_stop"() : () -> ()
    %cst_39 = arith.constant dense<0xFF800000> : vector<12xf32>
    %99 = vector.multi_reduction <maximumf>, %98, %cst_39 [1] : vector<12x20xf32> to vector<12xf32>
    %100 = vector.shape_cast %99 : vector<12xf32> to vector<12x1xf32>
    %101 = vector.broadcast %100 : vector<12x1xf32> to vector<12x20xf32>
    %102 = arith.subf %98, %101 : vector<12x20xf32>
    %103 = math.exp %102 : vector<12x20xf32>
    %cst_40 = arith.constant dense<0.000000e+00> : vector<12xf32>
    %104 = vector.multi_reduction <add>, %103, %cst_40 [1] : vector<12x20xf32> to vector<12xf32>
    %105 = vector.shape_cast %104 : vector<12xf32> to vector<12x1xf32>
    %106 = vector.broadcast %105 : vector<12x1xf32> to vector<12x20xf32>
    %107 = arith.divf %103, %106 : vector<12x20xf32>
    %108 = vector.extract_strided_slice %67 {offsets = [0, 32], sizes = [20, 16], strides = [1, 1]} : vector<20x64xf32> to vector<20x16xf32>
    %cst_41 = arith.constant dense<0.000000e+00> : vector<12x16xf32>
    %109 = tpu.matmul %107, %108, %cst_41 {dimension_numbers = #tpu.dot_dimension_numbers<[1], [0], [0], [1], [0, 0, 1, 1], [], []>, precision = #tpu.contract_precision<fp32>} : vector<12x20xf32>, vector<20x16xf32>, vector<12x16xf32> -> vector<12x16xf32>
    %110 = vector.extract_strided_slice %62 {offsets = [0, 48], sizes = [12, 16], strides = [1, 1]} : vector<12x64xf32> to vector<12x16xf32>
    %111 = vector.extract_strided_slice %66 {offsets = [0, 48], sizes = [20, 16], strides = [1, 1]} : vector<20x64xf32> to vector<20x16xf32>
    "tpu.trace_start"() <{level = 10 : i32, message = "md,nd->mn"}> : () -> ()
    %cst_42 = arith.constant dense<0.000000e+00> : vector<12x20xf32>
    %112 = tpu.matmul %110, %111, %cst_42 {dimension_numbers = #tpu.dot_dimension_numbers<[1], [1], [0], [0], [0, 0, 1, 0], [], []>, precision = #tpu.contract_precision<fp32>} : vector<12x16xf32>, vector<20x16xf32>, vector<12x20xf32> -> vector<12x20xf32>
    "tpu.trace_stop"() : () -> ()
    %cst_43 = arith.constant dense<0xFF800000> : vector<12xf32>
    %113 = vector.multi_reduction <maximumf>, %112, %cst_43 [1] : vector<12x20xf32> to vector<12xf32>
    %114 = vector.shape_cast %113 : vector<12xf32> to vector<12x1xf32>
    %115 = vector.broadcast %114 : vector<12x1xf32> to vector<12x20xf32>
    %116 = arith.subf %112, %115 : vector<12x20xf32>
    %117 = math.exp %116 : vector<12x20xf32>
    %cst_44 = arith.constant dense<0.000000e+00> : vector<12xf32>
    %118 = vector.multi_reduction <add>, %117, %cst_44 [1] : vector<12x20xf32> to vector<12xf32>
    %119 = vector.shape_cast %118 : vector<12xf32> to vector<12x1xf32>
    %120 = vector.broadcast %119 : vector<12x1xf32> to vector<12x20xf32>
    %121 = arith.divf %117, %120 : vector<12x20xf32>
    %122 = vector.extract_strided_slice %67 {offsets = [0, 48], sizes = [20, 16], strides = [1, 1]} : vector<20x64xf32> to vector<20x16xf32>
    %cst_45 = arith.constant dense<0.000000e+00> : vector<12x16xf32>
    %123 = tpu.matmul %121, %122, %cst_45 {dimension_numbers = #tpu.dot_dimension_numbers<[1], [0], [0], [1], [0, 0, 1, 1], [], []>, precision = #tpu.contract_precision<fp32>} : vector<12x20xf32>, vector<20x16xf32>, vector<12x16xf32> -> vector<12x16xf32>
    %124 = tpu.concatenate %81, %95, %109, %123 in 1 : vector<12x16xf32>, vector<12x16xf32>, vector<12x16xf32>, vector<12x16xf32> -> vector<12x64xf32>
    %c0_46 = arith.constant 0 : index
    %c0_47 = arith.constant 0 : index
    %c0_48 = arith.constant 0 : index
    %125 = vector.load %arg6[%c0_46, %c0_47, %c0_48] : memref<2x64x64xf32, #tpu.memory_space<vmem>>, vector<1x64x64xf32>
    %126 = vector.shape_cast %125 : vector<1x64x64xf32> to vector<64x64xf32>
    %cst_49 = arith.constant dense<0.000000e+00> : vector<12x64xf32>
    %127 = tpu.matmul %124, %126, %cst_49 {dimension_numbers = #tpu.dot_dimension_numbers<[1], [0], [0], [1], [0, 0, 1, 1], [], []>, precision = #tpu.contract_precision<fp32>} : vector<12x64xf32>, vector<64x64xf32>, vector<12x64xf32> -> vector<12x64xf32>
    %cst_50 = arith.constant dense<0.000000e+00> : vector<12xf32>
    %128 = vector.multi_reduction <add>, %127, %cst_50 [1] : vector<12x64xf32> to vector<12xf32>
    %129 = vector.shape_cast %128 : vector<12xf32> to vector<12x1xf32>
    %cst_51 = arith.constant 6.400000e+01 : f32
    %130 = vector.broadcast %cst_51 : f32 to vector<12x1xf32>
    %131 = arith.divf %129, %130 : vector<12x1xf32>
    %132 = vector.broadcast %131 : vector<12x1xf32> to vector<12x64xf32>
    %133 = arith.subf %127, %132 : vector<12x64xf32>
    %134 = arith.mulf %133, %133 : vector<12x64xf32>
    %cst_52 = arith.constant dense<0.000000e+00> : vector<12xf32>
    %135 = vector.multi_reduction <add>, %134, %cst_52 [1] : vector<12x64xf32> to vector<12xf32>
    %136 = vector.shape_cast %135 : vector<12xf32> to vector<12x1xf32>
    %cst_53 = arith.constant 6.400000e+01 : f32
    %137 = vector.broadcast %cst_53 : f32 to vector<12x1xf32>
    %138 = arith.divf %136, %137 : vector<12x1xf32>
    %139 = vector.broadcast %131 : vector<12x1xf32> to vector<12x64xf32>
    %140 = arith.subf %127, %139 : vector<12x64xf32>
    %cst_54 = arith.constant 9.99999974E-6 : f32
    %141 = vector.broadcast %cst_54 : f32 to vector<12x1xf32>
    %142 = arith.addf %138, %141 : vector<12x1xf32>
    %143 = math.rsqrt %142 : vector<12x1xf32>
    %144 = vector.broadcast %143 : vector<12x1xf32> to vector<12x64xf32>
    %145 = arith.mulf %140, %144 : vector<12x64xf32>
    %146 = vector.broadcast %10 : vector<1x64xf32> to vector<12x64xf32>
    %147 = arith.mulf %145, %146 : vector<12x64xf32>
    %148 = vector.broadcast %11 : vector<1x64xf32> to vector<12x64xf32>
    %149 = arith.addf %147, %148 : vector<12x64xf32>
    %150 = arith.addf %3, %149 : vector<12x64xf32>
    %cst_55 = arith.constant dense<0.000000e+00> : vector<12xf32>
    %151 = vector.multi_reduction <add>, %150, %cst_55 [1] : vector<12x64xf32> to vector<12xf32>
    %152 = vector.shape_cast %151 : vector<12xf32> to vector<12x1xf32>
    %cst_56 = arith.constant 6.400000e+01 : f32
    %153 = vector.broadcast %cst_56 : f32 to vector<12x1xf32>
    %154 = arith.divf %152, %153 : vector<12x1xf32>
    %155 = vector.broadcast %154 : vector<12x1xf32> to vector<12x64xf32>
    %156 = arith.subf %150, %155 : vector<12x64xf32>
    %157 = arith.mulf %156, %156 : vector<12x64xf32>
    %cst_57 = arith.constant dense<0.000000e+00> : vector<12xf32>
    %158 = vector.multi_reduction <add>, %157, %cst_57 [1] : vector<12x64xf32> to vector<12xf32>
    %159 = vector.shape_cast %158 : vector<12xf32> to vector<12x1xf32>
    %cst_58 = arith.constant 6.400000e+01 : f32
    %160 = vector.broadcast %cst_58 : f32 to vector<12x1xf32>
    %161 = arith.divf %159, %160 : vector<12x1xf32>
    %162 = vector.broadcast %154 : vector<12x1xf32> to vector<12x64xf32>
    %163 = arith.subf %150, %162 : vector<12x64xf32>
    %cst_59 = arith.constant 9.99999974E-6 : f32
    %164 = vector.broadcast %cst_59 : f32 to vector<12x1xf32>
    %165 = arith.addf %161, %164 : vector<12x1xf32>
    %166 = math.rsqrt %165 : vector<12x1xf32>
    %167 = vector.broadcast %166 : vector<12x1xf32> to vector<12x64xf32>
    %168 = arith.mulf %163, %167 : vector<12x64xf32>
    %169 = vector.broadcast %12 : vector<1x64xf32> to vector<12x64xf32>
    %170 = arith.mulf %168, %169 : vector<12x64xf32>
    %c0_60 = arith.constant 0 : index
    %c0_61 = arith.constant 0 : index
    %c0_62 = arith.constant 0 : index
    %171 = vector.load %arg7[%c0_60, %c0_61, %c0_62] : memref<2x64x256xf32, #tpu.memory_space<vmem>>, vector<1x64x256xf32>
    %172 = vector.shape_cast %171 : vector<1x64x256xf32> to vector<64x256xf32>
    %cst_63 = arith.constant dense<0.000000e+00> : vector<12x256xf32>
    %173 = tpu.matmul %170, %172, %cst_63 {dimension_numbers = #tpu.dot_dimension_numbers<[1], [0], [0], [1], [0, 0, 1, 1], [], []>, precision = #tpu.contract_precision<fp32>} : vector<12x64xf32>, vector<64x256xf32>, vector<12x256xf32> -> vector<12x256xf32>
    %cst_64 = arith.constant 5.000000e-01 : f32
    %174 = vector.broadcast %cst_64 : f32 to vector<12x256xf32>
    %175 = arith.mulf %174, %173 : vector<12x256xf32>
    %cst_65 = arith.constant 4.471500e-02 : f32
    %176 = vector.broadcast %cst_65 : f32 to vector<12x256xf32>
    %177 = arith.mulf %176, %173 : vector<12x256xf32>
    %178 = arith.mulf %177, %173 : vector<12x256xf32>
    %179 = arith.mulf %178, %173 : vector<12x256xf32>
    %180 = arith.addf %173, %179 : vector<12x256xf32>
    %cst_66 = arith.constant 0.797884583 : f32
    %181 = vector.broadcast %cst_66 : f32 to vector<12x256xf32>
    %182 = arith.mulf %181, %180 : vector<12x256xf32>
    %183 = math.tanh %182 : vector<12x256xf32>
    %cst_67 = arith.constant 1.000000e+00 : f32
    %184 = vector.broadcast %cst_67 : f32 to vector<12x256xf32>
    %185 = arith.addf %184, %183 : vector<12x256xf32>
    %186 = arith.mulf %175, %185 : vector<12x256xf32>
    %c0_68 = arith.constant 0 : index
    %c0_69 = arith.constant 0 : index
    %c0_70 = arith.constant 0 : index
    %187 = vector.load %arg8[%c0_68, %c0_69, %c0_70] : memref<2x1x256xf32, #tpu.memory_space<vmem>>, vector<1x1x256xf32>
    %188 = vector.shape_cast %187 : vector<1x1x256xf32> to vector<1x256xf32>
    %cst_71 = arith.constant dense<0.000000e+00> : vector<12xf32>
    %189 = vector.multi_reduction <add>, %186, %cst_71 [1] : vector<12x256xf32> to vector<12xf32>
    %190 = vector.shape_cast %189 : vector<12xf32> to vector<12x1xf32>
    %cst_72 = arith.constant 2.560000e+02 : f32
    %191 = vector.broadcast %cst_72 : f32 to vector<12x1xf32>
    %192 = arith.divf %190, %191 : vector<12x1xf32>
    %193 = vector.broadcast %192 : vector<12x1xf32> to vector<12x256xf32>
    %194 = arith.subf %186, %193 : vector<12x256xf32>
    %195 = arith.mulf %194, %194 : vector<12x256xf32>
    %cst_73 = arith.constant dense<0.000000e+00> : vector<12xf32>
    %196 = vector.multi_reduction <add>, %195, %cst_73 [1] : vector<12x256xf32> to vector<12xf32>
    %197 = vector.shape_cast %196 : vector<12xf32> to vector<12x1xf32>
    %cst_74 = arith.constant 2.560000e+02 : f32
    %198 = vector.broadcast %cst_74 : f32 to vector<12x1xf32>
    %199 = arith.divf %197, %198 : vector<12x1xf32>
    %200 = vector.broadcast %192 : vector<12x1xf32> to vector<12x256xf32>
    %201 = arith.subf %186, %200 : vector<12x256xf32>
    %cst_75 = arith.constant 9.99999974E-6 : f32
    %202 = vector.broadcast %cst_75 : f32 to vector<12x1xf32>
    %203 = arith.addf %199, %202 : vector<12x1xf32>
    %204 = math.rsqrt %203 : vector<12x1xf32>
    %205 = vector.broadcast %204 : vector<12x1xf32> to vector<12x256xf32>
    %206 = arith.mulf %201, %205 : vector<12x256xf32>
    %207 = vector.broadcast %188 : vector<1x256xf32> to vector<12x256xf32>
    %208 = arith.mulf %206, %207 : vector<12x256xf32>
    %c0_76 = arith.constant 0 : index
    %c0_77 = arith.constant 0 : index
    %c0_78 = arith.constant 0 : index
    %209 = vector.load %arg9[%c0_76, %c0_77, %c0_78] : memref<2x256x64xf32, #tpu.memory_space<vmem>>, vector<1x256x64xf32>
    %210 = vector.shape_cast %209 : vector<1x256x64xf32> to vector<256x64xf32>
    %cst_79 = arith.constant dense<0.000000e+00> : vector<12x64xf32>
    %211 = tpu.matmul %208, %210, %cst_79 {dimension_numbers = #tpu.dot_dimension_numbers<[1], [0], [0], [1], [0, 0, 1, 1], [], []>, precision = #tpu.contract_precision<fp32>} : vector<12x256xf32>, vector<256x64xf32>, vector<12x64xf32> -> vector<12x64xf32>
    %212 = arith.addf %150, %211 : vector<12x64xf32>
    %c1 = arith.constant 1 : index
    %c0_80 = arith.constant 0 : index
    %c0_81 = arith.constant 0 : index
    %213 = vector.load %arg3[%c1, %c0_80, %c0_81] : memref<2x7x64xf32, #tpu.memory_space<vmem>>, vector<1x7x64xf32>
    %214 = vector.shape_cast %213 : vector<1x7x64xf32> to vector<7x64xf32>
    %215 = vector.extract_strided_slice %214 {offsets = [0, 0], sizes = [1, 64], strides = [1, 1]} : vector<7x64xf32> to vector<1x64xf32>
    %216 = vector.extract_strided_slice %214 {offsets = [1, 0], sizes = [1, 64], strides = [1, 1]} : vector<7x64xf32> to vector<1x64xf32>
    %217 = vector.extract_strided_slice %214 {offsets = [2, 0], sizes = [1, 64], strides = [1, 1]} : vector<7x64xf32> to vector<1x64xf32>
    %218 = vector.extract_strided_slice %214 {offsets = [3, 0], sizes = [1, 64], strides = [1, 1]} : vector<7x64xf32> to vector<1x64xf32>
    %219 = vector.extract_strided_slice %214 {offsets = [4, 0], sizes = [1, 64], strides = [1, 1]} : vector<7x64xf32> to vector<1x64xf32>
    %220 = vector.extract_strided_slice %214 {offsets = [5, 0], sizes = [1, 64], strides = [1, 1]} : vector<7x64xf32> to vector<1x64xf32>
    %221 = vector.extract_strided_slice %214 {offsets = [6, 0], sizes = [1, 64], strides = [1, 1]} : vector<7x64xf32> to vector<1x64xf32>
    %cst_82 = arith.constant dense<0.000000e+00> : vector<8xf32>
    %222 = vector.multi_reduction <add>, %1, %cst_82 [1] : vector<8x64xf32> to vector<8xf32>
    %223 = vector.shape_cast %222 : vector<8xf32> to vector<8x1xf32>
    %cst_83 = arith.constant 6.400000e+01 : f32
    %224 = vector.broadcast %cst_83 : f32 to vector<8x1xf32>
    %225 = arith.divf %223, %224 : vector<8x1xf32>
    %226 = vector.broadcast %225 : vector<8x1xf32> to vector<8x64xf32>
    %227 = arith.subf %1, %226 : vector<8x64xf32>
    %228 = arith.mulf %227, %227 : vector<8x64xf32>
    %cst_84 = arith.constant dense<0.000000e+00> : vector<8xf32>
    %229 = vector.multi_reduction <add>, %228, %cst_84 [1] : vector<8x64xf32> to vector<8xf32>
    %230 = vector.shape_cast %229 : vector<8xf32> to vector<8x1xf32>
    %cst_85 = arith.constant 6.400000e+01 : f32
    %231 = vector.broadcast %cst_85 : f32 to vector<8x1xf32>
    %232 = arith.divf %230, %231 : vector<8x1xf32>
    %233 = vector.broadcast %225 : vector<8x1xf32> to vector<8x64xf32>
    %234 = arith.subf %1, %233 : vector<8x64xf32>
    %cst_86 = arith.constant 9.99999974E-6 : f32
    %235 = vector.broadcast %cst_86 : f32 to vector<8x1xf32>
    %236 = arith.addf %232, %235 : vector<8x1xf32>
    %237 = math.rsqrt %236 : vector<8x1xf32>
    %238 = vector.broadcast %237 : vector<8x1xf32> to vector<8x64xf32>
    %239 = arith.mulf %234, %238 : vector<8x64xf32>
    %240 = vector.broadcast %215 : vector<1x64xf32> to vector<8x64xf32>
    %241 = arith.mulf %239, %240 : vector<8x64xf32>
    %242 = vector.broadcast %216 : vector<1x64xf32> to vector<8x64xf32>
    %243 = arith.addf %241, %242 : vector<8x64xf32>
    %cst_87 = arith.constant dense<0.000000e+00> : vector<12xf32>
    %244 = vector.multi_reduction <add>, %212, %cst_87 [1] : vector<12x64xf32> to vector<12xf32>
    %245 = vector.shape_cast %244 : vector<12xf32> to vector<12x1xf32>
    %cst_88 = arith.constant 6.400000e+01 : f32
    %246 = vector.broadcast %cst_88 : f32 to vector<12x1xf32>
    %247 = arith.divf %245, %246 : vector<12x1xf32>
    %248 = vector.broadcast %247 : vector<12x1xf32> to vector<12x64xf32>
    %249 = arith.subf %212, %248 : vector<12x64xf32>
    %250 = arith.mulf %249, %249 : vector<12x64xf32>
    %cst_89 = arith.constant dense<0.000000e+00> : vector<12xf32>
    %251 = vector.multi_reduction <add>, %250, %cst_89 [1] : vector<12x64xf32> to vector<12xf32>
    %252 = vector.shape_cast %251 : vector<12xf32> to vector<12x1xf32>
    %cst_90 = arith.constant 6.400000e+01 : f32
    %253 = vector.broadcast %cst_90 : f32 to vector<12x1xf32>
    %254 = arith.divf %252, %253 : vector<12x1xf32>
    %255 = vector.broadcast %247 : vector<12x1xf32> to vector<12x64xf32>
    %256 = arith.subf %212, %255 : vector<12x64xf32>
    %cst_91 = arith.constant 9.99999974E-6 : f32
    %257 = vector.broadcast %cst_91 : f32 to vector<12x1xf32>
    %258 = arith.addf %254, %257 : vector<12x1xf32>
    %259 = math.rsqrt %258 : vector<12x1xf32>
    %260 = vector.broadcast %259 : vector<12x1xf32> to vector<12x64xf32>
    %261 = arith.mulf %256, %260 : vector<12x64xf32>
    %262 = vector.broadcast %217 : vector<1x64xf32> to vector<12x64xf32>
    %263 = arith.mulf %261, %262 : vector<12x64xf32>
    %264 = vector.broadcast %218 : vector<1x64xf32> to vector<12x64xf32>
    %265 = arith.addf %263, %264 : vector<12x64xf32>
    %c0_92 = arith.constant 0 : index
    %c0_93 = arith.constant 0 : index
    %266 = vector.load %arg11[%c0_92, %c0_93] : memref<20x64xf32, #tpu.memory_space<vmem>>, vector<8x64xf32>
    tpu.vector_store %arg11[%c0_92, %c0_93], %243 {strides = array<i32>} : memref<20x64xf32, #tpu.memory_space<vmem>>, vector<8x64xf32>,
    %c8_94 = arith.constant 8 : index
    %c0_95 = arith.constant 0 : index
    %267 = vector.load %arg11[%c8_94, %c0_95] : memref<20x64xf32, #tpu.memory_space<vmem>>, vector<12x64xf32>
    tpu.vector_store %arg11[%c8_94, %c0_95], %265 {strides = array<i32>} : memref<20x64xf32, #tpu.memory_space<vmem>>, vector<12x64xf32>,
    %c0_96 = arith.constant 0 : index
    %c0_97 = arith.constant 0 : index
    %268 = vector.load %arg11[%c0_96, %c0_97] : memref<20x64xf32, #tpu.memory_space<vmem>>, vector<20x64xf32>
    %c1_98 = arith.constant 1 : index
    %c0_99 = arith.constant 0 : index
    %c0_100 = arith.constant 0 : index
    %269 = vector.load %arg4[%c1_98, %c0_99, %c0_100] : memref<2x64x64xf32, #tpu.memory_space<vmem>>, vector<1x64x64xf32>
    %270 = vector.shape_cast %269 : vector<1x64x64xf32> to vector<64x64xf32>
    %cst_101 = arith.constant dense<0.000000e+00> : vector<12x64xf32>
    %271 = tpu.matmul %265, %270, %cst_101 {dimension_numbers = #tpu.dot_dimension_numbers<[1], [0], [0], [1], [0, 0, 1, 1], [], []>, precision = #tpu.contract_precision<fp32>} : vector<12x64xf32>, vector<64x64xf32>, vector<12x64xf32> -> vector<12x64xf32>
    %c1_102 = arith.constant 1 : index
    %c0_103 = arith.constant 0 : index
    %c0_104 = arith.constant 0 : index
    %272 = vector.load %arg5[%c1_102, %c0_103, %c0_104] : memref<2x64x128xf32, #tpu.memory_space<vmem>>, vector<1x64x128xf32>
    %273 = vector.shape_cast %272 : vector<1x64x128xf32> to vector<64x128xf32>
    %cst_105 = arith.constant dense<0.000000e+00> : vector<20x128xf32>
    %274 = tpu.matmul %268, %273, %cst_105 {dimension_numbers = #tpu.dot_dimension_numbers<[1], [0], [0], [1], [0, 0, 1, 1], [], []>, precision = #tpu.contract_precision<fp32>} : vector<20x64xf32>, vector<64x128xf32>, vector<20x128xf32> -> vector<20x128xf32>
    %275 = vector.extract_strided_slice %274 {offsets = [0, 0], sizes = [20, 64], strides = [1, 1]} : vector<20x128xf32> to vector<20x64xf32>
    %276 = vector.extract_strided_slice %274 {offsets = [0, 64], sizes = [20, 64], strides = [1, 1]} : vector<20x128xf32> to vector<20x64xf32>
    %277 = vector.extract_strided_slice %271 {offsets = [0, 0], sizes = [12, 16], strides = [1, 1]} : vector<12x64xf32> to vector<12x16xf32>
    %278 = vector.extract_strided_slice %275 {offsets = [0, 0], sizes = [20, 16], strides = [1, 1]} : vector<20x64xf32> to vector<20x16xf32>
    "tpu.trace_start"() <{level = 10 : i32, message = "md,nd->mn"}> : () -> ()
    %cst_106 = arith.constant dense<0.000000e+00> : vector<12x20xf32>
    %279 = tpu.matmul %277, %278, %cst_106 {dimension_numbers = #tpu.dot_dimension_numbers<[1], [1], [0], [0], [0, 0, 1, 0], [], []>, precision = #tpu.contract_precision<fp32>} : vector<12x16xf32>, vector<20x16xf32>, vector<12x20xf32> -> vector<12x20xf32>
    "tpu.trace_stop"() : () -> ()
    %cst_107 = arith.constant dense<0xFF800000> : vector<12xf32>
    %280 = vector.multi_reduction <maximumf>, %279, %cst_107 [1] : vector<12x20xf32> to vector<12xf32>
    %281 = vector.shape_cast %280 : vector<12xf32> to vector<12x1xf32>
    %282 = vector.broadcast %281 : vector<12x1xf32> to vector<12x20xf32>
    %283 = arith.subf %279, %282 : vector<12x20xf32>
    %284 = math.exp %283 : vector<12x20xf32>
    %cst_108 = arith.constant dense<0.000000e+00> : vector<12xf32>
    %285 = vector.multi_reduction <add>, %284, %cst_108 [1] : vector<12x20xf32> to vector<12xf32>
    %286 = vector.shape_cast %285 : vector<12xf32> to vector<12x1xf32>
    %287 = vector.broadcast %286 : vector<12x1xf32> to vector<12x20xf32>
    %288 = arith.divf %284, %287 : vector<12x20xf32>
    %289 = vector.extract_strided_slice %276 {offsets = [0, 0], sizes = [20, 16], strides = [1, 1]} : vector<20x64xf32> to vector<20x16xf32>
    %cst_109 = arith.constant dense<0.000000e+00> : vector<12x16xf32>
    %290 = tpu.matmul %288, %289, %cst_109 {dimension_numbers = #tpu.dot_dimension_numbers<[1], [0], [0], [1], [0, 0, 1, 1], [], []>, precision = #tpu.contract_precision<fp32>} : vector<12x20xf32>, vector<20x16xf32>, vector<12x16xf32> -> vector<12x16xf32>
    %291 = vector.extract_strided_slice %271 {offsets = [0, 16], sizes = [12, 16], strides = [1, 1]} : vector<12x64xf32> to vector<12x16xf32>
    %292 = vector.extract_strided_slice %275 {offsets = [0, 16], sizes = [20, 16], strides = [1, 1]} : vector<20x64xf32> to vector<20x16xf32>
    "tpu.trace_start"() <{level = 10 : i32, message = "md,nd->mn"}> : () -> ()
    %cst_110 = arith.constant dense<0.000000e+00> : vector<12x20xf32>
    %293 = tpu.matmul %291, %292, %cst_110 {dimension_numbers = #tpu.dot_dimension_numbers<[1], [1], [0], [0], [0, 0, 1, 0], [], []>, precision = #tpu.contract_precision<fp32>} : vector<12x16xf32>, vector<20x16xf32>, vector<12x20xf32> -> vector<12x20xf32>
    "tpu.trace_stop"() : () -> ()
    %cst_111 = arith.constant dense<0xFF800000> : vector<12xf32>
    %294 = vector.multi_reduction <maximumf>, %293, %cst_111 [1] : vector<12x20xf32> to vector<12xf32>
    %295 = vector.shape_cast %294 : vector<12xf32> to vector<12x1xf32>
    %296 = vector.broadcast %295 : vector<12x1xf32> to vector<12x20xf32>
    %297 = arith.subf %293, %296 : vector<12x20xf32>
    %298 = math.exp %297 : vector<12x20xf32>
    %cst_112 = arith.constant dense<0.000000e+00> : vector<12xf32>
    %299 = vector.multi_reduction <add>, %298, %cst_112 [1] : vector<12x20xf32> to vector<12xf32>
    %300 = vector.shape_cast %299 : vector<12xf32> to vector<12x1xf32>
    %301 = vector.broadcast %300 : vector<12x1xf32> to vector<12x20xf32>
    %302 = arith.divf %298, %301 : vector<12x20xf32>
    %303 = vector.extract_strided_slice %276 {offsets = [0, 16], sizes = [20, 16], strides = [1, 1]} : vector<20x64xf32> to vector<20x16xf32>
    %cst_113 = arith.constant dense<0.000000e+00> : vector<12x16xf32>
    %304 = tpu.matmul %302, %303, %cst_113 {dimension_numbers = #tpu.dot_dimension_numbers<[1], [0], [0], [1], [0, 0, 1, 1], [], []>, precision = #tpu.contract_precision<fp32>} : vector<12x20xf32>, vector<20x16xf32>, vector<12x16xf32> -> vector<12x16xf32>
    %305 = vector.extract_strided_slice %271 {offsets = [0, 32], sizes = [12, 16], strides = [1, 1]} : vector<12x64xf32> to vector<12x16xf32>
    %306 = vector.extract_strided_slice %275 {offsets = [0, 32], sizes = [20, 16], strides = [1, 1]} : vector<20x64xf32> to vector<20x16xf32>
    "tpu.trace_start"() <{level = 10 : i32, message = "md,nd->mn"}> : () -> ()
    %cst_114 = arith.constant dense<0.000000e+00> : vector<12x20xf32>
    %307 = tpu.matmul %305, %306, %cst_114 {dimension_numbers = #tpu.dot_dimension_numbers<[1], [1], [0], [0], [0, 0, 1, 0], [], []>, precision = #tpu.contract_precision<fp32>} : vector<12x16xf32>, vector<20x16xf32>, vector<12x20xf32> -> vector<12x20xf32>
    "tpu.trace_stop"() : () -> ()
    %cst_115 = arith.constant dense<0xFF800000> : vector<12xf32>
    %308 = vector.multi_reduction <maximumf>, %307, %cst_115 [1] : vector<12x20xf32> to vector<12xf32>
    %309 = vector.shape_cast %308 : vector<12xf32> to vector<12x1xf32>
    %310 = vector.broadcast %309 : vector<12x1xf32> to vector<12x20xf32>
    %311 = arith.subf %307, %310 : vector<12x20xf32>
    %312 = math.exp %311 : vector<12x20xf32>
    %cst_116 = arith.constant dense<0.000000e+00> : vector<12xf32>
    %313 = vector.multi_reduction <add>, %312, %cst_116 [1] : vector<12x20xf32> to vector<12xf32>
    %314 = vector.shape_cast %313 : vector<12xf32> to vector<12x1xf32>
    %315 = vector.broadcast %314 : vector<12x1xf32> to vector<12x20xf32>
    %316 = arith.divf %312, %315 : vector<12x20xf32>
    %317 = vector.extract_strided_slice %276 {offsets = [0, 32], sizes = [20, 16], strides = [1, 1]} : vector<20x64xf32> to vector<20x16xf32>
    %cst_117 = arith.constant dense<0.000000e+00> : vector<12x16xf32>
    %318 = tpu.matmul %316, %317, %cst_117 {dimension_numbers = #tpu.dot_dimension_numbers<[1], [0], [0], [1], [0, 0, 1, 1], [], []>, precision = #tpu.contract_precision<fp32>} : vector<12x20xf32>, vector<20x16xf32>, vector<12x16xf32> -> vector<12x16xf32>
    %319 = vector.extract_strided_slice %271 {offsets = [0, 48], sizes = [12, 16], strides = [1, 1]} : vector<12x64xf32> to vector<12x16xf32>
    %320 = vector.extract_strided_slice %275 {offsets = [0, 48], sizes = [20, 16], strides = [1, 1]} : vector<20x64xf32> to vector<20x16xf32>
    "tpu.trace_start"() <{level = 10 : i32, message = "md,nd->mn"}> : () -> ()
    %cst_118 = arith.constant dense<0.000000e+00> : vector<12x20xf32>
    %321 = tpu.matmul %319, %320, %cst_118 {dimension_numbers = #tpu.dot_dimension_numbers<[1], [1], [0], [0], [0, 0, 1, 0], [], []>, precision = #tpu.contract_precision<fp32>} : vector<12x16xf32>, vector<20x16xf32>, vector<12x20xf32> -> vector<12x20xf32>
    "tpu.trace_stop"() : () -> ()
    %cst_119 = arith.constant dense<0xFF800000> : vector<12xf32>
    %322 = vector.multi_reduction <maximumf>, %321, %cst_119 [1] : vector<12x20xf32> to vector<12xf32>
    %323 = vector.shape_cast %322 : vector<12xf32> to vector<12x1xf32>
    %324 = vector.broadcast %323 : vector<12x1xf32> to vector<12x20xf32>
    %325 = arith.subf %321, %324 : vector<12x20xf32>
    %326 = math.exp %325 : vector<12x20xf32>
    %cst_120 = arith.constant dense<0.000000e+00> : vector<12xf32>
    %327 = vector.multi_reduction <add>, %326, %cst_120 [1] : vector<12x20xf32> to vector<12xf32>
    %328 = vector.shape_cast %327 : vector<12xf32> to vector<12x1xf32>
    %329 = vector.broadcast %328 : vector<12x1xf32> to vector<12x20xf32>
    %330 = arith.divf %326, %329 : vector<12x20xf32>
    %331 = vector.extract_strided_slice %276 {offsets = [0, 48], sizes = [20, 16], strides = [1, 1]} : vector<20x64xf32> to vector<20x16xf32>
    %cst_121 = arith.constant dense<0.000000e+00> : vector<12x16xf32>
    %332 = tpu.matmul %330, %331, %cst_121 {dimension_numbers = #tpu.dot_dimension_numbers<[1], [0], [0], [1], [0, 0, 1, 1], [], []>, precision = #tpu.contract_precision<fp32>} : vector<12x20xf32>, vector<20x16xf32>, vector<12x16xf32> -> vector<12x16xf32>
    %333 = tpu.concatenate %290, %304, %318, %332 in 1 : vector<12x16xf32>, vector<12x16xf32>, vector<12x16xf32>, vector<12x16xf32> -> vector<12x64xf32>
    %c1_122 = arith.constant 1 : index
    %c0_123 = arith.constant 0 : index
    %c0_124 = arith.constant 0 : index
    %334 = vector.load %arg6[%c1_122, %c0_123, %c0_124] : memref<2x64x64xf32, #tpu.memory_space<vmem>>, vector<1x64x64xf32>
    %335 = vector.shape_cast %334 : vector<1x64x64xf32> to vector<64x64xf32>
    %cst_125 = arith.constant dense<0.000000e+00> : vector<12x64xf32>
    %336 = tpu.matmul %333, %335, %cst_125 {dimension_numbers = #tpu.dot_dimension_numbers<[1], [0], [0], [1], [0, 0, 1, 1], [], []>, precision = #tpu.contract_precision<fp32>} : vector<12x64xf32>, vector<64x64xf32>, vector<12x64xf32> -> vector<12x64xf32>
    %cst_126 = arith.constant dense<0.000000e+00> : vector<12xf32>
    %337 = vector.multi_reduction <add>, %336, %cst_126 [1] : vector<12x64xf32> to vector<12xf32>
    %338 = vector.shape_cast %337 : vector<12xf32> to vector<12x1xf32>
    %cst_127 = arith.constant 6.400000e+01 : f32
    %339 = vector.broadcast %cst_127 : f32 to vector<12x1xf32>
    %340 = arith.divf %338, %339 : vector<12x1xf32>
    %341 = vector.broadcast %340 : vector<12x1xf32> to vector<12x64xf32>
    %342 = arith.subf %336, %341 : vector<12x64xf32>
    %343 = arith.mulf %342, %342 : vector<12x64xf32>
    %cst_128 = arith.constant dense<0.000000e+00> : vector<12xf32>
    %344 = vector.multi_reduction <add>, %343, %cst_128 [1] : vector<12x64xf32> to vector<12xf32>
    %345 = vector.shape_cast %344 : vector<12xf32> to vector<12x1xf32>
    %cst_129 = arith.constant 6.400000e+01 : f32
    %346 = vector.broadcast %cst_129 : f32 to vector<12x1xf32>
    %347 = arith.divf %345, %346 : vector<12x1xf32>
    %348 = vector.broadcast %340 : vector<12x1xf32> to vector<12x64xf32>
    %349 = arith.subf %336, %348 : vector<12x64xf32>
    %cst_130 = arith.constant 9.99999974E-6 : f32
    %350 = vector.broadcast %cst_130 : f32 to vector<12x1xf32>
    %351 = arith.addf %347, %350 : vector<12x1xf32>
    %352 = math.rsqrt %351 : vector<12x1xf32>
    %353 = vector.broadcast %352 : vector<12x1xf32> to vector<12x64xf32>
    %354 = arith.mulf %349, %353 : vector<12x64xf32>
    %355 = vector.broadcast %219 : vector<1x64xf32> to vector<12x64xf32>
    %356 = arith.mulf %354, %355 : vector<12x64xf32>
    %357 = vector.broadcast %220 : vector<1x64xf32> to vector<12x64xf32>
    %358 = arith.addf %356, %357 : vector<12x64xf32>
    %359 = arith.addf %212, %358 : vector<12x64xf32>
    %cst_131 = arith.constant dense<0.000000e+00> : vector<12xf32>
    %360 = vector.multi_reduction <add>, %359, %cst_131 [1] : vector<12x64xf32> to vector<12xf32>
    %361 = vector.shape_cast %360 : vector<12xf32> to vector<12x1xf32>
    %cst_132 = arith.constant 6.400000e+01 : f32
    %362 = vector.broadcast %cst_132 : f32 to vector<12x1xf32>
    %363 = arith.divf %361, %362 : vector<12x1xf32>
    %364 = vector.broadcast %363 : vector<12x1xf32> to vector<12x64xf32>
    %365 = arith.subf %359, %364 : vector<12x64xf32>
    %366 = arith.mulf %365, %365 : vector<12x64xf32>
    %cst_133 = arith.constant dense<0.000000e+00> : vector<12xf32>
    %367 = vector.multi_reduction <add>, %366, %cst_133 [1] : vector<12x64xf32> to vector<12xf32>
    %368 = vector.shape_cast %367 : vector<12xf32> to vector<12x1xf32>
    %cst_134 = arith.constant 6.400000e+01 : f32
    %369 = vector.broadcast %cst_134 : f32 to vector<12x1xf32>
    %370 = arith.divf %368, %369 : vector<12x1xf32>
    %371 = vector.broadcast %363 : vector<12x1xf32> to vector<12x64xf32>
    %372 = arith.subf %359, %371 : vector<12x64xf32>
    %cst_135 = arith.constant 9.99999974E-6 : f32
    %373 = vector.broadcast %cst_135 : f32 to vector<12x1xf32>
    %374 = arith.addf %370, %373 : vector<12x1xf32>
    %375 = math.rsqrt %374 : vector<12x1xf32>
    %376 = vector.broadcast %375 : vector<12x1xf32> to vector<12x64xf32>
    %377 = arith.mulf %372, %376 : vector<12x64xf32>
    %378 = vector.broadcast %221 : vector<1x64xf32> to vector<12x64xf32>
    %379 = arith.mulf %377, %378 : vector<12x64xf32>
    %c1_136 = arith.constant 1 : index
    %c0_137 = arith.constant 0 : index
    %c0_138 = arith.constant 0 : index
    %380 = vector.load %arg7[%c1_136, %c0_137, %c0_138] : memref<2x64x256xf32, #tpu.memory_space<vmem>>, vector<1x64x256xf32>
    %381 = vector.shape_cast %380 : vector<1x64x256xf32> to vector<64x256xf32>
    %cst_139 = arith.constant dense<0.000000e+00> : vector<12x256xf32>
    %382 = tpu.matmul %379, %381, %cst_139 {dimension_numbers = #tpu.dot_dimension_numbers<[1], [0], [0], [1], [0, 0, 1, 1], [], []>, precision = #tpu.contract_precision<fp32>} : vector<12x64xf32>, vector<64x256xf32>, vector<12x256xf32> -> vector<12x256xf32>
    %cst_140 = arith.constant 5.000000e-01 : f32
    %383 = vector.broadcast %cst_140 : f32 to vector<12x256xf32>
    %384 = arith.mulf %383, %382 : vector<12x256xf32>
    %cst_141 = arith.constant 4.471500e-02 : f32
    %385 = vector.broadcast %cst_141 : f32 to vector<12x256xf32>
    %386 = arith.mulf %385, %382 : vector<12x256xf32>
    %387 = arith.mulf %386, %382 : vector<12x256xf32>
    %388 = arith.mulf %387, %382 : vector<12x256xf32>
    %389 = arith.addf %382, %388 : vector<12x256xf32>
    %cst_142 = arith.constant 0.797884583 : f32
    %390 = vector.broadcast %cst_142 : f32 to vector<12x256xf32>
    %391 = arith.mulf %390, %389 : vector<12x256xf32>
    %392 = math.tanh %391 : vector<12x256xf32>
    %cst_143 = arith.constant 1.000000e+00 : f32
    %393 = vector.broadcast %cst_143 : f32 to vector<12x256xf32>
    %394 = arith.addf %393, %392 : vector<12x256xf32>
    %395 = arith.mulf %384, %394 : vector<12x256xf32>
    %c1_144 = arith.constant 1 : index
    %c0_145 = arith.constant 0 : index
    %c0_146 = arith.constant 0 : index
    %396 = vector.load %arg8[%c1_144, %c0_145, %c0_146] : memref<2x1x256xf32, #tpu.memory_space<vmem>>, vector<1x1x256xf32>
    %397 = vector.shape_cast %396 : vector<1x1x256xf32> to vector<1x256xf32>
    %cst_147 = arith.constant dense<0.000000e+00> : vector<12xf32>
    %398 = vector.multi_reduction <add>, %395, %cst_147 [1] : vector<12x256xf32> to vector<12xf32>
    %399 = vector.shape_cast %398 : vector<12xf32> to vector<12x1xf32>
    %cst_148 = arith.constant 2.560000e+02 : f32
    %400 = vector.broadcast %cst_148 : f32 to vector<12x1xf32>
    %401 = arith.divf %399, %400 : vector<12x1xf32>
    %402 = vector.broadcast %401 : vector<12x1xf32> to vector<12x256xf32>
    %403 = arith.subf %395, %402 : vector<12x256xf32>
    %404 = arith.mulf %403, %403 : vector<12x256xf32>
    %cst_149 = arith.constant dense<0.000000e+00> : vector<12xf32>
    %405 = vector.multi_reduction <add>, %404, %cst_149 [1] : vector<12x256xf32> to vector<12xf32>
    %406 = vector.shape_cast %405 : vector<12xf32> to vector<12x1xf32>
    %cst_150 = arith.constant 2.560000e+02 : f32
    %407 = vector.broadcast %cst_150 : f32 to vector<12x1xf32>
    %408 = arith.divf %406, %407 : vector<12x1xf32>
    %409 = vector.broadcast %401 : vector<12x1xf32> to vector<12x256xf32>
    %410 = arith.subf %395, %409 : vector<12x256xf32>
    %cst_151 = arith.constant 9.99999974E-6 : f32
    %411 = vector.broadcast %cst_151 : f32 to vector<12x1xf32>
    %412 = arith.addf %408, %411 : vector<12x1xf32>
    %413 = math.rsqrt %412 : vector<12x1xf32>
    %414 = vector.broadcast %413 : vector<12x1xf32> to vector<12x256xf32>
    %415 = arith.mulf %410, %414 : vector<12x256xf32>
    %416 = vector.broadcast %397 : vector<1x256xf32> to vector<12x256xf32>
    %417 = arith.mulf %415, %416 : vector<12x256xf32>
    %c1_152 = arith.constant 1 : index
    %c0_153 = arith.constant 0 : index
    %c0_154 = arith.constant 0 : index
    %418 = vector.load %arg9[%c1_152, %c0_153, %c0_154] : memref<2x256x64xf32, #tpu.memory_space<vmem>>, vector<1x256x64xf32>
    %419 = vector.shape_cast %418 : vector<1x256x64xf32> to vector<256x64xf32>
    %cst_155 = arith.constant dense<0.000000e+00> : vector<12x64xf32>
    %420 = tpu.matmul %417, %419, %cst_155 {dimension_numbers = #tpu.dot_dimension_numbers<[1], [0], [0], [1], [0, 0, 1, 1], [], []>, precision = #tpu.contract_precision<fp32>} : vector<12x256xf32>, vector<256x64xf32>, vector<12x64xf32> -> vector<12x64xf32>
    %421 = arith.addf %359, %420 : vector<12x64xf32>
    %c0_156 = arith.constant 0 : index
    %c0_157 = arith.constant 0 : index
    %c0_158 = arith.constant 0 : index
    %422 = vector.load %arg10[%c0_156, %c0_157, %c0_158] : memref<1x12x64xf32, #tpu.memory_space<vmem>>, vector<1x12x64xf32>
    %423 = vector.shape_cast %422 : vector<1x12x64xf32> to vector<12x64xf32>
    %424 = vector.shape_cast %421 : vector<12x64xf32> to vector<1x12x64xf32>
    tpu.vector_store %arg10[%c0_156, %c0_157, %c0_158], %424 {strides = array<i32>} : memref<1x12x64xf32, #tpu.memory_space<vmem>>, vector<1x12x64xf32>,
    return
  }
  func.func @transform_0(%arg0: i32) -> (i32, i32, i32) {
    %c0_i32 = arith.constant 0 : i32
    %c0_i32_0 = arith.constant 0 : i32
    %c0_i32_1 = arith.constant 0 : i32
    return %arg0, %c0_i32, %c0_i32_0 : i32, i32, i32
  }
  func.func @transform_1(%arg0: i32) -> (i32, i32, i32) {
    %c0_i32 = arith.constant 0 : i32
    %c0_i32_0 = arith.constant 0 : i32
    %c0_i32_1 = arith.constant 0 : i32
    return %arg0, %c0_i32, %c0_i32_0 : i32, i32, i32
  }
  func.func @transform_2(%arg0: i32) -> (i32, i32, i32) {
    %c0_i32 = arith.constant 0 : i32
    %c0_i32_0 = arith.constant 0 : i32
    %c0_i32_1 = arith.constant 0 : i32
    %c0_i32_2 = arith.constant 0 : i32
    return %c0_i32, %c0_i32_0, %c0_i32_1 : i32, i32, i32
  }
  func.func @transform_3(%arg0: i32) -> (i32, i32, i32) {
    %c0_i32 = arith.constant 0 : i32
    %c0_i32_0 = arith.constant 0 : i32
    %c0_i32_1 = arith.constant 0 : i32
    %c0_i32_2 = arith.constant 0 : i32
    return %c0_i32, %c0_i32_0, %c0_i32_1 : i32, i32, i32
  }
  func.func @transform_4(%arg0: i32) -> (i32, i32, i32) {
    %c0_i32 = arith.constant 0 : i32
    %c0_i32_0 = arith.constant 0 : i32
    %c0_i32_1 = arith.constant 0 : i32
    %c0_i32_2 = arith.constant 0 : i32
    return %c0_i32, %c0_i32_0, %c0_i32_1 : i32, i32, i32
  }
  func.func @transform_5(%arg0: i32) -> (i32, i32, i32) {
    %c0_i32 = arith.constant 0 : i32
    %c0_i32_0 = arith.constant 0 : i32
    %c0_i32_1 = arith.constant 0 : i32
    %c0_i32_2 = arith.constant 0 : i32
    return %c0_i32, %c0_i32_0, %c0_i32_1 : i32, i32, i32
  }
  func.func @transform_6(%arg0: i32) -> (i32, i32, i32) {
    %c0_i32 = arith.constant 0 : i32
    %c0_i32_0 = arith.constant 0 : i32
    %c0_i32_1 = arith.constant 0 : i32
    %c0_i32_2 = arith.constant 0 : i32
    return %c0_i32, %c0_i32_0, %c0_i32_1 : i32, i32, i32
  }
  func.func @transform_7(%arg0: i32) -> (i32, i32, i32) {
    %c0_i32 = arith.constant 0 : i32
    %c0_i32_0 = arith.constant 0 : i32
    %c0_i32_1 = arith.constant 0 : i32
    %c0_i32_2 = arith.constant 0 : i32
    return %c0_i32, %c0_i32_0, %c0_i32_1 : i32, i32, i32
  }
  func.func @transform_8(%arg0: i32) -> (i32, i32, i32) {
    %c0_i32 = arith.constant 0 : i32
    %c0_i32_0 = arith.constant 0 : i32
    %c0_i32_1 = arith.constant 0 : i32
    %c0_i32_2 = arith.constant 0 : i32
    return %c0_i32, %c0_i32_0, %c0_i32_1 : i32, i32, i32
  }
  func.func @transform_9(%arg0: i32) -> (i32, i32, i32) {
    %c0_i32 = arith.constant 0 : i32
    %c0_i32_0 = arith.constant 0 : i32
    %c0_i32_1 = arith.constant 0 : i32
    return %arg0, %c0_i32, %c0_i32_0 : i32, i32, i32
  }
}

</mosaic_0001>

<bundles_post_ra>
// kernel: tpu_custom_call.1
= control target key start
LH: loop header
LB: loop body
LE: loop exit
PB: predicated region body
PF: predicated region fallthrough
CT: control target
= control target key end

     0   :  { %s21641_s30 = smov 0   ;;  %s25393_s0 = inlined_call_operand.vmem [shape: f32[2,8,64], index: 0, kind: input, shape index: {}]   ;;  %s25394_s1 = inlined_call_operand.vmem [shape: f32[2,12,64], index: 1, kind: input, shape index: {}]   ;;  %s25395_s2 = inlined_call_operand.vmem [shape: f32[2,7,64], index: 2, kind: input, shape index: {}]   ;;  %s25396_s3 = inlined_call_operand.vmem [shape: f32[2,64,64], index: 3, kind: input, shape index: {}]   ;;  %s25397_s4 = inlined_call_operand.vmem [shape: f32[2,64,128], index: 4, kind: input, shape index: {}]   ;;  %s25398_s5 = inlined_call_operand.vmem [shape: f32[2,64,64], index: 5, kind: input, shape index: {}]   ;;  %s25399_s6 = inlined_call_operand.vmem [shape: f32[2,64,256], index: 6, kind: input, shape index: {}]   ;;  %s25400_s7 = inlined_call_operand.vmem [shape: f32[2,1,256], index: 7, kind: input, shape index: {}]   ;;  %s25401_s8 = inlined_call_operand.vmem [shape: f32[2,256,64], index: 8, kind: input, shape index: {}]   ;;  %s25402_s9 = inlined_call_operand.vmem [shape: f32[2,12,64], index: 9, kind: output, shape index: {}]  }
   0x1 LB: > { %s16632_s10 = sadd.s32 4294967295, %s21579_s30   ;;  %p16636_p0 = scmp.ge.s32.totalorder %s21579_s30, 1  ;;  %s21579_s30 = sphi %s21641_s30, %s19_s30  }
   0x2   : > { %p296_p1 = scmp.lt.s32.totalorder %s21579_s30, 3 }
   0x4   : > { %p297_p2 = pnand %p16636_p0, %p296_p1 }
   0x6   : > { %300 = sbr.rel (%p297_p2) target bundleno = 10913 (0x2aa1), region = 56 }
   0xd   : > { %p336_p3 = scmp.lt.s32.totalorder %s16632_s10, 1  ;;  %vm354_vm0 = vcmask 523264   ;;  %vm382_vm1 = vcmask 519168   ;;  %v424_v21 = vld [vmem:[%s25396_s3] sm:$0xff]  ;;  %v425_v22 = vld [vmem:[%s25396_s3 + $0x8] sm:$0xff]  ;;  %v426_v26 = vld [vmem:[%s25396_s3 + $0x10] sm:$0xff] }
   0xe   : > { %v439_v23 = vand.u32 4294901760, %v424_v21  ;;  %v442_v24 = vand.u32 4294901760, %v425_v22  ;;  %v427_v27 = vld [vmem:[%s25396_s3 + $0x18] sm:$0xff]  ;;  %v1018_v28 = vld [vmem:[%s25397_s4] sm:$0xff]  ;;  %v445_v29 = vand.u32 4294901760, %v426_v26  ;;  %v1019_v31 = vld [vmem:[%s25397_s4 + $0x8] sm:$0xff] }
   0xf   : > { %s25859_s10 = smov (!%p336_p3, %s16632_s10), 1  ;;  %v448_v30 = vand.u32 4294901760, %v427_v27  ;;  %v1036_v32 = vand.u32 4294901760, %v1018_v28  ;;  %v21707_v33 = vld [vmem:[%s25396_s3 + $0x20] sm:$0xff]  ;;  %v25403_v34 = vmov 0.0|0.0   ;;  %v1039_v35 = vand.u32 4294901760, %v1019_v31 }
  0x10   : > { %s16637_s11 = sshll.u32 %s25859_s10, 3  ;;  %s16718_s12 = sshll.u32 %s25859_s10, 4  ;;  %v21689_v25 = vpack.c.bf16 %v442_v24, %v439_v23  ;;  %19744 = vmatprep.subr.bf16.mxu1 %v25403_v34  ;;  %v21714_v36 = vld [vmem:[%s25396_s3 + $0x28] sm:$0xff]  ;;  %v451_v37 = vand.u32 4294901760, %v21707_v33  ;;  %v1020_v38 = vld [vmem:[%s25397_s4 + $0x10] sm:$0xff]  ;;  %v1021_v39 = vld [vmem:[%s25397_s4 + $0x18] sm:$0xff]  ;;  %v21775_v61 = vsub.f32 %v424_v21, %v439_v23  ;;  %v21779_v63 = vsub.f32 %v425_v22, %v442_v24 }
  0x11   : > { %s339_s15 = scalar_lea.vmem %s25393_s0, %s16637_s11  ;;  %s21661_s18 = scalar_lea.vmem %s25394_s1, %s16718_s12  ;;  %v21723_v40 = vpack.c.bf16 %v448_v30, %v445_v29  ;;  %v21725_v41 = vsub.f32 %v1018_v28, %v1036_v32  ;;  %v454_v42 = vand.u32 4294901760, %v21714_v36  ;;  %v1042_v43 = vand.u32 4294901760, %v1020_v38  ;;  %v21731_v44 = vld [vmem:[%s25396_s3 + $0x30] sm:$0xff]  ;;  %v21736_v45 = vld [vmem:[%s25396_s3 + $0x38] sm:$0xff]  ;;  %v1022_v46 = vld [vmem:[%s25397_s4 + $0x20] sm:$0xff] }
  0x12   : > { %v350_v0 = vld [vmem:[%s339_s15] sm:$0xff]  ;;  %v352_v1 = vld [vmem:[%s21661_s18 + $0x8] sm:$0xf]  ;;  %19649 = vmatprep.subr.bf16.mxu0 %v21689_v25  ;;  %v21741_v47 = vpack.c.bf16 %v1039_v35, %v1036_v32  ;;  %v21743_v48 = vsub.f32 %v1019_v31, %v1039_v35  ;;  %v1045_v49 = vand.u32 4294901760, %v1021_v39  ;;  %v457_v50 = vand.u32 4294901760, %v21731_v44  ;;  %s21584_s21 = smov 64   ;;  %s349_s29 = scalar_lea.vmem %s25402_s9, %s16718_s12 }
  0x13   : > { %v351_v2 = vld [vmem:[%s21661_s18] sm:$0xff]  ;;  %v355_v3 = vsel %vm354_vm0, %v350_v0, 0.0  ;;  %v383_v4 = vsel %vm382_vm1, %v352_v1, 0.0  ;;  %19651 = vmatpush3.bf16.msra.mxu0 %v21689_v25  ;;  %v1023_v51 = vld [vmem:[%s25397_s4 + $0x28] sm:$0xff]  ;;  %v21754_v52 = vpack.c.bf16 %v454_v42, %v451_v37  ;;  %v21756_v53 = vsub.f32 %v1020_v38, %v1042_v43  ;;  %s21585_s22 = smov 112   ;;  %s21586_s23 = smov 48  }
  0x14   : > { %356 = vadd.xlane.f32.xlu0 %v355_v3  ;;  %384 = vadd.xlane.f32.xlu1 %v383_v4  ;;  %v379_v5 = vsel %vm354_vm0, %v351_v2, 0.0  ;;  %v460_v54 = vand.u32 4294901760, %v21736_v45  ;;  %v1048_v55 = vand.u32 4294901760, %v1022_v46  ;;  %v21761_v56 = vpack.c.bf16 %v1045_v49, %v1042_v43  ;;  %s21587_s24 = smov 96   ;;  %s21588_s25 = smov 32  }
  0x15   : > { %19653 = vmatprep.subr.bf16.mxu0 %v21723_v40  ;;  %19746 = vmatpush3.bf16.msra.mxu1 %v21741_v47  ;;  %v21763_v57 = vsub.f32 %v1021_v39, %v1045_v49  ;;  %v1051_v58 = vand.u32 4294901760, %v1023_v51  ;;  %v561_v32 = vsub.f32 %v21707_v33, %v451_v37  ;;  %v568_v38 = vsub.f32 %v21714_v36, %v454_v42  ;;  %s21589_s26 = smov 80   ;;  %s21590_s27 = smov 16  }
  0x16   : > { %19747 = vmatprep.subr.bf16.mxu1 %v25403_v34  ;;  %v21771_v59 = vpack.c.bf16 %v460_v54, %v457_v50  ;;  %v21773_v60 = vsub.f32 %v1022_v46, %v1048_v55  ;;  %vm21582_vm2 = vmmov 0   ;;  %v25405_v39 = vmov 0.0  }
  0x17   : > { %19655 = vmatpush3.bf16.msra.mxu0 %v21723_v40  ;;  %v21777_v62 = vsub.f32 %v1023_v51, %v1051_v58  ;;  %18158 = vmatprep.mubr.msk.f32.mxu1 %vm21582_vm2, %v25405_v39  ;;  %v562_v46 = vand.u32 4294901760, %v561_v32  ;;  %v1155_v49 = vand.u32 4294901760, %v21756_v53  ;;  %v1162_v51 = vand.u32 4294901760, %v21763_v57 }
  0x18   : > { %380 = vadd.xlane.f32.xlu0 %v379_v5  ;;  %19657 = vmatprep.subr.bf16.mxu0 %v21754_v52  ;;  %v1024_v5 = vld [vmem:[%s25397_s4 + $0x30] sm:$0xff]  ;;  %v569_v37 = vand.u32 4294901760, %v568_v38  ;;  %v582_v36 = vsub.f32 %v21736_v45, %v460_v54  ;;  %vm1658_vm3 = vcmask 130048   ;;  %vm2193_vm4 = vcmask 158720  }
  0x19   : > { %19749 = vmatpush3.bf16.msra.mxu1 %v21761_v56  ;;  %v563_v42 = vsub.f32 %v561_v32, %v562_v46  ;;  %vm2189_vm5 = vcmask 162816   ;;  %vm2227_vm6 = vcmask 1043456   ;;  %vm6035_vm7 = vcmask 261120  }
  0x1a   : > { %19750 = vmatprep.subr.bf16.mxu1 %v25403_v34  ;;  %vm6038_vm8 = vcmask 392192  }
  0x1b   : > { %19659 = vmatpush3.bf16.msra.mxu0 %v21754_v52 }
  0x1c   : > { %19661 = vmatprep.subr.bf16.mxu0 %v21771_v59 }
  0x1f   : > { %19663 = vmatpush3.bf16.msra.mxu0 %v21771_v59 }
  0xa1   : > { %v357_v6 = vpop.xlane.xlu0 %356  ;;  %v385_v7 = vpop.xlane.xlu1 %384 }
  0xa2   : > { %v359_v8 = vmul.f32 0.015625, %v357_v6  ;;  %v387_v9 = vmul.f32 0.015625, %v385_v7  ;;  %v1025_v6 = vld [vmem:[%s25397_s4 + $0x38] sm:$0xff]  ;;  %v21801_v7 = vsub.f32 %v426_v26, %v445_v29 }
  0xa4   : > { %v21668_v10 = vsub.f32 %v350_v0, %v359_v8  ;;  %v21670_v11 = vsub.f32 %v352_v1, %v387_v9  ;;  %v534_v0 = vand.u32 4294901760, %v21775_v61  ;;  %v21784_v1 = vpack.c.bf16 %v1051_v58, %v1048_v55 }
  0xa5   : > { %v381_v12 = vpop.xlane.xlu0 %380  ;;  %v21803_v8 = vsub.f32 %v427_v27, %v448_v30  ;;  %v575_v55 = vsub.f32 %v21731_v44, %v457_v50  ;;  %v1156_v58 = vsub.f32 %v21756_v53, %v1155_v49 }
  0xa6   : > { %v386_v13 = vmul.f32 0.015625, %v381_v12  ;;  %v361_v14 = vmul.f32 %v21668_v10, %v21668_v10  ;;  %v391_v15 = vmul.f32 %v21670_v11, %v21670_v11  ;;  %v535_v3 = vsub.f32 %v21775_v61, %v534_v0  ;;  %19752 = vmatpush3.bf16.msra.mxu1 %v21784_v1 }
  0xa7   : > { %v1054_v12 = vand.u32 4294901760, %v1024_v5  ;;  %19753 = vmatprep.subr.bf16.mxu1 %v25403_v34 }
  0xa8   : > { %v21676_v16 = vsub.f32 %v351_v2, %v386_v13  ;;  %v362_v17 = vsel %vm354_vm0, %v361_v14, 0.0  ;;  %v395_v18 = vsel %vm382_vm1, %v391_v15, 0.0  ;;  %v541_v2 = vand.u32 4294901760, %v21779_v63 }
  0xa9   : > { %363 = vadd.xlane.f32.xlu1 %v362_v17  ;;  %v536_v9 = vand.u32 4294901760, %v535_v3  ;;  %v1057_v13 = vand.u32 4294901760, %v1025_v6  ;;  %v548_v15 = vand.u32 4294901760, %v21801_v7  ;;  %v555_v17 = vand.u32 4294901760, %v21803_v8 }
  0xaa   : > { %v390_v19 = vmul.f32 %v21676_v16, %v21676_v16  ;;  %v542_v4 = vsub.f32 %v21779_v63, %v541_v2  ;;  %v21825_v26 = vsub.f32 %v1024_v5, %v1054_v12  ;;  %v1163_v3 = vsub.f32 %v21763_v57, %v1162_v51 }
  0xab   : > { %v549_v22 = vsub.f32 %v21801_v7, %v548_v15  ;;  %v556_v23 = vsub.f32 %v21803_v8, %v555_v17  ;;  %v21827_v27 = vsub.f32 %v1025_v6, %v1057_v13  ;;  %v570_v5 = vsub.f32 %v568_v38, %v569_v37 }
  0xac   : > { %v392_v20 = vsel %vm354_vm0, %v390_v19, 0.0  ;;  %v543_v14 = vand.u32 4294901760, %v542_v4  ;;  %v21811_v19 = vpack.c.bf16 %v1057_v13, %v1054_v12  ;;  %v1169_v4 = vand.u32 4294901760, %v21773_v60 }
  0xad   : > { %396 = vadd.xlane.f32.xlu1 %v395_v18  ;;  %393 = vadd.xlane.f32.xlu0 %v392_v20  ;;  %v1141_v18 = vand.u32 4294901760, %v21725_v41  ;;  %v25407_v20 = vand.u32 4294901760, %v21743_v48  ;;  %v550_v29 = vand.u32 4294901760, %v549_v22  ;;  %v557_v30 = vand.u32 4294901760, %v556_v23 }
  0xae   : > { %v21814_v21 = vpack.c.bf16 %v543_v14, %v536_v9  ;;  %19755 = vmatpush3.bf16.msra.mxu1 %v21811_v19  ;;  %v576_v6 = vand.u32 4294901760, %v575_v55  ;;  %v583_v9 = vand.u32 4294901760, %v582_v36  ;;  %v1176_v12 = vand.u32 4294901760, %v21777_v62 }
  0xaf   : > { %v1142_v24 = vsub.f32 %v21725_v41, %v1141_v18  ;;  %v1149_v28 = vsub.f32 %v21743_v48, %v25407_v20  ;;  %19756 = vmatprep.subr.bf16.mxu1 %v25403_v34  ;;  %v21843_v43 = vpack.c.bf16 %v557_v30, %v550_v29  ;;  %v564_v13 = vand.u32 4294901760, %v563_v42 }
  0xb0   : > { %19665 = vmatprep.subr.bf16.mxu0 %v21814_v21  ;;  %v1157_v14 = vand.u32 4294901760, %v1156_v58  ;;  %v1164_v22 = vand.u32 4294901760, %v1163_v3  ;;  %v1170_v44 = vsub.f32 %v21773_v60, %v1169_v4  ;;  %v571_v50 = vand.u32 4294901760, %v570_v5 }
  0xb1   : > { %v1143_v31 = vand.u32 4294901760, %v1142_v24  ;;  %v1150_v35 = vand.u32 4294901760, %v1149_v28  ;;  %v577_v23 = vsub.f32 %v575_v55, %v576_v6  ;;  %v584_v45 = vsub.f32 %v582_v36, %v583_v9 }
  0xb2   : > { %v1177_v54 = vsub.f32 %v21777_v62, %v1176_v12  ;;  %v21861_v24 = vpack.c.bf16 %v1164_v22, %v1157_v14  ;;  %v1171_v28 = vand.u32 4294901760, %v1170_v44  ;;  %v1183_v29 = vand.u32 4294901760, %v21825_v26 }
  0xb3   : > { %v21847_v33 = vpack.c.bf16 %v1150_v35, %v1143_v31  ;;  %v1190_v30 = vand.u32 4294901760, %v21827_v27  ;;  %v21865_v31 = vpack.c.bf16 %v571_v50, %v564_v13  ;;  %v578_v35 = vand.u32 4294901760, %v577_v23 }
  0xb4   : > { %v585_v42 = vand.u32 4294901760, %v584_v45  ;;  %v1178_v58 = vand.u32 4294901760, %v1177_v54  ;;  %v1184_v3 = vsub.f32 %v21825_v26, %v1183_v29  ;;  %v21875_v44 = vpack.c.bf16 %v21779_v63, %v21775_v61 }
  0xb5   : > { %v1191_v5 = vsub.f32 %v21827_v27, %v1190_v30  ;;  %v21881_v13 = vpack.c.bf16 %v21803_v8, %v21801_v7  ;;  %v19769_v50 = vpack.c.bf16 %v21743_v48, %v21725_v41  ;;  %v21885_v23 = vpack.c.bf16 %v568_v38, %v561_v32 }
  0xb6   : > { %v21869_v34 = vpack.c.bf16 %v585_v42, %v578_v35  ;;  %v21871_v39 = vpack.c.bf16 %v1178_v58, %v1171_v28  ;;  %v1185_v14 = vand.u32 4294901760, %v1184_v3  ;;  %v19772_v45 = vpack.c.bf16 %v21763_v57, %v21756_v53 }
  0xb7   : > { %v1192_v22 = vand.u32 4294901760, %v1191_v5  ;;  %v21889_v54 = vpack.c.bf16 %v582_v36, %v575_v55  ;;  %v19775_v28 = vpack.c.bf16 %v21777_v62, %v21773_v60  ;;  %v21899_v42 = vpack.c.bf16 %v541_v2, %v534_v0 }
  0xb8   : > { %v21905_v32 = vpack.c.bf16 %v555_v17, %v548_v15  ;;  %v25596_v38 = vand.u32 4294901760, %v21743_v48  ;;  %v21913_v36 = vpack.c.bf16 %v569_v37, %v562_v46  ;;  %v21915_v58 = vpack.c.bf16 %v1162_v51, %v1155_v49  ;;  %v353_v37 = vld [vmem:[%s25395_s2] sm:$0x7f] }
  0xb9   : > { %v21877_v20 = vpack.c.bf16 %v1192_v22, %v1185_v14  ;;  %v21917_v61 = vpack.c.bf16 %v583_v9, %v576_v6  ;;  %v21919_v63 = vpack.c.bf16 %v1176_v12, %v1169_v4  ;;  %v21921_v0 = vpack.c.bf16 %v1190_v30, %v1183_v29 }
  0xba   : > { %v21911_v55 = vpack.c.bf16 %v25596_v38, %v1141_v18  ;;  %v369_v8 = vlaneseq  ;;  %v16642_v38 = vld [vmem:[%s25395_s2 + $0x8] sm:$0x7f] }
  0xbc   : > { %v21923_v14 = vshrl.u32 %v369_v8, 7 }
  0xbe   : > { %25597 = vst [vmem:[#allocation3_spill] sm:$0xff] %v21923_v14  ;;  %v21926_v51 = vsub.s32 0, %v21923_v14  ;;  %v21932_v4 = vsub.s32 1, %v21923_v14  ;;  %v25408_v9 = vsub.s32 2, %v21923_v14  ;;  %v25411_v22 = vsub.s32 3, %v21923_v14 }
  0xc0   : > { %25598 = vst [vmem:[#allocation4_spill] sm:$0xff] %v21926_v51  ;;  %25599 = vst [vmem:[#allocation5_spill] sm:$0xff] %v21932_v4  ;;  %v372_v6 = vrot.slane %v353_v37, %v21926_v51  ;;  %v377_v29 = vrot.slane %v353_v37, %v21932_v4 }
 0x136   : > { %v364_v2 = vpop.xlane.xlu1 %363 }
 0x137   : > { %v365_v7 = vmul.f32 0.015625, %v364_v2 }
 0x139   : > { %v366_v15 = vadd.f32 1e-05, %v365_v7  ;;  %v409_v7 = vrot.slane %v353_v37, %v25408_v9 }
 0x13a   : > { %v397_v17 = vpop.xlane.xlu1 %396  ;;  %v394_v3 = vpop.xlane.xlu0 %393 }
 0x13b   : > { %21454 = vrsqrt.f32 %v366_v15  ;;  %v399_v5 = vmul.f32 0.015625, %v397_v17  ;;  %v398_v18 = vmul.f32 0.015625, %v394_v3  ;;  %v8471_v17 = vrot.slane %v16642_v38, %v21926_v51 }
 0x13d   : > { %v401_v46 = vadd.f32 1e-05, %v399_v5  ;;  %v400_v49 = vadd.f32 1e-05, %v398_v18 }
 0x13f   : > { %21456 = vrsqrt.f32 %v401_v46 }
 0x140   : > { %21458 = vrsqrt.f32 %v400_v49 }
 0x145   : > { %v21455_v12 = vpop.eup %21454 }
 0x146   : > { %v368_v30 = vmul.f32 %v21455_v12, %v21668_v10  ;;  %v415_v10 = vrot.slane %v353_v37, %v25411_v22 }
 0x148   : > { %v373_v2 = vmul.f32 %v372_v6, %v368_v30  ;;  %v8476_v6 = vrot.slane %v16642_v38, %v21932_v4  ;;  %v8472_v12 = vmul.f32 %v8471_v17, %v368_v30 }
 0x149   : > { %v21457_v8 = vpop.eup %21456 }
 0x14a   : > { %v21459_v15 = vpop.eup %21458  ;;  %v378_v3 = vadd.f32 %v377_v29, %v373_v2  ;;  %v405_v5 = vmul.f32 %v21457_v8, %v21670_v11 }
 0x14b   : > { %v404_v18 = vmul.f32 %v21459_v15, %v21676_v16  ;;  %v8477_v16 = vadd.f32 %v8476_v6, %v8472_v12 }
 0x14c   : > { %418 = vst.msk [vmem:[#allocation2] sm:$0xff] %vm354_vm0, %v378_v3  ;;  %v411_v46 = vmul.f32 %v409_v7, %v405_v5 }
 0x14d   : > { %v410_v49 = vmul.f32 %v409_v7, %v404_v18 }
 0x14e   : > { %v417_v9 = vadd.f32 %v415_v10, %v411_v46 }
 0x14f   : > { %v416_v35 = vadd.f32 %v415_v10, %v410_v49 }
 0x150   : > { %420 = vst.msk [vmem:[#allocation2 + $0x10] sm:$0xf] %vm382_vm1, %v417_v9  ;;  %v436_v29 = vsel %vm354_vm0, %v417_v9, 0 }
 0x151   : > { %419 = vst.msk [vmem:[#allocation2 + $0x8] sm:$0xff] %vm354_vm0, %v416_v35  ;;  %v433_v11 = vsel %vm354_vm0, %v416_v35, 0  ;;  %v21955_v37 = vand.u32 4294901760, %v436_v29 }
 0x152   : > { %v21957_v2 = vand.u32 4294901760, %v433_v11 }
 0x153   : > { %v21960_v7 = vsub.f32 %v436_v29, %v21955_v37  ;;  %v421_v38 = vld [vmem:[#allocation2] sm:$0xff] }
 0x154   : > { %v21963_v30 = vsub.f32 %v433_v11, %v21957_v2  ;;  %v1027_v8 = vsel %vm354_vm0, %v421_v38, 0  ;;  %8516 = vst.msk [vmem:[#allocation2] sm:$0xff] %vm354_vm0, %v8477_v16 }
 0x155   : > { %v523_v9 = vand.u32 4294901760, %v21960_v7  ;;  %v21968_v15 = vand.u32 4294901760, %v1027_v8 }
 0x156   : > { %v513_v35 = vand.u32 4294901760, %v21963_v30 }
 0x157   : > { %v524_v17 = vsub.f32 %v21960_v7, %v523_v9  ;;  %v21975_v3 = vsub.f32 %v1027_v8, %v21968_v15  ;;  %v423_v5 = vld [vmem:[#allocation2 + $0x10] sm:$0xf] }
 0x158   : > { %v514_v10 = vsub.f32 %v21963_v30, %v513_v35  ;;  %v422_v18 = vld [vmem:[#allocation2 + $0x8] sm:$0xff]  ;;  %v1033_v46 = vsel %vm354_vm0, %v423_v5, 0 }
 0x159   : > { %v525_v49 = vand.u32 4294901760, %v524_v17  ;;  %v1110_v6 = vand.u32 4294901760, %v21975_v3  ;;  %v1030_v12 = vsel %vm354_vm0, %v422_v18, 0  ;;  %v21983_v29 = vand.u32 4294901760, %v1033_v46 }
 0x15a   : > { %v515_v11 = vand.u32 4294901760, %v514_v10  ;;  %v21985_v16 = vand.u32 4294901760, %v1030_v12 }
 0x15b   : > { %v1111_v38 = vsub.f32 %v21975_v3, %v1110_v6  ;;  %v21991_v8 = vsub.f32 %v1033_v46, %v21983_v29  ;;  %v25600_v46 = vmov 0.0  }
 0x15c   : > { %18044 = vmatprep.mubr.f32.mxu0 %v515_v11  ;;  %v21994_v5 = vsub.f32 %v1030_v12, %v21985_v16  ;;  %v25601_v12 = vmov 0.0|0.0  }
 0x15d   : > { %18045 = vmatmul.mubr.f32.vlgmr.msra.gmra.mrb[0].mxu0 %v525_v49  ;;  %v1112_v17 = vand.u32 4294901760, %v1111_v38  ;;  %v1130_v18 = vand.u32 4294901760, %v21991_v8 }
 0x15e   : > { %19667 = vmatpush3.bf16.msra.mxu0 %v21814_v21  ;;  %18063 = vmatprep.mubr.f32.mxu0 %v21957_v2  ;;  %v1120_v10 = vand.u32 4294901760, %v21994_v5 }
 0x15f   : > { %19669 = vmatprep.subr.bf16.mxu0 %v21843_v43  ;;  %18159 = vmatmul.mubr.f32.vlgmr.msra.gmra.mrb[0].mxu1 %v1112_v17  ;;  %v1131_v11 = vsub.f32 %v21991_v8, %v1130_v18 }
 0x160   : > { %19758 = vmatpush3.bf16.msra.mxu1 %v21847_v33  ;;  %18161 = vmatprep.mubr.msk.f32.mxu1 %vm21582_vm2, %v25600_v46  ;;  %v1121_v49 = vsub.f32 %v21994_v5, %v1120_v10 }
 0x161   : > { %19759 = vmatprep.subr.bf16.mxu1 %v25601_v12  ;;  %v1132_v33 = vand.u32 4294901760, %v1131_v11 }
 0x162   : > { %19671 = vmatpush3.bf16.msra.mxu0 %v21843_v43  ;;  %v1122_v21 = vand.u32 4294901760, %v1121_v49 }
 0x163   : > { %19673 = vmatprep.subr.bf16.mxu0 %v21865_v31 }
 0x164   : > { %18162 = vmatmul.mubr.f32.gmra.mrb[2].mxu1 %v1122_v21 }
 0x165   : > { %19761 = vmatpush3.bf16.msra.mxu1 %v21861_v24  ;;  %18164 = vmatprep.mubr.msk.f32.mxu1 %vm21582_vm2, %v25600_v46 }
 0x166   : > { %19675 = vmatpush3.bf16.msra.mxu0 %v21865_v31  ;;  %19762 = vmatprep.subr.bf16.mxu1 %v25601_v12 }
 0x167   : > { %19677 = vmatprep.subr.bf16.mxu0 %v21869_v34 }
 0x168   : > { %18165 = vmatmul.mubr.f32.gmra.mrb[4].mxu1 %v1132_v33 }
 0x169   : > { %19764 = vmatpush3.bf16.msra.mxu1 %v21871_v39  ;;  %18183 = vmatprep.mubr.msk.f32.mxu1 %vm21582_vm2, %v25600_v46 }
 0x16a   : > { %19679 = vmatpush3.bf16.msra.mxu0 %v21869_v34  ;;  %19765 = vmatprep.subr.bf16.mxu1 %v25601_v12  ;;  %v25602_v34 = vpack.c.bf16 %v21827_v27, %v21825_v26 }
 0x16b   : > { %19681 = vmatprep.subr.bf16.mxu0 %v21875_v44 }
 0x16d   : > { %18064 = vmatmul.mubr.f32.vlgmr.msra.gmra.mrb[0].mxu0 %v21955_v37  ;;  %19767 = vmatpush3.bf16.msra.mxu1 %v21877_v20 }
 0x16e   : > { %19683 = vmatpush3.bf16.msra.mxu0 %v21875_v44  ;;  %18082 = vmatprep.mubr.f32.mxu0 %v21963_v30 }
 0x16f   : > { %19768 = vmatprep.subr.bf16.mxu1 %v25601_v12  ;;  %19685 = vmatprep.subr.bf16.mxu0 %v21881_v13 }
 0x170   : > { %18184 = vmatmul.mubr.f32.vlgmr.msra.gmra.mrb[0].mxu1 %v21968_v15 }
 0x171   : > { %19770 = vmatpush3.bf16.msra.mxu1 %v19769_v50  ;;  %18186 = vmatprep.mubr.msk.f32.mxu1 %vm21582_vm2, %v25600_v46 }
 0x172   : > { %19687 = vmatpush3.bf16.msra.mxu0 %v21881_v13  ;;  %19771 = vmatprep.subr.bf16.mxu1 %v25601_v12 }
 0x173   : > { %19689 = vmatprep.subr.bf16.mxu0 %v21885_v23 }
 0x174   : > { %18187 = vmatmul.mubr.f32.gmra.mrb[2].mxu1 %v21985_v16 }
 0x175   : > { %19773 = vmatpush3.bf16.msra.mxu1 %v19772_v45  ;;  %18189 = vmatprep.mubr.msk.f32.mxu1 %vm21582_vm2, %v25600_v46 }
 0x176   : > { %19691 = vmatpush3.bf16.msra.mxu0 %v21885_v23  ;;  %19774 = vmatprep.subr.bf16.mxu1 %v25601_v12 }
 0x177   : > { %19693 = vmatprep.subr.bf16.mxu0 %v21889_v54 }
 0x178   : > { %18190 = vmatmul.mubr.f32.gmra.mrb[4].mxu1 %v21983_v29 }
 0x179   : > { %19776 = vmatpush3.bf16.msra.mxu1 %v19775_v28  ;;  %18208 = vmatprep.mubr.msk.f32.mxu1 %vm21582_vm2, %v25600_v46 }
 0x17a   : > { %19695 = vmatpush3.bf16.msra.mxu0 %v21889_v54  ;;  %19777 = vmatprep.subr.bf16.mxu1 %v25601_v12 }
 0x17b   : > { %19697 = vmatprep.subr.bf16.mxu0 %v21689_v25 }
 0x17d   : > { %18083 = vmatmul.mubr.f32.vlgmr.msra.gmra.mrb[0].mxu0 %v21960_v7  ;;  %19779 = vmatpush3.bf16.msra.mxu1 %v25602_v34 }
 0x17e   : > { %19699 = vmatpush3.bf16.msra.mxu0 %v21689_v25  ;;  %18101 = vmatprep.mubr.f32.mxu0 %v513_v35 }
 0x17f   : > { %19780 = vmatprep.subr.bf16.mxu1 %v25601_v12  ;;  %19701 = vmatprep.subr.bf16.mxu0 %v21723_v40 }
 0x180   : > { %18209 = vmatmul.mubr.f32.vlgmr.msra.gmra.mrb[0].mxu1 %v21975_v3 }
 0x181   : > { %19782 = vmatpush3.bf16.msra.mxu1 %v21741_v47  ;;  %18211 = vmatprep.mubr.msk.f32.mxu1 %vm21582_vm2, %v25600_v46 }
 0x182   : > { %19703 = vmatpush3.bf16.msra.mxu0 %v21723_v40  ;;  %19783 = vmatprep.subr.bf16.mxu1 %v25601_v12 }
 0x183   : > { %19705 = vmatprep.subr.bf16.mxu0 %v21754_v52 }
 0x184   : > { %18212 = vmatmul.mubr.f32.gmra.mrb[2].mxu1 %v21994_v5 }
 0x185   : > { %19785 = vmatpush3.bf16.msra.mxu1 %v21761_v56  ;;  %18214 = vmatprep.mubr.msk.f32.mxu1 %vm21582_vm2, %v25600_v46 }
 0x186   : > { %19707 = vmatpush3.bf16.msra.mxu0 %v21754_v52  ;;  %19786 = vmatprep.subr.bf16.mxu1 %v25601_v12 }
 0x187   : > { %19709 = vmatprep.subr.bf16.mxu0 %v21771_v59 }
 0x188   : > { %18215 = vmatmul.mubr.f32.gmra.mrb[4].mxu1 %v21991_v8 }
 0x189   : > { %19788 = vmatpush3.bf16.msra.mxu1 %v21784_v1  ;;  %18233 = vmatprep.mubr.msk.f32.mxu1 %vm21582_vm2, %v25600_v46 }
 0x18a   : > { %19711 = vmatpush3.bf16.msra.mxu0 %v21771_v59  ;;  %19789 = vmatprep.subr.bf16.mxu1 %v25601_v12 }
 0x18b   : > { %19713 = vmatprep.subr.bf16.mxu0 %v21899_v42 }
 0x18d   : > { %18102 = vmatmul.mubr.f32.vlgmr.msra.gmra.mrb[0].mxu0 %v523_v9  ;;  %19791 = vmatpush3.bf16.msra.mxu1 %v21811_v19 }
 0x18e   : > { %19715 = vmatpush3.bf16.msra.mxu0 %v21899_v42  ;;  %18120 = vmatprep.mubr.f32.mxu0 %v21957_v2 }
 0x18f   : > { %19792 = vmatprep.subr.bf16.mxu1 %v25601_v12  ;;  %19717 = vmatprep.subr.bf16.mxu0 %v21905_v32 }
 0x190   : > { %18234 = vmatmul.mubr.f32.vlgmr.msra.gmra.mrb[0].mxu1 %v1110_v6 }
 0x191   : > { %19794 = vmatpush3.bf16.msra.mxu1 %v21911_v55  ;;  %18236 = vmatprep.mubr.msk.f32.mxu1 %vm21582_vm2, %v25600_v46 }
 0x192   : > { %19719 = vmatpush3.bf16.msra.mxu0 %v21905_v32  ;;  %19795 = vmatprep.subr.bf16.mxu1 %v25601_v12 }
 0x193   : > { %19721 = vmatprep.subr.bf16.mxu0 %v21913_v36 }
 0x194   : > { %18237 = vmatmul.mubr.f32.gmra.mrb[2].mxu1 %v1120_v10 }
 0x195   : > { %19797 = vmatpush3.bf16.msra.mxu1 %v21915_v58  ;;  %18239 = vmatprep.mubr.msk.f32.mxu1 %vm21582_vm2, %v25600_v46 }
 0x196   : > { %19723 = vmatpush3.bf16.msra.mxu0 %v21913_v36  ;;  %19798 = vmatprep.subr.bf16.mxu1 %v25601_v12 }
 0x197   : > { %19725 = vmatprep.subr.bf16.mxu0 %v21917_v61 }
 0x198   : > { %18240 = vmatmul.mubr.f32.gmra.mrb[4].mxu1 %v1130_v18 }
 0x199   : > { %19800 = vmatpush3.bf16.msra.mxu1 %v21919_v63  ;;  %18258 = vmatprep.mubr.msk.f32.mxu1 %vm21582_vm2, %v25600_v46 }
 0x19a   : > { %19727 = vmatpush3.bf16.msra.mxu0 %v21917_v61  ;;  %19801 = vmatprep.subr.bf16.mxu1 %v25601_v12 }
 0x19b   : > { %19729 = vmatprep.subr.bf16.mxu0 %v21689_v25 }
 0x19d   : > { %18121 = vmatmul.mubr.f32.vlgmr.msra.gmra.mrb[0].mxu0 %v21955_v37  ;;  %19803 = vmatpush3.bf16.msra.mxu1 %v21921_v0 }
 0x19e   : > { %19731 = vmatpush3.bf16.msra.mxu0 %v21689_v25  ;;  %18139 = vmatprep.mubr.f32.mxu0 %v21957_v2 }
 0x19f   : > { %19804 = vmatprep.subr.bf16.mxu1 %v25601_v12  ;;  %19733 = vmatprep.subr.bf16.mxu0 %v21723_v40 }
 0x1a0   : > { %18259 = vmatmul.mubr.f32.vlgmr.msra.gmra.mrb[0].mxu1 %v21968_v15 }
 0x1a1   : > { %19806 = vmatpush3.bf16.msra.mxu1 %v21741_v47  ;;  %18261 = vmatprep.mubr.msk.f32.mxu1 %vm21582_vm2, %v25600_v46 }
 0x1a2   : > { %19735 = vmatpush3.bf16.msra.mxu0 %v21723_v40  ;;  %19807 = vmatprep.subr.bf16.mxu1 %v25601_v12 }
 0x1a3   : > { %19737 = vmatprep.subr.bf16.mxu0 %v21754_v52 }
 0x1a4   : > { %18262 = vmatmul.mubr.f32.gmra.mrb[2].mxu1 %v21985_v16 }
 0x1a5   : > { %19809 = vmatpush3.bf16.msra.mxu1 %v21761_v56  ;;  %18264 = vmatprep.mubr.msk.f32.mxu1 %vm21582_vm2, %v25600_v46 }
 0x1a6   : > { %19739 = vmatpush3.bf16.msra.mxu0 %v21754_v52  ;;  %19810 = vmatprep.subr.bf16.mxu1 %v25601_v12 }
 0x1a7   : > { %19741 = vmatprep.subr.bf16.mxu0 %v21771_v59 }
 0x1a8   : > { %18265 = vmatmul.mubr.f32.gmra.mrb[4].mxu1 %v21983_v29 }
 0x1a9   : > { %19812 = vmatpush3.bf16.msra.mxu1 %v21784_v1  ;;  %18283 = vmatprep.mubr.msk.f32.mxu1 %vm21582_vm2, %v25600_v46 }
 0x1aa   : > { %19743 = vmatpush3.bf16.msra.mxu0 %v21771_v59  ;;  %19813 = vmatprep.subr.bf16.mxu1 %v25601_v12 }
 0x1ad   : > { %18140 = vmatmul.mubr.f32.vlgmr.msra.gmra.mrb[0].mxu0 %v21955_v37  ;;  %19815 = vmatpush3.bf16.msra.mxu1 %v21811_v19 }
 0x1b0   : > { %18284 = vmatmul.mubr.f32.vlgmr.msra.gmra.mrb[0].mxu1 %v21968_v15 }
 0x1b1   : > { %18286 = vmatprep.mubr.msk.f32.mxu1 %vm21582_vm2, %v25600_v46 }
 0x1b4   : > { %18287 = vmatmul.mubr.f32.gmra.mrb[2].mxu1 %v21985_v16 }
 0x1b5   : > { %18289 = vmatprep.mubr.msk.f32.mxu1 %vm21582_vm2, %v25600_v46 }
 0x1b8   : > { %18290 = vmatmul.mubr.f32.gmra.mrb[4].mxu1 %v21983_v29 }
 0x280   : > { %v22154_v25 = vpop.f32.mrb[0].mxu0 }
 0x281   : > { %v22156_v40 = vpop.f32.mrb[1].mxu0  ;;  %v1663_v52 = vsel %vm1658_vm3, %v22154_v25, 0 }
 0x282   : > { %v1660_v41 = vsel %vm1658_vm3, %v22156_v40, 0  ;;  %v22169_v60 = vand.u32 4294901760, %v1663_v52 }
 0x283   : > { %v22160_v47 = vand.u32 4294901760, %v1660_v41  ;;  %v22162_v48 = vpop.f32.mrb[0].mxu1 }
 0x284   : > { %v1666_v53 = vsel %vm1658_vm3, %v22162_v48, 0  ;;  %v18285_v56 = vpop.f32.mrb[1].mxu1  ;;  %v1753_v24 = vsub.f32 %v1663_v52, %v22169_v60 }
 0x285   : > { %v1743_v57 = vsub.f32 %v1660_v41, %v22160_v47  ;;  %v1675_v59 = vand.u32 4294901760, %v1666_v53 }
 0x286   : > { %v1754_v36 = vand.u32 4294901760, %v1753_v24 }
 0x287   : > { %v22171_v62 = vpop.f32.mrb[2].mxu1  ;;  %v1744_v1 = vand.u32 4294901760, %v1743_v57  ;;  %v1764_v19 = vsub.f32 %v1666_v53, %v1675_v59 }
 0x288   : > { %v1669_v20 = vsel %vm1658_vm3, %v22171_v62, 0  ;;  %v18288_v26 = vpop.f32.mrb[3].mxu1  ;;  %v1755_v7 = vsub.f32 %v1753_v24, %v1754_v36 }
 0x289   : > { %v1678_v27 = vand.u32 4294901760, %v1669_v20  ;;  %v1745_v39 = vsub.f32 %v1743_v57, %v1744_v1  ;;  %v1765_v43 = vand.u32 4294901760, %v1764_v19 }
 0x28a   : > { %v1756_v9 = vand.u32 4294901760, %v1755_v7 }
 0x28b   : > { %v22176_v31 = vpop.f32.mrb[4].mxu1  ;;  %v19816_v44 = vpack.c.bf16 %v1678_v27, %v1675_v59  ;;  %v1746_v13 = vand.u32 4294901760, %v1745_v39  ;;  %v1771_v50 = vsub.f32 %v1669_v20, %v1678_v27  ;;  %v1766_v28 = vsub.f32 %v1764_v19, %v1765_v43 }
 0x28c   : > { %v1672_v23 = vsel %vm1658_vm3, %v22176_v31, 0  ;;  %v18291_v45 = vpop.f32.mrb[5].mxu1 }
 0x28d   : > { %v1681_v54 = vand.u32 4294901760, %v1672_v23  ;;  %19817 = vmatprep.subr.bf16.mxu0 %v19816_v44  ;;  %18298 = vmatprep.mubr.f32.mxu0 %v1746_v13  ;;  %v1772_v42 = vand.u32 4294901760, %v1771_v50  ;;  %v19824_v32 = vpack.c.bf16 %v1771_v50, %v1764_v19  ;;  %v1767_v63 = vand.u32 4294901760, %v1766_v28 }
 0x28e   : > { %19819 = vmatpush3.bf16.xpose.msra.mxu0 %v19816_v44 }
 0x28f   : > { %18296 = vmatprep.subr.mxu0 %v1681_v54  ;;  %v1773_v55 = vsub.f32 %v1771_v50, %v1772_v42  ;;  %v1778_v58 = vsub.f32 %v1672_v23, %v1681_v54  ;;  %v19832_v61 = vpack.c.bf16 %v1772_v42, %v1765_v43 }
 0x291   : > { %v1774_v0 = vand.u32 4294901760, %v1773_v55  ;;  %v1779_v37 = vand.u32 4294901760, %v1778_v58 }
 0x293   : > { %v19820_v2 = vpack.c.bf16 %v1774_v0, %v1767_v63  ;;  %v1780_v30 = vsub.f32 %v1778_v58, %v1779_v37 }
 0x295   : > { %v1781_v15 = vand.u32 4294901760, %v1780_v30 }
 0x296   : > { %18297 = vmatpush3.xpose.msra.mxu0 %v1681_v54 }
 0x297   : > { %19821 = vmatprep.subr.bf16.mxu0 %v19820_v2 }
 0x299   : > { %18299 = vmatmul.mubr.f32.vlgmr.msra.gmra.mrb[2].mxu0 %v1756_v9 }
 0x29a   : > { %19823 = vmatpush3.bf16.xpose.msra.mxu0 %v19820_v2  ;;  %18307 = vmatprep.mubr.f32.mxu0 %v22160_v47 }
 0x29b   : > { %18305 = vmatprep.subr.mxu0 %v1781_v15 }
 0x2a2   : > { %18306 = vmatpush3.xpose.msra.mxu0 %v1781_v15 }
 0x2a3   : > { %19825 = vmatprep.subr.bf16.mxu0 %v19824_v32 }
 0x2a5   : > { %18308 = vmatmul.mubr.f32.vlgmr.msra.gmra.mrb[2].mxu0 %v22169_v60 }
 0x2a6   : > { %19827 = vmatpush3.bf16.xpose.msra.mxu0 %v19824_v32  ;;  %18316 = vmatprep.mubr.f32.mxu0 %v1743_v57 }
 0x2a7   : > { %18314 = vmatprep.subr.mxu0 %v1778_v58 }
 0x2ae   : > { %18315 = vmatpush3.xpose.msra.mxu0 %v1778_v58 }
 0x2af   : > { %19829 = vmatprep.subr.bf16.mxu0 %v19816_v44 }
 0x2b1   : > { %18317 = vmatmul.mubr.f32.vlgmr.msra.gmra.mrb[2].mxu0 %v1753_v24 }
 0x2b2   : > { %19831 = vmatpush3.bf16.xpose.msra.mxu0 %v19816_v44  ;;  %18325 = vmatprep.mubr.f32.mxu0 %v1744_v1 }
 0x2b3   : > { %18323 = vmatprep.subr.mxu0 %v1681_v54 }
 0x2ba   : > { %18324 = vmatpush3.xpose.msra.mxu0 %v1681_v54 }
 0x2bb   : > { %19833 = vmatprep.subr.bf16.mxu0 %v19832_v61 }
 0x2bd   : > { %18326 = vmatmul.mubr.f32.vlgmr.msra.gmra.mrb[2].mxu0 %v1754_v36 }
 0x2be   : > { %19835 = vmatpush3.bf16.xpose.msra.mxu0 %v19832_v61  ;;  %18334 = vmatprep.mubr.f32.mxu0 %v22160_v47 }
 0x2bf   : > { %18332 = vmatprep.subr.mxu0 %v1779_v37 }
 0x2c6   : > { %18333 = vmatpush3.xpose.msra.mxu0 %v1779_v37 }
 0x2c7   : > { %19837 = vmatprep.subr.bf16.mxu0 %v19816_v44 }
 0x2c9   : > { %18335 = vmatmul.mubr.f32.vlgmr.msra.gmra.mrb[2].mxu0 %v22169_v60 }
 0x2ca   : > { %19839 = vmatpush3.bf16.xpose.msra.mxu0 %v19816_v44  ;;  %18343 = vmatprep.mubr.f32.mxu0 %v22160_v47 }
 0x2cb   : > { %18341 = vmatprep.subr.mxu0 %v1681_v54 }
 0x2d2   : > { %18342 = vmatpush3.xpose.msra.mxu0 %v1681_v54 }
 0x2d5   : > { %18344 = vmatmul.mubr.f32.vlgmr.msra.gmra.mrb[2].mxu0 %v22169_v60 }
 0x3a8   : > { %v18345_v35 = vpop.f32.mrb[2].mxu0 }
 0x3a9   : > { %v2179_v3 = vpop.f32.mrb[3].mxu0  ;;  %v2194_v6 = vsel %vm2193_vm4, %v18345_v35, -inf }
 0x3aa   : > { %2195 = vmax.xlane.f32.xlu1 %v2194_v6  ;;  %v2190_v29 = vsel %vm2189_vm5, %v2179_v3, -inf }
 0x3ab   : > { %2191 = vmax.xlane.f32.xlu0 %v2190_v29 }
 0x437   : > { %v2196_v16 = vpop.xlane.xlu1 %2195 }
 0x438   : > { %v2198_v38 = vsub.f32 %v18345_v35, %v2196_v16  ;;  %v2192_v8 = vpop.xlane.xlu0 %2191 }
 0x439   : > { %v2197_v5 = vsub.f32 %v2179_v3, %v2192_v8 }
 0x43a   : > { %v2201_v17 = vmul.f32 1.442695, %v2198_v38 }
 0x43b   : > { %v2199_v10 = vmul.f32 1.442695, %v2197_v5 }
 0x43c   : > { %21460 = vpow2.f32 %v2201_v17 }
 0x43d   : > { %21462 = vpow2.f32 %v2199_v10 }
 0x446   : > { %v21461_v18 = vpop.eup %21460 }
 0x447   : > { %v21463_v49 = vpop.eup %21462  ;;  %v2206_v21 = vsel %vm2193_vm4, %v21461_v18, 0.0 }
 0x448   : > { %2207 = vadd.xlane.f32.xlu1 %v2206_v21  ;;  %v2203_v11 = vsel %vm2189_vm5, %v21463_v49, 0.0 }
 0x449   : > { %2204 = vadd.xlane.f32.xlu0 %v2203_v11 }
 0x459   : > { %2215 = vrot.lane.b32.xlu1 %v22171_v62, %s21584_s21 }
 0x45d   : > { %2217 = vrot.lane.b32.xlu1 %v22176_v31, %s21584_s21 }
 0x45f   : > { %2213 = vrot.lane.b32.xlu0 %v22162_v48, %s21584_s21 }
 0x461   : > { %2749 = vrot.lane.b32.xlu1 %v22162_v48, %s21585_s22 }
 0x463   : > { %2751 = vrot.lane.b32.xlu0 %v22171_v62, %s21585_s22 }
 0x465   : > { %2745 = vrot.lane.b32.xlu1 %v22156_v40, %s21585_s22 }
 0x467   : > { %2747 = vrot.lane.b32.xlu0 %v22154_v25, %s21585_s22 }
 0x469   : > { %2753 = vrot.lane.b32.xlu1 %v22176_v31, %s21585_s22 }
 0x4d5   : > { %v2208_v33 = vpop.xlane.xlu1 %2207 }
 0x4d6   : > { %21464 = vrcp.f32 %v2208_v33  ;;  %v2205_v34 = vpop.xlane.xlu0 %2204 }
 0x4d7   : > { %21466 = vrcp.f32 %v2205_v34 }
 0x4d9   : > { %v2216_v41 = vpop.permute.xlu1 %2215 }
 0x4da   : > { %v2234_v47 = vand.u32 4294901760, %v2216_v41  ;;  %v2214_v52 = vpop.permute.xlu0 %2213 }
 0x4db   : > { %v2231_v53 = vand.u32 4294901760, %v2214_v52 }
 0x4dc   : > { %v2327_v56 = vsub.f32 %v2216_v41, %v2234_v47 }
 0x4dd   : > { %v22206_v57 = vpack.c.bf16 %v2234_v47, %v2231_v53  ;;  %v2320_v59 = vsub.f32 %v2214_v52, %v2231_v53  ;;  %v2218_v60 = vpop.permute.xlu1 %2217 }
 0x4de   : > { %v2328_v1 = vand.u32 4294901760, %v2327_v56  ;;  %v2228_v19 = vsel %vm2227_vm6, %v2218_v60, 0  ;;  %v2752_v8 = vpop.permute.xlu0 %2751 }
 0x4df   : > { %v2321_v20 = vand.u32 4294901760, %v2320_v59  ;;  %v22209_v26 = vand.u32 4294901760, %v2228_v19  ;;  %19841 = vmatprep.subr.bf16.mxu0 %v22206_v57  ;;  %v19848_v7 = vpack.c.bf16 %v2327_v56, %v2320_v59  ;;  %v2761_v10 = vsel %vm1658_vm3, %v2752_v8, 0 }
 0x4e0   : > { %v21465_v27 = vpop.eup %21464  ;;  %19843 = vmatpush3.bf16.msra.mxu0 %v22206_v57  ;;  %v2329_v39 = vsub.f32 %v2327_v56, %v2328_v1  ;;  %v2769_v11 = vand.u32 4294901760, %v2761_v10 }
 0x4e1   : > { %v21467_v43 = vpop.eup %21466  ;;  %v2212_v24 = vmul.f32 %v21465_v27, %v21461_v18  ;;  %v2334_v44 = vsub.f32 %v2228_v19, %v22209_v26  ;;  %18350 = vmatprep.subr.mxu0 %v22209_v26  ;;  %v2322_v13 = vsub.f32 %v2320_v59, %v2321_v20  ;;  %v2750_v3 = vpop.permute.xlu1 %2749  ;;  %v19856_v16 = vpack.c.bf16 %v2328_v1, %v2321_v20 }
 0x4e2   : > { %v2330_v50 = vand.u32 4294901760, %v2329_v39  ;;  %v2210_v23 = vmul.f32 %v21467_v43, %v21463_v49  ;;  %v2759_v17 = vsel %vm1658_vm3, %v2750_v3, 0  ;;  %v2748_v49 = vpop.permute.xlu0 %2747  ;;  %v2862_v56 = vsub.f32 %v2761_v10, %v2769_v11 }
 0x4e3   : > { %v2323_v45 = vand.u32 4294901760, %v2322_v13  ;;  %v2335_v54 = vand.u32 4294901760, %v2334_v44  ;;  %v2225_v42 = vsel %vm2189_vm5, %v2212_v24, 0  ;;  %v2766_v18 = vand.u32 4294901760, %v2759_v17 }
 0x4e4   : > { %18351 = vmatpush3.msra.mxu0 %v22209_v26  ;;  %v2222_v28 = vsel %vm2189_vm5, %v2210_v23, 0  ;;  %v22218_v58 = vand.u32 4294901760, %v2225_v42  ;;  %v2757_v34 = vsel %vm1658_vm3, %v2748_v49, 0 }
 0x4e5   : > { %v19844_v32 = vpack.c.bf16 %v2330_v50, %v2323_v45  ;;  %v2298_v55 = vand.u32 4294901760, %v2222_v28  ;;  %v2336_v36 = vsub.f32 %v2334_v44, %v2335_v54  ;;  %v2746_v6 = vpop.permute.xlu1 %2745  ;;  %v2855_v41 = vsub.f32 %v2759_v17, %v2766_v18 }
 0x4e6   : > { %v2309_v0 = vsub.f32 %v2225_v42, %v22218_v58  ;;  %v2755_v29 = vsel %vm1658_vm3, %v2746_v6, 0  ;;  %v19864_v52 = vpack.c.bf16 %v2769_v11, %v2766_v18  ;;  %v2843_v59 = vand.u32 4294901760, %v2757_v34 }
 0x4e7   : > { %19845 = vmatprep.subr.bf16.mxu1 %v19844_v32  ;;  %18361 = vmatprep.mubr.f32.mxu1 %v2298_v55  ;;  %v2299_v61 = vsub.f32 %v2222_v28, %v2298_v55  ;;  %v2337_v63 = vand.u32 4294901760, %v2336_v36  ;;  %v22227_v38 = vand.u32 4294901760, %v2755_v29  ;;  %v2856_v60 = vand.u32 4294901760, %v2855_v41 }
 0x4e8   : > { %19847 = vmatpush3.bf16.msra.mxu1 %v19844_v32  ;;  %v2310_v2 = vand.u32 4294901760, %v2309_v0  ;;  %v2844_v20 = vsub.f32 %v2757_v34, %v2843_v59  ;;  %v19872_v42 = vpack.c.bf16 %v2862_v56, %v2855_v41 }
 0x4e9   : > { %v2300_v37 = vand.u32 4294901760, %v2299_v61  ;;  %18359 = vmatprep.subr.mxu1 %v2337_v63  ;;  %v2834_v5 = vsub.f32 %v2755_v29, %v22227_v38  ;;  %v2754_v33 = vpop.permute.xlu1 %2753  ;;  %v2857_v39 = vsub.f32 %v2855_v41, %v2856_v60 }
 0x4ea   : > { %v2311_v9 = vsub.f32 %v2309_v0, %v2310_v2  ;;  %v2763_v53 = vsel %vm1658_vm3, %v2754_v33, 0  ;;  %v2845_v43 = vand.u32 4294901760, %v2844_v20 }
 0x4eb   : > { %v2301_v30 = vsub.f32 %v2299_v61, %v2300_v37  ;;  %v2835_v21 = vand.u32 4294901760, %v2834_v5  ;;  %v2772_v1 = vand.u32 4294901760, %v2763_v53 }
 0x4ec   : > { %18360 = vmatpush3.msra.mxu1 %v2337_v63  ;;  %v2312_v35 = vand.u32 4294901760, %v2311_v9  ;;  %v2846_v50 = vsub.f32 %v2844_v20, %v2845_v43 }
 0x4ed   : > { %18362 = vmatmul.mubr.f32.vlgmr.msra.gmra.mrb[6].mxu1 %v22218_v58  ;;  %19849 = vmatprep.subr.bf16.mxu1 %v19848_v7  ;;  %v2302_v15 = vand.u32 4294901760, %v2301_v30  ;;  %v2836_v47 = vsub.f32 %v2834_v5, %v2835_v21  ;;  %v2869_v27 = vsub.f32 %v2763_v53, %v2772_v1 }
 0x4ee   : > { %19851 = vmatpush3.bf16.msra.mxu1 %v19848_v7  ;;  %18370 = vmatprep.mubr.f32.mxu1 %v2299_v61 }
 0x4ef   : > { %18352 = vmatprep.mubr.f32.mxu0 %v2302_v15  ;;  %18368 = vmatprep.subr.mxu1 %v2334_v44  ;;  %v2837_v19 = vand.u32 4294901760, %v2836_v47  ;;  %v2870_v13 = vand.u32 4294901760, %v2869_v27 }
 0x4f0   : > { %18353 = vmatmul.mubr.f32.vlgmr.msra.gmra.mrb[4].mxu0 %v2312_v35 }
 0x4f1   : > { %v2871_v45 = vsub.f32 %v2869_v27, %v2870_v13 }
 0x4f2   : > { %18369 = vmatpush3.msra.mxu1 %v2334_v44  ;;  %v2858_v44 = vand.u32 4294901760, %v2857_v39 }
 0x4f3   : > { %19853 = vmatprep.subr.bf16.mxu1 %v22206_v57  ;;  %v2872_v28 = vand.u32 4294901760, %v2871_v45 }
 0x4f5   : > { %18371 = vmatmul.mubr.f32.vlgmr.msra.gmra.mrb[6].mxu1 %v2309_v0 }
 0x4f6   : > { %19855 = vmatpush3.bf16.msra.mxu1 %v22206_v57  ;;  %18379 = vmatprep.mubr.f32.mxu1 %v2300_v37 }
 0x4f7   : > { %18377 = vmatprep.subr.mxu1 %v22209_v26 }
 0x4fa   : > { %18378 = vmatpush3.msra.mxu1 %v22209_v26 }
 0x4fb   : > { %19857 = vmatprep.subr.bf16.mxu1 %v19856_v16 }
 0x4fd   : > { %18380 = vmatmul.mubr.f32.vlgmr.msra.gmra.mrb[6].mxu1 %v2310_v2 }
 0x4fe   : > { %19859 = vmatpush3.bf16.msra.mxu1 %v19856_v16  ;;  %18388 = vmatprep.mubr.f32.mxu1 %v2298_v55 }
 0x4ff   : > { %18386 = vmatprep.subr.mxu1 %v2335_v54 }
 0x502   : > { %18387 = vmatpush3.msra.mxu1 %v2335_v54  ;;  %v2847_v54 = vand.u32 4294901760, %v2846_v50 }
 0x503   : > { %19861 = vmatprep.subr.bf16.mxu1 %v22206_v57 }
 0x505   : > { %18389 = vmatmul.mubr.f32.vlgmr.msra.gmra.mrb[6].mxu1 %v22218_v58 }
 0x506   : > { %19863 = vmatpush3.bf16.msra.mxu1 %v22206_v57  ;;  %18397 = vmatprep.mubr.f32.mxu1 %v2298_v55  ;;  %v2863_v57 = vand.u32 4294901760, %v2862_v56 }
 0x507   : > { %18395 = vmatprep.subr.mxu1 %v22209_v26 }
 0x508   : > { %v2864_v24 = vsub.f32 %v2862_v56, %v2863_v57  ;;  %v19880_v32 = vpack.c.bf16 %v2863_v57, %v2856_v60 }
 0x50a   : > { %18396 = vmatpush3.msra.mxu1 %v22209_v26  ;;  %v2865_v23 = vand.u32 4294901760, %v2864_v24 }
 0x50b   : > { %19865 = vmatprep.subr.bf16.mxu1 %v19864_v52 }
 0x50c   : > { %v19868_v26 = vpack.c.bf16 %v2865_v23, %v2858_v44 }
 0x50d   : > { %18398 = vmatmul.mubr.f32.vlgmr.msra.gmra.mrb[6].mxu1 %v22218_v58 }
 0x50e   : > { %18406 = vmatprep.mubr.f32.mxu1 %v2837_v19 }
 0x511   : > { %19867 = vmatpush3.bf16.xpose.msra.mxu1 %v19864_v52 }
 0x512   : > { %18404 = vmatprep.subr.mxu1 %v2772_v1 }
 0x519   : > { %18405 = vmatpush3.xpose.msra.mxu1 %v2772_v1 }
 0x51a   : > { %19869 = vmatprep.subr.bf16.mxu1 %v19868_v26 }
 0x51c   : > { %18407 = vmatmul.mubr.f32.vlgmr.msra.gmra.mrb[8].mxu1 %v2847_v54 }
 0x51d   : > { %19871 = vmatpush3.bf16.xpose.msra.mxu1 %v19868_v26  ;;  %18415 = vmatprep.mubr.f32.mxu1 %v22227_v38 }
 0x51e   : > { %18413 = vmatprep.subr.mxu1 %v2872_v28 }
 0x525   : > { %18414 = vmatpush3.xpose.msra.mxu1 %v2872_v28 }
 0x526   : > { %19873 = vmatprep.subr.bf16.mxu1 %v19872_v42 }
 0x528   : > { %18416 = vmatmul.mubr.f32.vlgmr.msra.gmra.mrb[8].mxu1 %v2843_v59 }
 0x529   : > { %19875 = vmatpush3.bf16.xpose.msra.mxu1 %v19872_v42  ;;  %18424 = vmatprep.mubr.f32.mxu1 %v2834_v5 }
 0x52a   : > { %18422 = vmatprep.subr.mxu1 %v2869_v27 }
 0x531   : > { %18423 = vmatpush3.xpose.msra.mxu1 %v2869_v27 }
 0x532   : > { %19877 = vmatprep.subr.bf16.mxu1 %v19864_v52 }
 0x534   : > { %18425 = vmatmul.mubr.f32.vlgmr.msra.gmra.mrb[8].mxu1 %v2844_v20 }
 0x535   : > { %19879 = vmatpush3.bf16.xpose.msra.mxu1 %v19864_v52  ;;  %18433 = vmatprep.mubr.f32.mxu1 %v2835_v21 }
 0x536   : > { %18431 = vmatprep.subr.mxu1 %v2772_v1 }
 0x53d   : > { %18432 = vmatpush3.xpose.msra.mxu1 %v2772_v1 }
 0x53e   : > { %19881 = vmatprep.subr.bf16.mxu1 %v19880_v32 }
 0x540   : > { %18434 = vmatmul.mubr.f32.vlgmr.msra.gmra.mrb[8].mxu1 %v2845_v43 }
 0x541   : > { %19883 = vmatpush3.bf16.xpose.msra.mxu1 %v19880_v32  ;;  %18442 = vmatprep.mubr.f32.mxu1 %v22227_v38 }
 0x542   : > { %18440 = vmatprep.subr.mxu1 %v2870_v13 }
 0x549   : > { %18441 = vmatpush3.xpose.msra.mxu1 %v2870_v13 }
 0x54a   : > { %19885 = vmatprep.subr.bf16.mxu1 %v19864_v52 }
 0x54c   : > { %18443 = vmatmul.mubr.f32.vlgmr.msra.gmra.mrb[8].mxu1 %v2843_v59 }
 0x54d   : > { %19887 = vmatpush3.bf16.xpose.msra.mxu1 %v19864_v52  ;;  %18451 = vmatprep.mubr.f32.mxu1 %v22227_v38 }
 0x54e   : > { %18449 = vmatprep.subr.mxu1 %v2772_v1 }
 0x555   : > { %18450 = vmatpush3.xpose.msra.mxu1 %v2772_v1 }
 0x558   : > { %18452 = vmatmul.mubr.f32.vlgmr.msra.gmra.mrb[8].mxu1 %v2843_v59 }
 0x5c3   : > { %v18354_v55 = vpop.f32.mrb[4].mxu0 }
 0x5c4   : > { %v2304_v36 = vpop.f32.mrb[5].mxu0 }
 0x5e0   : > { %v18399_v58 = vpop.f32.mrb[6].mxu1 }
 0x5e1   : > { %v22243_v61 = vadd.f32 %v18399_v58, %v18354_v55  ;;  %v2735_v63 = vpop.f32.mrb[7].mxu1 }
 0x5e2   : > { %v22245_v0 = vadd.f32 %v2735_v63, %v2304_v36 }
 0x62b   : > { %v18453_v37 = vpop.f32.mrb[8].mxu1 }
 0x62c   : > { %v3270_v2 = vpop.f32.mrb[9].mxu1  ;;  %v3283_v7 = vsel %vm2193_vm4, %v18453_v37, -inf }
 0x62d   : > { %3284 = vmax.xlane.f32.xlu1 %v3283_v7  ;;  %v3280_v30 = vsel %vm2189_vm5, %v3270_v2, -inf }
 0x62e   : > { %3281 = vmax.xlane.f32.xlu0 %v3280_v30 }
 0x63e   : > { %3304 = vrot.lane.b32.xlu1 %v22171_v62, %s21586_s23 }
 0x642   : > { %3306 = vrot.lane.b32.xlu1 %v22176_v31, %s21586_s23 }
 0x646   : > { %3837 = vrot.lane.b32.xlu1 %v22162_v48, %s21587_s24 }
 0x64a   : > { %3833 = vrot.lane.b32.xlu1 %v22156_v40, %s21587_s24 }
 0x64e   : > { %3841 = vrot.lane.b32.xlu1 %v22176_v31, %s21587_s24 }
 0x6ba   : > { %v3285_v9 = vpop.xlane.xlu1 %3284 }
 0x6bb   : > { %v3287_v15 = vsub.f32 %v18453_v37, %v3285_v9  ;;  %v3282_v35 = vpop.xlane.xlu0 %3281 }
 0x6bc   : > { %v3286_v3 = vsub.f32 %v3270_v2, %v3282_v35 }
 0x6bd   : > { %v3290_v6 = vmul.f32 1.442695, %v3287_v15 }
 0x6be   : > { %v3288_v29 = vmul.f32 1.442695, %v3286_v3  ;;  %v3305_v17 = vpop.permute.xlu1 %3304 }
 0x6bf   : > { %21468 = vpow2.f32 %v3290_v6  ;;  %v3322_v18 = vand.u32 4294901760, %v3305_v17 }
 0x6c0   : > { %21470 = vpow2.f32 %v3288_v29 }
 0x6c1   : > { %v22267_v21 = vsub.f32 %v3305_v17, %v3322_v18 }
 0x6c2   : > { %v3307_v11 = vpop.permute.xlu1 %3306 }
 0x6c3   : > { %v3416_v34 = vand.u32 4294901760, %v22267_v21  ;;  %v3316_v47 = vsel %vm2227_vm6, %v3307_v11, 0 }
 0x6c4   : > { %v22273_v60 = vand.u32 4294901760, %v3316_v47 }
 0x6c5   : > { %v3417_v19 = vsub.f32 %v22267_v21, %v3416_v34 }
 0x6c6   : > { %v3422_v50 = vsub.f32 %v3316_v47, %v22273_v60  ;;  %v3838_v30 = vpop.permute.xlu1 %3837 }
 0x6c7   : > { %v3418_v44 = vand.u32 4294901760, %v3417_v19 }
 0x6c8   : > { %v3423_v42 = vand.u32 4294901760, %v3422_v50 }
 0x6c9   : > { %v21469_v16 = vpop.eup %21468 }
 0x6ca   : > { %v3295_v38 = vsel %vm2193_vm4, %v21469_v16, 0.0  ;;  %v21471_v8 = vpop.eup %21470  ;;  %v3424_v58 = vsub.f32 %v3422_v50, %v3423_v42  ;;  %v3834_v9 = vpop.permute.xlu1 %3833 }
 0x6cb   : > { %3296 = vadd.xlane.f32.xlu0 %v3295_v38  ;;  %v3292_v5 = vsel %vm2189_vm5, %v21471_v8, 0.0  ;;  %v3843_v15 = vsel %vm1658_vm3, %v3834_v9, 0  ;;  %v3847_v38 = vsel %vm1658_vm3, %v3838_v30, 0 }
 0x6cc   : > { %v3425_v2 = vand.u32 4294901760, %v3424_v58  ;;  %v22293_v3 = vand.u32 4294901760, %v3843_v15 }
 0x6ce   : > { %v3922_v29 = vsub.f32 %v3843_v15, %v22293_v3 }
 0x6cf   : > { %3293 = vadd.xlane.f32.xlu0 %v3292_v5 }
 0x6d0   : > { %v3923_v17 = vand.u32 4294901760, %v3922_v29 }
 0x6d2   : > { %v3924_v11 = vsub.f32 %v3922_v29, %v3923_v17 }
 0x6e5   : > { %3302 = vrot.lane.b32.xlu0 %v22162_v48, %s21586_s23 }
 0x6e9   : > { %3839 = vrot.lane.b32.xlu0 %v22171_v62, %s21587_s24 }
 0x6ed   : > { %3835 = vrot.lane.b32.xlu0 %v22154_v25, %s21587_s24 }
 0x758   : > { %v3297_v10 = vpop.xlane.xlu0 %3296 }
 0x759   : > { %21472 = vrcp.f32 %v3297_v10  ;;  %v3854_v10 = vand.u32 4294901760, %v3847_v38 }
 0x75c   : > { %v3294_v49 = vpop.xlane.xlu0 %3293 }
 0x75d   : > { %21474 = vrcp.f32 %v3294_v49 }
 0x760   : > { %v3303_v33 = vpop.permute.xlu0 %3302 }
 0x761   : > { %v3319_v41 = vand.u32 4294901760, %v3303_v33 }
 0x763   : > { %v21473_v52 = vpop.eup %21472  ;;  %v22271_v53 = vpack.c.bf16 %v3322_v18, %v3319_v41  ;;  %v3408_v56 = vsub.f32 %v3303_v33, %v3319_v41  ;;  %v3842_v18 = vpop.permute.xlu1 %3841  ;;  %v3943_v41 = vsub.f32 %v3847_v38, %v3854_v10 }
 0x764   : > { %v3301_v59 = vmul.f32 %v21473_v52, %v21469_v16  ;;  %v3840_v6 = vpop.permute.xlu0 %3839  ;;  %v3851_v33 = vsel %vm1658_vm3, %v3842_v18, 0 }
 0x765   : > { %v3409_v1 = vand.u32 4294901760, %v3408_v56  ;;  %19889 = vmatprep.subr.bf16.mxu0 %v22271_v53  ;;  %v19896_v7 = vpack.c.bf16 %v22267_v21, %v3408_v56  ;;  %v3849_v16 = vsel %vm1658_vm3, %v3840_v6, 0  ;;  %v3860_v52 = vand.u32 4294901760, %v3851_v33 }
 0x766   : > { %19891 = vmatpush3.bf16.msra.mxu0 %v22271_v53  ;;  %v3314_v57 = vsel %vm2189_vm5, %v3301_v59, 0  ;;  %v3925_v59 = vand.u32 4294901760, %v3924_v11 }
 0x767   : > { %v21475_v20 = vpop.eup %21474  ;;  %18458 = vmatprep.subr.mxu0 %v22273_v60  ;;  %v3410_v27 = vsub.f32 %v3408_v56, %v3409_v1  ;;  %v22280_v39 = vand.u32 4294901760, %v3314_v57  ;;  %v19904_v35 = vpack.c.bf16 %v3416_v34, %v3409_v1  ;;  %v3957_v19 = vsub.f32 %v3851_v33, %v3860_v52 }
 0x768   : > { %v3299_v43 = vmul.f32 %v21475_v20, %v21471_v8  ;;  %v3857_v8 = vand.u32 4294901760, %v3849_v16  ;;  %v3836_v5 = vpop.permute.xlu0 %3835 }
 0x769   : > { %v3411_v24 = vand.u32 4294901760, %v3410_v27  ;;  %v3397_v13 = vsub.f32 %v3314_v57, %v22280_v39  ;;  %v3845_v49 = vsel %vm1658_vm3, %v3836_v5, 0 }
 0x76a   : > { %18459 = vmatpush3.msra.mxu0 %v22273_v60  ;;  %v3311_v23 = vsel %vm2189_vm5, %v3299_v43, 0  ;;  %v3950_v21 = vsub.f32 %v3849_v16, %v3857_v8  ;;  %v19912_v34 = vpack.c.bf16 %v3857_v8, %v3854_v10  ;;  %v3931_v47 = vand.u32 4294901760, %v3845_v49 }
 0x76b   : > { %v19892_v26 = vpack.c.bf16 %v3418_v44, %v3411_v24  ;;  %v3386_v45 = vand.u32 4294901760, %v3311_v23  ;;  %v3398_v54 = vand.u32 4294901760, %v3397_v13  ;;  %v3958_v24 = vand.u32 4294901760, %v3957_v19 }
 0x76c   : > { %v3951_v56 = vand.u32 4294901760, %v3950_v21  ;;  %v3932_v1 = vsub.f32 %v3845_v49, %v3931_v47 }
 0x76d   : > { %19893 = vmatprep.subr.bf16.mxu0 %v19892_v26  ;;  %v3387_v28 = vsub.f32 %v3311_v23, %v3386_v45  ;;  %v3399_v55 = vsub.f32 %v3397_v13, %v3398_v54 }
 0x76e   : > { %v3952_v57 = vsub.f32 %v3950_v21, %v3951_v56  ;;  %v3933_v20 = vand.u32 4294901760, %v3932_v1 }
 0x76f   : > { %v3388_v32 = vand.u32 4294901760, %v3387_v28  ;;  %v3400_v37 = vand.u32 4294901760, %v3399_v55 }
 0x770   : > { %v3953_v43 = vand.u32 4294901760, %v3952_v57  ;;  %v3934_v44 = vsub.f32 %v3932_v1, %v3933_v20 }
 0x771   : > { %v3389_v36 = vsub.f32 %v3387_v28, %v3388_v32 }
 0x772   : > { %v3935_v23 = vand.u32 4294901760, %v3934_v44 }
 0x773   : > { %v3390_v63 = vand.u32 4294901760, %v3389_v36 }
 0x775   : > { %18460 = vmatprep.mubr.f32.mxu0 %v3390_v63 }
 0x776   : > { %18461 = vmatmul.mubr.f32.vlgmr.msra.gmra.mrb[6].mxu0 %v3400_v37 }
 0x777   : > { %19895 = vmatpush3.bf16.msra.mxu0 %v19892_v26  ;;  %18469 = vmatprep.mubr.f32.mxu0 %v3386_v45  ;;  %v19920_v26 = vpack.c.bf16 %v3950_v21, %v3943_v41 }
 0x778   : > { %18467 = vmatprep.subr.mxu0 %v3425_v2 }
 0x77b   : > { %18468 = vmatpush3.msra.mxu0 %v3425_v2 }
 0x77c   : > { %19897 = vmatprep.subr.bf16.mxu0 %v19896_v7 }
 0x77e   : > { %18470 = vmatmul.mubr.f32.vlgmr.msra.gmra.mrb[6].mxu0 %v22280_v39 }
 0x77f   : > { %19899 = vmatpush3.bf16.msra.mxu0 %v19896_v7  ;;  %18478 = vmatprep.mubr.f32.mxu0 %v3387_v28 }
 0x780   : > { %18476 = vmatprep.subr.mxu0 %v3422_v50 }
 0x783   : > { %18477 = vmatpush3.msra.mxu0 %v3422_v50  ;;  %v3959_v50 = vsub.f32 %v3957_v19, %v3958_v24 }
 0x784   : > { %19901 = vmatprep.subr.bf16.mxu0 %v22271_v53 }
 0x786   : > { %18479 = vmatmul.mubr.f32.vlgmr.msra.gmra.mrb[6].mxu0 %v3397_v13 }
 0x787   : > { %19903 = vmatpush3.bf16.msra.mxu0 %v22271_v53  ;;  %18487 = vmatprep.mubr.f32.mxu0 %v3388_v32 }
 0x788   : > { %18485 = vmatprep.subr.mxu0 %v22273_v60 }
 0x78b   : > { %18486 = vmatpush3.msra.mxu0 %v22273_v60 }
 0x78c   : > { %19905 = vmatprep.subr.bf16.mxu0 %v19904_v35 }
 0x78e   : > { %18488 = vmatmul.mubr.f32.vlgmr.msra.gmra.mrb[6].mxu0 %v3398_v54 }
 0x78f   : > { %19907 = vmatpush3.bf16.msra.mxu0 %v19904_v35  ;;  %18496 = vmatprep.mubr.f32.mxu0 %v3386_v45 }
 0x790   : > { %18494 = vmatprep.subr.mxu0 %v3423_v42 }
 0x793   : > { %18495 = vmatpush3.msra.mxu0 %v3423_v42 }
 0x794   : > { %19909 = vmatprep.subr.bf16.mxu0 %v22271_v53 }
 0x796   : > { %18497 = vmatmul.mubr.f32.vlgmr.msra.gmra.mrb[6].mxu0 %v22280_v39 }
 0x797   : > { %19911 = vmatpush3.bf16.msra.mxu0 %v22271_v53  ;;  %18505 = vmatprep.mubr.f32.mxu0 %v3386_v45  ;;  %v3944_v53 = vand.u32 4294901760, %v3943_v41 }
 0x798   : > { %18503 = vmatprep.subr.mxu0 %v22273_v60 }
 0x799   : > { %v3945_v27 = vsub.f32 %v3943_v41, %v3944_v53  ;;  %v19928_v45 = vpack.c.bf16 %v3951_v56, %v3944_v53 }
 0x79b   : > { %18504 = vmatpush3.msra.mxu0 %v22273_v60  ;;  %v3946_v13 = vand.u32 4294901760, %v3945_v27 }
 0x79c   : > { %19913 = vmatprep.subr.bf16.mxu0 %v19912_v34 }
 0x79d   : > { %v19916_v60 = vpack.c.bf16 %v3953_v43, %v3946_v13 }
 0x79e   : > { %18506 = vmatmul.mubr.f32.vlgmr.msra.gmra.mrb[6].mxu0 %v22280_v39  ;;  %v3960_v39 = vand.u32 4294901760, %v3959_v50 }
 0x79f   : > { %18514 = vmatprep.mubr.f32.mxu0 %v3925_v59 }
 0x7a2   : > { %19915 = vmatpush3.bf16.xpose.msra.mxu0 %v19912_v34 }
 0x7a3   : > { %18512 = vmatprep.subr.mxu0 %v3860_v52 }
 0x7aa   : > { %18513 = vmatpush3.xpose.msra.mxu0 %v3860_v52 }
 0x7ab   : > { %19917 = vmatprep.subr.bf16.mxu0 %v19916_v60 }
 0x7ad   : > { %18515 = vmatmul.mubr.f32.vlgmr.msra.gmra.mrb[8].mxu0 %v3935_v23 }
 0x7ae   : > { %19919 = vmatpush3.bf16.xpose.msra.mxu0 %v19916_v60  ;;  %18523 = vmatprep.mubr.f32.mxu0 %v22293_v3 }
 0x7af   : > { %18521 = vmatprep.subr.mxu0 %v3960_v39 }
 0x7b6   : > { %18522 = vmatpush3.xpose.msra.mxu0 %v3960_v39 }
 0x7b7   : > { %19921 = vmatprep.subr.bf16.mxu0 %v19920_v26 }
 0x7b9   : > { %18524 = vmatmul.mubr.f32.vlgmr.msra.gmra.mrb[8].mxu0 %v3931_v47 }
 0x7ba   : > { %19923 = vmatpush3.bf16.xpose.msra.mxu0 %v19920_v26  ;;  %18532 = vmatprep.mubr.f32.mxu0 %v3922_v29 }
 0x7bb   : > { %18530 = vmatprep.subr.mxu0 %v3957_v19 }
 0x7c2   : > { %18531 = vmatpush3.xpose.msra.mxu0 %v3957_v19 }
 0x7c3   : > { %19925 = vmatprep.subr.bf16.mxu0 %v19912_v34 }
 0x7c5   : > { %18533 = vmatmul.mubr.f32.vlgmr.msra.gmra.mrb[8].mxu0 %v3932_v1 }
 0x7c6   : > { %19927 = vmatpush3.bf16.xpose.msra.mxu0 %v19912_v34  ;;  %18541 = vmatprep.mubr.f32.mxu0 %v3923_v17 }
 0x7c7   : > { %18539 = vmatprep.subr.mxu0 %v3860_v52 }
 0x7ce   : > { %18540 = vmatpush3.xpose.msra.mxu0 %v3860_v52 }
 0x7cf   : > { %19929 = vmatprep.subr.bf16.mxu0 %v19928_v45 }
 0x7d1   : > { %18542 = vmatmul.mubr.f32.vlgmr.msra.gmra.mrb[8].mxu0 %v3933_v20 }
 0x7d2   : > { %19931 = vmatpush3.bf16.xpose.msra.mxu0 %v19928_v45  ;;  %18550 = vmatprep.mubr.f32.mxu0 %v22293_v3 }
 0x7d3   : > { %18548 = vmatprep.subr.mxu0 %v3958_v24 }
 0x7da   : > { %18549 = vmatpush3.xpose.msra.mxu0 %v3958_v24 }
 0x7db   : > { %19933 = vmatprep.subr.bf16.mxu0 %v19912_v34 }
 0x7dd   : > { %18551 = vmatmul.mubr.f32.vlgmr.msra.gmra.mrb[8].mxu0 %v3931_v47 }
 0x7de   : > { %19935 = vmatpush3.bf16.xpose.msra.mxu0 %v19912_v34  ;;  %18559 = vmatprep.mubr.f32.mxu0 %v22293_v3 }
 0x7df   : > { %18557 = vmatprep.subr.mxu0 %v3860_v52 }
 0x7e6   : > { %18558 = vmatpush3.xpose.msra.mxu0 %v3860_v52 }
 0x7e9   : > { %18560 = vmatmul.mubr.f32.vlgmr.msra.gmra.mrb[8].mxu0 %v3931_v47 }
 0x871   : > { %v22309_v54 = vpop.f32.mrb[6].mxu0 }
 0x872   : > { %v22311_v28 = vpop.f32.mrb[7].mxu0 }
 0x8bc   : > { %v18561_v42 = vpop.f32.mrb[8].mxu0 }
 0x8bd   : > { %v4358_v32 = vpop.f32.mrb[9].mxu0  ;;  %v4371_v55 = vsel %vm2193_vm4, %v18561_v42, -inf }
 0x8be   : > { %4372 = vmax.xlane.f32.xlu1 %v4371_v55  ;;  %v4368_v36 = vsel %vm2189_vm5, %v4358_v32, -inf }
 0x8bf   : > { %4369 = vmax.xlane.f32.xlu0 %v4368_v36 }
 0x8cf   : > { %4392 = vrot.lane.b32.xlu1 %v22171_v62, %s21588_s25 }
 0x8d3   : > { %4394 = vrot.lane.b32.xlu1 %v22176_v31, %s21588_s25 }
 0x8d7   : > { %4925 = vrot.lane.b32.xlu1 %v22162_v48, %s21589_s26 }
 0x8db   : > { %4921 = vrot.lane.b32.xlu1 %v22156_v40, %s21589_s26 }
 0x8df   : > { %4929 = vrot.lane.b32.xlu1 %v22176_v31, %s21589_s26 }
 0x94b   : > { %v4373_v58 = vpop.xlane.xlu1 %4372 }
 0x94c   : > { %v4375_v63 = vsub.f32 %v18561_v42, %v4373_v58  ;;  %v4370_v37 = vpop.xlane.xlu0 %4369 }
 0x94d   : > { %v4374_v2 = vsub.f32 %v4358_v32, %v4370_v37 }
 0x94e   : > { %v4378_v7 = vmul.f32 1.442695, %v4375_v63 }
 0x94f   : > { %v4376_v30 = vmul.f32 1.442695, %v4374_v2  ;;  %v4393_v40 = vpop.permute.xlu1 %4392 }
 0x950   : > { %21476 = vpow2.f32 %v4378_v7  ;;  %v4410_v29 = vand.u32 4294901760, %v4393_v40 }
 0x951   : > { %21478 = vpow2.f32 %v4376_v30 }
 0x952   : > { %v22333_v38 = vsub.f32 %v4393_v40, %v4410_v29 }
 0x953   : > { %v4395_v8 = vpop.permute.xlu1 %4394 }
 0x954   : > { %v4504_v17 = vand.u32 4294901760, %v22333_v38  ;;  %v4404_v18 = vsel %vm2227_vm6, %v4395_v8, 0 }
 0x955   : > { %v22340_v34 = vand.u32 4294901760, %v4404_v18 }
 0x956   : > { %v4505_v33 = vsub.f32 %v22333_v38, %v4504_v17 }
 0x957   : > { %v4510_v20 = vsub.f32 %v4404_v18, %v22340_v34  ;;  %v4926_v36 = vpop.permute.xlu1 %4925 }
 0x958   : > { %v4506_v19 = vand.u32 4294901760, %v4505_v33 }
 0x959   : > { %v4511_v60 = vand.u32 4294901760, %v4510_v20 }
 0x95a   : > { %v21477_v9 = vpop.eup %21476 }
 0x95b   : > { %v4383_v15 = vsel %vm2193_vm4, %v21477_v9, 0.0  ;;  %v21479_v35 = vpop.eup %21478  ;;  %v4512_v26 = vsub.f32 %v4510_v20, %v4511_v60  ;;  %v4922_v58 = vpop.permute.xlu1 %4921 }
 0x95c   : > { %4384 = vadd.xlane.f32.xlu0 %v4383_v15  ;;  %v4380_v3 = vsel %vm2189_vm5, %v21479_v35, 0.0  ;;  %v4931_v63 = vsel %vm1658_vm3, %v4922_v58, 0  ;;  %v4935_v15 = vsel %vm1658_vm3, %v4926_v36, 0 }
 0x95d   : > { %v4513_v32 = vand.u32 4294901760, %v4512_v26  ;;  %v22359_v2 = vand.u32 4294901760, %v4931_v63 }
 0x95f   : > { %v5010_v30 = vsub.f32 %v4931_v63, %v22359_v2 }
 0x960   : > { %4381 = vadd.xlane.f32.xlu0 %v4380_v3 }
 0x976   : > { %4390 = vrot.lane.b32.xlu0 %v22162_v48, %s21588_s25 }
 0x97a   : > { %4927 = vrot.lane.b32.xlu0 %v22171_v62, %s21589_s26 }
 0x97e   : > { %4923 = vrot.lane.b32.xlu0 %v22154_v25, %s21589_s26 }
 0x9e9   : > { %v4385_v6 = vpop.xlane.xlu0 %4384 }
 0x9ea   : > { %21480 = vrcp.f32 %v4385_v6  ;;  %v4942_v6 = vand.u32 4294901760, %v4935_v15 }
 0x9ed   : > { %v4382_v16 = vpop.xlane.xlu0 %4381 }
 0x9ee   : > { %21482 = vrcp.f32 %v4382_v16 }
 0x9f1   : > { %v4391_v5 = vpop.permute.xlu0 %4390 }
 0x9f2   : > { %v4407_v10 = vand.u32 4294901760, %v4391_v5 }
 0x9f4   : > { %v21481_v49 = vpop.eup %21480  ;;  %v22337_v21 = vpack.c.bf16 %v4410_v29, %v4407_v10  ;;  %v4496_v11 = vsub.f32 %v4391_v5, %v4407_v10  ;;  %v4930_v29 = vpop.permute.xlu1 %4929  ;;  %v5031_v10 = vsub.f32 %v4935_v15, %v4942_v6 }
 0x9f5   : > { %v4389_v25 = vmul.f32 %v21481_v49, %v21477_v9  ;;  %v4928_v7 = vpop.permute.xlu0 %4927  ;;  %v4939_v5 = vsel %vm1658_vm3, %v4930_v29, 0 }
 0x9f6   : > { %v4497_v41 = vand.u32 4294901760, %v4496_v11  ;;  %19937 = vmatprep.subr.bf16.mxu1 %v22337_v21  ;;  %v19944_v55 = vpack.c.bf16 %v22333_v38, %v4496_v11  ;;  %v4937_v9 = vsel %vm1658_vm3, %v4928_v7, 0  ;;  %v4948_v49 = vand.u32 4294901760, %v4939_v5 }
 0x9f7   : > { %19939 = vmatpush3.bf16.msra.mxu1 %v22337_v21  ;;  %v4402_v47 = vsel %vm2189_vm5, %v4389_v25, 0  ;;  %v4945_v3 = vand.u32 4294901760, %v4937_v9 }
 0x9f8   : > { %v21483_v52 = vpop.eup %21482  ;;  %v4498_v56 = vsub.f32 %v4496_v11, %v4497_v41  ;;  %18566 = vmatprep.subr.mxu1 %v22340_v34  ;;  %v22346_v59 = vand.u32 4294901760, %v4402_v47  ;;  %v19952_v37 = vpack.c.bf16 %v4504_v17, %v4497_v41  ;;  %v5045_v41 = vsub.f32 %v4939_v5, %v4948_v49 }
 0x9f9   : > { %v4387_v53 = vmul.f32 %v21483_v52, %v21479_v35  ;;  %v5011_v35 = vand.u32 4294901760, %v5010_v30  ;;  %v4924_v40 = vpop.permute.xlu0 %4923  ;;  %v5038_v38 = vsub.f32 %v4937_v9, %v4945_v3  ;;  %v19960_v17 = vpack.c.bf16 %v4945_v3, %v4942_v6 }
 0x9fa   : > { %v4499_v1 = vand.u32 4294901760, %v4498_v56  ;;  %v4485_v57 = vsub.f32 %v4402_v47, %v22346_v59  ;;  %v4933_v16 = vsel %vm1658_vm3, %v4924_v40, 0 }
 0x9fb   : > { %18567 = vmatpush3.msra.mxu1 %v22340_v34  ;;  %v4399_v27 = vsel %vm2189_vm5, %v4387_v53, 0  ;;  %v5012_v8 = vsub.f32 %v5010_v30, %v5011_v35  ;;  %v5019_v18 = vand.u32 4294901760, %v4933_v16  ;;  %v5039_v11 = vand.u32 4294901760, %v5038_v38 }
 0x9fc   : > { %v19940_v43 = vpack.c.bf16 %v4506_v19, %v4499_v1  ;;  %v4474_v24 = vand.u32 4294901760, %v4399_v27  ;;  %v4486_v44 = vand.u32 4294901760, %v4485_v57  ;;  %v5046_v1 = vand.u32 4294901760, %v5045_v41 }
 0x9fd   : > { %v5013_v25 = vand.u32 4294901760, %v5012_v8  ;;  %v5020_v33 = vsub.f32 %v4933_v16, %v5019_v18  ;;  %v5040_v47 = vsub.f32 %v5038_v38, %v5039_v11 }
 0x9fe   : > { %19941 = vmatprep.subr.bf16.mxu1 %v19940_v43  ;;  %v4475_v13 = vsub.f32 %v4399_v27, %v4474_v24  ;;  %v4487_v23 = vsub.f32 %v4485_v57, %v4486_v44 }
 0x9ff   : > { %v5021_v56 = vand.u32 4294901760, %v5020_v33  ;;  %v5041_v53 = vand.u32 4294901760, %v5040_v47 }
 0xa00   : > { %v4476_v50 = vand.u32 4294901760, %v4475_v13  ;;  %v4488_v42 = vand.u32 4294901760, %v4487_v23 }
 0xa01   : > { %v5022_v19 = vsub.f32 %v5020_v33, %v5021_v56 }
 0xa02   : > { %v4477_v39 = vsub.f32 %v4475_v13, %v4476_v50 }
 0xa03   : > { %v5023_v27 = vand.u32 4294901760, %v5022_v19 }
 0xa04   : > { %v4478_v45 = vand.u32 4294901760, %v4477_v39 }
 0xa06   : > { %18568 = vmatprep.mubr.f32.mxu1 %v4478_v45 }
 0xa07   : > { %18569 = vmatmul.mubr.f32.vlgmr.msra.gmra.mrb[10].mxu1 %v4488_v42 }
 0xa08   : > { %19943 = vmatpush3.bf16.msra.mxu1 %v19940_v43  ;;  %18577 = vmatprep.mubr.f32.mxu1 %v4474_v24  ;;  %v19968_v43 = vpack.c.bf16 %v5038_v38, %v5031_v10 }
 0xa09   : > { %18575 = vmatprep.subr.mxu1 %v4513_v32 }
 0xa0c   : > { %18576 = vmatpush3.msra.mxu1 %v4513_v32 }
 0xa0d   : > { %19945 = vmatprep.subr.bf16.mxu1 %v19944_v55 }
 0xa0f   : > { %18578 = vmatmul.mubr.f32.vlgmr.msra.gmra.mrb[10].mxu1 %v22346_v59 }
 0xa10   : > { %19947 = vmatpush3.bf16.msra.mxu1 %v19944_v55  ;;  %18586 = vmatprep.mubr.f32.mxu1 %v4475_v13 }
 0xa11   : > { %18584 = vmatprep.subr.mxu1 %v4510_v20 }
 0xa14   : > { %18585 = vmatpush3.msra.mxu1 %v4510_v20  ;;  %v5047_v20 = vsub.f32 %v5045_v41, %v5046_v1 }
 0xa15   : > { %19949 = vmatprep.subr.bf16.mxu1 %v22337_v21 }
 0xa17   : > { %18587 = vmatmul.mubr.f32.vlgmr.msra.gmra.mrb[10].mxu1 %v4485_v57 }
 0xa18   : > { %19951 = vmatpush3.bf16.msra.mxu1 %v22337_v21  ;;  %18595 = vmatprep.mubr.f32.mxu1 %v4476_v50 }
 0xa19   : > { %18593 = vmatprep.subr.mxu1 %v22340_v34 }
 0xa1c   : > { %18594 = vmatpush3.msra.mxu1 %v22340_v34 }
 0xa1d   : > { %19953 = vmatprep.subr.bf16.mxu1 %v19952_v37 }
 0xa1f   : > { %18596 = vmatmul.mubr.f32.vlgmr.msra.gmra.mrb[10].mxu1 %v4486_v44 }
 0xa20   : > { %19955 = vmatpush3.bf16.msra.mxu1 %v19952_v37  ;;  %18604 = vmatprep.mubr.f32.mxu1 %v4474_v24 }
 0xa21   : > { %18602 = vmatprep.subr.mxu1 %v4511_v60 }
 0xa24   : > { %18603 = vmatpush3.msra.mxu1 %v4511_v60 }
 0xa25   : > { %19957 = vmatprep.subr.bf16.mxu1 %v22337_v21 }
 0xa27   : > { %18605 = vmatmul.mubr.f32.vlgmr.msra.gmra.mrb[10].mxu1 %v22346_v59 }
 0xa28   : > { %19959 = vmatpush3.bf16.msra.mxu1 %v22337_v21  ;;  %18613 = vmatprep.mubr.f32.mxu1 %v4474_v24  ;;  %v5032_v21 = vand.u32 4294901760, %v5031_v10 }
 0xa29   : > { %18611 = vmatprep.subr.mxu1 %v22340_v34 }
 0xa2a   : > { %v5033_v52 = vsub.f32 %v5031_v10, %v5032_v21  ;;  %v19976_v24 = vpack.c.bf16 %v5039_v11, %v5032_v21 }
 0xa2c   : > { %18612 = vmatpush3.msra.mxu1 %v22340_v34  ;;  %v5034_v57 = vand.u32 4294901760, %v5033_v52 }
 0xa2d   : > { %19961 = vmatprep.subr.bf16.mxu1 %v19960_v17 }
 0xa2e   : > { %v19964_v34 = vpack.c.bf16 %v5041_v53, %v5034_v57 }
 0xa2f   : > { %18614 = vmatmul.mubr.f32.vlgmr.msra.gmra.mrb[10].mxu1 %v22346_v59  ;;  %v5048_v59 = vand.u32 4294901760, %v5047_v20 }
 0xa30   : > { %18622 = vmatprep.mubr.f32.mxu1 %v5013_v25 }
 0xa33   : > { %19963 = vmatpush3.bf16.xpose.msra.mxu1 %v19960_v17 }
 0xa34   : > { %18620 = vmatprep.subr.mxu1 %v4948_v49 }
 0xa3b   : > { %18621 = vmatpush3.xpose.msra.mxu1 %v4948_v49 }
 0xa3c   : > { %19965 = vmatprep.subr.bf16.mxu1 %v19964_v34 }
 0xa3e   : > { %18623 = vmatmul.mubr.f32.vlgmr.msra.gmra.mrb[12].mxu1 %v5023_v27 }
 0xa3f   : > { %19967 = vmatpush3.bf16.xpose.msra.mxu1 %v19964_v34  ;;  %18631 = vmatprep.mubr.f32.mxu1 %v22359_v2 }
 0xa40   : > { %18629 = vmatprep.subr.mxu1 %v5048_v59 }
 0xa47   : > { %18630 = vmatpush3.xpose.msra.mxu1 %v5048_v59 }
 0xa48   : > { %19969 = vmatprep.subr.bf16.mxu1 %v19968_v43 }
 0xa4a   : > { %18632 = vmatmul.mubr.f32.vlgmr.msra.gmra.mrb[12].mxu1 %v5019_v18 }
 0xa4b   : > { %19971 = vmatpush3.bf16.xpose.msra.mxu1 %v19968_v43  ;;  %18640 = vmatprep.mubr.f32.mxu1 %v5010_v30 }
 0xa4c   : > { %18638 = vmatprep.subr.mxu1 %v5045_v41 }
 0xa53   : > { %18639 = vmatpush3.xpose.msra.mxu1 %v5045_v41 }
 0xa54   : > { %19973 = vmatprep.subr.bf16.mxu1 %v19960_v17 }
 0xa56   : > { %18641 = vmatmul.mubr.f32.vlgmr.msra.gmra.mrb[12].mxu1 %v5020_v33 }
 0xa57   : > { %19975 = vmatpush3.bf16.xpose.msra.mxu1 %v19960_v17  ;;  %18649 = vmatprep.mubr.f32.mxu1 %v5011_v35 }
 0xa58   : > { %18647 = vmatprep.subr.mxu1 %v4948_v49 }
 0xa5f   : > { %18648 = vmatpush3.xpose.msra.mxu1 %v4948_v49 }
 0xa60   : > { %19977 = vmatprep.subr.bf16.mxu1 %v19976_v24 }
 0xa62   : > { %18650 = vmatmul.mubr.f32.vlgmr.msra.gmra.mrb[12].mxu1 %v5021_v56 }
 0xa63   : > { %19979 = vmatpush3.bf16.xpose.msra.mxu1 %v19976_v24  ;;  %18658 = vmatprep.mubr.f32.mxu1 %v22359_v2 }
 0xa64   : > { %18656 = vmatprep.subr.mxu1 %v5046_v1 }
 0xa6b   : > { %18657 = vmatpush3.xpose.msra.mxu1 %v5046_v1 }
 0xa6c   : > { %19981 = vmatprep.subr.bf16.mxu1 %v19960_v17 }
 0xa6e   : > { %18659 = vmatmul.mubr.f32.vlgmr.msra.gmra.mrb[12].mxu1 %v5019_v18 }
 0xa6f   : > { %19983 = vmatpush3.bf16.xpose.msra.mxu1 %v19960_v17  ;;  %18667 = vmatprep.mubr.f32.mxu1 %v22359_v2 }
 0xa70   : > { %18665 = vmatprep.subr.mxu1 %v4948_v49 }
 0xa77   : > { %18666 = vmatpush3.xpose.msra.mxu1 %v4948_v49 }
 0xa7a   : > { %18668 = vmatmul.mubr.f32.vlgmr.msra.gmra.mrb[12].mxu1 %v5019_v18 }
 0xa7b   : > { %6809 = vmatprep.mubr.f32.mxu1 %v25600_v46 }
 0xb02   : > { %v18615_v44 = vpop.f32.mrb[10].mxu1 }
 0xb03   : > { %v4911_v13 = vpop.f32.mrb[11].mxu1 }
 0xb4d   : > { %v18669_v60 = vpop.f32.mrb[12].mxu1 }
 0xb4e   : > { %v5446_v50 = vpop.f32.mrb[13].mxu1  ;;  %v5459_v23 = vsel %vm2193_vm4, %v18669_v60, -inf }
 0xb4f   : > { %5460 = vmax.xlane.f32.xlu1 %v5459_v23  ;;  %v5456_v39 = vsel %vm2189_vm5, %v5446_v50, -inf }
 0xb50   : > { %5457 = vmax.xlane.f32.xlu0 %v5456_v39 }
 0xb60   : > { %5480 = vrot.lane.b32.xlu1 %v22171_v62, %s21590_s27 }
 0xb64   : > { %5482 = vrot.lane.b32.xlu1 %v22176_v31, %s21590_s27 }
 0xb68   : > { %6011 = vrot.lane.b32.xlu1 %v22311_v28, %s21590_s27 }
 0xb6c   : > { %6019 = vrot.lane.b32.xlu1 %v4911_v13, %s21588_s25  ;;  %v6041_v13 = vld [vmem:[%s25398_s5] sm:$0xff] }
 0xbdc   : > { %v5461_v26 = vpop.xlane.xlu1 %5460 }
 0xbdd   : > { %v5463_v45 = vsub.f32 %v18669_v60, %v5461_v26  ;;  %v5458_v42 = vpop.xlane.xlu0 %5457  ;;  %v6042_v60 = vld [vmem:[%s25398_s5 + $0x8] sm:$0xff]  ;;  %v6043_v26 = vld [vmem:[%s25398_s5 + $0x10] sm:$0xff] }
 0xbde   : > { %v5462_v32 = vsub.f32 %v5446_v50, %v5458_v42  ;;  %v6056_v50 = vand.u32 4294901760, %v6041_v13  ;;  %v6059_v23 = vand.u32 4294901760, %v6042_v60  ;;  %v6062_v42 = vand.u32 4294901760, %v6043_v26 }
 0xbdf   : > { %v5466_v55 = vmul.f32 1.442695, %v5463_v45  ;;  %v6044_v45 = vld [vmem:[%s25398_s5 + $0x18] sm:$0xff] }
 0xbe0   : > { %v5464_v36 = vmul.f32 1.442695, %v5462_v32  ;;  %v5481_v28 = vpop.permute.xlu1 %5480  ;;  %v22401_v39 = vpack.c.bf16 %v6059_v23, %v6056_v50  ;;  %v6065_v32 = vand.u32 4294901760, %v6044_v45 }
 0xbe1   : > { %21484 = vpow2.f32 %v5466_v55  ;;  %v5498_v2 = vand.u32 4294901760, %v5481_v28 }
 0xbe2   : > { %21486 = vpow2.f32 %v5464_v36  ;;  %v22411_v55 = vpack.c.bf16 %v6065_v32, %v6062_v42  ;;  %v6045_v36 = vld [vmem:[%s25398_s5 + $0x20] sm:$0xff] }
 0xbe3   : > { %v5591_v30 = vsub.f32 %v5481_v28, %v5498_v2  ;;  %v6150_v28 = vsub.f32 %v6041_v13, %v6056_v50 }
 0xbe4   : > { %v5483_v9 = vpop.permute.xlu1 %5482 }
 0xbe5   : > { %v5592_v35 = vand.u32 4294901760, %v5591_v30  ;;  %v5492_v40 = vsel %vm2227_vm6, %v5483_v9, 0 }
 0xbe6   : > { %v5501_v38 = vand.u32 4294901760, %v5492_v40 }
 0xbe8   : > { %v5598_v33 = vsub.f32 %v5492_v40, %v5501_v38 }
 0xbea   : > { %v5599_v1 = vand.u32 4294901760, %v5598_v33 }
 0xbeb   : > { %v21485_v58 = vpop.eup %21484 }
 0xbec   : > { %v5471_v63 = vsel %vm2193_vm4, %v21485_v58, 0.0  ;;  %v21487_v62 = vpop.eup %21486  ;;  %v5600_v20 = vsub.f32 %v5598_v33, %v5599_v1 }
 0xbed   : > { %5472 = vadd.xlane.f32.xlu0 %v5471_v63  ;;  %v5468_v31 = vsel %vm2189_vm5, %v21487_v62, 0.0  ;;  %v6068_v63 = vand.u32 4294901760, %v6045_v36 }
 0xbee   : > { %v5601_v43 = vand.u32 4294901760, %v5600_v20 }
 0xbf1   : > { %5469 = vadd.xlane.f32.xlu0 %v5468_v31 }
 0xc07   : > { %5478 = vrot.lane.b32.xlu0 %v22162_v48, %s21590_s27 }
 0xc0b   : > { %6013 = vrot.lane.b32.xlu0 %v22309_v54, %s21590_s27  ;;  %v5593_v54 = vsub.f32 %v5591_v30, %v5592_v35 }
 0xc0d   : > { %v5594_v25 = vand.u32 4294901760, %v5593_v54 }
 0xc0f   : > { %6021 = vrot.lane.b32.xlu0 %v18615_v44, %s21588_s25 }
 0xc7a   : > { %v5473_v37 = vpop.xlane.xlu0 %5472 }
 0xc7b   : > { %21488 = vrcp.f32 %v5473_v37  ;;  %v6157_v37 = vsub.f32 %v6042_v60, %v6059_v23 }
 0xc7d   : > { %v20040_v50 = vpack.c.bf16 %v6157_v37, %v6150_v28 }
 0xc7e   : > { %v5470_v7 = vpop.xlane.xlu0 %5469 }
 0xc7f   : > { %21490 = vrcp.f32 %v5470_v7  ;;  %v6048_v7 = vld [vmem:[%s25398_s5 + $0x38] sm:$0xff] }
 0xc80   : > { %v6077_v9 = vand.u32 4294901760, %v6048_v7 }
 0xc82   : > { %v5479_v15 = vpop.permute.xlu0 %5478 }
 0xc83   : > { %v5495_v3 = vand.u32 4294901760, %v5479_v15 }
 0xc85   : > { %v21489_v6 = vpop.eup %21488  ;;  %v19984_v48 = vpack.c.bf16 %v5498_v2, %v5495_v3  ;;  %v5584_v29 = vsub.f32 %v5479_v15, %v5495_v3  ;;  %v6047_v2 = vld [vmem:[%s25398_s5 + $0x30] sm:$0xff]  ;;  %v6151_v15 = vand.u32 4294901760, %v6150_v28 }
 0xc86   : > { %v5477_v16 = vmul.f32 %v21489_v6, %v21485_v58  ;;  %v6046_v58 = vld [vmem:[%s25398_s5 + $0x28] sm:$0xff] }
 0xc87   : > { %v5585_v8 = vand.u32 4294901760, %v5584_v29  ;;  %19985 = vmatprep.subr.bf16.mxu0 %v19984_v48  ;;  %v19992_v24 = vpack.c.bf16 %v5591_v30, %v5584_v29  ;;  %v6074_v30 = vand.u32 4294901760, %v6047_v2  ;;  %v6152_v40 = vsub.f32 %v6150_v28, %v6151_v15 }
 0xc88   : > { %19987 = vmatpush3.bf16.msra.mxu0 %v19984_v48  ;;  %v5490_v5 = vsel %vm2189_vm5, %v5477_v16, 0 }
 0xc89   : > { %v21491_v17 = vpop.eup %21490  ;;  %v5586_v10 = vsub.f32 %v5584_v29, %v5585_v8  ;;  %18674 = vmatprep.subr.mxu0 %v5501_v38  ;;  %v5572_v18 = vand.u32 4294901760, %v5490_v5  ;;  %v20000_v44 = vpack.c.bf16 %v5592_v35, %v5585_v8  ;;  %v6158_v35 = vand.u32 4294901760, %v6157_v37 }
 0xc8a   : > { %v5475_v49 = vmul.f32 %v21491_v17, %v21487_v62  ;;  %v6071_v62 = vand.u32 4294901760, %v6046_v58  ;;  %v22431_v3 = vpack.c.bf16 %v6077_v9, %v6074_v30  ;;  %v6171_v29 = vsub.f32 %v6044_v45, %v6065_v32 }
 0xc8b   : > { %v5587_v11 = vand.u32 4294901760, %v5586_v10  ;;  %v5573_v21 = vsub.f32 %v5490_v5, %v5572_v18  ;;  %v6159_v6 = vsub.f32 %v6157_v37, %v6158_v35  ;;  %v6153_v16 = vand.u32 4294901760, %v6152_v40 }
 0xc8c   : > { %18675 = vmatpush3.msra.mxu0 %v5501_v38  ;;  %v5487_v41 = vsel %vm2189_vm5, %v5475_v49, 0  ;;  %v22421_v31 = vpack.c.bf16 %v6071_v62, %v6068_v63  ;;  %v6172_v8 = vand.u32 4294901760, %v6171_v29  ;;  %v6185_v49 = vsub.f32 %v6046_v58, %v6071_v62  ;;  %v6012_v62 = vpop.permute.xlu1 %6011 }
 0xc8d   : > { %v19988_v47 = vpack.c.bf16 %v5594_v25, %v5587_v11  ;;  %v5562_v52 = vand.u32 4294901760, %v5487_v41  ;;  %v5574_v56 = vand.u32 4294901760, %v5573_v21  ;;  %v6160_v54 = vand.u32 4294901760, %v6159_v6 }
 0xc8e   : > { %v6173_v25 = vsub.f32 %v6171_v29, %v6172_v8  ;;  %v6033_v28 = vsel %vm1658_vm3, %v22245_v0, %v6012_v62 }
 0xc8f   : > { %19989 = vmatprep.subr.bf16.mxu0 %v19988_v47  ;;  %v5563_v53 = vsub.f32 %v5487_v41, %v5562_v52  ;;  %v5575_v57 = vsub.f32 %v5573_v21, %v5574_v56  ;;  %v22435_v17 = vpack.c.bf16 %v6160_v54, %v6153_v16  ;;  %v6186_v41 = vand.u32 4294901760, %v6185_v49 }
 0xc91   : > { %v5564_v19 = vand.u32 4294901760, %v5563_v53  ;;  %v5576_v59 = vand.u32 4294901760, %v5575_v57 }
 0xc93   : > { %v5565_v34 = vsub.f32 %v5563_v53, %v5564_v19 }
 0xc95   : > { %v5566_v27 = vand.u32 4294901760, %v5565_v34 }
 0xc97   : > { %18676 = vmatprep.mubr.f32.mxu0 %v5566_v27 }
 0xc98   : > { %18677 = vmatmul.mubr.f32.vlgmr.msra.gmra.mrb[10].mxu0 %v5576_v59 }
 0xc99   : > { %19991 = vmatpush3.bf16.msra.mxu0 %v19988_v47  ;;  %18685 = vmatprep.mubr.f32.mxu0 %v5562_v52  ;;  %v6174_v47 = vand.u32 4294901760, %v6173_v25 }
 0xc9a   : > { %18683 = vmatprep.subr.mxu0 %v5601_v43 }
 0xc9d   : > { %18684 = vmatpush3.msra.mxu0 %v5601_v43 }
 0xc9e   : > { %19993 = vmatprep.subr.bf16.mxu0 %v19992_v24 }
 0xca0   : > { %18686 = vmatmul.mubr.f32.vlgmr.msra.gmra.mrb[10].mxu0 %v5572_v18 }
 0xca1   : > { %19995 = vmatpush3.bf16.msra.mxu0 %v19992_v24  ;;  %18694 = vmatprep.mubr.f32.mxu0 %v5563_v53  ;;  %v6192_v53 = vsub.f32 %v6047_v2, %v6074_v30 }
 0xca2   : > { %18692 = vmatprep.subr.mxu0 %v5598_v33 }
 0xca3   : > { %v6193_v20 = vand.u32 4294901760, %v6192_v53 }
 0xca5   : > { %18693 = vmatpush3.msra.mxu0 %v5598_v33  ;;  %v6194_v43 = vsub.f32 %v6192_v53, %v6193_v20 }
 0xca6   : > { %19997 = vmatprep.subr.bf16.mxu0 %v19984_v48 }
 0xca8   : > { %18695 = vmatmul.mubr.f32.vlgmr.msra.gmra.mrb[10].mxu0 %v5573_v21 }
 0xca9   : > { %19999 = vmatpush3.bf16.msra.mxu0 %v19984_v48  ;;  %18703 = vmatprep.mubr.f32.mxu0 %v5564_v19 }
 0xcaa   : > { %18701 = vmatprep.subr.mxu0 %v5501_v38 }
 0xcad   : > { %18702 = vmatpush3.msra.mxu0 %v5501_v38 }
 0xcae   : > { %20001 = vmatprep.subr.bf16.mxu0 %v20000_v44 }
 0xcb0   : > { %18704 = vmatmul.mubr.f32.vlgmr.msra.gmra.mrb[10].mxu0 %v5574_v56  ;;  %v6187_v56 = vsub.f32 %v6185_v49, %v6186_v41 }
 0xcb1   : > { %20003 = vmatpush3.bf16.msra.mxu0 %v20000_v44  ;;  %18712 = vmatprep.mubr.f32.mxu0 %v5562_v52  ;;  %v6195_v44 = vand.u32 4294901760, %v6194_v43  ;;  %v25409_v43 = vsub.s32 5, %v21923_v14 }
 0xcb2   : > { %18710 = vmatprep.subr.mxu0 %v5599_v1  ;;  %v6188_v34 = vand.u32 4294901760, %v6187_v56 }
 0xcb5   : > { %18711 = vmatpush3.msra.mxu0 %v5599_v1  ;;  %v6199_v1 = vsub.f32 %v6048_v7, %v6077_v9  ;;  %v6020_v7 = vpop.permute.xlu1 %6019 }
 0xcb6   : > { %20005 = vmatprep.subr.bf16.mxu0 %v19984_v48 }
 0xcb7   : > { %v6200_v27 = vand.u32 4294901760, %v6199_v1  ;;  %v20052_v45 = vpack.c.bf16 %v6199_v1, %v6192_v53 }
 0xcb8   : > { %18713 = vmatmul.mubr.f32.vlgmr.msra.gmra.mrb[10].mxu0 %v5572_v18 }
 0xcb9   : > { %20007 = vmatpush3.bf16.msra.mxu0 %v19984_v48  ;;  %18721 = vmatprep.mubr.f32.mxu0 %v5562_v52  ;;  %v6164_v48 = vsub.f32 %v6043_v26, %v6062_v42  ;;  %v6201_v24 = vsub.f32 %v6199_v1, %v6200_v27  ;;  %v20072_v42 = vpack.c.bf16 %v6158_v35, %v6151_v15 }
 0xcba   : > { %18719 = vmatprep.subr.mxu0 %v5501_v38  ;;  %v22444_v58 = vpack.c.bf16 %v6200_v27, %v6193_v20  ;;  %v6036_v15 = vsel %vm6035_vm7, %v6033_v28, %v6020_v7 }
 0xcbb   : > { %v6202_v13 = vand.u32 4294901760, %v6201_v24  ;;  %v20044_v23 = vpack.c.bf16 %v6171_v29, %v6164_v48  ;;  %v22488_v24 = vld [vmem:[%s25395_s2] sm:$0x7f] }
 0xcbd   : > { %18720 = vmatpush3.msra.mxu0 %v5501_v38  ;;  %v6165_v38 = vand.u32 4294901760, %v6164_v48  ;;  %v20036_v60 = vpack.c.bf16 %v6202_v13, %v6195_v44 }
 0xcbe   : > { %20009 = vmatprep.subr.bf16.mxu0 %v22401_v39 }
 0xcbf   : > { %v6166_v10 = vsub.f32 %v6164_v48, %v6165_v38  ;;  %v22440_v32 = vpack.c.bf16 %v6172_v8, %v6165_v38 }
 0xcc0   : > { %18722 = vmatmul.mubr.f32.vlgmr.msra.gmra.mrb[10].mxu0 %v5572_v18  ;;  %v6178_v18 = vsub.f32 %v6045_v36, %v6068_v63  ;;  %v6014_v63 = vpop.permute.xlu0 %6013 }
 0xcc1   : > { %20011 = vmatpush3.bf16.msra.mxu0 %v22401_v39  ;;  %v6167_v21 = vand.u32 4294901760, %v6166_v10  ;;  %v6034_v30 = vsel %vm1658_vm3, %v22243_v61, %v6014_v63 }
 0xcc2   : > { %20013 = vmatprep.subr.bf16.mxu0 %v22411_v55  ;;  %v6179_v33 = vand.u32 4294901760, %v6178_v18  ;;  %v20048_v26 = vpack.c.bf16 %v6185_v49, %v6178_v18 }
 0xcc3   : > { %v20028_v19 = vpack.c.bf16 %v6174_v47, %v6167_v21 }
 0xcc4   : > { %v6180_v52 = vsub.f32 %v6178_v18, %v6179_v33  ;;  %v22442_v36 = vpack.c.bf16 %v6186_v41, %v6179_v33  ;;  %v6022_v2 = vpop.permute.xlu0 %6021 }
 0xcc5   : > { %20015 = vmatpush3.bf16.msra.mxu0 %v22411_v55  ;;  %v6037_v37 = vsel %vm6035_vm7, %v6034_v30, %v6022_v2  ;;  %v21570_v2 = vld [vmem:[%s21661_s18 + $0x8] sm:$0xf] }
 0xcc6   : > { %20017 = vmatprep.subr.bf16.mxu0 %v22421_v31  ;;  %v6181_v57 = vand.u32 4294901760, %v6180_v52 }
 0xcc8   : > { %v20032_v59 = vpack.c.bf16 %v6188_v34, %v6181_v57 }
 0xcc9   : > { %20019 = vmatpush3.bf16.msra.mxu0 %v22421_v31 }
 0xcca   : > { %20021 = vmatprep.subr.bf16.mxu0 %v22431_v3 }
 0xccd   : > { %20023 = vmatpush3.bf16.msra.mxu0 %v22431_v3 }
 0xcce   : > { %20025 = vmatprep.subr.bf16.mxu0 %v22435_v17 }
 0xd93   : > { %v18723_v5 = vpop.f32.mrb[10].mxu0 }
 0xd94   : > { %6029 = vrot.lane.b32.xlu0 %v18723_v5, %s21586_s23  ;;  %v5999_v11 = vpop.f32.mrb[11].mxu0 }
 0xd95   : > { %6027 = vrot.lane.b32.xlu1 %v5999_v11, %s21586_s23 }
 0xe06   : > { %v6030_v9 = vpop.permute.xlu0 %6029 }
 0xe07   : > { %v6040_v35 = vsel %vm6038_vm8, %v6037_v37, %v6030_v9  ;;  %v6028_v40 = vpop.permute.xlu1 %6027 }
 0xe08   : > { %v6053_v6 = vsel %vm354_vm0, %v6040_v35, 0  ;;  %v6039_v48 = vsel %vm6038_vm8, %v6036_v15, %v6028_v40 }
 0xe09   : > { %v6138_v29 = vand.u32 4294901760, %v6053_v6  ;;  %v6050_v16 = vsel %vm354_vm0, %v6039_v48, 0 }
 0xe0a   : > { %v6128_v54 = vand.u32 4294901760, %v6050_v16 }
 0xe0b   : > { %v6139_v61 = vsub.f32 %v6053_v6, %v6138_v29 }
 0xe0c   : > { %v6129_v38 = vsub.f32 %v6050_v16, %v6128_v54 }
 0xe0d   : > { %v6140_v8 = vand.u32 4294901760, %v6139_v61 }
 0xe0e   : > { %v6130_v0 = vand.u32 4294901760, %v6129_v38 }
 0xe0f   : > { %v6141_v5 = vsub.f32 %v6139_v61, %v6140_v8 }
 0xe10   : > { %v6131_v10 = vsub.f32 %v6129_v38, %v6130_v0 }
 0xe11   : > { %v6142_v49 = vand.u32 4294901760, %v6141_v5  ;;  %v6709_v5 = vld [vmem:[%s25399_s6 + $0x10] sm:$0xff] }
 0xe12   : > { %v6132_v18 = vand.u32 4294901760, %v6131_v10 }
 0xe14   : > { %18740 = vmatprep.mubr.f32.mxu0 %v6132_v18  ;;  %v6735_v18 = vand.u32 4294901760, %v6709_v5 }
 0xe15   : > { %18741 = vmatmul.mubr.f32.vlgmr.msra.gmra.mrb[12].mxu0 %v6142_v49 }
 0xe16   : > { %20027 = vmatpush3.bf16.msra.mxu0 %v22435_v17  ;;  %18759 = vmatprep.mubr.f32.mxu0 %v6128_v54 }
 0xe17   : > { %20029 = vmatprep.subr.bf16.mxu0 %v20028_v19 }
 0xe1a   : > { %20031 = vmatpush3.bf16.msra.mxu0 %v20028_v19 }
 0xe1b   : > { %20033 = vmatprep.subr.bf16.mxu0 %v20032_v59 }
 0xe1e   : > { %20035 = vmatpush3.bf16.msra.mxu0 %v20032_v59  ;;  %v25410_v59 = vsub.s32 4, %v21923_v14 }
 0xe1f   : > { %20037 = vmatprep.subr.bf16.mxu0 %v20036_v60 }
 0xe20   : > { %v6664_v44 = vrot.slane %v22488_v24, %v25410_v59 }
 0xe22   : > { %20039 = vmatpush3.bf16.msra.mxu0 %v20036_v60 }
 0xe23   : > { %20041 = vmatprep.subr.bf16.mxu0 %v20040_v50 }
 0xe25   : > { %18760 = vmatmul.mubr.f32.vlgmr.msra.gmra.mrb[12].mxu0 %v6138_v29 }
 0xe26   : > { %20043 = vmatpush3.bf16.msra.mxu0 %v20040_v50  ;;  %18778 = vmatprep.mubr.f32.mxu0 %v6129_v38  ;;  %v6670_v50 = vrot.slane %v22488_v24, %v25409_v43 }
 0xe27   : > { %20045 = vmatprep.subr.bf16.mxu0 %v20044_v23 }
 0xe2a   : > { %20047 = vmatpush3.bf16.msra.mxu0 %v20044_v23 }
 0xe2b   : > { %20049 = vmatprep.subr.bf16.mxu0 %v20048_v26 }
 0xe2e   : > { %20051 = vmatpush3.bf16.msra.mxu0 %v20048_v26 }
 0xe2f   : > { %20053 = vmatprep.subr.bf16.mxu0 %v20052_v45 }
 0xe32   : > { %20055 = vmatpush3.bf16.msra.mxu0 %v20052_v45 }
 0xe33   : > { %20057 = vmatprep.subr.bf16.mxu0 %v22401_v39 }
 0xe35   : > { %18779 = vmatmul.mubr.f32.vlgmr.msra.gmra.mrb[12].mxu0 %v6139_v61  ;;  %v6710_v61 = vld [vmem:[%s25399_s6 + $0x18] sm:$0xff] }
 0xe36   : > { %20059 = vmatpush3.bf16.msra.mxu0 %v22401_v39  ;;  %18797 = vmatprep.mubr.f32.mxu0 %v6130_v0  ;;  %v6707_v0 = vld [vmem:[%s25399_s6] sm:$0xff] }
 0xe37   : > { %20061 = vmatprep.subr.bf16.mxu0 %v22411_v55  ;;  %v6731_v10 = vand.u32 4294901760, %v6707_v0 }
 0xe3a   : > { %20063 = vmatpush3.bf16.msra.mxu0 %v22411_v55 }
 0xe3b   : > { %20065 = vmatprep.subr.bf16.mxu0 %v22421_v31 }
 0xe3e   : > { %20067 = vmatpush3.bf16.msra.mxu0 %v22421_v31 }
 0xe3f   : > { %20069 = vmatprep.subr.bf16.mxu0 %v22431_v3 }
 0xe42   : > { %20071 = vmatpush3.bf16.msra.mxu0 %v22431_v3 }
 0xe43   : > { %20073 = vmatprep.subr.bf16.mxu0 %v20072_v42 }
 0xe45   : > { %18798 = vmatmul.mubr.f32.vlgmr.msra.gmra.mrb[12].mxu0 %v6140_v8  ;;  %v6733_v8 = vand.u32 4294901760, %v6710_v61 }
 0xe46   : > { %20075 = vmatpush3.bf16.msra.mxu0 %v20072_v42  ;;  %18816 = vmatprep.mubr.f32.mxu0 %v6128_v54 }
 0xe47   : > { %20077 = vmatprep.subr.bf16.mxu0 %v22440_v32 }
 0xe4a   : > { %20079 = vmatpush3.bf16.msra.mxu0 %v22440_v32  ;;  %v21569_v32 = vld [vmem:[%s21661_s18] sm:$0xff] }
 0xe4b   : > { %20081 = vmatprep.subr.bf16.mxu0 %v22442_v36 }
 0xe4e   : > { %20083 = vmatpush3.bf16.msra.mxu0 %v22442_v36 }
 0xe4f   : > { %20085 = vmatprep.subr.bf16.mxu0 %v22444_v58 }
 0xe52   : > { %20087 = vmatpush3.bf16.msra.mxu0 %v22444_v58 }
 0xe53   : > { %20089 = vmatprep.subr.bf16.mxu0 %v22401_v39 }
 0xe55   : > { %18817 = vmatmul.mubr.f32.vlgmr.msra.gmra.mrb[12].mxu0 %v6138_v29 }
 0xe56   : > { %20091 = vmatpush3.bf16.msra.mxu0 %v22401_v39  ;;  %18835 = vmatprep.mubr.f32.mxu0 %v6128_v54  ;;  %v6708_v54 = vld [vmem:[%s25399_s6 + $0x8] sm:$0xff] }
 0xe57   : > { %20093 = vmatprep.subr.bf16.mxu0 %v22411_v55  ;;  %v6729_v38 = vand.u32 4294901760, %v6708_v54 }
 0xe59   : > { %v22530_v49 = vpack.c.bf16 %v6733_v8, %v6729_v38 }
 0xe5a   : > { %20095 = vmatpush3.bf16.msra.mxu0 %v22411_v55 }
 0xe5b   : > { %20097 = vmatprep.subr.bf16.mxu0 %v22421_v31  ;;  %20105 = vmatprep.subr.bf16.mxu1 %v22530_v49 }
 0xe5e   : > { %20099 = vmatpush3.bf16.msra.mxu0 %v22421_v31 }
 0xe5f   : > { %20101 = vmatprep.subr.bf16.mxu0 %v22431_v3 }
 0xe62   : > { %20103 = vmatpush3.bf16.msra.mxu0 %v22431_v3 }
 0xe65   : > { %18836 = vmatmul.mubr.f32.vlgmr.msra.gmra.mrb[12].mxu0 %v6138_v29 }
 0xf38   : > { %v18837_v17 = vpop.f32.mrb[12].mxu0 }
 0xf39   : > { %v6625_v11 = vpop.f32.mrb[13].mxu0  ;;  %v6638_v25 = vsel %vm382_vm1, %v18837_v17, 0.0 }
 0xf3a   : > { %6639 = vadd.xlane.f32.xlu0 %v6638_v25  ;;  %v6635_v39 = vsel %vm354_vm0, %v6625_v11, 0.0  ;;  %v6714_v25 = vld [vmem:[%s25399_s6 + $0x38] sm:$0xff] }
 0xf3b   : > { %6636 = vadd.xlane.f32.xlu1 %v6635_v39 }
 0xfc7   : > { %v6640_v21 = vpop.xlane.xlu0 %6639 }
 0xfc8   : > { %v6642_v33 = vmul.f32 0.015625, %v6640_v21  ;;  %v6637_v55 = vpop.xlane.xlu1 %6636  ;;  %v6741_v21 = vand.u32 4294901760, %v6714_v25 }
 0xfc9   : > { %v6641_v41 = vmul.f32 0.015625, %v6637_v55  ;;  %v6713_v55 = vld [vmem:[%s25399_s6 + $0x30] sm:$0xff] }
 0xfca   : > { %v6644_v47 = vsub.f32 %v18837_v17, %v6642_v33  ;;  %v22532_v17 = vpack.c.bf16 %v6735_v18, %v6731_v10  ;;  %v6711_v33 = vld [vmem:[%s25399_s6 + $0x20] sm:$0xff] }
 0xfcb   : > { %v6643_v52 = vsub.f32 %v6625_v11, %v6641_v41  ;;  %v6712_v11 = vld [vmem:[%s25399_s6 + $0x28] sm:$0xff]  ;;  %v6739_v41 = vand.u32 4294901760, %v6711_v33 }
 0xfcc   : > { %v6646_v53 = vmul.f32 %v6644_v47, %v6644_v47  ;;  %v6737_v39 = vand.u32 4294901760, %v6712_v11  ;;  %20107 = vmatpush1.bf16.msra.mxu1 %v22532_v17 }
 0xfcd   : > { %v6645_v31 = vmul.f32 %v6643_v52, %v6643_v52 }
 0xfce   : > { %v6650_v3 = vsel %vm382_vm1, %v6646_v53, 0.0  ;;  %v6718_v53 = vld [vmem:[%s25399_s6 + $0x58] sm:$0xff] }
 0xfcf   : > { %v6647_v56 = vsel %vm354_vm0, %v6645_v31, 0.0 }
 0xfd0   : > { %6648 = vadd.xlane.f32.xlu0 %v6647_v56  ;;  %v6716_v56 = vld [vmem:[%s25399_s6 + $0x48] sm:$0xff] }
 0xfd4   : > { %6651 = vadd.xlane.f32.xlu0 %v6650_v3  ;;  %v6745_v3 = vand.u32 4294901760, %v6716_v56 }
0x105d   : > { %v6649_v1 = vpop.xlane.xlu0 %6648 }
0x105e   : > { %v6653_v19 = vmul.f32 0.015625, %v6649_v1  ;;  %v6749_v1 = vand.u32 4294901760, %v6718_v53 }
0x1060   : > { %v6655_v57 = vadd.f32 1e-05, %v6653_v19  ;;  %v6715_v19 = vld [vmem:[%s25399_s6 + $0x40] sm:$0xff] }
0x1061   : > { %v6652_v34 = vpop.xlane.xlu0 %6651 }
0x1062   : > { %21492 = vrsqrt.f32 %v6655_v57  ;;  %v6654_v20 = vmul.f32 0.015625, %v6652_v34  ;;  %v6717_v57 = vld [vmem:[%s25399_s6 + $0x50] sm:$0xff]  ;;  %v6747_v34 = vand.u32 4294901760, %v6715_v19 }
0x1064   : > { %v6656_v27 = vadd.f32 1e-05, %v6654_v20  ;;  %v6751_v20 = vand.u32 4294901760, %v6717_v57 }
0x1066   : > { %21494 = vrsqrt.f32 %v6656_v27  ;;  %v22566_v27 = vsub.f32 %v6708_v54, %v6729_v38 }
0x106c   : > { %v21493_v13 = vpop.eup %21492 }
0x106d   : > { %v6659_v60 = vmul.f32 %v21493_v13, %v6643_v52  ;;  %v22548_v52 = vpack.c.bf16 %v6741_v21, %v6737_v39  ;;  %v22570_v13 = vsub.f32 %v6707_v0, %v6731_v10 }
0x106f   : > { %v6665_v23 = vmul.f32 %v6664_v44, %v6659_v60  ;;  %20109 = vmatprep.subr.bf16.mxu1 %v22548_v52  ;;  %v22572_v60 = vsub.f32 %v6709_v5, %v6735_v18  ;;  %v25412_v0 = vand.u32 4294901760, %v22570_v13 }
0x1070   : > { %v21495_v26 = vpop.eup %21494 }
0x1071   : > { %v6671_v45 = vadd.f32 %v6670_v50, %v6665_v23  ;;  %v6660_v42 = vmul.f32 %v21495_v26, %v6644_v47  ;;  %v6743_v47 = vand.u32 4294901760, %v6713_v55  ;;  %v6722_v23 = vld [vmem:[%s25399_s6 + $0x78] sm:$0xff]  ;;  %v22580_v26 = vsub.f32 %v6712_v11, %v6737_v39 }
0x1072   : > { %v6841_v39 = vsub.f32 %v22570_v13, %v25412_v0 }
0x1073   : > { %v22497_v36 = vadd.f32 %v21569_v32, %v6671_v45  ;;  %v6666_v58 = vmul.f32 %v6664_v44, %v6660_v42  ;;  %v22550_v31 = vpack.c.bf16 %v6743_v47, %v6739_v41  ;;  %v22568_v44 = vsub.f32 %v6710_v61, %v6733_v8 }
0x1074   : > { %v22582_v45 = vsub.f32 %v6714_v25, %v6741_v21  ;;  %v22584_v42 = vsub.f32 %v6711_v33, %v6739_v41  ;;  %v22586_v32 = vsub.f32 %v6713_v55, %v6743_v47  ;;  %v6852_v21 = vand.u32 4294901760, %v22572_v60 }
0x1075   : > { %25603 = vst [vmem:[#allocation6_spill] sm:$0xff] %v22497_v36  ;;  %v6675_v63 = vsel %vm354_vm0, %v22497_v36, 0.0  ;;  %v6672_v62 = vadd.f32 %v6670_v50, %v6666_v58  ;;  %20111 = vmatpush1.bf16.msra.mxu1 %v22550_v31  ;;  %v6720_v50 = vld [vmem:[%s25399_s6 + $0x68] sm:$0xff]  ;;  %v6719_v58 = vld [vmem:[%s25399_s6 + $0x60] sm:$0xff]  ;;  %v25413_v54 = vand.u32 4294901760, %v22568_v44  ;;  %v6858_v33 = vand.u32 4294901760, %v22580_v26 }
0x1076   : > { %6676 = vadd.xlane.f32.xlu1 %v6675_v63  ;;  %v6721_v63 = vld [vmem:[%s25399_s6 + $0x70] sm:$0xff]  ;;  %v6870_v41 = vand.u32 4294901760, %v22582_v45  ;;  %v6864_v47 = vand.u32 4294901760, %v22584_v42 }
0x1077   : > { %v22502_v7 = vadd.f32 %v21570_v2, %v6672_v62  ;;  %v22594_v62 = vpack.c.bf16 %v6749_v1, %v6745_v3  ;;  %v22596_v2 = vsub.f32 %v6716_v56, %v6745_v3  ;;  %v6847_v25 = vsub.f32 %v22568_v44, %v25413_v54 }
0x1078   : > { %v6876_v56 = vand.u32 4294901760, %v22586_v32  ;;  %v6842_v3 = vand.u32 4294901760, %v6841_v39 }
0x1079   : > { %25604 = vst [vmem:[#allocation7_spill] sm:$0xff] %v22502_v7  ;;  %v6678_v30 = vsel %vm382_vm1, %v22502_v7, 0.0  ;;  %20113 = vmatprep.subr.bf16.mxu1 %v22594_v62 }
0x107a   : > { %6679 = vadd.xlane.f32.xlu0 %v6678_v30  ;;  %v22598_v30 = vsub.f32 %v6718_v53, %v6749_v1  ;;  %v6848_v53 = vand.u32 4294901760, %v6847_v25  ;;  %v6853_v1 = vsub.f32 %v22572_v60, %v6852_v21 }
0x1103   : > { %v6677_v28 = vpop.xlane.xlu1 %6676 }
0x1104   : > { %v6681_v37 = vmul.f32 0.015625, %v6677_v28  ;;  %v22600_v28 = vpack.c.bf16 %v6751_v20, %v6747_v34 }
0x1106   : > { %v22507_v9 = vsub.f32 %v22497_v36, %v6681_v37  ;;  %v22602_v37 = vsub.f32 %v6715_v19, %v6747_v34  ;;  %20115 = vmatpush1.bf16.msra.mxu1 %v22600_v28  ;;  %v6859_v19 = vsub.f32 %v22580_v26, %v6858_v33  ;;  %v6865_v34 = vsub.f32 %v22584_v42, %v6864_v47 }
0x1107   : > { %v6680_v15 = vpop.xlane.xlu0 %6679 }
0x1108   : > { %v6682_v35 = vmul.f32 0.015625, %v6680_v15  ;;  %v6685_v40 = vmul.f32 %v22507_v9, %v22507_v9  ;;  %v22604_v15 = vsub.f32 %v6717_v57, %v6751_v20  ;;  %v6871_v57 = vsub.f32 %v22582_v45, %v6870_v41 }
0x1109   : > { %v6877_v20 = vsub.f32 %v22586_v32, %v6876_v56  ;;  %v6888_v39 = vand.u32 4294901760, %v22602_v37 }
0x110a   : > { %v22512_v6 = vsub.f32 %v22502_v7, %v6682_v35  ;;  %v6687_v48 = vsel %vm354_vm0, %v6685_v40, 0.0  ;;  %v6753_v35 = vand.u32 4294901760, %v6720_v50  ;;  %v6757_v40 = vand.u32 4294901760, %v6722_v23 }
0x110b   : > { %6688 = vadd.xlane.f32.xlu1 %v6687_v48  ;;  %v6755_v48 = vand.u32 4294901760, %v6719_v58  ;;  %v6900_v43 = vand.u32 4294901760, %v22604_v15 }
0x110c   : > { %v6686_v29 = vmul.f32 %v22512_v6, %v22512_v6  ;;  %v22610_v61 = vpack.c.bf16 %v6757_v40, %v6753_v35  ;;  %v22612_v38 = vsub.f32 %v6720_v50, %v6753_v35  ;;  %v22614_v8 = vsub.f32 %v6722_v23, %v6757_v40 }
0x110d   : > { %v22619_v10 = vsub.f32 %v6719_v58, %v6755_v48  ;;  %v6854_v23 = vand.u32 4294901760, %v6853_v1  ;;  %v6860_v58 = vand.u32 4294901760, %v6859_v19  ;;  %v6872_v35 = vand.u32 4294901760, %v6871_v57 }
0x110e   : > { %v6690_v16 = vsel %vm382_vm1, %v6686_v29, 0.0  ;;  %v6759_v29 = vand.u32 4294901760, %v6721_v63  ;;  %20117 = vmatprep.subr.bf16.mxu1 %v22610_v61  ;;  %v6866_v40 = vand.u32 4294901760, %v6865_v34  ;;  %v6889_v19 = vsub.f32 %v22602_v37, %v6888_v39 }
0x110f   : > { %6691 = vadd.xlane.f32.xlu0 %v6690_v16  ;;  %v25414_v16 = vand.u32 4294901760, %v22566_v27  ;;  %v22651_v59 = vpack.c.bf16 %v6872_v35, %v6860_v58  ;;  %v6901_v57 = vsub.f32 %v22604_v15, %v6900_v43 }
0x1110   : > { %v22617_v5 = vpack.c.bf16 %v6759_v29, %v6755_v48  ;;  %v22621_v18 = vsub.f32 %v6721_v63, %v6759_v29  ;;  %v6882_v63 = vand.u32 4294901760, %v22596_v2  ;;  %v6878_v48 = vand.u32 4294901760, %v6877_v20 }
0x1111   : > { %v6835_v11 = vsub.f32 %v22566_v27, %v25414_v16  ;;  %v6894_v29 = vand.u32 4294901760, %v22598_v30  ;;  %v6918_v20 = vand.u32 4294901760, %v22614_v8  ;;  %v6890_v58 = vand.u32 4294901760, %v6889_v19 }
0x1112   : > { %20119 = vmatpush1.bf16.msra.mxu1 %v22617_v5  ;;  %v6883_v25 = vsub.f32 %v22596_v2, %v6882_v63  ;;  %v6902_v35 = vand.u32 4294901760, %v6901_v57  ;;  %v20136_v19 = vpack.c.bf16 %v22568_v44, %v22566_v27  ;;  %v20138_v57 = vpack.c.bf16 %v22572_v60, %v22570_v13 }
0x1113   : > { %v6836_v55 = vand.u32 4294901760, %v6835_v11  ;;  %v22646_v11 = vpack.c.bf16 %v6854_v23, %v6842_v3  ;;  %v6906_v3 = vand.u32 4294901760, %v22612_v38  ;;  %v6924_v23 = vand.u32 4294901760, %v22621_v18 }
0x1114   : > { %v6884_v1 = vand.u32 4294901760, %v6883_v25  ;;  %v6919_v25 = vsub.f32 %v22614_v8, %v6918_v20  ;;  %v20130_v54 = vpack.c.bf16 %v6902_v35, %v6890_v58  ;;  %v20144_v58 = vpack.c.bf16 %v22598_v30, %v22596_v2 }
0x1115   : > { %v20120_v50 = vpack.c.bf16 %v6848_v53, %v6836_v55  ;;  %v22653_v55 = vpack.c.bf16 %v6878_v48, %v6866_v40  ;;  %v6895_v53 = vsub.f32 %v22598_v30, %v6894_v29  ;;  %v6907_v40 = vsub.f32 %v22612_v38, %v6906_v3 }
0x1116   : > { %v6925_v0 = vsub.f32 %v22621_v18, %v6924_v23  ;;  %v25605_v60 = vand.u32 4294901760, %v22566_v27  ;;  %v22694_v2 = vpack.c.bf16 %v6876_v56, %v6864_v47  ;;  %v22696_v30 = vpack.c.bf16 %v6894_v29, %v6882_v63 }
0x1117   : > { %20121 = vmatprep.subr.bf16.mxu1 %v20120_v50  ;;  %v6896_v34 = vand.u32 4294901760, %v6895_v53  ;;  %v6912_v50 = vand.u32 4294901760, %v22619_v10  ;;  %v6908_v16 = vand.u32 4294901760, %v6907_v40  ;;  %v6920_v53 = vand.u32 4294901760, %v6919_v25 }
0x1118   : > { %v6926_v36 = vand.u32 4294901760, %v6925_v0 }
0x1119   : > { %v20128_v48 = vpack.c.bf16 %v6896_v34, %v6884_v1  ;;  %v6913_v22 = vsub.f32 %v22619_v10, %v6912_v50  ;;  %v20132_v12 = vpack.c.bf16 %v6920_v53, %v6908_v16  ;;  %v20140_v1 = vpack.c.bf16 %v22582_v45, %v22580_v26 }
0x111a   : > { %v20142_v34 = vpack.c.bf16 %v22586_v32, %v22584_v42  ;;  %v25606_v16 = vand.u32 4294901760, %v22568_v44  ;;  %v25607_v45 = vand.u32 4294901760, %v22570_v13  ;;  %v22692_v32 = vpack.c.bf16 %v6870_v41, %v6858_v33 }
0x111b   : > { %v6914_v7 = vand.u32 4294901760, %v6913_v22  ;;  %v20146_v22 = vpack.c.bf16 %v22604_v15, %v22602_v37  ;;  %v22698_v37 = vpack.c.bf16 %v6900_v43, %v6888_v39  ;;  %v22700_v15 = vpack.c.bf16 %v6918_v20, %v6906_v3 }
0x111c   : > { %v22686_v26 = vpack.c.bf16 %v25606_v16, %v25605_v60  ;;  %v22690_v42 = vpack.c.bf16 %v6852_v21, %v25607_v45 }
0x111d   : > { %v20134_v4 = vpack.c.bf16 %v6926_v36, %v6914_v7  ;;  %v20148_v36 = vpack.c.bf16 %v22614_v8, %v22612_v38  ;;  %v20150_v7 = vpack.c.bf16 %v22621_v18, %v22619_v10  ;;  %v22702_v38 = vpack.c.bf16 %v6924_v23, %v6912_v50 }
0x111e   : > { %v25420_v18 = vsub.s32 6, %v21923_v14 }
0x1120   : > { %v6704_v21 = vrot.slane %v22488_v24, %v25420_v18 }
0x1198   : > { %v6689_v27 = vpop.xlane.xlu1 %6688 }
0x1199   : > { %v6693_v44 = vmul.f32 0.015625, %v6689_v27 }
0x119b   : > { %v6695_v8 = vadd.f32 1e-05, %v6693_v44 }
0x119c   : > { %v6692_v0 = vpop.xlane.xlu0 %6691 }
0x119d   : > { %21496 = vrsqrt.f32 %v6695_v8  ;;  %v6694_v13 = vmul.f32 0.015625, %v6692_v0 }
0x119f   : > { %v6696_v10 = vadd.f32 1e-05, %v6694_v13 }
0x11a1   : > { %21498 = vrsqrt.f32 %v6696_v10 }
0x11a7   : > { %v21497_v43 = vpop.eup %21496 }
0x11a8   : > { %v6699_v33 = vmul.f32 %v21497_v43, %v22507_v9 }
0x11aa   : > { %v6705_v41 = vmul.f32 %v6704_v21, %v6699_v33 }
0x11ab   : > { %v21499_v47 = vpop.eup %21498 }
0x11ac   : > { %v6700_v56 = vmul.f32 %v21499_v47, %v22512_v6  ;;  %v6724_v63 = vsel %vm354_vm0, %v6705_v41, 0  ;;  %v7530_v41 = vld [vmem:[%s25401_s8 + $0x80] sm:$0xff]  ;;  %v7531_v47 = vld [vmem:[%s25401_s8 + $0x88] sm:$0xff] }
0x11ad   : > { %v22711_v29 = vand.u32 4294901760, %v6724_v63 }
0x11ae   : > { %v6706_v39 = vmul.f32 %v6704_v21, %v6700_v56  ;;  %v7514_v56 = vld [vmem:[%s25401_s8] sm:$0xff] }
0x11af   : > { %v6811_v3 = vsub.f32 %v6724_v63, %v22711_v29  ;;  %v7595_v63 = vand.u32 4294901760, %v7530_v41 }
0x11b0   : > { %v6727_v20 = vsel %vm354_vm0, %v6706_v39, 0  ;;  %v7515_v39 = vld [vmem:[%s25401_s8 + $0x8] sm:$0xff] }
0x11b1   : > { %v6812_v50 = vand.u32 4294901760, %v6811_v3  ;;  %v22715_v23 = vand.u32 4294901760, %v6727_v20 }
0x11b3   : > { %v6813_v24 = vsub.f32 %v6811_v3, %v6812_v50  ;;  %v6822_v35 = vsub.f32 %v6727_v20, %v22715_v23  ;;  %v22791_v20 = vld [vmem:[%s25401_s8 + $0x90] sm:$0xff] }
0x11b5   : > { %v6814_v9 = vand.u32 4294901760, %v6813_v24  ;;  %v6823_v40 = vand.u32 4294901760, %v6822_v35  ;;  %v7601_v24 = vand.u32 4294901760, %v22791_v20 }
0x11b7   : > { %6815 = vmatmul.mubr.f32.vlgmr.msra.gmra.mrb[14].mxu1 %v6814_v9  ;;  %v6824_v25 = vsub.f32 %v6822_v35, %v6823_v40  ;;  %v22803_v9 = vld [vmem:[%s25401_s8 + $0x10] sm:$0xff] }
0x11b8   : > { %20123 = vmatpush1.bf16.msra.mxu1 %v22646_v11  ;;  %6820 = vmatprep.mubr.f32.mxu1 %v25600_v46 }
0x11b9   : > { %20125 = vmatprep.subr.bf16.mxu1 %v22651_v59  ;;  %v6825_v6 = vand.u32 4294901760, %v6824_v25  ;;  %v22810_v25 = vsub.f32 %v7530_v41, %v7595_v63 }
0x11bb   : > { %6826 = vmatmul.mubr.f32.gmra.mrb[16].mxu1 %v6825_v6 }
0x11bc   : > { %20127 = vmatpush1.bf16.msra.mxu1 %v22653_v55  ;;  %6976 = vmatprep.mubr.f32.mxu1 %v25600_v46 }
0x11bd   : > { %20129 = vmatprep.subr.bf16.mxu1 %v20128_v48 }
0x11c0   : > { %20131 = vmatpush1.bf16.msra.mxu1 %v20130_v54 }
0x11c1   : > { %20133 = vmatprep.subr.bf16.mxu1 %v20132_v12 }
0x11c4   : > { %20135 = vmatpush1.bf16.msra.mxu1 %v20134_v4 }
0x11c5   : > { %20137 = vmatprep.subr.bf16.mxu1 %v20136_v19 }
0x11c7   : > { %6978 = vmatmul.mubr.f32.vlgmr.msra.gmra.mrb[14].mxu1 %v22711_v29 }
0x11c8   : > { %20139 = vmatpush1.bf16.msra.mxu1 %v20138_v57  ;;  %6983 = vmatprep.mubr.f32.mxu1 %v25600_v46 }
0x11c9   : > { %20141 = vmatprep.subr.bf16.mxu1 %v20140_v1 }
0x11cb   : > { %6985 = vmatmul.mubr.f32.gmra.mrb[16].mxu1 %v22715_v23 }
0x11cc   : > { %20143 = vmatpush1.bf16.msra.mxu1 %v20142_v34  ;;  %7087 = vmatprep.mubr.f32.mxu1 %v25600_v46 }
0x11cd   : > { %20145 = vmatprep.subr.bf16.mxu1 %v20144_v58 }
0x11d0   : > { %20147 = vmatpush1.bf16.msra.mxu1 %v20146_v22 }
0x11d1   : > { %20149 = vmatprep.subr.bf16.mxu1 %v20148_v36 }
0x11d4   : > { %20151 = vmatpush1.bf16.msra.mxu1 %v20150_v7 }
0x11d5   : > { %20153 = vmatprep.subr.bf16.mxu1 %v22530_v49 }
0x11d7   : > { %7090 = vmatmul.mubr.f32.vlgmr.msra.gmra.mrb[14].mxu1 %v6811_v3  ;;  %v7547_v3 = vand.u32 4294901760, %v7514_v56 }
0x11d8   : > { %20155 = vmatpush1.bf16.msra.mxu1 %v22532_v17  ;;  %7095 = vmatprep.mubr.f32.mxu1 %v25600_v46 }
0x11d9   : > { %20157 = vmatprep.subr.bf16.mxu1 %v22548_v52 }
0x11db   : > { %7098 = vmatmul.mubr.f32.gmra.mrb[16].mxu1 %v6822_v35 }
0x11dc   : > { %20159 = vmatpush1.bf16.msra.mxu1 %v22550_v31  ;;  %7184 = vmatprep.mubr.f32.mxu1 %v25600_v46 }
0x11dd   : > { %20161 = vmatprep.subr.bf16.mxu1 %v22594_v62 }
0x11e0   : > { %20163 = vmatpush1.bf16.msra.mxu1 %v22600_v28 }
0x11e1   : > { %20165 = vmatprep.subr.bf16.mxu1 %v22610_v61 }
0x11e4   : > { %20167 = vmatpush1.bf16.msra.mxu1 %v22617_v5 }
0x11e5   : > { %20169 = vmatprep.subr.bf16.mxu1 %v22686_v26 }
0x11e7   : > { %7188 = vmatmul.mubr.f32.vlgmr.msra.gmra.mrb[14].mxu1 %v6812_v50  ;;  %v22796_v50 = vld [vmem:[%s25401_s8 + $0x98] sm:$0xff] }
0x11e8   : > { %20171 = vmatpush1.bf16.msra.mxu1 %v22690_v42  ;;  %7193 = vmatprep.mubr.f32.mxu1 %v25600_v46  ;;  %v7604_v35 = vand.u32 4294901760, %v22796_v50 }
0x11e9   : > { %20173 = vmatprep.subr.bf16.mxu1 %v22692_v32 }
0x11eb   : > { %7197 = vmatmul.mubr.f32.gmra.mrb[16].mxu1 %v6823_v40  ;;  %v22808_v40 = vld [vmem:[%s25401_s8 + $0x18] sm:$0xff] }
0x11ec   : > { %20175 = vmatpush1.bf16.msra.mxu1 %v22694_v2  ;;  %7315 = vmatprep.mubr.f32.mxu1 %v25600_v46 }
0x11ed   : > { %20177 = vmatprep.subr.bf16.mxu1 %v22696_v30 }
0x11f0   : > { %20179 = vmatpush1.bf16.msra.mxu1 %v22698_v37 }
0x11f1   : > { %20181 = vmatprep.subr.bf16.mxu1 %v22700_v15 }
0x11f4   : > { %20183 = vmatpush1.bf16.msra.mxu1 %v22702_v38 }
0x11f5   : > { %20185 = vmatprep.subr.bf16.mxu1 %v22530_v49 }
0x11f7   : > { %7317 = vmatmul.mubr.f32.vlgmr.msra.gmra.mrb[14].mxu1 %v22711_v29 }
0x11f8   : > { %20187 = vmatpush1.bf16.msra.mxu1 %v22532_v17  ;;  %7322 = vmatprep.mubr.f32.mxu1 %v25600_v46 }
0x11f9   : > { %20189 = vmatprep.subr.bf16.mxu1 %v22548_v52 }
0x11fb   : > { %7324 = vmatmul.mubr.f32.gmra.mrb[16].mxu1 %v22715_v23 }
0x11fc   : > { %20191 = vmatpush1.bf16.msra.mxu1 %v22550_v31  ;;  %7410 = vmatprep.mubr.f32.mxu1 %v25600_v46 }
0x11fd   : > { %20193 = vmatprep.subr.bf16.mxu1 %v22594_v62 }
0x1200   : > { %20195 = vmatpush1.bf16.msra.mxu1 %v22600_v28 }
0x1201   : > { %20197 = vmatprep.subr.bf16.mxu1 %v22610_v61 }
0x1204   : > { %20199 = vmatpush1.bf16.msra.mxu1 %v22617_v5 }
0x1207   : > { %7412 = vmatmul.mubr.f32.vlgmr.msra.gmra.mrb[14].mxu1 %v22711_v29  ;;  %v7598_v29 = vand.u32 4294901760, %v7531_v47 }
0x1208   : > { %7417 = vmatprep.mubr.f32.mxu1 %v25600_v46 }
0x1209   : > { %v22812_v6 = vsub.f32 %v7531_v47, %v7598_v29 }
0x120b   : > { %7419 = vmatmul.mubr.f32.gmra.mrb[16].mxu1 %v22715_v23  ;;  %v7550_v23 = vand.u32 4294901760, %v7515_v39 }
0x12da   : > { %v7413_v4 = vpop.f32.mrb[14].mxu1 }
0x12db   : > { %v7429_v12 = vmul.f32 0.044715, %v7413_v4  ;;  %v7415_v59 = vpop.f32.mrb[15].mxu1  ;;  %v7425_v26 = vmul.f32 0.5, %v7413_v4 }
0x12dc   : > { %v7430_v49 = vmul.f32 0.044715, %v7415_v59  ;;  %v7426_v42 = vmul.f32 0.5, %v7415_v59 }
0x12dd   : > { %v7433_v17 = vmul.f32 %v7429_v12, %v7413_v4  ;;  %v7553_v12 = vand.u32 4294901760, %v22803_v9 }
0x12de   : > { %v7434_v52 = vmul.f32 %v7430_v49, %v7415_v59  ;;  %v7420_v31 = vpop.f32.mrb[16].mxu1  ;;  %v22822_v49 = vsub.f32 %v22791_v20, %v7601_v24  ;;  %v23098_v20 = vld [vmem:[%s25401_s8 + $0x58] sm:$0xff] }
0x12df   : > { %v7437_v62 = vmul.f32 %v7433_v17, %v7413_v4  ;;  %v7431_v54 = vmul.f32 0.044715, %v7420_v31  ;;  %v7422_v28 = vpop.f32.mrb[17].mxu1  ;;  %v7427_v38 = vmul.f32 0.5, %v7420_v31  ;;  %v22827_v17 = vsub.f32 %v22796_v50, %v7604_v35 }
0x12e0   : > { %v7438_v11 = vmul.f32 %v7434_v52, %v7415_v59  ;;  %v7432_v61 = vmul.f32 0.044715, %v7422_v28  ;;  %v7428_v8 = vmul.f32 0.5, %v7422_v28  ;;  %v7556_v52 = vand.u32 4294901760, %v22808_v40 }
0x12e1   : > { %v7441_v55 = vadd.f32 %v7437_v62, %v7413_v4  ;;  %v7435_v5 = vmul.f32 %v7431_v54, %v7420_v31  ;;  %v22814_v4 = vsub.f32 %v7514_v56, %v7547_v3  ;;  %v25431_v62 = vand.u32 4294901760, %v22812_v6 }
0x12e2   : > { %v7442_v48 = vadd.f32 %v7438_v11, %v7415_v59  ;;  %v7436_v53 = vmul.f32 %v7432_v61, %v7422_v28  ;;  %v22817_v59 = vsub.f32 %v7515_v39, %v7550_v23  ;;  %v25428_v61 = vand.u32 4294901760, %v22822_v49 }
0x12e3   : > { %v7439_v19 = vmul.f32 %v7435_v5, %v7420_v31  ;;  %v7445_v57 = vmul.f32 0.7978846, %v7441_v55  ;;  %v25430_v54 = vand.u32 4294901760, %v22814_v4  ;;  %v25427_v55 = vand.u32 4294901760, %v22827_v17 }
0x12e4   : > { %v7440_v1 = vmul.f32 %v7436_v53, %v7422_v28  ;;  %v7446_v34 = vmul.f32 0.7978846, %v7442_v48  ;;  %v25429_v11 = vand.u32 4294901760, %v22817_v59  ;;  %v22844_v5 = vsub.f32 %v22808_v40, %v7556_v52 }
0x12e5   : > { %v7443_v58 = vadd.f32 %v7439_v19, %v7420_v31  ;;  %21500 = vtanh.f32 %v7445_v57  ;;  %v25432_v31 = vand.u32 4294901760, %v22810_v25  ;;  %v7796_v53 = vsub.f32 %v22812_v6, %v25431_v62 }
0x12e6   : > { %v7444_v22 = vadd.f32 %v7440_v1, %v7422_v28  ;;  %21502 = vtanh.f32 %v7446_v34  ;;  %v22836_v28 = vsub.f32 %v22803_v9, %v7553_v12  ;;  %25609 = vst [vmem:[#allocation9_spill] sm:$0xff] %v22844_v5  ;;  %v7677_v19 = vsub.f32 %v22814_v4, %v25430_v54 }
0x12e7   : > { %v7447_v36 = vmul.f32 0.7978846, %v7443_v58  ;;  %v7789_v48 = vsub.f32 %v22810_v25, %v25432_v31  ;;  %v7684_v1 = vsub.f32 %v22817_v59, %v25429_v11  ;;  %v7803_v34 = vsub.f32 %v22822_v49, %v25428_v61 }
0x12e8   : > { %v7448_v7 = vmul.f32 0.7978846, %v7444_v22  ;;  %25608 = vst [vmem:[#allocation8_spill] sm:$0xff] %v22836_v28  ;;  %v25426_v57 = vand.u32 4294901760, %v22836_v28  ;;  %v7810_v58 = vsub.f32 %v22827_v17, %v25427_v55  ;;  %v25425_v22 = vand.u32 4294901760, %v22844_v5 }
0x12e9   : > { %21504 = vtanh.f32 %v7447_v36  ;;  %v22869_v36 = vld [vmem:[%s25401_s8 + $0xa0] sm:$0xff]  ;;  %v22902_v39 = vpack.c.bf16 %v7550_v23, %v7547_v3  ;;  %v23104_v50 = vpack.c.bf16 %v7556_v52, %v7553_v12 }
0x12ea   : > { %21506 = vtanh.f32 %v7448_v7  ;;  %v7790_v7 = vand.u32 4294901760, %v7789_v48 }
0x12ef   : > { %v21501_v60 = vpop.eup %21500 }
0x12f0   : > { %v21503_v16 = vpop.eup %21502  ;;  %v7453_v45 = vadd.f32 1.0, %v21501_v60  ;;  %v7797_v60 = vand.u32 4294901760, %v7796_v53 }
0x12f1   : > { %v7454_v32 = vadd.f32 1.0, %v21503_v16  ;;  %v7678_v16 = vand.u32 4294901760, %v7677_v19 }
0x12f2   : > { %v22762_v2 = vmul.f32 %v7453_v45, %v7425_v26  ;;  %v7691_v26 = vsub.f32 %v22836_v28, %v25426_v57  ;;  %v22877_v45 = vld [vmem:[%s25401_s8 + $0xa8] sm:$0xff]  ;;  %v25642_v28 = vand.u32 4294901760, %v23098_v20 }
0x12f3   : > { %v21505_v30 = vpop.eup %21504  ;;  %v22764_v37 = vmul.f32 %v7454_v32, %v7426_v42  ;;  %v7685_v42 = vand.u32 4294901760, %v7684_v1  ;;  %v7804_v32 = vand.u32 4294901760, %v7803_v34  ;;  %v25445_v47 = vand.u32 4294901760, %v22877_v45 }
0x12f4   : > { %v21507_v15 = vpop.eup %21506  ;;  %v7455_v27 = vadd.f32 1.0, %v21505_v30  ;;  %v7811_v30 = vand.u32 4294901760, %v7810_v58 }
0x12f5   : > { %v7462_v44 = vadd.f32 %v22764_v37, %v22762_v2  ;;  %v7456_v0 = vadd.f32 1.0, %v21507_v15  ;;  %v7698_v15 = vsub.f32 %v22844_v5, %v25425_v22  ;;  %v22909_v53 = vsub.f32 %v22877_v45, %v25445_v47  ;;  %v23026_v22 = vld [vmem:[%s25401_s8 + $0x48] sm:$0xff] }
0x12f6   : > { %v22768_v13 = vmul.f32 %v7455_v27, %v7427_v38  ;;  %v22885_v38 = vld [vmem:[%s25401_s8 + $0x20] sm:$0xff]  ;;  %v22890_v27 = vld [vmem:[%s25401_s8 + $0x28] sm:$0xff]  ;;  %v25447_v11 = vand.u32 4294901760, %v23026_v22 }
0x12f7   : > { %7463 = vadd.xlane.f32.xlu1 %v7462_v44  ;;  %v22770_v10 = vmul.f32 %v7456_v0, %v7428_v8  ;;  %v20232_v44 = vpack.c.bf16 %v7797_v60, %v7790_v7  ;;  %v7692_v8 = vand.u32 4294901760, %v7691_v26  ;;  %v22892_v0 = vpack.c.bf16 %v7598_v29, %v7595_v63  ;;  %25611 = vst [vmem:[#allocation11_spill] sm:$0xff] %v22909_v53 }
0x12f8   : > { %v7465_v21 = vsel %vm2227_vm6, %v22768_v13, 0.0  ;;  %v7699_v41 = vand.u32 4294901760, %v7698_v15  ;;  %v25443_v63 = vand.u32 4294901760, %v22885_v38  ;;  %v25442_v29 = vand.u32 4294901760, %v22890_v27 }
0x12f9   : > { %v7466_v43 = vsel %vm2227_vm6, %v22770_v10, 0.0  ;;  %20233 = vmatprep.subr.bf16.mxu1 %v20232_v44  ;;  %20201 = vmatprep.subr.bf16.mxu0 %v22892_v0  ;;  %v25423_v1 = vand.u32 4294901760, %v22909_v53 }
0x12fa   : > { %v7467_v33 = vadd.f32 %v7466_v43, %v7465_v21  ;;  %v25448_v21 = vand.u32 4294901760, %v22869_v36  ;;  %v20234_v43 = vpack.c.bf16 %v7685_v42, %v7678_v16  ;;  %v20238_v48 = vpack.c.bf16 %v7699_v41, %v7692_v8  ;;  %20203 = vmatpush3.bf16.msra.mxu0 %v22902_v39 }
0x12fb   : > { %v22916_v3 = vsub.f32 %v22885_v38, %v25443_v63  ;;  %v22921_v23 = vsub.f32 %v22890_v27, %v25442_v29  ;;  %v7824_v60 = vsub.f32 %v22909_v53, %v25423_v1 }
0x12fc   : > { %7468 = vadd.xlane.f32.xlu0 %v7467_v33  ;;  %v20236_v33 = vpack.c.bf16 %v7811_v30, %v7804_v32  ;;  %v22900_v56 = vsub.f32 %v22869_v36, %v25448_v21  ;;  %20235 = vmatpush3.bf16.msra.mxu1 %v20234_v43  ;;  %v23093_v21 = vld [vmem:[%s25401_s8 + $0x50] sm:$0xff] }
0x12fd   : > { %25612 = vst [vmem:[#allocation12_spill] sm:$0xff] %v22916_v3  ;;  %25613 = vst [vmem:[#allocation13_spill] sm:$0xff] %v22921_v23  ;;  %v25422_v58 = vand.u32 4294901760, %v22916_v3  ;;  %v25421_v7 = vand.u32 4294901760, %v22921_v23  ;;  %v7825_v32 = vand.u32 4294901760, %v7824_v60 }
0x12fe   : > { %25610 = vst [vmem:[#allocation10_spill] sm:$0xff] %v22900_v56  ;;  %20237 = vmatprep.subr.bf16.mxu1 %v20236_v33  ;;  %v25424_v19 = vand.u32 4294901760, %v22900_v56 }
0x12ff   : > { %v7705_v26 = vsub.f32 %v22916_v3, %v25422_v58  ;;  %v7712_v42 = vsub.f32 %v22921_v23, %v25421_v7 }
0x1300   : > { %v7817_v34 = vsub.f32 %v22900_v56, %v25424_v19  ;;  %20239 = vmatpush3.bf16.msra.mxu1 %v20238_v48  ;;  %v23021_v19 = vld [vmem:[%s25401_s8 + $0x40] sm:$0xff] }
0x1301   : > { %v7706_v30 = vand.u32 4294901760, %v7705_v26  ;;  %v7713_v15 = vand.u32 4294901760, %v7712_v42  ;;  %v25446_v61 = vand.u32 4294901760, %v23021_v19 }
0x1302   : > { %v7818_v16 = vand.u32 4294901760, %v7817_v34 }
0x1303   : > { %v20242_v8 = vpack.c.bf16 %v7713_v15, %v7706_v30  ;;  %v22961_v30 = vld [vmem:[%s25401_s8 + $0xb0] sm:$0xff] }
0x1304   : > { %v20240_v44 = vpack.c.bf16 %v7825_v32, %v7818_v16  ;;  %v25440_v15 = vand.u32 4294901760, %v22961_v30 }
0x1306   : > { %20241 = vmatprep.subr.bf16.mxu1 %v20240_v44 }
0x1307   : > { %20243 = vmatpush3.bf16.msra.mxu1 %v20242_v8  ;;  %v22975_v8 = vld [vmem:[%s25401_s8 + $0x30] sm:$0xff] }
0x1384   : > { %v7464_v43 = vpop.xlane.xlu1 %7463 }
0x1385   : > { %v7471_v33 = vmul.f32 0.00390625, %v7464_v43  ;;  %v22980_v43 = vld [vmem:[%s25401_s8 + $0x38] sm:$0xff] }
0x1387   : > { %v22939_v41 = vsub.f32 %v22762_v2, %v7471_v33  ;;  %v22942_v48 = vsub.f32 %v22764_v37, %v7471_v33 }
0x1389   : > { %v7469_v34 = vpop.xlane.xlu0 %7468  ;;  %v7477_v18 = vmul.f32 %v22939_v41, %v22939_v41  ;;  %v7478_v60 = vmul.f32 %v22942_v48, %v22942_v48 }
0x138a   : > { %v7472_v26 = vmul.f32 0.00390625, %v7469_v34  ;;  %v25434_v34 = vand.u32 4294901760, %v22975_v8 }
0x138b   : > { %v7481_v16 = vadd.f32 %v7478_v60, %v7477_v18  ;;  %v22966_v18 = vld [vmem:[%s25401_s8 + $0xb8] sm:$0xff]  ;;  %v25433_v60 = vand.u32 4294901760, %v22980_v43 }
0x138c   : > { %v22949_v42 = vsub.f32 %v22768_v13, %v7472_v26  ;;  %v22952_v32 = vsub.f32 %v22770_v10, %v7472_v26  ;;  %v25439_v44 = vand.u32 4294901760, %v22966_v18  ;;  %v22987_v26 = vsub.f32 %v22961_v30, %v25440_v15 }
0x138d   : > { %7482 = vadd.xlane.f32.xlu1 %v7481_v16 }
0x138e   : > { %v7479_v2 = vmul.f32 %v22949_v42, %v22949_v42  ;;  %v7480_v37 = vmul.f32 %v22952_v32, %v22952_v32  ;;  %v22992_v16 = vsub.f32 %v22966_v18, %v25439_v44 }
0x1390   : > { %v7484_v13 = vsel %vm2227_vm6, %v7479_v2, 0.0  ;;  %v7485_v10 = vsel %vm2227_vm6, %v7480_v37, 0.0  ;;  %v22997_v2 = vsub.f32 %v22975_v8, %v25434_v34  ;;  %v23002_v37 = vsub.f32 %v22980_v43, %v25433_v60 }
0x1391   : > { %v7486_v33 = vadd.f32 %v7485_v10, %v7484_v13  ;;  %v23007_v13 = vld [vmem:[%s25401_s8 + $0xc0] sm:$0xff]  ;;  %v23012_v10 = vld [vmem:[%s25401_s8 + $0xc8] sm:$0xff]  ;;  %v25436_v7 = vand.u32 4294901760, %v22992_v16 }
0x1392   : > { %v25437_v58 = vand.u32 4294901760, %v23007_v13  ;;  %v25438_v1 = vand.u32 4294901760, %v23012_v10  ;;  %v25441_v57 = vand.u32 4294901760, %v22997_v2  ;;  %v25444_v55 = vand.u32 4294901760, %v23002_v37 }
0x1393   : > { %7487 = vadd.xlane.f32.xlu0 %v7486_v33  ;;  %v25435_v33 = vand.u32 4294901760, %v22987_v26  ;;  %v7838_v62 = vsub.f32 %v22992_v16, %v25436_v7  ;;  %v23057_v7 = vsub.f32 %v23021_v19, %v25446_v61  ;;  %v23071_v61 = vld [vmem:[%s25401_s8 + $0xd0] sm:$0xff] }
0x1394   : > { %v23041_v31 = vsub.f32 %v23007_v13, %v25437_v58  ;;  %v23046_v60 = vsub.f32 %v23012_v10, %v25438_v1  ;;  %v7719_v34 = vsub.f32 %v22997_v2, %v25441_v57  ;;  %v23062_v58 = vsub.f32 %v23026_v22, %v25447_v11 }
0x1395   : > { %v7831_v54 = vsub.f32 %v22987_v26, %v25435_v33  ;;  %v7726_v33 = vsub.f32 %v23002_v37, %v25444_v55  ;;  %v7839_v44 = vand.u32 4294901760, %v7838_v62  ;;  %v25451_v55 = vand.u32 4294901760, %v23057_v7 }
0x1396   : > { %v25452_v15 = vand.u32 4294901760, %v23041_v31  ;;  %v25449_v57 = vand.u32 4294901760, %v23046_v60  ;;  %v7720_v29 = vand.u32 4294901760, %v7719_v34  ;;  %v25450_v47 = vand.u32 4294901760, %v23062_v58 }
0x1397   : > { %v7832_v1 = vand.u32 4294901760, %v7831_v54  ;;  %v7727_v63 = vand.u32 4294901760, %v7726_v33  ;;  %v23076_v54 = vld [vmem:[%s25401_s8 + $0xd8] sm:$0xff]  ;;  %v23082_v62 = vpack.c.bf16 %v7604_v35, %v7601_v24  ;;  %v7733_v35 = vsub.f32 %v23057_v7, %v25451_v55 }
0x1398   : > { %v7845_v33 = vsub.f32 %v23041_v31, %v25452_v15  ;;  %v7852_v11 = vsub.f32 %v23046_v60, %v25449_v57  ;;  %v25456_v9 = vand.u32 4294901760, %v23071_v61  ;;  %v25453_v40 = vand.u32 4294901760, %v23076_v54  ;;  %v23147_v15 = vld [vmem:[%s25401_s8 + $0x60] sm:$0xff] }
0x1399   : > { %v20244_v34 = vpack.c.bf16 %v7839_v44, %v7832_v1  ;;  %v20246_v24 = vpack.c.bf16 %v7727_v63, %v7720_v29  ;;  %v7740_v1 = vsub.f32 %v23062_v58, %v25450_v47  ;;  %20205 = vmatprep.subr.bf16.mxu0 %v23082_v62  ;;  %v7734_v12 = vand.u32 4294901760, %v7733_v35  ;;  %v23121_v47 = vld [vmem:[%s25401_s8 + $0xe0] sm:$0xff] }
0x139a   : > { %v7846_v44 = vand.u32 4294901760, %v7845_v33  ;;  %v7853_v57 = vand.u32 4294901760, %v7852_v11  ;;  %20207 = vmatpush3.bf16.msra.mxu0 %v23104_v50  ;;  %v25455_v63 = vand.u32 4294901760, %v23093_v21  ;;  %v25454_v29 = vand.u32 4294901760, %v23098_v20  ;;  %v23126_v11 = vld [vmem:[%s25401_s8 + $0xe8] sm:$0xff] }
0x139b   : > { %20245 = vmatprep.subr.bf16.mxu1 %v20244_v34  ;;  %v7741_v52 = vand.u32 4294901760, %v7740_v1  ;;  %v25614_v34 = vand.u32 4294901760, %v22869_v36  ;;  %v25615_v33 = vand.u32 4294901760, %v22877_v45  ;;  %v23137_v1 = vsub.f32 %v23071_v61, %v25456_v9  ;;  %v23152_v36 = vld [vmem:[%s25401_s8 + $0x68] sm:$0xff] }
0x139c   : > { %20247 = vmatpush3.bf16.msra.mxu1 %v20246_v24  ;;  %v20248_v35 = vpack.c.bf16 %v7853_v57, %v7846_v44  ;;  %v23142_v55 = vsub.f32 %v23076_v54, %v25453_v40  ;;  %v25616_v57 = vand.u32 4294901760, %v22885_v38  ;;  %v25617_v45 = vand.u32 4294901760, %v22890_v27 }
0x139d   : > { %v23132_v24 = vpack.c.bf16 %v25615_v33, %v25614_v34  ;;  %v20250_v34 = vpack.c.bf16 %v7741_v52, %v7734_v12  ;;  %v23163_v33 = vsub.f32 %v23093_v21, %v25455_v63  ;;  %v23168_v40 = vsub.f32 %v23098_v20, %v25454_v29 }
0x139e   : > { %v23158_v44 = vpack.c.bf16 %v25617_v45, %v25616_v57  ;;  %20249 = vmatprep.subr.bf16.mxu1 %v20248_v35  ;;  %v25459_v38 = vand.u32 4294901760, %v23137_v1  ;;  %v7631_v57 = vand.u32 4294901760, %v23121_v47  ;;  %v7634_v12 = vand.u32 4294901760, %v23126_v11 }
0x139f   : > { %20209 = vmatprep.subr.bf16.mxu0 %v23132_v24  ;;  %v25619_v35 = vand.u32 4294901760, %v22961_v30  ;;  %v25620_v9 = vand.u32 4294901760, %v22966_v18  ;;  %v25623_v29 = vand.u32 4294901760, %v22975_v8  ;;  %v25624_v63 = vand.u32 4294901760, %v22980_v43 }
0x13a0   : > { %25618 = vst [vmem:[#allocation14_spill] sm:$0xff] %v23158_v44  ;;  %20211 = vmatpush3.bf16.msra.mxu0 %v23158_v44  ;;  %20251 = vmatpush3.bf16.msra.mxu1 %v20250_v34  ;;  %v7859_v14 = vsub.f32 %v23137_v1, %v25459_v38  ;;  %v25622_v34 = vand.u32 4294901760, %v23142_v55  ;;  %v23193_v45 = vsub.f32 %v23121_v47, %v7631_v57  ;;  %v25626_v18 = vand.u32 4294901760, %v23163_v33 }
0x13a1   : > { %v23184_v27 = vpack.c.bf16 %v25620_v9, %v25619_v35  ;;  %v23199_v30 = vpack.c.bf16 %v25624_v63, %v25623_v29  ;;  %v25627_v35 = vand.u32 4294901760, %v23168_v40  ;;  %v23208_v46 = vsub.f32 %v23126_v11, %v7634_v12 }
0x13a2   : > { %v7866_v52 = vsub.f32 %v23142_v55, %v25622_v34  ;;  %v7747_v9 = vsub.f32 %v23163_v33, %v25626_v18  ;;  %v7860_v47 = vand.u32 4294901760, %v7859_v14  ;;  %v25628_v43 = vand.u32 4294901760, %v23147_v15  ;;  %v7544_v14 = vld [vmem:[%s25401_s8 + $0xf0] sm:$0xff] }
0x13a3   : > { %25621 = vst [vmem:[#allocation15_spill] sm:$0xff] %v23184_v27  ;;  %25625 = vst [vmem:[#allocation16_spill] sm:$0xff] %v23199_v30  ;;  %v7754_v38 = vsub.f32 %v23168_v40, %v25627_v35  ;;  %20213 = vmatprep.subr.bf16.mxu0 %v23184_v27  ;;  %v25629_v11 = vand.u32 4294901760, %v23152_v36  ;;  %v25630_v8 = vand.u32 4294901760, %v23007_v13  ;;  %v25633_v35 = vand.u32 4294901760, %v23193_v45 }
0x13a4   : > { %v7867_v34 = vand.u32 4294901760, %v7866_v52  ;;  %v23215_v63 = vsub.f32 %v23147_v15, %v25628_v43  ;;  %20215 = vmatpush3.bf16.msra.mxu0 %v23199_v30  ;;  %v7748_v29 = vand.u32 4294901760, %v7747_v9  ;;  %v7545_v52 = vld [vmem:[%s25401_s8 + $0xf8] sm:$0xff]  ;;  %v7528_v30 = vld [vmem:[%s25401_s8 + $0x70] sm:$0xff]  ;;  %v25634_v13 = vand.u32 4294901760, %v23208_v46 }
0x13a5   : > { %v7755_v18 = vand.u32 4294901760, %v7754_v38  ;;  %v23222_v23 = vsub.f32 %v23152_v36, %v25629_v11  ;;  %v25631_v38 = vand.u32 4294901760, %v23012_v10  ;;  %v7873_v11 = vsub.f32 %v23193_v45, %v25633_v35 }
0x13a6   : > { %v20252_v43 = vpack.c.bf16 %v7867_v34, %v7860_v47  ;;  %v7529_v47 = vld [vmem:[%s25401_s8 + $0x78] sm:$0xff]  ;;  %v7880_v10 = vsub.f32 %v23208_v46, %v25634_v13  ;;  %v25638_v56 = vand.u32 4294901760, %v23215_v63  ;;  %v7640_v27 = vand.u32 4294901760, %v7545_v52 }
0x13a7   : > { %v23234_v9 = vpack.c.bf16 %v25631_v38, %v25630_v8  ;;  %v20254_v34 = vpack.c.bf16 %v7755_v18, %v7748_v29  ;;  %v25635_v8 = vand.u32 4294901760, %v23021_v19  ;;  %v25636_v38 = vand.u32 4294901760, %v23026_v22 }
0x13a8   : > { %v25481_v3 = vand.u32 4294901760, %v23222_v23  ;;  %20253 = vmatprep.subr.bf16.mxu1 %v20252_v43  ;;  %v7874_v53 = vand.u32 4294901760, %v7873_v11  ;;  %v7761_v29 = vsub.f32 %v23215_v63, %v25638_v56  ;;  %v7637_v18 = vand.u32 4294901760, %v7544_v14 }
0x13a9   : > { %25632 = vst [vmem:[#allocation17_spill] sm:$0xff] %v23234_v9  ;;  %v23253_v35 = vpack.c.bf16 %v25636_v38, %v25635_v8  ;;  %20217 = vmatprep.subr.bf16.mxu0 %v23234_v9  ;;  %20255 = vmatpush3.bf16.msra.mxu1 %v20254_v34  ;;  %v7881_v13 = vand.u32 4294901760, %v7880_v10  ;;  %v7589_v19 = vand.u32 4294901760, %v7528_v30  ;;  %v7592_v8 = vand.u32 4294901760, %v7529_v47 }
0x13aa   : > { %v7768_v22 = vsub.f32 %v23222_v23, %v25481_v3  ;;  %v7762_v43 = vand.u32 4294901760, %v7761_v29  ;;  %v25639_v38 = vand.u32 4294901760, %v23071_v61  ;;  %v25640_v11 = vand.u32 4294901760, %v23076_v54 }
0x13ab   : > { %25637 = vst [vmem:[#allocation18_spill] sm:$0xff] %v23253_v35  ;;  %20219 = vmatpush3.bf16.msra.mxu0 %v23253_v35  ;;  %v23270_v56 = vsub.f32 %v7544_v14, %v7637_v18  ;;  %v23272_v5 = vsub.f32 %v7545_v52, %v7640_v27  ;;  %v20256_v34 = vpack.c.bf16 %v7881_v13, %v7874_v53  ;;  %v25641_v35 = vand.u32 4294901760, %v23093_v21 }
0x13ac   : > { %v23268_v9 = vpack.c.bf16 %v25640_v11, %v25639_v38  ;;  %v7769_v10 = vand.u32 4294901760, %v7768_v22  ;;  %v23280_v44 = vsub.f32 %v7528_v30, %v7589_v19  ;;  %v23285_v14 = vsub.f32 %v7529_v47, %v7592_v8 }
0x13ad   : > { %v23278_v3 = vpack.c.bf16 %v25642_v28, %v25641_v35  ;;  %v25487_v61 = vand.u32 4294901760, %v23270_v56  ;;  %v25486_v54 = vand.u32 4294901760, %v23272_v5  ;;  %v23287_v52 = vpack.c.bf16 %v7634_v12, %v7631_v57  ;;  %20257 = vmatprep.subr.bf16.mxu1 %v20256_v34 }
0x13ae   : > { %20221 = vmatprep.subr.bf16.mxu0 %v23268_v9  ;;  %v20258_v53 = vpack.c.bf16 %v7769_v10, %v7762_v43  ;;  %v25485_v21 = vand.u32 4294901760, %v23280_v44  ;;  %v25484_v30 = vand.u32 4294901760, %v23285_v14  ;;  %v25643_v12 = vand.u32 4294901760, %v23147_v15 }
0x13af   : > { %20223 = vmatpush3.bf16.msra.mxu0 %v23278_v3  ;;  %v7887_v28 = vsub.f32 %v23270_v56, %v25487_v61  ;;  %v7894_v20 = vsub.f32 %v23272_v5, %v25486_v54  ;;  %v25644_v47 = vand.u32 4294901760, %v23152_v36  ;;  %v23312_v34 = vpack.c.bf16 %v7640_v27, %v7637_v18  ;;  %v23378_v54 = vld [vmem:[%s25397_s4 + $0x60] sm:$0xff]  ;;  %v23383_v61 = vld [vmem:[%s25397_s4 + $0x68] sm:$0xff] }
0x13b0   : > { %20225 = vmatprep.subr.bf16.mxu0 %v23287_v52  ;;  %20259 = vmatpush3.bf16.msra.mxu1 %v20258_v53  ;;  %v7775_v57 = vsub.f32 %v23280_v44, %v25485_v21  ;;  %v7782_v22 = vsub.f32 %v23285_v14, %v25484_v30  ;;  %v23314_v10 = vpack.c.bf16 %v7592_v8, %v7589_v19 }
0x13b1   : > { %v23306_v35 = vpack.c.bf16 %v25644_v47, %v25643_v12  ;;  %v7888_v29 = vand.u32 4294901760, %v7887_v28  ;;  %v7895_v13 = vand.u32 4294901760, %v7894_v20  ;;  %v20264_v36 = vpack.c.bf16 %v22812_v6, %v22810_v25  ;;  %25651 = vst [vmem:[#allocation25_spill] sm:$0xff] %v23378_v54  ;;  %25652 = vst [vmem:[#allocation26_spill] sm:$0xff] %v23383_v61  ;;  %v23405_v20 = vld [vmem:[%s25397_s4 + $0x78] sm:$0xff] }
0x13b2   : > { %v7776_v43 = vand.u32 4294901760, %v7775_v57  ;;  %v7783_v11 = vand.u32 4294901760, %v7782_v22  ;;  %v25492_v47 = vand.u32 4294901760, %v23378_v54  ;;  %v25493_v12 = vand.u32 4294901760, %v23383_v61  ;;  %v23400_v57 = vld [vmem:[%s25397_s4 + $0x70] sm:$0xff]  ;;  %25656 = vst [vmem:[#allocation30_spill] sm:$0xff] %v23405_v20 }
0x13b3   : > { %20227 = vmatpush3.bf16.msra.mxu0 %v23306_v35  ;;  %v20260_v38 = vpack.c.bf16 %v7895_v13, %v7888_v29  ;;  %v23344_v29 = vld [vmem:[%s25397_s4 + $0x40] sm:$0xff]  ;;  %v23349_v13 = vld [vmem:[%s25397_s4 + $0x48] sm:$0xff]  ;;  %25655 = vst [vmem:[#allocation29_spill] sm:$0xff] %v23400_v57  ;;  %v25497_v28 = vand.u32 4294901760, %v23400_v57  ;;  %v25501_v8 = vand.u32 4294901760, %v23405_v20 }
0x13b4   : > { %v20262_v15 = vpack.c.bf16 %v7783_v11, %v7776_v43  ;;  %20229 = vmatprep.subr.bf16.mxu0 %v23312_v34  ;;  %25645 = vst [vmem:[#allocation19_spill] sm:$0xff] %v23344_v29  ;;  %25646 = vst [vmem:[#allocation20_spill] sm:$0xff] %v23349_v13  ;;  %v25488_v22 = vand.u32 4294901760, %v23344_v29  ;;  %v25489_v43 = vand.u32 4294901760, %v23349_v13  ;;  %v23361_v11 = vld [vmem:[%s25397_s4 + $0x58] sm:$0xff] }
0x13b5   : > { %20261 = vmatprep.subr.bf16.mxu1 %v20260_v38  ;;  %v23356_v38 = vld [vmem:[%s25397_s4 + $0x50] sm:$0xff]  ;;  %25648 = vst [vmem:[#allocation22_spill] sm:$0xff] %v23361_v11  ;;  %v25491_v21 = vand.u32 4294901760, %v23361_v11  ;;  %v23422_v19 = vsub.f32 %v23400_v57, %v25497_v28  ;;  %v23427_v18 = vsub.f32 %v23405_v20, %v25501_v8 }
0x13b6   : > { %20263 = vmatpush3.bf16.msra.mxu1 %v20262_v15  ;;  %25647 = vst [vmem:[#allocation21_spill] sm:$0xff] %v23356_v38  ;;  %v23366_v15 = vsub.f32 %v23344_v29, %v25488_v22  ;;  %v25490_v30 = vand.u32 4294901760, %v23356_v38  ;;  %v25676_v29 = vpack.c.bf16 %v22992_v16, %v22987_v26 }
0x13b7   : > { %20231 = vmatpush3.bf16.msra.mxu0 %v23314_v10  ;;  %20297 = vmatprep.subr.bf16.mxu1 %v22892_v0  ;;  %25659 = vst [vmem:[#allocation33_spill] sm:$0xff] %v23422_v19  ;;  %25660 = vst [vmem:[#allocation34_spill] sm:$0xff] %v23427_v18  ;;  %v25661_v19 = vld [vmem:[#allocation5_spill] sm:$0xff] }
0x13b8   : > { %20265 = vmatprep.subr.bf16.mxu0 %v20264_v36  ;;  %25649 = vst [vmem:[#allocation23_spill] sm:$0xff] %v23366_v15  ;;  %v23371_v36 = vsub.f32 %v23349_v13, %v25489_v43  ;;  %v23388_v22 = vsub.f32 %v23356_v38, %v25490_v30  ;;  %v23393_v43 = vsub.f32 %v23361_v11, %v25491_v21  ;;  %v25670_v11 = vld [vmem:[#allocation11_spill] sm:$0xff]  ;;  %v25674_v13 = vld [vmem:[#allocation17_spill] sm:$0xff] }
0x13b9   : > { %v23410_v30 = vsub.f32 %v23378_v54, %v25492_v47  ;;  %v23415_v21 = vsub.f32 %v23383_v61, %v25493_v12  ;;  %v25668_v54 = vld [vmem:[#allocation15_spill] sm:$0xff] }
0x13ba   : > { %25650 = vst [vmem:[#allocation24_spill] sm:$0xff] %v23371_v36  ;;  %25653 = vst [vmem:[#allocation27_spill] sm:$0xff] %v23388_v22 }
0x13bb   : > { %25654 = vst [vmem:[#allocation28_spill] sm:$0xff] %v23393_v43  ;;  %25657 = vst [vmem:[#allocation31_spill] sm:$0xff] %v23410_v30  ;;  %v7461_v43 = vld [vmem:[%s25400_s7] sm:$0x3] }
0x13bc   : > { %25658 = vst [vmem:[#allocation32_spill] sm:$0xff] %v23415_v21  ;;  %v7503_v28 = vrot.slane %v7461_v43, %v21926_v51  ;;  %v7507_v22 = vrot.slane %v7461_v43, %v25661_v19 }
0x141a   : > { %v7483_v47 = vpop.xlane.xlu1 %7482 }
0x141b   : > { %v7489_v27 = vmul.f32 0.00390625, %v7483_v47 }
0x141d   : > { %v7491_v53 = vadd.f32 1e-05, %v7489_v27 }
0x141f   : > { %21508 = vrsqrt.f32 %v7491_v53 }
0x1420   : > { %v7488_v12 = vpop.xlane.xlu0 %7487 }
0x1421   : > { %v7490_v21 = vmul.f32 0.00390625, %v7488_v12 }
0x1423   : > { %v7492_v30 = vadd.f32 1e-05, %v7490_v21 }
0x1425   : > { %21510 = vrsqrt.f32 %v7492_v30 }
0x1429   : > { %v21509_v36 = vpop.eup %21508 }
0x142a   : > { %v7495_v8 = vmul.f32 %v21509_v36, %v22939_v41  ;;  %v7496_v18 = vmul.f32 %v21509_v36, %v22942_v48 }
0x142c   : > { %v7511_v47 = vmul.f32 %v7507_v22, %v7496_v18  ;;  %v7510_v27 = vmul.f32 %v7503_v28, %v7495_v8 }
0x142e   : > { %v23436_v53 = vand.u32 4294901760, %v7511_v47  ;;  %v23438_v12 = vand.u32 4294901760, %v7510_v27 }
0x142f   : > { %v21511_v21 = vpop.eup %21510 }
0x1430   : > { %25662 = vst [vmem:[#allocation35_spill] sm:$0xff] %v23438_v12  ;;  %7898 = vmatprep.mubr.f32.mxu1 %v23436_v53  ;;  %v7498_v30 = vmul.f32 %v21511_v21, %v22952_v32  ;;  %v7497_v51 = vmul.f32 %v21511_v21, %v22949_v42  ;;  %v7643_v43 = vsub.f32 %v7511_v47, %v23436_v53 }
0x1431   : > { %v23445_v19 = vsub.f32 %v7510_v27, %v23438_v12  ;;  %7900 = vmatmul.mubr.f32.vlgmr.msra.gmra.mrb[18].mxu1 %v23438_v12  ;;  %v20266_v27 = vpack.c.bf16 %v22817_v59, %v22814_v4 }
0x1432   : > { %20299 = vmatpush3.bf16.msra.mxu1 %v22902_v39  ;;  %v7513_v41 = vmul.f32 %v7507_v22, %v7498_v30  ;;  %v7512_v48 = vmul.f32 %v7503_v28, %v7497_v51  ;;  %v7644_v18 = vand.u32 4294901760, %v7643_v43  ;;  %v20268_v30 = vpack.c.bf16 %v22827_v17, %v22822_v49 }
0x1433   : > { %v7650_v8 = vand.u32 4294901760, %v23445_v19  ;;  %20301 = vmatprep.subr.bf16.mxu1 %v23082_v62 }
0x1434   : > { %v23451_v36 = vand.u32 4294901760, %v7513_v41  ;;  %v23453_v32 = vand.u32 4294901760, %v7512_v48  ;;  %v7645_v42 = vsub.f32 %v7643_v43, %v7644_v18 }
0x1435   : > { %v7651_v47 = vsub.f32 %v23445_v19, %v7650_v8 }
0x1436   : > { %25663 = vst [vmem:[#allocation36_spill] sm:$0xff] %v23451_v36  ;;  %25664 = vst [vmem:[#allocation37_spill] sm:$0xff] %v23453_v32  ;;  %20303 = vmatpush3.bf16.msra.mxu1 %v23104_v50  ;;  %7905 = vmatprep.mubr.f32.mxu1 %v23451_v36  ;;  %v7646_v51 = vand.u32 4294901760, %v7645_v42  ;;  %v7658_v22 = vsub.f32 %v7513_v41, %v23451_v36  ;;  %v23462_v21 = vsub.f32 %v7512_v48, %v23453_v32  ;;  %v25665_v42 = vld [vmem:[#allocation14_spill] sm:$0xff]  ;;  %v25666_v41 = vld [vmem:[#allocation8_spill] sm:$0xff] }
0x1437   : > { %v7652_v28 = vand.u32 4294901760, %v7651_v47  ;;  %7907 = vmatmul.mubr.f32.gmra.mrb[20].mxu1 %v23453_v32  ;;  %20305 = vmatprep.subr.bf16.mxu1 %v23132_v24  ;;  %v25667_v47 = vld [vmem:[#allocation9_spill] sm:$0xff]  ;;  %v25669_v32 = vld [vmem:[#allocation10_spill] sm:$0xff]  ;;  %v25671_v36 = vld [vmem:[#allocation16_spill] sm:$0xff] }
0x1438   : > { %7647 = vmatprep.mubr.f32.mxu0 %v7646_v51  ;;  %8158 = vmatprep.mubr.f32.mxu1 %v7644_v18  ;;  %v7659_v15 = vand.u32 4294901760, %v7658_v22  ;;  %v7665_v20 = vand.u32 4294901760, %v23462_v21  ;;  %v20270_v48 = vpack.c.bf16 %v25667_v47, %v25666_v41  ;;  %v20272_v51 = vpack.c.bf16 %v25670_v11, %v25669_v32 }
0x1439   : > { %7653 = vmatmul.mubr.f32.vlgmr.msra.gmra.mrb[14].mxu0 %v7652_v28  ;;  %v25673_v28 = vld [vmem:[#allocation13_spill] sm:$0xff] }
0x143a   : > { %20267 = vmatpush3.bf16.msra.mxu0 %v20266_v27  ;;  %20307 = vmatpush3.bf16.msra.mxu1 %v25665_v42  ;;  %v7660_v57 = vsub.f32 %v7658_v22, %v7659_v15  ;;  %v7666_v61 = vsub.f32 %v23462_v21, %v7665_v20  ;;  %v25672_v27 = vld [vmem:[#allocation12_spill] sm:$0xff] }
0x143b   : > { %20269 = vmatprep.subr.bf16.mxu0 %v20268_v30  ;;  %20309 = vmatprep.subr.bf16.mxu1 %v25668_v54  ;;  %v20274_v12 = vpack.c.bf16 %v25673_v28, %v25672_v27  ;;  %v25675_v30 = vld [vmem:[#allocation18_spill] sm:$0xff] }
0x143c   : > { %v7661_v18 = vand.u32 4294901760, %v7660_v57  ;;  %v7667_v38 = vand.u32 4294901760, %v7666_v61  ;;  %v25677_v61 = vpack.c.bf16 %v23002_v37, %v22997_v2  ;;  %v25678_v57 = vpack.c.bf16 %v23046_v60, %v23041_v31 }
0x143e   : > { %20271 = vmatpush3.bf16.msra.mxu0 %v20270_v48  ;;  %20311 = vmatpush3.bf16.msra.mxu1 %v25671_v36  ;;  %v25683_v48 = vpack.c.bf16 %v23222_v23, %v23215_v63 }
0x143f   : > { %7662 = vmatprep.mubr.f32.mxu0 %v7661_v18  ;;  %20273 = vmatprep.subr.bf16.mxu0 %v20272_v51  ;;  %v25684_v51 = vpack.c.bf16 %v23272_v5, %v23270_v56  ;;  %v25685_v18 = vand.u32 4294901760, %v22810_v25  ;;  %v25690_v25 = vand.u32 4294901760, %v22822_v49  ;;  %v25695_v49 = vand.u32 4294901760, %v25670_v11 }
0x1440   : > { %7668 = vmatmul.mubr.f32.gmra.mrb[16].mxu0 %v7667_v38  ;;  %20313 = vmatprep.subr.bf16.mxu1 %v25674_v13  ;;  %v25679_v38 = vpack.c.bf16 %v23062_v58, %v23057_v7  ;;  %v25699_v11 = vand.u32 4294901760, %v22992_v16  ;;  %v25705_v16 = vand.u32 4294901760, %v23062_v58  ;;  %v25711_v58 = vand.u32 4294901760, %v23208_v46 }
0x1441   : > { %8042 = vmatprep.mubr.f32.mxu0 %v7643_v43  ;;  %v25682_v43 = vpack.c.bf16 %v23208_v46, %v23193_v45  ;;  %v25718_v46 = vmov 0.0|0.0  }
0x1442   : > { %20275 = vmatpush3.bf16.msra.mxu0 %v20274_v12  ;;  %20315 = vmatpush3.bf16.msra.mxu1 %v25675_v30  ;;  %v25681_v12 = vpack.c.bf16 %v23168_v40, %v23163_v33 }
0x1443   : > { %20277 = vmatprep.subr.bf16.mxu0 %v25676_v29  ;;  %20317 = vmatprep.subr.bf16.mxu1 %v23268_v9  ;;  %v25680_v29 = vpack.c.bf16 %v23142_v55, %v23137_v1 }
0x1446   : > { %20279 = vmatpush3.bf16.msra.mxu0 %v25677_v61  ;;  %20319 = vmatpush3.bf16.msra.mxu1 %v23278_v3  ;;  %v25686_v61 = vand.u32 4294901760, %v22812_v6  ;;  %v25691_v6 = vand.u32 4294901760, %v22827_v17 }
0x1447   : > { %20281 = vmatprep.subr.bf16.mxu0 %v25678_v57  ;;  %20321 = vmatprep.subr.bf16.mxu1 %v23287_v52 }
0x1448   : > { %v20328_v57 = vpack.c.bf16 %v25686_v61, %v25685_v18  ;;  %v25725_v18 = vld [vmem:[#allocation21_spill] sm:$0xff] }
0x1449   : > { %v25726_v61 = vand.u32 4294901760, %v25725_v18 }
0x144a   : > { %20283 = vmatpush3.bf16.msra.mxu0 %v25679_v38  ;;  %20323 = vmatpush3.bf16.msra.mxu1 %v23306_v35 }
0x144b   : > { %20285 = vmatprep.subr.bf16.mxu0 %v25680_v29  ;;  %20325 = vmatprep.subr.bf16.mxu1 %v23312_v34  ;;  %v25720_v29 = vand.u32 4294901760, %v23272_v5 }
0x144e   : > { %20287 = vmatpush3.bf16.msra.mxu0 %v25681_v12  ;;  %20327 = vmatpush3.bf16.msra.mxu1 %v23314_v10 }
0x144f   : > { %20289 = vmatprep.subr.bf16.mxu0 %v25682_v43  ;;  %20361 = vmatprep.subr.bf16.mxu1 %v22892_v0  ;;  %v25687_v0 = vpack.c.bf16 %v23285_v14, %v23280_v44  ;;  %v25723_v43 = vand.u32 4294901760, %v23285_v14  ;;  %v25730_v14 = vld [vmem:[#allocation25_spill] sm:$0xff] }
0x1451   : > { %8162 = vmatmul.mubr.f32.vlgmr.msra.gmra.mrb[22].mxu1 %v7650_v8 }
0x1452   : > { %20291 = vmatpush3.bf16.msra.mxu0 %v25683_v48  ;;  %8169 = vmatprep.mubr.f32.mxu1 %v7659_v15  ;;  %v25689_v15 = vand.u32 4294901760, %v22817_v59 }
0x1453   : > { %20363 = vmatpush3.bf16.msra.mxu1 %v22902_v39  ;;  %20293 = vmatprep.subr.bf16.mxu0 %v25684_v51  ;;  %v25688_v39 = vand.u32 4294901760, %v22814_v4  ;;  %v25693_v4 = vand.u32 4294901760, %v25667_v47  ;;  %v25724_v51 = vld [vmem:[#allocation36_spill] sm:$0xff] }
0x1454   : > { %20365 = vmatprep.subr.bf16.mxu1 %v23082_v62  ;;  %v20332_v62 = vpack.c.bf16 %v25691_v6, %v25690_v25  ;;  %v25734_v6 = vmov 0.0  }
0x1455   : > { %8173 = vmatmul.mubr.f32.gmra.mrb[24].mxu1 %v7665_v20  ;;  %v20330_v8 = vpack.c.bf16 %v25689_v15, %v25688_v39  ;;  %v25692_v20 = vand.u32 4294901760, %v25666_v41  ;;  %v25702_v41 = vand.u32 4294901760, %v23041_v31  ;;  %v25708_v31 = vand.u32 4294901760, %v23163_v33  ;;  %v25732_v15 = vld [vmem:[#allocation26_spill] sm:$0xff] }
0x1456   : > { %20295 = vmatpush3.bf16.msra.mxu0 %v25687_v0  ;;  %8450 = vmatprep.mubr.f32.mxu1 %v23436_v53  ;;  %v25713_v33 = vand.u32 4294901760, %v23222_v23  ;;  %v25721_v23 = vld [vmem:[#allocation35_spill] sm:$0xff]  ;;  %v25731_v39 = vand.u32 4294901760, %v25730_v14  ;;  %v25739_v14 = vld [vmem:[#allocation6_spill] sm:$0xff] }
0x1457   : > { %20367 = vmatpush3.bf16.msra.mxu1 %v23104_v50  ;;  %20329 = vmatprep.subr.bf16.mxu0 %v20328_v57  ;;  %v20334_v59 = vpack.c.bf16 %v25693_v4, %v25692_v20  ;;  %v25694_v50 = vand.u32 4294901760, %v25669_v32  ;;  %v25698_v32 = vand.u32 4294901760, %v22987_v26  ;;  %v25704_v26 = vand.u32 4294901760, %v23057_v7  ;;  %v8519_v7 = vld [vmem:[#allocation2] sm:$0xff]  ;;  %v25735_v20 = vld [vmem:[#allocation29_spill] sm:$0xff] }
0x1458   : > { %20369 = vmatprep.subr.bf16.mxu1 %v23132_v24  ;;  %v25696_v24 = vand.u32 4294901760, %v25672_v27  ;;  %v25736_v4 = vand.u32 4294901760, %v25735_v20  ;;  %v25740_v20 = vld [vmem:[#allocation7_spill] sm:$0xff] }
0x1459   : > { %8045 = vmatmul.mubr.f32.vlgmr.msra.gmra.mrb[18].mxu0 %v23445_v19  ;;  %v20336_v17 = vpack.c.bf16 %v25695_v49, %v25694_v50  ;;  %v25697_v19 = vand.u32 4294901760, %v25673_v28 }
0x145a   : > { %8051 = vmatprep.mubr.f32.mxu0 %v7658_v22  ;;  %20331 = vmatpush3.bf16.msra.mxu0 %v20330_v8  ;;  %v25733_v8 = vand.u32 4294901760, %v25732_v15 }
0x145b   : > { %20371 = vmatpush3.bf16.msra.mxu1 %v25665_v42  ;;  %20333 = vmatprep.subr.bf16.mxu0 %v20332_v62  ;;  %v20338_v22 = vpack.c.bf16 %v25697_v19, %v25696_v24  ;;  %v20340_v42 = vpack.c.bf16 %v25699_v11, %v25698_v32 }
0x145c   : > { %20373 = vmatprep.subr.bf16.mxu1 %v25668_v54  ;;  %v25700_v54 = vand.u32 4294901760, %v22997_v2  ;;  %v25706_v2 = vand.u32 4294901760, %v23137_v1  ;;  %v23630_v25 = vpack.c.bf16 %v25733_v8, %v25731_v39 }
0x145d   : > { %8054 = vmatmul.mubr.f32.gmra.mrb[20].mxu0 %v23462_v21 }
0x145e   : > { %20335 = vmatpush3.bf16.msra.mxu0 %v20334_v59  ;;  %8339 = vmatprep.mubr.f32.mxu0 %v23436_v53  ;;  %v25701_v53 = vand.u32 4294901760, %v23002_v37  ;;  %v25707_v37 = vand.u32 4294901760, %v23142_v55  ;;  %v9127_v55 = vsel %vm354_vm0, %v8519_v7, 0  ;;  %v25737_v59 = vld [vmem:[#allocation30_spill] sm:$0xff] }
0x145f   : > { %20375 = vmatpush3.bf16.msra.mxu1 %v25671_v36  ;;  %20337 = vmatprep.subr.bf16.mxu0 %v20336_v17  ;;  %v25703_v36 = vand.u32 4294901760, %v23046_v60  ;;  %v25709_v60 = vand.u32 4294901760, %v23168_v40  ;;  %v25738_v50 = vand.u32 4294901760, %v25737_v59 }
0x1460   : > { %20377 = vmatprep.subr.bf16.mxu1 %v25674_v13  ;;  %v20342_v21 = vpack.c.bf16 %v25701_v53, %v25700_v54  ;;  %v20346_v13 = vpack.c.bf16 %v25705_v16, %v25704_v26  ;;  %v20348_v27 = vpack.c.bf16 %v25707_v37, %v25706_v2 }
0x1461   : > { %v20344_v47 = vpack.c.bf16 %v25703_v36, %v25702_v41  ;;  %v23643_v49 = vpack.c.bf16 %v25738_v50, %v25736_v4 }
0x1462   : > { %20339 = vmatpush3.bf16.msra.mxu0 %v20338_v22 }
0x1463   : > { %20379 = vmatpush3.bf16.msra.mxu1 %v25675_v30  ;;  %20341 = vmatprep.subr.bf16.mxu0 %v20340_v42  ;;  %v25716_v30 = vld [vmem:[#allocation20_spill] sm:$0xff] }
0x1464   : > { %20381 = vmatprep.subr.bf16.mxu1 %v23268_v9  ;;  %v20350_v9 = vpack.c.bf16 %v25709_v60, %v25708_v31 }
0x1466   : > { %20343 = vmatpush3.bf16.msra.mxu0 %v20342_v21 }
0x1467   : > { %20383 = vmatpush3.bf16.msra.mxu1 %v23278_v3  ;;  %20345 = vmatprep.subr.bf16.mxu0 %v20344_v47  ;;  %v25710_v3 = vand.u32 4294901760, %v23193_v45  ;;  %v25717_v45 = vand.u32 4294901760, %v25716_v30 }
0x1468   : > { %20385 = vmatprep.subr.bf16.mxu1 %v23287_v52  ;;  %v25712_v52 = vand.u32 4294901760, %v23215_v63  ;;  %v23605_v63 = vand.u32 4294901760, %v9127_v55 }
0x1469   : > { %v20352_v1 = vpack.c.bf16 %v25711_v58, %v25710_v3 }
0x146a   : > { %20347 = vmatpush3.bf16.msra.mxu0 %v20346_v13  ;;  %v20354_v40 = vpack.c.bf16 %v25713_v33, %v25712_v52  ;;  %v23622_v0 = vsub.f32 %v9127_v55, %v23605_v63 }
0x146b   : > { %20387 = vmatpush3.bf16.msra.mxu1 %v23306_v35  ;;  %20349 = vmatprep.subr.bf16.mxu0 %v20348_v27  ;;  %v25714_v35 = vld [vmem:[#allocation19_spill] sm:$0xff] }
0x146c   : > { %20389 = vmatprep.subr.bf16.mxu1 %v23312_v34  ;;  %v25715_v28 = vand.u32 4294901760, %v25714_v35  ;;  %v25719_v34 = vand.u32 4294901760, %v23270_v56  ;;  %v25727_v56 = vld [vmem:[#allocation22_spill] sm:$0xff]  ;;  %v25519_v62 = vand.u32 4294901760, %v23622_v0 }
0x146d   : > { %v25728_v57 = vand.u32 4294901760, %v25727_v56 }
0x146e   : > { %20351 = vmatpush3.bf16.msra.mxu0 %v20350_v9  ;;  %v23598_v38 = vpack.c.bf16 %v25717_v45, %v25715_v28  ;;  %v20356_v12 = vpack.c.bf16 %v25720_v29, %v25719_v34  ;;  %v9211_v17 = vsub.f32 %v23622_v0, %v25519_v62 }
0x146f   : > { %20391 = vmatpush3.bf16.msra.mxu1 %v23314_v10  ;;  %20353 = vmatprep.subr.bf16.mxu0 %v20352_v1  ;;  %v25722_v10 = vand.u32 4294901760, %v23280_v44  ;;  %v23618_v5 = vpack.c.bf16 %v25728_v57, %v25726_v61  ;;  %v25729_v44 = vld [vmem:[#allocation37_spill] sm:$0xff] }
0x1470   : > { %20488 = vmatprep.subr.bf16.mxu1 %v25718_v46  ;;  %v9212_v24 = vand.u32 4294901760, %v9211_v17 }
0x1471   : > { %v20358_v48 = vpack.c.bf16 %v25723_v43, %v25722_v10 }
0x1472   : > { %8452 = vmatmul.mubr.f32.vlgmr.msra.gmra.mrb[26].mxu1 %v25721_v23  ;;  %20355 = vmatpush3.bf16.msra.mxu0 %v20354_v40 }
0x1473   : > { %8457 = vmatprep.mubr.f32.mxu1 %v25724_v51  ;;  %20490 = vmatpush3.bf16.msra.mxu1 %v23598_v38 }
0x1474   : > { %20357 = vmatprep.subr.bf16.mxu0 %v20356_v12  ;;  %20491 = vmatprep.subr.bf16.mxu1 %v25718_v46 }
0x1476   : > { %8459 = vmatmul.mubr.f32.gmra.mrb[28].mxu1 %v25729_v44  ;;  %20359 = vmatpush3.bf16.msra.mxu0 %v20358_v48 }
0x1477   : > { %20493 = vmatpush3.bf16.msra.mxu1 %v23618_v5  ;;  %18968 = vmatprep.mubr.msk.f32.mxu1 %vm21582_vm2, %v25734_v6 }
0x1478   : > { %20494 = vmatprep.subr.bf16.mxu1 %v25718_v46 }
0x1479   : > { %8341 = vmatmul.mubr.f32.vlgmr.msra.gmra.mrb[22].mxu0 %v25721_v23 }
0x147a   : > { %8346 = vmatprep.mubr.f32.mxu0 %v25724_v51 }
0x147b   : > { %20496 = vmatpush3.bf16.msra.mxu1 %v23630_v25 }
0x147c   : > { %20497 = vmatprep.subr.bf16.mxu1 %v25718_v46 }
0x147d   : > { %8348 = vmatmul.mubr.f32.gmra.mrb[24].mxu0 %v25729_v44 }
0x147f   : > { %20499 = vmatpush3.bf16.msra.mxu1 %v23643_v49 }
0x1480   : > { %20500 = vmatprep.subr.bf16.mxu1 %v25718_v46 }
0x1482   : > { %18969 = vmatmul.mubr.f32.vlgmr.msra.gmra.mrb[30].mxu1 %v9212_v24 }
0x1483   : > { %18971 = vmatprep.mubr.msk.f32.mxu1 %vm21582_vm2, %v25734_v6 }
0x1504   : > { %v17216_v19 = vpop.f32.mrb[18].mxu1 }
0x1505   : > { %v17217_v22 = vpop.f32.mrb[19].mxu1 }
0x1506   : > { %v17218_v32 = vadd.f32 %v17217_v22, %v17216_v19 }
0x150a   : > { %v17219_v11 = vpop.f32.mrb[20].mxu1 }
0x150b   : > { %v17220_v42 = vpop.f32.mrb[21].mxu1 }
0x150c   : > { %v17221_v54 = vadd.f32 %v17220_v42, %v17219_v11  ;;  %v17178_v53 = vpop.f32.mrb[14].mxu0 }
0x150d   : > { %v17179_v21 = vpop.f32.mrb[15].mxu0 }
0x150e   : > { %v17180_v41 = vadd.f32 %v17179_v21, %v17178_v53  ;;  %v16643_v21 = vld [vmem:[%s25396_s3 + $0x40] sm:$0xff] }
0x1510   : > { %v7902_v36 = vadd.f32 %v17218_v32, %v17180_v41  ;;  %v16644_v41 = vld [vmem:[%s25396_s3 + $0x48] sm:$0xff] }
0x1513   : > { %v17181_v47 = vpop.f32.mrb[16].mxu0 }
0x1514   : > { %v17182_v26 = vpop.f32.mrb[17].mxu0 }
0x1515   : > { %v17183_v16 = vadd.f32 %v17182_v26, %v17181_v47  ;;  %v8541_v47 = vand.u32 4294901760, %v16644_v41 }
0x1517   : > { %v7909_v13 = vadd.f32 %v17221_v54, %v17183_v16  ;;  %v16645_v16 = vld [vmem:[%s25396_s3 + $0x50] sm:$0xff] }
0x1524   : > { %v17292_v2 = vpop.f32.mrb[22].mxu1 }
0x1525   : > { %v17293_v37 = vpop.f32.mrb[23].mxu1 }
0x1526   : > { %v17294_v27 = vadd.f32 %v17293_v37, %v17292_v2  ;;  %v8544_v2 = vand.u32 4294901760, %v16645_v16 }
0x1528   : > { %v17295_v31 = vpop.f32.mrb[24].mxu1 }
0x1529   : > { %v17296_v60 = vpop.f32.mrb[25].mxu1 }
0x152a   : > { %v17297_v9 = vadd.f32 %v17296_v60, %v17295_v31  ;;  %v16648_v31 = vld [vmem:[%s25396_s3 + $0x68] sm:$0xff]  ;;  %v23701_v60 = vld [vmem:[%s25396_s3 + $0x70] sm:$0xff] }
0x152c   : > { %v17254_v7 = vpop.f32.mrb[18].mxu0 }
0x152d   : > { %v17255_v3 = vpop.f32.mrb[19].mxu0 }
0x152e   : > { %v17256_v58 = vadd.f32 %v17255_v3, %v17254_v7  ;;  %v8553_v3 = vand.u32 4294901760, %v16648_v31 }
0x1530   : > { %v8047_v1 = vadd.f32 %v17256_v58, %v7902_v36  ;;  %v17257_v55 = vpop.f32.mrb[20].mxu0  ;;  %v8538_v36 = vand.u32 4294901760, %v16643_v21  ;;  %v23708_v58 = vld [vmem:[%s25396_s3 + $0x78] sm:$0xff] }
0x1531   : > { %v17258_v52 = vpop.f32.mrb[21].mxu0 }
0x1532   : > { %v17259_v33 = vadd.f32 %v17258_v52, %v17257_v55  ;;  %v8164_v40 = vadd.f32 %v17294_v27, %v8047_v1  ;;  %v23682_v26 = vpack.c.bf16 %v8541_v47, %v8538_v36  ;;  %v16647_v27 = vld [vmem:[%s25396_s3 + $0x60] sm:$0xff]  ;;  %v8556_v1 = vand.u32 4294901760, %v23701_v60 }
0x1533   : > { %v8550_v7 = vand.u32 4294901760, %v16647_v27  ;;  %v8559_v55 = vand.u32 4294901760, %v23708_v58 }
0x1534   : > { %v8056_v35 = vadd.f32 %v17259_v33, %v7909_v13  ;;  %v16646_v13 = vld [vmem:[%s25396_s3 + $0x58] sm:$0xff]  ;;  %20393 = vmatprep.subr.bf16.mxu0 %v23682_v26 }
0x1535   : > { %v8547_v37 = vand.u32 4294901760, %v16646_v13  ;;  %20395 = vmatpush3.bf16.msra.mxu0 %v23682_v26  ;;  %v23713_v52 = vpack.c.bf16 %v8553_v3, %v8550_v7  ;;  %v25741_v33 = vld [vmem:[#allocation23_spill] sm:$0xff] }
0x1536   : > { %v8175_v28 = vadd.f32 %v17297_v9, %v8056_v35  ;;  %v25742_v35 = vld [vmem:[#allocation24_spill] sm:$0xff] }
0x1537   : > { %v23703_v9 = vpack.c.bf16 %v8547_v37, %v8544_v2 }
0x1539   : > { %20397 = vmatprep.subr.bf16.mxu0 %v23703_v9 }
0x153a   : > { %20399 = vmatpush3.bf16.msra.mxu0 %v23703_v9 }
0x153b   : > { %20401 = vmatprep.subr.bf16.mxu0 %v23713_v52 }
0x153e   : > { %20403 = vmatpush3.bf16.msra.mxu0 %v23713_v52 }
0x1545   : > { %v17368_v30 = vpop.f32.mrb[26].mxu1 }
0x1546   : > { %v17369_v45 = vpop.f32.mrb[27].mxu1 }
0x1547   : > { %v17370_v34 = vadd.f32 %v17369_v45, %v17368_v30  ;;  %v23721_v30 = vpack.c.bf16 %v8559_v55, %v8556_v1  ;;  %v23723_v45 = vsub.f32 %v16643_v21, %v8538_v36  ;;  %v25746_v21 = vld [vmem:[#allocation32_spill] sm:$0xff] }
0x1549   : > { %v17371_v29 = vpop.f32.mrb[28].mxu1  ;;  %20405 = vmatprep.subr.bf16.mxu0 %v23721_v30 }
0x154a   : > { %v17372_v12 = vpop.f32.mrb[29].mxu1  ;;  %20407 = vmatpush3.bf16.msra.mxu0 %v23721_v30 }
0x154b   : > { %v17373_v23 = vadd.f32 %v17372_v12, %v17371_v29 }
0x154c   : > { %v17330_v10 = vpop.f32.mrb[22].mxu0 }
0x154d   : > { %v17331_v43 = vpop.f32.mrb[23].mxu0 }
0x154e   : > { %v17332_v48 = vadd.f32 %v17331_v43, %v17330_v10 }
0x1550   : > { %v8343_v51 = vadd.f32 %v17332_v48, %v8164_v40  ;;  %v17333_v18 = vpop.f32.mrb[24].mxu0  ;;  %v9241_v40 = vand.u32 4294901760, %v25741_v33 }
0x1551   : > { %v17334_v61 = vpop.f32.mrb[25].mxu0 }
0x1552   : > { %v8454_v56 = vadd.f32 %v17370_v34, %v8343_v51  ;;  %v17335_v57 = vadd.f32 %v17334_v61, %v17333_v18  ;;  %v23725_v34 = vsub.f32 %v16644_v41, %v8541_v47  ;;  %v9242_v29 = vsub.f32 %v25741_v33, %v9241_v40  ;;  %v25743_v51 = vld [vmem:[#allocation27_spill] sm:$0xff]  ;;  %v25744_v61 = vld [vmem:[#allocation28_spill] sm:$0xff] }
0x1553   : > { %v9255_v18 = vand.u32 4294901760, %v25743_v51  ;;  %v9276_v41 = vand.u32 4294901760, %v25746_v21 }
0x1554   : > { %v8350_v44 = vadd.f32 %v17335_v57, %v8175_v28  ;;  %v23655_v39 = vadd.f32 %v8454_v56, %v25739_v14  ;;  %v9248_v28 = vand.u32 4294901760, %v25742_v35  ;;  %v8640_v10 = vand.u32 4294901760, %v23725_v34 }
0x1555   : > { %v9243_v43 = vand.u32 4294901760, %v9242_v29  ;;  %v25522_v56 = vand.u32 4294901760, %v25744_v61  ;;  %v23745_v14 = vsub.f32 %v16645_v16, %v8544_v2  ;;  %v9277_v29 = vsub.f32 %v25746_v21, %v9276_v41 }
0x1556   : > { %v8461_v15 = vadd.f32 %v17373_v23, %v8350_v44  ;;  %v8478_v8 = vsel %vm354_vm0, %v23655_v39, 0.0  ;;  %v9249_v12 = vsub.f32 %v25742_v35, %v9248_v28  ;;  %v8633_v23 = vand.u32 4294901760, %v23723_v45 }
0x1557   : > { %8479 = vadd.xlane.f32.xlu1 %v8478_v8  ;;  %v8641_v44 = vsub.f32 %v23725_v34, %v8640_v10 }
0x1558   : > { %v23660_v4 = vadd.f32 %v8461_v15, %v25740_v20  ;;  %v9250_v48 = vand.u32 4294901760, %v9249_v12  ;;  %v8634_v57 = vsub.f32 %v23723_v45, %v8633_v23  ;;  %v23747_v15 = vsub.f32 %v16646_v13, %v8547_v37 }
0x1559   : > { %v9256_v20 = vsub.f32 %v25743_v51, %v9255_v18  ;;  %v8660_v13 = vsub.f32 %v16647_v27, %v8550_v7  ;;  %v8667_v12 = vsub.f32 %v16648_v31, %v8553_v3  ;;  %v25748_v7 = vld [vmem:[#allocation34_spill] sm:$0xff]  ;;  %v8674_v31 = vsub.f32 %v23701_v60, %v8556_v1 }
0x155a   : > { %v8481_v59 = vsel %vm382_vm1, %v23660_v4, 0.0  ;;  %v20501_v8 = vpack.c.bf16 %v9250_v48, %v9243_v43 }
0x155b   : > { %8482 = vadd.xlane.f32.xlu0 %v8481_v59  ;;  %v9263_v59 = vsub.f32 %v25744_v61, %v25522_v56 }
0x155c   : > { %20502 = vmatpush3.bf16.msra.mxu1 %v20501_v8  ;;  %v9278_v8 = vand.u32 4294901760, %v9277_v29  ;;  %v8675_v29 = vand.u32 4294901760, %v8674_v31 }
0x155d   : > { %20503 = vmatprep.subr.bf16.mxu1 %v25718_v46 }
0x155e   : > { %v8676_v60 = vsub.f32 %v8674_v31, %v8675_v29 }
0x15e4   : > { %v8480_v50 = vpop.xlane.xlu1 %8479 }
0x15e5   : > { %v8484_v17 = vmul.f32 0.015625, %v8480_v50  ;;  %v8635_v50 = vand.u32 4294901760, %v8634_v57  ;;  %v8661_v57 = vand.u32 4294901760, %v8660_v13 }
0x15e7   : > { %v23665_v24 = vsub.f32 %v23655_v39, %v8484_v17  ;;  %v8642_v17 = vand.u32 4294901760, %v8641_v44  ;;  %v8662_v27 = vsub.f32 %v8660_v13, %v8661_v57 }
0x15e8   : > { %v8483_v19 = vpop.xlane.xlu0 %8482 }
0x15e9   : > { %v8485_v22 = vmul.f32 0.015625, %v8483_v19  ;;  %v8488_v32 = vmul.f32 %v23665_v24, %v23665_v24  ;;  %v25521_v19 = vand.u32 4294901760, %v23745_v14  ;;  %v23760_v36 = vpack.c.bf16 %v8642_v17, %v8635_v50 }
0x15eb   : > { %v23670_v11 = vsub.f32 %v23660_v4, %v8485_v22  ;;  %v8490_v42 = vsel %vm354_vm0, %v8488_v32, 0.0  ;;  %v25520_v22 = vand.u32 4294901760, %v23747_v15  ;;  %v9257_v32 = vand.u32 4294901760, %v9256_v20  ;;  %20409 = vmatprep.subr.bf16.mxu0 %v23760_v36 }
0x15ec   : > { %8491 = vadd.xlane.f32.xlu1 %v8490_v42  ;;  %v9264_v42 = vand.u32 4294901760, %v9263_v59  ;;  %v8648_v47 = vsub.f32 %v23745_v14, %v25521_v19  ;;  %v8668_v20 = vand.u32 4294901760, %v8667_v12  ;;  %v25747_v59 = vld [vmem:[#allocation33_spill] sm:$0xff]  ;;  %v8677_v19 = vand.u32 4294901760, %v8676_v60 }
0x15ed   : > { %v8489_v54 = vmul.f32 %v23670_v11, %v23670_v11  ;;  %v8655_v16 = vsub.f32 %v23747_v15, %v25520_v22  ;;  %v9283_v50 = vand.u32 4294901760, %v25747_v59 }
0x15ee   : > { %v20504_v2 = vpack.c.bf16 %v9264_v42, %v9257_v32  ;;  %v8649_v43 = vand.u32 4294901760, %v8648_v47  ;;  %v9290_v32 = vand.u32 4294901760, %v25748_v7  ;;  %v8669_v42 = vsub.f32 %v8667_v12, %v8668_v20 }
0x15ef   : > { %v8493_v53 = vsel %vm382_vm1, %v8489_v54, 0.0  ;;  %v25745_v54 = vld [vmem:[#allocation31_spill] sm:$0xff]  ;;  %v8656_v48 = vand.u32 4294901760, %v8655_v16  ;;  %v9284_v47 = vsub.f32 %v25747_v59, %v9283_v50  ;;  %v8681_v16 = vsub.f32 %v23708_v58, %v8559_v55 }
0x15f0   : > { %8494 = vadd.xlane.f32.xlu0 %v8493_v53  ;;  %v9269_v53 = vand.u32 4294901760, %v25745_v54  ;;  %20505 = vmatpush3.bf16.msra.mxu1 %v20504_v2  ;;  %v8663_v2 = vand.u32 4294901760, %v8662_v27  ;;  %v20513_v55 = vpack.c.bf16 %v25742_v35, %v25741_v33  ;;  %v23793_v27 = vpack.c.bf16 %v23725_v34, %v23723_v45 }
0x15f1   : > { %v23773_v17 = vpack.c.bf16 %v8656_v48, %v8649_v43  ;;  %20506 = vmatprep.subr.bf16.mxu1 %v25718_v46  ;;  %v8670_v43 = vand.u32 4294901760, %v8669_v42  ;;  %v9285_v48 = vand.u32 4294901760, %v9284_v47  ;;  %v8682_v62 = vand.u32 4294901760, %v8681_v16 }
0x15f2   : > { %v9270_v37 = vsub.f32 %v25745_v54, %v9269_v53  ;;  %v20522_v42 = vpack.c.bf16 %v25748_v7, %v25747_v59  ;;  %v23807_v47 = vpack.c.bf16 %v8681_v16, %v8674_v31  ;;  %v25750_v31 = vand.u32 4294901760, %v23745_v14 }
0x15f3   : > { %v23784_v1 = vpack.c.bf16 %v8670_v43, %v8663_v2  ;;  %v23813_v2 = vpack.c.bf16 %v9248_v28, %v9241_v40  ;;  %v23833_v40 = vpack.c.bf16 %v9276_v41, %v9269_v53  ;;  %v23835_v28 = vpack.c.bf16 %v8668_v20, %v8661_v57 }
0x15f4   : > { %v9271_v44 = vand.u32 4294901760, %v9270_v37  ;;  %v9291_v37 = vsub.f32 %v25748_v7, %v9290_v32  ;;  %v23837_v45 = vpack.c.bf16 %v9290_v32, %v9283_v50  ;;  %v23839_v34 = vpack.c.bf16 %v8682_v62, %v8675_v29 }
0x15f5   : > { %v25755_v33 = vand.u32 4294901760, %v23622_v0 }
0x15f6   : > { %v20507_v3 = vpack.c.bf16 %v9278_v8, %v9271_v44  ;;  %v9292_v22 = vand.u32 4294901760, %v9291_v37  ;;  %v8683_v44 = vsub.f32 %v8681_v16, %v8682_v62  ;;  %v23819_v37 = vpack.c.bf16 %v8640_v10, %v8633_v23 }
0x15f7   : > { %v25751_v16 = vand.u32 4294901760, %v23747_v15 }
0x15f8   : > { %20508 = vmatpush3.bf16.msra.mxu1 %v20507_v3  ;;  %v20510_v8 = vpack.c.bf16 %v9292_v22, %v9285_v48  ;;  %v8684_v56 = vand.u32 4294901760, %v8683_v44  ;;  %v20516_v3 = vpack.c.bf16 %v25744_v61, %v25743_v51  ;;  %v23799_v22 = vpack.c.bf16 %v23747_v15, %v23745_v14  ;;  %v21571_v14 = vld [vmem:[%s25395_s2 + $0x8] sm:$0x7f]  ;;  %v25752_v15 = vld [vmem:[#allocation3_spill] sm:$0xff] }
0x15f9   : > { %20509 = vmatprep.subr.bf16.mxu1 %v25718_v46  ;;  %v23831_v43 = vpack.c.bf16 %v25751_v16, %v25750_v31  ;;  %v25753_v53 = vsub.s32 2, %v25752_v15  ;;  %v25754_v62 = vsub.s32 3, %v25752_v15 }
0x15fa   : > { %v23786_v58 = vpack.c.bf16 %v8684_v56, %v8677_v19  ;;  %v20519_v56 = vpack.c.bf16 %v25746_v21, %v25745_v54  ;;  %v23803_v19 = vpack.c.bf16 %v8667_v12, %v8660_v13  ;;  %v25749_v13 = vand.u32 4294901760, %v25744_v61 }
0x15fb   : > { %v8507_v41 = vrot.slane %v21571_v14, %v25753_v53  ;;  %v8513_v50 = vrot.slane %v21571_v14, %v25754_v62 }
0x15fc   : > { %20511 = vmatpush3.bf16.msra.mxu1 %v20510_v8  ;;  %v23825_v12 = vpack.c.bf16 %v25749_v13, %v9255_v18 }
0x15fd   : > { %20512 = vmatprep.subr.bf16.mxu1 %v25718_v46 }
0x1679   : > { %v8492_v23 = vpop.xlane.xlu1 %8491 }
0x167a   : > { %v8496_v10 = vmul.f32 0.015625, %v8492_v23 }
0x167c   : > { %v8498_v48 = vadd.f32 1e-05, %v8496_v10 }
0x167d   : > { %v8495_v60 = vpop.xlane.xlu0 %8494 }
0x167e   : > { %21512 = vrsqrt.f32 %v8498_v48  ;;  %v8497_v18 = vmul.f32 0.015625, %v8495_v60 }
0x1680   : > { %v8499_v44 = vadd.f32 1e-05, %v8497_v18 }
0x1682   : > { %21514 = vrsqrt.f32 %v8499_v44 }
0x1688   : > { %v21513_v57 = vpop.eup %21512 }
0x1689   : > { %v8502_v20 = vmul.f32 %v21513_v57, %v23665_v24 }
0x168b   : > { %v8508_v32 = vmul.f32 %v8507_v41, %v8502_v20 }
0x168c   : > { %v21515_v29 = vpop.eup %21514 }
0x168d   : > { %v8503_v8 = vmul.f32 %v21515_v29, %v23670_v11  ;;  %v8514_v13 = vadd.f32 %v8513_v50, %v8508_v32 }
0x168f   : > { %v8509_v31 = vmul.f32 %v8507_v41, %v8503_v8  ;;  %8517 = vst.msk [vmem:[#allocation2 + $0x8] sm:$0xff] %vm354_vm0, %v8514_v13  ;;  %v8532_v16 = vsel %vm354_vm0, %v8514_v13, 0 }
0x1690   : > { %v23852_v23 = vand.u32 4294901760, %v8532_v16 }
0x1691   : > { %v8515_v10 = vadd.f32 %v8513_v50, %v8509_v31 }
0x1692   : > { %v23855_v48 = vsub.f32 %v8532_v16, %v23852_v23 }
0x1693   : > { %8518 = vst.msk [vmem:[#allocation2 + $0x10] sm:$0xf] %vm382_vm1, %v8515_v10  ;;  %v8535_v24 = vsel %vm354_vm0, %v8515_v10, 0 }
0x1694   : > { %v8612_v60 = vand.u32 4294901760, %v23855_v48  ;;  %v23860_v18 = vand.u32 4294901760, %v8535_v24 }
0x1696   : > { %v8613_v11 = vsub.f32 %v23855_v48, %v8612_v60  ;;  %v23866_v44 = vsub.f32 %v8535_v24, %v23860_v18  ;;  %v8520_v14 = vld [vmem:[#allocation2 + $0x8] sm:$0xff] }
0x1697   : > { %v9130_v53 = vsel %vm354_vm0, %v8520_v14, 0 }
0x1698   : > { %v8614_v41 = vand.u32 4294901760, %v8613_v11  ;;  %v8622_v57 = vand.u32 4294901760, %v23866_v44  ;;  %v23870_v20 = vand.u32 4294901760, %v9130_v53 }
0x169a   : > { %18854 = vmatprep.mubr.f32.mxu0 %v8614_v41  ;;  %v8623_v62 = vsub.f32 %v23866_v44, %v8622_v57  ;;  %v23876_v50 = vsub.f32 %v9130_v53, %v23870_v20  ;;  %v8521_v32 = vld [vmem:[#allocation2 + $0x10] sm:$0xf] }
0x169b   : > { %v9133_v29 = vsel %vm354_vm0, %v8521_v32, 0 }
0x169c   : > { %v8624_v8 = vand.u32 4294901760, %v8623_v62  ;;  %v9220_v13 = vand.u32 4294901760, %v23876_v50  ;;  %v23880_v31 = vand.u32 4294901760, %v9133_v29 }
0x169e   : > { %18855 = vmatmul.mubr.f32.vlgmr.msra.gmra.mrb[26].mxu0 %v8624_v8  ;;  %v9221_v16 = vsub.f32 %v23876_v50, %v9220_v13  ;;  %v23886_v10 = vsub.f32 %v9133_v29, %v23880_v31 }
0x169f   : > { %20411 = vmatpush3.bf16.msra.mxu0 %v23760_v36  ;;  %18873 = vmatprep.mubr.f32.mxu0 %v23852_v23 }
0x16a0   : > { %20413 = vmatprep.subr.bf16.mxu0 %v23773_v17  ;;  %v9222_v24 = vand.u32 4294901760, %v9221_v16  ;;  %v9230_v11 = vand.u32 4294901760, %v23886_v10 }
0x16a2   : > { %18972 = vmatmul.mubr.f32.gmra.mrb[32].mxu1 %v9222_v24  ;;  %v9231_v14 = vsub.f32 %v23886_v10, %v9230_v11 }
0x16a3   : > { %20415 = vmatpush3.bf16.msra.mxu0 %v23773_v17  ;;  %18974 = vmatprep.mubr.msk.f32.mxu1 %vm21582_vm2, %v25734_v6 }
0x16a4   : > { %20417 = vmatprep.subr.bf16.mxu0 %v23784_v1  ;;  %v9232_v36 = vand.u32 4294901760, %v9231_v14 }
0x16a6   : > { %18975 = vmatmul.mubr.f32.gmra.mrb[34].mxu1 %v9232_v36 }
0x16a7   : > { %20419 = vmatpush3.bf16.msra.mxu0 %v23784_v1  ;;  %18993 = vmatprep.mubr.msk.f32.mxu1 %vm21582_vm2, %v25734_v6 }
0x16a8   : > { %20421 = vmatprep.subr.bf16.mxu0 %v23786_v58 }
0x16aa   : > { %18994 = vmatmul.mubr.f32.vlgmr.msra.gmra.mrb[30].mxu1 %v23605_v63 }
0x16ab   : > { %20423 = vmatpush3.bf16.msra.mxu0 %v23786_v58  ;;  %20514 = vmatpush3.bf16.msra.mxu1 %v20513_v55 }
0x16ac   : > { %20425 = vmatprep.subr.bf16.mxu0 %v23793_v27  ;;  %18996 = vmatprep.mubr.msk.f32.mxu1 %vm21582_vm2, %v25734_v6 }
0x16ad   : > { %20515 = vmatprep.subr.bf16.mxu1 %v25718_v46 }
0x16ae   : > { %18874 = vmatmul.mubr.f32.vlgmr.msra.gmra.mrb[26].mxu0 %v23860_v18  ;;  %18997 = vmatmul.mubr.f32.gmra.mrb[32].mxu1 %v23870_v20 }
0x16af   : > { %20427 = vmatpush3.bf16.msra.mxu0 %v23793_v27  ;;  %18892 = vmatprep.mubr.f32.mxu0 %v23855_v48 }
0x16b0   : > { %20517 = vmatpush3.bf16.msra.mxu1 %v20516_v3  ;;  %20429 = vmatprep.subr.bf16.mxu0 %v23799_v22 }
0x16b1   : > { %18999 = vmatprep.mubr.msk.f32.mxu1 %vm21582_vm2, %v25734_v6  ;;  %20518 = vmatprep.subr.bf16.mxu1 %v25718_v46 }
0x16b2   : > { %19000 = vmatmul.mubr.f32.gmra.mrb[34].mxu1 %v23880_v31 }
0x16b3   : > { %20431 = vmatpush3.bf16.msra.mxu0 %v23799_v22  ;;  %19018 = vmatprep.mubr.msk.f32.mxu1 %vm21582_vm2, %v25734_v6 }
0x16b4   : > { %20520 = vmatpush3.bf16.msra.mxu1 %v20519_v56  ;;  %20433 = vmatprep.subr.bf16.mxu0 %v23803_v19 }
0x16b5   : > { %20521 = vmatprep.subr.bf16.mxu1 %v25718_v46 }
0x16b7   : > { %20435 = vmatpush3.bf16.msra.mxu0 %v23803_v19 }
0x16b8   : > { %20523 = vmatpush3.bf16.msra.mxu1 %v20522_v42  ;;  %20437 = vmatprep.subr.bf16.mxu0 %v23807_v47 }
0x16b9   : > { %20524 = vmatprep.subr.bf16.mxu1 %v25718_v46 }
0x16bb   : > { %19019 = vmatmul.mubr.f32.vlgmr.msra.gmra.mrb[30].mxu1 %v23622_v0  ;;  %20439 = vmatpush3.bf16.msra.mxu0 %v23807_v47 }
0x16bc   : > { %20526 = vmatpush3.bf16.msra.mxu1 %v23598_v38  ;;  %19021 = vmatprep.mubr.msk.f32.mxu1 %vm21582_vm2, %v25734_v6 }
0x16bd   : > { %20441 = vmatprep.subr.bf16.mxu0 %v23682_v26  ;;  %20527 = vmatprep.subr.bf16.mxu1 %v25718_v46 }
0x16be   : > { %18893 = vmatmul.mubr.f32.vlgmr.msra.gmra.mrb[26].mxu0 %v23866_v44 }
0x16bf   : > { %19022 = vmatmul.mubr.f32.gmra.mrb[32].mxu1 %v23876_v50  ;;  %20443 = vmatpush3.bf16.msra.mxu0 %v23682_v26 }
0x16c0   : > { %18911 = vmatprep.mubr.f32.mxu0 %v8612_v60  ;;  %20529 = vmatpush3.bf16.msra.mxu1 %v23618_v5 }
0x16c1   : > { %19024 = vmatprep.mubr.msk.f32.mxu1 %vm21582_vm2, %v25734_v6  ;;  %20445 = vmatprep.subr.bf16.mxu0 %v23703_v9 }
0x16c2   : > { %20530 = vmatprep.subr.bf16.mxu1 %v25718_v46 }
0x16c3   : > { %19025 = vmatmul.mubr.f32.gmra.mrb[34].mxu1 %v23886_v10  ;;  %20447 = vmatpush3.bf16.msra.mxu0 %v23703_v9 }
0x16c4   : > { %20532 = vmatpush3.bf16.msra.mxu1 %v23630_v25  ;;  %20449 = vmatprep.subr.bf16.mxu0 %v23713_v52 }
0x16c5   : > { %20533 = vmatprep.subr.bf16.mxu1 %v25718_v46  ;;  %19043 = vmatprep.mubr.msk.f32.mxu1 %vm21582_vm2, %v25734_v6 }
0x16c7   : > { %20451 = vmatpush3.bf16.msra.mxu0 %v23713_v52 }
0x16c8   : > { %20535 = vmatpush3.bf16.msra.mxu1 %v23643_v49  ;;  %20453 = vmatprep.subr.bf16.mxu0 %v23721_v30 }
0x16c9   : > { %20536 = vmatprep.subr.bf16.mxu1 %v25718_v46 }
0x16cb   : > { %19044 = vmatmul.mubr.f32.vlgmr.msra.gmra.mrb[30].mxu1 %v25755_v33  ;;  %20455 = vmatpush3.bf16.msra.mxu0 %v23721_v30 }
0x16cc   : > { %20538 = vmatpush3.bf16.msra.mxu1 %v23813_v2  ;;  %19046 = vmatprep.mubr.msk.f32.mxu1 %vm21582_vm2, %v25734_v6 }
0x16cd   : > { %20457 = vmatprep.subr.bf16.mxu0 %v23819_v37  ;;  %20539 = vmatprep.subr.bf16.mxu1 %v25718_v46 }
0x16ce   : > { %18912 = vmatmul.mubr.f32.vlgmr.msra.gmra.mrb[26].mxu0 %v8622_v57 }
0x16cf   : > { %19047 = vmatmul.mubr.f32.gmra.mrb[32].mxu1 %v9220_v13  ;;  %20459 = vmatpush3.bf16.msra.mxu0 %v23819_v37 }
0x16d0   : > { %18930 = vmatprep.mubr.f32.mxu0 %v23852_v23  ;;  %20541 = vmatpush3.bf16.msra.mxu1 %v23825_v12 }
0x16d1   : > { %19049 = vmatprep.mubr.msk.f32.mxu1 %vm21582_vm2, %v25734_v6  ;;  %20461 = vmatprep.subr.bf16.mxu0 %v23831_v43 }
0x16d2   : > { %20542 = vmatprep.subr.bf16.mxu1 %v25718_v46 }
0x16d3   : > { %19050 = vmatmul.mubr.f32.gmra.mrb[34].mxu1 %v9230_v11  ;;  %20463 = vmatpush3.bf16.msra.mxu0 %v23831_v43 }
0x16d4   : > { %20544 = vmatpush3.bf16.msra.mxu1 %v23833_v40  ;;  %20465 = vmatprep.subr.bf16.mxu0 %v23835_v28 }
0x16d5   : > { %20545 = vmatprep.subr.bf16.mxu1 %v25718_v46  ;;  %19068 = vmatprep.mubr.msk.f32.mxu1 %vm21582_vm2, %v25734_v6 }
0x16d7   : > { %20467 = vmatpush3.bf16.msra.mxu0 %v23835_v28 }
0x16d8   : > { %20547 = vmatpush3.bf16.msra.mxu1 %v23837_v45  ;;  %20469 = vmatprep.subr.bf16.mxu0 %v23839_v34 }
0x16d9   : > { %20548 = vmatprep.subr.bf16.mxu1 %v25718_v46 }
0x16db   : > { %19069 = vmatmul.mubr.f32.vlgmr.msra.gmra.mrb[30].mxu1 %v23605_v63  ;;  %20471 = vmatpush3.bf16.msra.mxu0 %v23839_v34 }
0x16dc   : > { %20550 = vmatpush3.bf16.msra.mxu1 %v23598_v38  ;;  %19071 = vmatprep.mubr.msk.f32.mxu1 %vm21582_vm2, %v25734_v6 }
0x16dd   : > { %20473 = vmatprep.subr.bf16.mxu0 %v23682_v26  ;;  %20551 = vmatprep.subr.bf16.mxu1 %v25718_v46 }
0x16de   : > { %18931 = vmatmul.mubr.f32.vlgmr.msra.gmra.mrb[26].mxu0 %v23860_v18 }
0x16df   : > { %19072 = vmatmul.mubr.f32.gmra.mrb[32].mxu1 %v23870_v20  ;;  %20475 = vmatpush3.bf16.msra.mxu0 %v23682_v26 }
0x16e0   : > { %18949 = vmatprep.mubr.f32.mxu0 %v23852_v23  ;;  %20553 = vmatpush3.bf16.msra.mxu1 %v23618_v5 }
0x16e1   : > { %19074 = vmatprep.mubr.msk.f32.mxu1 %vm21582_vm2, %v25734_v6  ;;  %20477 = vmatprep.subr.bf16.mxu0 %v23703_v9 }
0x16e2   : > { %20554 = vmatprep.subr.bf16.mxu1 %v25718_v46 }
0x16e3   : > { %19075 = vmatmul.mubr.f32.gmra.mrb[34].mxu1 %v23880_v31  ;;  %20479 = vmatpush3.bf16.msra.mxu0 %v23703_v9 }
0x16e4   : > { %20556 = vmatpush3.bf16.msra.mxu1 %v23630_v25  ;;  %20481 = vmatprep.subr.bf16.mxu0 %v23713_v52 }
0x16e5   : > { %20557 = vmatprep.subr.bf16.mxu1 %v25718_v46  ;;  %19093 = vmatprep.mubr.msk.f32.mxu1 %vm21582_vm2, %v25734_v6 }
0x16e7   : > { %20483 = vmatpush3.bf16.msra.mxu0 %v23713_v52 }
0x16e8   : > { %20559 = vmatpush3.bf16.msra.mxu1 %v23643_v49  ;;  %20485 = vmatprep.subr.bf16.mxu0 %v23721_v30 }
0x16eb   : > { %19094 = vmatmul.mubr.f32.vlgmr.msra.gmra.mrb[30].mxu1 %v23605_v63  ;;  %20487 = vmatpush3.bf16.msra.mxu0 %v23721_v30 }
0x16ec   : > { %19096 = vmatprep.mubr.msk.f32.mxu1 %vm21582_vm2, %v25734_v6 }
0x16ee   : > { %18950 = vmatmul.mubr.f32.vlgmr.msra.gmra.mrb[26].mxu0 %v23860_v18 }
0x16ef   : > { %19097 = vmatmul.mubr.f32.gmra.mrb[32].mxu1 %v23870_v20 }
0x16f0   : > { %19099 = vmatprep.mubr.msk.f32.mxu1 %vm21582_vm2, %v25734_v6 }
0x16f3   : > { %19100 = vmatmul.mubr.f32.gmra.mrb[34].mxu1 %v23880_v31 }
0x17be   : > { %v24032_v38 = vpop.f32.mrb[30].mxu1 }
0x17bf   : > { %v9765_v46 = vsel %vm1658_vm3, %v24032_v38, 0  ;;  %v19095_v63 = vpop.f32.mrb[31].mxu1 }
0x17c0   : > { %v9774_v5 = vand.u32 4294901760, %v9765_v46 }
0x17c1   : > { %v24036_v0 = vpop.f32.mrb[26].mxu0 }
0x17c2   : > { %v9762_v25 = vsel %vm1658_vm3, %v24036_v0, 0  ;;  %v24040_v49 = vpop.f32.mrb[32].mxu1  ;;  %v24042_v26 = vpop.f32.mrb[27].mxu0  ;;  %v9863_v9 = vsub.f32 %v9765_v46, %v9774_v5 }
0x17c3   : > { %v24044_v52 = vand.u32 4294901760, %v9762_v25  ;;  %v9768_v35 = vsel %vm1658_vm3, %v24040_v49, 0  ;;  %v9759_v30 = vsel %vm1658_vm3, %v24042_v26, 0  ;;  %v19098_v51 = vpop.f32.mrb[33].mxu1 }
0x17c4   : > { %v9841_v61 = vand.u32 4294901760, %v9759_v30  ;;  %v9777_v54 = vand.u32 4294901760, %v9768_v35  ;;  %v9864_v21 = vand.u32 4294901760, %v9863_v9 }
0x17c5   : > { %v9852_v59 = vsub.f32 %v9762_v25, %v24044_v52 }
0x17c6   : > { %v9842_v17 = vsub.f32 %v9759_v30, %v9841_v61  ;;  %v24051_v7 = vpop.f32.mrb[34].mxu1  ;;  %v20560_v1 = vpack.c.bf16 %v9777_v54, %v9774_v5  ;;  %v9870_v58 = vsub.f32 %v9768_v35, %v9777_v54  ;;  %v9865_v56 = vsub.f32 %v9863_v9, %v9864_v21 }
0x17c7   : > { %v9771_v55 = vsel %vm1658_vm3, %v24051_v7, 0  ;;  %v19101_v27 = vpop.f32.mrb[35].mxu1  ;;  %v9853_v42 = vand.u32 4294901760, %v9852_v59 }
0x17c8   : > { %v9780_v3 = vand.u32 4294901760, %v9771_v55  ;;  %20561 = vmatprep.subr.bf16.mxu0 %v20560_v1  ;;  %v9843_v22 = vand.u32 4294901760, %v9842_v17  ;;  %v9871_v19 = vand.u32 4294901760, %v9870_v58  ;;  %v20568_v47 = vpack.c.bf16 %v9870_v58, %v9863_v9 }
0x17c9   : > { %20563 = vmatpush3.bf16.xpose.msra.mxu0 %v20560_v1  ;;  %v9866_v28 = vand.u32 4294901760, %v9865_v56  ;;  %v9854_v48 = vsub.f32 %v9852_v59, %v9853_v42 }
0x17ca   : > { %19106 = vmatprep.subr.mxu0 %v9780_v3  ;;  %v9844_v2 = vsub.f32 %v9842_v17, %v9843_v22  ;;  %v9872_v37 = vsub.f32 %v9870_v58, %v9871_v19  ;;  %v9877_v12 = vsub.f32 %v9771_v55, %v9780_v3  ;;  %v20576_v43 = vpack.c.bf16 %v9871_v19, %v9864_v21 }
0x17cb   : > { %v9855_v18 = vand.u32 4294901760, %v9854_v48 }
0x17cc   : > { %v9845_v40 = vand.u32 4294901760, %v9844_v2  ;;  %v9873_v45 = vand.u32 4294901760, %v9872_v37  ;;  %v9878_v34 = vand.u32 4294901760, %v9877_v12 }
0x17ce   : > { %19108 = vmatprep.mubr.f32.mxu0 %v9845_v40  ;;  %v20564_v23 = vpack.c.bf16 %v9873_v45, %v9866_v28  ;;  %v9879_v60 = vsub.f32 %v9877_v12, %v9878_v34 }
0x17d0   : > { %v9880_v44 = vand.u32 4294901760, %v9879_v60 }
0x17d1   : > { %19107 = vmatpush3.xpose.msra.mxu0 %v9780_v3 }
0x17d2   : > { %20565 = vmatprep.subr.bf16.mxu0 %v20564_v23 }
0x17d4   : > { %19109 = vmatmul.mubr.f32.vlgmr.msra.gmra.mrb[28].mxu0 %v9855_v18 }
0x17d5   : > { %20567 = vmatpush3.bf16.xpose.msra.mxu0 %v20564_v23  ;;  %19117 = vmatprep.mubr.f32.mxu0 %v9841_v61 }
0x17d6   : > { %19115 = vmatprep.subr.mxu0 %v9880_v44 }
0x17dd   : > { %19116 = vmatpush3.xpose.msra.mxu0 %v9880_v44 }
0x17de   : > { %20569 = vmatprep.subr.bf16.mxu0 %v20568_v47 }
0x17e0   : > { %19118 = vmatmul.mubr.f32.vlgmr.msra.gmra.mrb[28].mxu0 %v24044_v52 }
0x17e1   : > { %20571 = vmatpush3.bf16.xpose.msra.mxu0 %v20568_v47  ;;  %19126 = vmatprep.mubr.f32.mxu0 %v9842_v17 }
0x17e2   : > { %19124 = vmatprep.subr.mxu0 %v9877_v12 }
0x17e9   : > { %19125 = vmatpush3.xpose.msra.mxu0 %v9877_v12 }
0x17ea   : > { %20573 = vmatprep.subr.bf16.mxu0 %v20560_v1 }
0x17ec   : > { %19127 = vmatmul.mubr.f32.vlgmr.msra.gmra.mrb[28].mxu0 %v9852_v59 }
0x17ed   : > { %20575 = vmatpush3.bf16.xpose.msra.mxu0 %v20560_v1  ;;  %19135 = vmatprep.mubr.f32.mxu0 %v9843_v22 }
0x17ee   : > { %19133 = vmatprep.subr.mxu0 %v9780_v3 }
0x17f5   : > { %19134 = vmatpush3.xpose.msra.mxu0 %v9780_v3 }
0x17f6   : > { %20577 = vmatprep.subr.bf16.mxu0 %v20576_v43 }
0x17f8   : > { %19136 = vmatmul.mubr.f32.vlgmr.msra.gmra.mrb[28].mxu0 %v9853_v42 }
0x17f9   : > { %20579 = vmatpush3.bf16.xpose.msra.mxu0 %v20576_v43  ;;  %19144 = vmatprep.mubr.f32.mxu0 %v9841_v61 }
0x17fa   : > { %19142 = vmatprep.subr.mxu0 %v9878_v34 }
0x1801   : > { %19143 = vmatpush3.xpose.msra.mxu0 %v9878_v34 }
0x1802   : > { %20581 = vmatprep.subr.bf16.mxu0 %v20560_v1 }
0x1804   : > { %19145 = vmatmul.mubr.f32.vlgmr.msra.gmra.mrb[28].mxu0 %v24044_v52 }
0x1805   : > { %20583 = vmatpush3.bf16.xpose.msra.mxu0 %v20560_v1  ;;  %19153 = vmatprep.mubr.f32.mxu0 %v9841_v61 }
0x1806   : > { %19151 = vmatprep.subr.mxu0 %v9780_v3 }
0x180d   : > { %19152 = vmatpush3.xpose.msra.mxu0 %v9780_v3 }
0x1810   : > { %19154 = vmatmul.mubr.f32.vlgmr.msra.gmra.mrb[28].mxu0 %v24044_v52 }
0x18e3   : > { %v19155_v53 = vpop.f32.mrb[28].mxu0 }
0x18e4   : > { %v10278_v41 = vpop.f32.mrb[29].mxu0  ;;  %v10291_v57 = vsel %vm2193_vm4, %v19155_v53, -inf }
0x18e5   : > { %10292 = vmax.xlane.f32.xlu0 %v10291_v57  ;;  %v10288_v20 = vsel %vm2189_vm5, %v10278_v41, -inf }
0x18e6   : > { %10289 = vmax.xlane.f32.xlu1 %v10288_v20 }
0x18f7   : > { %10310 = vrot.lane.b32.xlu1 %v24032_v38, %s21584_s21 }
0x1972   : > { %v10293_v62 = vpop.xlane.xlu0 %10292 }
0x1973   : > { %v10295_v50 = vsub.f32 %v19155_v53, %v10293_v62  ;;  %v10290_v32 = vpop.xlane.xlu1 %10289 }
0x1974   : > { %v10294_v29 = vsub.f32 %v10278_v41, %v10290_v32 }
0x1975   : > { %v10298_v8 = vmul.f32 1.442695, %v10295_v50 }
0x1976   : > { %v10296_v13 = vmul.f32 1.442695, %v10294_v29 }
0x1977   : > { %21516 = vpow2.f32 %v10298_v8  ;;  %v10311_v11 = vpop.permute.xlu1 %10310 }
0x1978   : > { %21518 = vpow2.f32 %v10296_v13  ;;  %v10327_v14 = vand.u32 4294901760, %v10311_v11 }
0x197a   : > { %v24078_v33 = vsub.f32 %v10311_v11, %v10327_v14 }
0x197c   : > { %v10417_v5 = vand.u32 4294901760, %v24078_v33 }
0x197e   : > { %v10418_v51 = vsub.f32 %v24078_v33, %v10417_v5 }
0x1980   : > { %v10419_v55 = vand.u32 4294901760, %v10418_v51 }
0x1981   : > { %v21517_v31 = vpop.eup %21516 }
0x1982   : > { %v21519_v16 = vpop.eup %21518  ;;  %v10303_v10 = vsel %vm2193_vm4, %v21517_v31, 0.0 }
0x1983   : > { %10304 = vadd.xlane.f32.xlu0 %v10303_v10  ;;  %v10300_v24 = vsel %vm2189_vm5, %v21519_v16, 0.0 }
0x1984   : > { %10301 = vadd.xlane.f32.xlu1 %v10300_v24 }
0x1995   : > { %10314 = vrot.lane.b32.xlu1 %v24051_v7, %s21584_s21 }
0x1999   : > { %10312 = vrot.lane.b32.xlu0 %v24040_v49, %s21584_s21  ;;  %10845 = vrot.lane.b32.xlu1 %v24032_v38, %s21585_s22 }
0x199d   : > { %10841 = vrot.lane.b32.xlu0 %v24042_v26, %s21585_s22  ;;  %10847 = vrot.lane.b32.xlu1 %v24040_v49, %s21585_s22 }
0x19a1   : > { %10849 = vrot.lane.b32.xlu0 %v24051_v7, %s21585_s22  ;;  %10843 = vrot.lane.b32.xlu1 %v24036_v0, %s21585_s22 }
0x1a10   : > { %v10305_v36 = vpop.xlane.xlu0 %10304 }
0x1a11   : > { %21520 = vrcp.f32 %v10305_v36  ;;  %v10302_v46 = vpop.xlane.xlu1 %10301 }
0x1a12   : > { %21522 = vrcp.f32 %v10302_v46 }
0x1a14   : > { %v10313_v63 = vpop.permute.xlu0 %10312 }
0x1a15   : > { %v10330_v25 = vand.u32 4294901760, %v10313_v63  ;;  %v10315_v9 = vpop.permute.xlu1 %10314 }
0x1a16   : > { %v10324_v52 = vsel %vm2227_vm6, %v10315_v9, 0 }
0x1a17   : > { %v24082_v35 = vpack.c.bf16 %v10330_v25, %v10327_v14  ;;  %v10423_v30 = vsub.f32 %v10313_v63, %v10330_v25  ;;  %v24085_v54 = vand.u32 4294901760, %v10324_v52 }
0x1a18   : > { %v10842_v44 = vpop.permute.xlu0 %10841 }
0x1a19   : > { %v10424_v61 = vand.u32 4294901760, %v10423_v30  ;;  %20585 = vmatprep.subr.bf16.mxu1 %v24082_v35  ;;  %v10430_v47 = vsub.f32 %v10324_v52, %v24085_v54  ;;  %v20592_v18 = vpack.c.bf16 %v10423_v30, %v24078_v33  ;;  %v10846_v53 = vpop.permute.xlu1 %10845  ;;  %v10851_v41 = vsel %vm1658_vm3, %v10842_v44, 0 }
0x1a1a   : > { %20587 = vmatpush3.bf16.msra.mxu1 %v24082_v35  ;;  %v24104_v20 = vand.u32 4294901760, %v10851_v41  ;;  %v10855_v29 = vsel %vm1658_vm3, %v10846_v53, 0 }
0x1a1b   : > { %v21521_v21 = vpop.eup %21520  ;;  %v10425_v59 = vsub.f32 %v10423_v30, %v10424_v61  ;;  %19160 = vmatprep.subr.mxu1 %v24085_v54  ;;  %v10431_v43 = vand.u32 4294901760, %v10430_v47  ;;  %v20600_v57 = vpack.c.bf16 %v10424_v61, %v10417_v5 }
0x1a1c   : > { %v21523_v17 = vpop.eup %21522  ;;  %v10309_v1 = vmul.f32 %v21521_v21, %v21517_v31  ;;  %v10930_v50 = vsub.f32 %v10851_v41, %v24104_v20  ;;  %v10850_v10 = vpop.permute.xlu0 %10849 }
0x1a1d   : > { %v10307_v58 = vmul.f32 %v21523_v17, %v21519_v16  ;;  %v10426_v27 = vand.u32 4294901760, %v10425_v59  ;;  %v10432_v34 = vsub.f32 %v10430_v47, %v10431_v43  ;;  %v10848_v62 = vpop.permute.xlu1 %10847  ;;  %v10862_v16 = vand.u32 4294901760, %v10855_v29 }
0x1a1e   : > { %v10322_v3 = vsel %vm2189_vm5, %v10309_v1, 0  ;;  %19161 = vmatpush3.msra.mxu1 %v24085_v54  ;;  %v10857_v32 = vsel %vm1658_vm3, %v10848_v62, 0  ;;  %v10931_v8 = vand.u32 4294901760, %v10930_v50  ;;  %v10859_v36 = vsel %vm1658_vm3, %v10850_v10, 0 }
0x1a1f   : > { %v24092_v22 = vand.u32 4294901760, %v10322_v3  ;;  %v20588_v56 = vpack.c.bf16 %v10426_v27, %v10419_v55  ;;  %v10319_v19 = vsel %vm2189_vm5, %v10307_v58, 0  ;;  %v10433_v60 = vand.u32 4294901760, %v10432_v34 }
0x1a20   : > { %v10394_v2 = vand.u32 4294901760, %v10319_v19  ;;  %v10865_v13 = vand.u32 4294901760, %v10857_v32  ;;  %v10932_v14 = vsub.f32 %v10930_v50, %v10931_v8  ;;  %v10951_v46 = vsub.f32 %v10855_v29, %v10862_v16 }
0x1a21   : > { %v10405_v42 = vsub.f32 %v10322_v3, %v24092_v22  ;;  %20589 = vmatprep.subr.bf16.mxu1 %v20588_v56  ;;  %v10844_v31 = vpop.permute.xlu1 %10843  ;;  %v10868_v5 = vand.u32 4294901760, %v10859_v36 }
0x1a22   : > { %v10395_v12 = vsub.f32 %v10319_v19, %v10394_v2  ;;  %v10853_v24 = vsel %vm1658_vm3, %v10844_v31, 0  ;;  %v10958_v11 = vsub.f32 %v10857_v32, %v10865_v13  ;;  %v20608_v33 = vpack.c.bf16 %v10865_v13, %v10862_v16 }
0x1a23   : > { %v10406_v37 = vand.u32 4294901760, %v10405_v42  ;;  %v10939_v63 = vand.u32 4294901760, %v10853_v24  ;;  %v10933_v9 = vand.u32 4294901760, %v10932_v14  ;;  %v10952_v52 = vand.u32 4294901760, %v10951_v46 }
0x1a24   : > { %v10396_v40 = vand.u32 4294901760, %v10395_v12  ;;  %v10959_v25 = vand.u32 4294901760, %v10958_v11  ;;  %v10965_v30 = vsub.f32 %v10859_v36, %v10868_v5 }
0x1a25   : > { %v10407_v28 = vsub.f32 %v10405_v42, %v10406_v37  ;;  %v10953_v61 = vsub.f32 %v10951_v46, %v10952_v52 }
0x1a26   : > { %v10397_v45 = vsub.f32 %v10395_v12, %v10396_v40  ;;  %v10960_v51 = vsub.f32 %v10958_v11, %v10959_v25  ;;  %v10966_v17 = vand.u32 4294901760, %v10965_v30 }
0x1a27   : > { %v10408_v48 = vand.u32 4294901760, %v10407_v28  ;;  %v10954_v58 = vand.u32 4294901760, %v10953_v61 }
0x1a28   : > { %v10398_v23 = vand.u32 4294901760, %v10397_v45  ;;  %v10961_v59 = vand.u32 4294901760, %v10960_v51  ;;  %v10967_v55 = vsub.f32 %v10965_v30, %v10966_v17 }
0x1a2a   : > { %19162 = vmatprep.mubr.f32.mxu1 %v10398_v23  ;;  %v10968_v3 = vand.u32 4294901760, %v10967_v55 }
0x1a2b   : > { %19163 = vmatmul.mubr.f32.vlgmr.msra.gmra.mrb[36].mxu1 %v10408_v48 }
0x1a2c   : > { %20591 = vmatpush3.bf16.msra.mxu1 %v20588_v56  ;;  %19171 = vmatprep.mubr.f32.mxu1 %v10394_v2  ;;  %v20624_v56 = vpack.c.bf16 %v10959_v25, %v10952_v52 }
0x1a2d   : > { %19169 = vmatprep.subr.mxu1 %v10433_v60 }
0x1a30   : > { %19170 = vmatpush3.msra.mxu1 %v10433_v60 }
0x1a31   : > { %20593 = vmatprep.subr.bf16.mxu1 %v20592_v18 }
0x1a33   : > { %19172 = vmatmul.mubr.f32.vlgmr.msra.gmra.mrb[36].mxu1 %v24092_v22 }
0x1a34   : > { %20595 = vmatpush3.bf16.msra.mxu1 %v20592_v18  ;;  %19180 = vmatprep.mubr.f32.mxu1 %v10395_v12 }
0x1a35   : > { %19178 = vmatprep.subr.mxu1 %v10430_v47 }
0x1a38   : > { %19179 = vmatpush3.msra.mxu1 %v10430_v47 }
0x1a39   : > { %20597 = vmatprep.subr.bf16.mxu1 %v24082_v35 }
0x1a3b   : > { %19181 = vmatmul.mubr.f32.vlgmr.msra.gmra.mrb[36].mxu1 %v10405_v42 }
0x1a3c   : > { %20599 = vmatpush3.bf16.msra.mxu1 %v24082_v35  ;;  %19189 = vmatprep.mubr.f32.mxu1 %v10396_v40 }
0x1a3d   : > { %19187 = vmatprep.subr.mxu1 %v24085_v54 }
0x1a40   : > { %19188 = vmatpush3.msra.mxu1 %v24085_v54 }
0x1a41   : > { %20601 = vmatprep.subr.bf16.mxu1 %v20600_v57 }
0x1a43   : > { %19190 = vmatmul.mubr.f32.vlgmr.msra.gmra.mrb[36].mxu1 %v10406_v37 }
0x1a44   : > { %20603 = vmatpush3.bf16.msra.mxu1 %v20600_v57  ;;  %19198 = vmatprep.mubr.f32.mxu1 %v10394_v2 }
0x1a45   : > { %19196 = vmatprep.subr.mxu1 %v10431_v43 }
0x1a48   : > { %19197 = vmatpush3.msra.mxu1 %v10431_v43 }
0x1a49   : > { %20605 = vmatprep.subr.bf16.mxu1 %v24082_v35 }
0x1a4b   : > { %19199 = vmatmul.mubr.f32.vlgmr.msra.gmra.mrb[36].mxu1 %v24092_v22 }
0x1a4c   : > { %20607 = vmatpush3.bf16.msra.mxu1 %v24082_v35  ;;  %19207 = vmatprep.mubr.f32.mxu1 %v10394_v2  ;;  %v10940_v35 = vsub.f32 %v10853_v24, %v10939_v63 }
0x1a4d   : > { %19205 = vmatprep.subr.mxu1 %v24085_v54 }
0x1a4e   : > { %v10941_v21 = vand.u32 4294901760, %v10940_v35 }
0x1a50   : > { %19206 = vmatpush3.msra.mxu1 %v24085_v54  ;;  %v10942_v1 = vsub.f32 %v10940_v35, %v10941_v21  ;;  %v20612_v54 = vpack.c.bf16 %v10961_v59, %v10954_v58 }
0x1a51   : > { %20609 = vmatprep.subr.bf16.mxu1 %v20608_v33 }
0x1a52   : > { %v10943_v27 = vand.u32 4294901760, %v10942_v1 }
0x1a53   : > { %19208 = vmatmul.mubr.f32.vlgmr.msra.gmra.mrb[36].mxu1 %v24092_v22  ;;  %v20616_v22 = vpack.c.bf16 %v10958_v11, %v10951_v46 }
0x1a54   : > { %19216 = vmatprep.mubr.f32.mxu1 %v10933_v9 }
0x1a57   : > { %20611 = vmatpush3.bf16.xpose.msra.mxu1 %v20608_v33 }
0x1a58   : > { %19214 = vmatprep.subr.mxu1 %v10868_v5 }
0x1a5f   : > { %19215 = vmatpush3.xpose.msra.mxu1 %v10868_v5 }
0x1a60   : > { %20613 = vmatprep.subr.bf16.mxu1 %v20612_v54 }
0x1a62   : > { %19217 = vmatmul.mubr.f32.vlgmr.msra.gmra.mrb[38].mxu1 %v10943_v27 }
0x1a63   : > { %20615 = vmatpush3.bf16.xpose.msra.mxu1 %v20612_v54  ;;  %19225 = vmatprep.mubr.f32.mxu1 %v24104_v20 }
0x1a64   : > { %19223 = vmatprep.subr.mxu1 %v10968_v3 }
0x1a6b   : > { %19224 = vmatpush3.xpose.msra.mxu1 %v10968_v3 }
0x1a6c   : > { %20617 = vmatprep.subr.bf16.mxu1 %v20616_v22 }
0x1a6e   : > { %19226 = vmatmul.mubr.f32.vlgmr.msra.gmra.mrb[38].mxu1 %v10939_v63 }
0x1a6f   : > { %20619 = vmatpush3.bf16.xpose.msra.mxu1 %v20616_v22  ;;  %19234 = vmatprep.mubr.f32.mxu1 %v10930_v50 }
0x1a70   : > { %19232 = vmatprep.subr.mxu1 %v10965_v30 }
0x1a77   : > { %19233 = vmatpush3.xpose.msra.mxu1 %v10965_v30 }
0x1a78   : > { %20621 = vmatprep.subr.bf16.mxu1 %v20608_v33 }
0x1a7a   : > { %19235 = vmatmul.mubr.f32.vlgmr.msra.gmra.mrb[38].mxu1 %v10940_v35 }
0x1a7b   : > { %20623 = vmatpush3.bf16.xpose.msra.mxu1 %v20608_v33  ;;  %19243 = vmatprep.mubr.f32.mxu1 %v10931_v8 }
0x1a7c   : > { %19241 = vmatprep.subr.mxu1 %v10868_v5 }
0x1a83   : > { %19242 = vmatpush3.xpose.msra.mxu1 %v10868_v5 }
0x1a84   : > { %20625 = vmatprep.subr.bf16.mxu1 %v20624_v56 }
0x1a86   : > { %19244 = vmatmul.mubr.f32.vlgmr.msra.gmra.mrb[38].mxu1 %v10941_v21 }
0x1a87   : > { %20627 = vmatpush3.bf16.xpose.msra.mxu1 %v20624_v56  ;;  %19252 = vmatprep.mubr.f32.mxu1 %v24104_v20 }
0x1a88   : > { %19250 = vmatprep.subr.mxu1 %v10966_v17 }
0x1a8f   : > { %19251 = vmatpush3.xpose.msra.mxu1 %v10966_v17 }
0x1a90   : > { %20629 = vmatprep.subr.bf16.mxu1 %v20608_v33 }
0x1a92   : > { %19253 = vmatmul.mubr.f32.vlgmr.msra.gmra.mrb[38].mxu1 %v10939_v63 }
0x1a93   : > { %20631 = vmatpush3.bf16.xpose.msra.mxu1 %v20608_v33  ;;  %19261 = vmatprep.mubr.f32.mxu1 %v24104_v20 }
0x1a94   : > { %19259 = vmatprep.subr.mxu1 %v10868_v5 }
0x1a9b   : > { %19260 = vmatpush3.xpose.msra.mxu1 %v10868_v5 }
0x1a9e   : > { %19262 = vmatmul.mubr.f32.vlgmr.msra.gmra.mrb[38].mxu1 %v10939_v63 }
0x1b26   : > { %v24120_v19 = vpop.f32.mrb[36].mxu1 }
0x1b27   : > { %v24122_v42 = vpop.f32.mrb[37].mxu1 }
0x1b71   : > { %v19263_v47 = vpop.f32.mrb[38].mxu1 }
0x1b72   : > { %v11366_v2 = vpop.f32.mrb[39].mxu1  ;;  %v11379_v37 = vsel %vm2193_vm4, %v19263_v47, -inf }
0x1b73   : > { %11380 = vmax.xlane.f32.xlu0 %v11379_v37  ;;  %v11376_v12 = vsel %vm2189_vm5, %v11366_v2, -inf }
0x1b74   : > { %11377 = vmax.xlane.f32.xlu1 %v11376_v12 }
0x1b85   : > { %11398 = vrot.lane.b32.xlu1 %v24032_v38, %s21586_s23 }
0x1b89   : > { %11402 = vrot.lane.b32.xlu1 %v24051_v7, %s21586_s23 }
0x1b8d   : > { %11933 = vrot.lane.b32.xlu1 %v24032_v38, %s21587_s24 }
0x1b91   : > { %11935 = vrot.lane.b32.xlu1 %v24040_v49, %s21587_s24 }
0x1b95   : > { %11931 = vrot.lane.b32.xlu1 %v24036_v0, %s21587_s24 }
0x1c00   : > { %v11381_v43 = vpop.xlane.xlu0 %11380 }
0x1c01   : > { %v11383_v40 = vsub.f32 %v19263_v47, %v11381_v43  ;;  %v11378_v28 = vpop.xlane.xlu1 %11377 }
0x1c02   : > { %v11382_v45 = vsub.f32 %v11366_v2, %v11378_v28 }
0x1c03   : > { %v11386_v34 = vmul.f32 1.442695, %v11383_v40 }
0x1c04   : > { %v11384_v23 = vmul.f32 1.442695, %v11382_v45 }
0x1c05   : > { %21524 = vpow2.f32 %v11386_v34  ;;  %v11399_v53 = vpop.permute.xlu1 %11398 }
0x1c06   : > { %21526 = vpow2.f32 %v11384_v23  ;;  %v11415_v57 = vand.u32 4294901760, %v11399_v53 }
0x1c08   : > { %v24144_v62 = vsub.f32 %v11399_v53, %v11415_v57 }
0x1c09   : > { %v11403_v50 = vpop.permute.xlu1 %11402 }
0x1c0a   : > { %v11505_v29 = vand.u32 4294901760, %v24144_v62  ;;  %v11412_v13 = vsel %vm2227_vm6, %v11403_v50, 0 }
0x1c0b   : > { %v24151_v14 = vand.u32 4294901760, %v11412_v13 }
0x1c0c   : > { %v11506_v11 = vsub.f32 %v24144_v62, %v11505_v29 }
0x1c0d   : > { %v11518_v30 = vsub.f32 %v11412_v13, %v24151_v14  ;;  %v11934_v37 = vpop.permute.xlu1 %11933 }
0x1c0e   : > { %v11507_v9 = vand.u32 4294901760, %v11506_v11  ;;  %v11943_v23 = vsel %vm1658_vm3, %v11934_v37, 0 }
0x1c0f   : > { %v21525_v48 = vpop.eup %21524  ;;  %v11519_v1 = vand.u32 4294901760, %v11518_v30 }
0x1c10   : > { %v11391_v60 = vsel %vm2193_vm4, %v21525_v48, 0.0  ;;  %v21527_v18 = vpop.eup %21526 }
0x1c11   : > { %11392 = vadd.xlane.f32.xlu0 %v11391_v60  ;;  %v11388_v44 = vsel %vm2189_vm5, %v21527_v18, 0.0  ;;  %v11520_v27 = vsub.f32 %v11518_v30, %v11519_v1  ;;  %v11936_v28 = vpop.permute.xlu1 %11935 }
0x1c12   : > { %v11945_v34 = vsel %vm1658_vm3, %v11936_v28, 0 }
0x1c13   : > { %v11521_v56 = vand.u32 4294901760, %v11520_v27 }
0x1c15   : > { %11389 = vadd.xlane.f32.xlu0 %v11388_v44  ;;  %v11932_v60 = vpop.permute.xlu1 %11931  ;;  %v11950_v44 = vand.u32 4294901760, %v11943_v23 }
0x1c2b   : > { %11400 = vrot.lane.b32.xlu0 %v24040_v49, %s21586_s23 }
0x1c2f   : > { %11929 = vrot.lane.b32.xlu0 %v24042_v26, %s21587_s24 }
0x1c33   : > { %11937 = vrot.lane.b32.xlu0 %v24051_v7, %s21587_s24 }
0x1c9e   : > { %v11393_v41 = vpop.xlane.xlu0 %11392 }
0x1c9f   : > { %21528 = vrcp.f32 %v11393_v41  ;;  %v11941_v41 = vsel %vm1658_vm3, %v11932_v60, 0 }
0x1ca2   : > { %v11390_v20 = vpop.xlane.xlu0 %11389 }
0x1ca3   : > { %21530 = vrcp.f32 %v11390_v20 }
0x1ca6   : > { %v11401_v32 = vpop.permute.xlu0 %11400 }
0x1ca7   : > { %v11418_v8 = vand.u32 4294901760, %v11401_v32 }
0x1ca9   : > { %v21529_v31 = vpop.eup %21528  ;;  %v24148_v16 = vpack.c.bf16 %v11418_v8, %v11415_v57  ;;  %v11511_v10 = vsub.f32 %v11401_v32, %v11418_v8  ;;  %v12039_v32 = vsub.f32 %v11943_v23, %v11950_v44 }
0x1caa   : > { %v11397_v24 = vmul.f32 %v21529_v31, %v21525_v48  ;;  %v11930_v2 = vpop.permute.xlu0 %11929  ;;  %v11953_v48 = vand.u32 4294901760, %v11945_v34 }
0x1cab   : > { %v11512_v36 = vand.u32 4294901760, %v11511_v10  ;;  %20633 = vmatprep.subr.bf16.mxu0 %v24148_v16  ;;  %v20640_v47 = vpack.c.bf16 %v11511_v10, %v24144_v62  ;;  %v11939_v12 = vsel %vm1658_vm3, %v11930_v2, 0 }
0x1cac   : > { %20635 = vmatpush3.bf16.msra.mxu0 %v24148_v16  ;;  %v11410_v33 = vsel %vm2189_vm5, %v11397_v24, 0  ;;  %v24170_v40 = vand.u32 4294901760, %v11939_v12  ;;  %v12046_v57 = vsub.f32 %v11945_v34, %v11953_v48  ;;  %v20656_v62 = vpack.c.bf16 %v11953_v48, %v11950_v44 }
0x1cad   : > { %v21531_v46 = vpop.eup %21530  ;;  %v11513_v63 = vsub.f32 %v11511_v10, %v11512_v36  ;;  %19268 = vmatprep.subr.mxu0 %v24151_v14  ;;  %v24157_v5 = vand.u32 4294901760, %v11410_v33  ;;  %v20648_v43 = vpack.c.bf16 %v11512_v36, %v11505_v29  ;;  %v12027_v29 = vand.u32 4294901760, %v11941_v41 }
0x1cae   : > { %v11395_v25 = vmul.f32 %v21531_v46, %v21527_v18  ;;  %v12018_v45 = vsub.f32 %v11939_v12, %v24170_v40  ;;  %v11938_v53 = vpop.permute.xlu0 %11937  ;;  %v12047_v8 = vand.u32 4294901760, %v12046_v57 }
0x1caf   : > { %v11514_v52 = vand.u32 4294901760, %v11513_v63  ;;  %v11493_v35 = vsub.f32 %v11410_v33, %v24157_v5  ;;  %v11947_v50 = vsel %vm1658_vm3, %v11938_v53, 0  ;;  %v12028_v10 = vsub.f32 %v11941_v41, %v12027_v29 }
0x1cb0   : > { %19269 = vmatpush3.msra.mxu0 %v24151_v14  ;;  %v11407_v51 = vsel %vm2189_vm5, %v11395_v25, 0  ;;  %v12019_v18 = vand.u32 4294901760, %v12018_v45  ;;  %v11956_v13 = vand.u32 4294901760, %v11947_v50  ;;  %v12048_v24 = vsub.f32 %v12046_v57, %v12047_v8 }
0x1cb1   : > { %v20636_v61 = vpack.c.bf16 %v11514_v52, %v11507_v9  ;;  %v11482_v21 = vand.u32 4294901760, %v11407_v51  ;;  %v11494_v59 = vand.u32 4294901760, %v11493_v35  ;;  %v12029_v33 = vand.u32 4294901760, %v12028_v10 }
0x1cb2   : > { %v12020_v20 = vsub.f32 %v12018_v45, %v12019_v18  ;;  %v12053_v11 = vsub.f32 %v11947_v50, %v11956_v13  ;;  %v12049_v46 = vand.u32 4294901760, %v12048_v24 }
0x1cb3   : > { %20637 = vmatprep.subr.bf16.mxu0 %v20636_v61  ;;  %v11483_v17 = vsub.f32 %v11407_v51, %v11482_v21  ;;  %v11495_v54 = vsub.f32 %v11493_v35, %v11494_v59  ;;  %v12030_v25 = vsub.f32 %v12028_v10, %v12029_v33 }
0x1cb4   : > { %v12021_v31 = vand.u32 4294901760, %v12020_v20  ;;  %v12054_v63 = vand.u32 4294901760, %v12053_v11 }
0x1cb5   : > { %v11484_v58 = vand.u32 4294901760, %v11483_v17  ;;  %v11496_v22 = vand.u32 4294901760, %v11495_v54 }
0x1cb6   : > { %v12055_v52 = vsub.f32 %v12053_v11, %v12054_v63 }
0x1cb7   : > { %v11485_v55 = vsub.f32 %v11483_v17, %v11484_v58 }
0x1cb9   : > { %v11486_v3 = vand.u32 4294901760, %v11485_v55 }
0x1cbb   : > { %19270 = vmatprep.mubr.f32.mxu0 %v11486_v3 }
0x1cbc   : > { %19271 = vmatmul.mubr.f32.vlgmr.msra.gmra.mrb[30].mxu0 %v11496_v22 }
0x1cbd   : > { %20639 = vmatpush3.bf16.msra.mxu0 %v20636_v61  ;;  %19279 = vmatprep.mubr.f32.mxu0 %v11482_v21 }
0x1cbe   : > { %19277 = vmatprep.subr.mxu0 %v11521_v56 }
0x1cc1   : > { %19278 = vmatpush3.msra.mxu0 %v11521_v56 }
0x1cc2   : > { %20641 = vmatprep.subr.bf16.mxu0 %v20640_v47 }
0x1cc4   : > { %19280 = vmatmul.mubr.f32.vlgmr.msra.gmra.mrb[30].mxu0 %v24157_v5 }
0x1cc5   : > { %20643 = vmatpush3.bf16.msra.mxu0 %v20640_v47  ;;  %19288 = vmatprep.mubr.f32.mxu0 %v11483_v17 }
0x1cc6   : > { %19286 = vmatprep.subr.mxu0 %v11518_v30 }
0x1cc9   : > { %19287 = vmatpush3.msra.mxu0 %v11518_v30  ;;  %v20664_v30 = vpack.c.bf16 %v12046_v57, %v12039_v32 }
0x1cca   : > { %20645 = vmatprep.subr.bf16.mxu0 %v24148_v16 }
0x1ccc   : > { %19289 = vmatmul.mubr.f32.vlgmr.msra.gmra.mrb[30].mxu0 %v11493_v35  ;;  %v12031_v35 = vand.u32 4294901760, %v12030_v25 }
0x1ccd   : > { %20647 = vmatpush3.bf16.msra.mxu0 %v24148_v16  ;;  %19297 = vmatprep.mubr.f32.mxu0 %v11484_v58 }
0x1cce   : > { %19295 = vmatprep.subr.mxu0 %v24151_v14 }
0x1cd1   : > { %19296 = vmatpush3.msra.mxu0 %v24151_v14 }
0x1cd2   : > { %20649 = vmatprep.subr.bf16.mxu0 %v20648_v43 }
0x1cd4   : > { %19298 = vmatmul.mubr.f32.vlgmr.msra.gmra.mrb[30].mxu0 %v11494_v59 }
0x1cd5   : > { %20651 = vmatpush3.bf16.msra.mxu0 %v20648_v43  ;;  %19306 = vmatprep.mubr.f32.mxu0 %v11482_v21 }
0x1cd6   : > { %19304 = vmatprep.subr.mxu0 %v11519_v1 }
0x1cd9   : > { %19305 = vmatpush3.msra.mxu0 %v11519_v1 }
0x1cda   : > { %20653 = vmatprep.subr.bf16.mxu0 %v24148_v16 }
0x1cdc   : > { %19307 = vmatmul.mubr.f32.vlgmr.msra.gmra.mrb[30].mxu0 %v24157_v5 }
0x1cdd   : > { %20655 = vmatpush3.bf16.msra.mxu0 %v24148_v16  ;;  %19315 = vmatprep.mubr.f32.mxu0 %v11482_v21  ;;  %v12040_v16 = vand.u32 4294901760, %v12039_v32 }
0x1cde   : > { %19313 = vmatprep.subr.mxu0 %v24151_v14 }
0x1cdf   : > { %v12041_v36 = vsub.f32 %v12039_v32, %v12040_v16  ;;  %v20672_v51 = vpack.c.bf16 %v12047_v8, %v12040_v16 }
0x1ce1   : > { %19314 = vmatpush3.msra.mxu0 %v24151_v14  ;;  %v12042_v9 = vand.u32 4294901760, %v12041_v36 }
0x1ce2   : > { %20657 = vmatprep.subr.bf16.mxu0 %v20656_v62 }
0x1ce3   : > { %v20660_v14 = vpack.c.bf16 %v12049_v46, %v12042_v9 }
0x1ce4   : > { %19316 = vmatmul.mubr.f32.vlgmr.msra.gmra.mrb[30].mxu0 %v24157_v5  ;;  %v12056_v5 = vand.u32 4294901760, %v12055_v52 }
0x1ce5   : > { %19324 = vmatprep.mubr.f32.mxu0 %v12021_v31 }
0x1ce8   : > { %20659 = vmatpush3.bf16.xpose.msra.mxu0 %v20656_v62 }
0x1ce9   : > { %19322 = vmatprep.subr.mxu0 %v11956_v13 }
0x1cf0   : > { %19323 = vmatpush3.xpose.msra.mxu0 %v11956_v13 }
0x1cf1   : > { %20661 = vmatprep.subr.bf16.mxu0 %v20660_v14 }
0x1cf3   : > { %19325 = vmatmul.mubr.f32.vlgmr.msra.gmra.mrb[32].mxu0 %v12031_v35 }
0x1cf4   : > { %20663 = vmatpush3.bf16.xpose.msra.mxu0 %v20660_v14  ;;  %19333 = vmatprep.mubr.f32.mxu0 %v24170_v40 }
0x1cf5   : > { %19331 = vmatprep.subr.mxu0 %v12056_v5 }
0x1cfc   : > { %19332 = vmatpush3.xpose.msra.mxu0 %v12056_v5 }
0x1cfd   : > { %20665 = vmatprep.subr.bf16.mxu0 %v20664_v30 }
0x1cff   : > { %19334 = vmatmul.mubr.f32.vlgmr.msra.gmra.mrb[32].mxu0 %v12027_v29 }
0x1d00   : > { %20667 = vmatpush3.bf16.xpose.msra.mxu0 %v20664_v30  ;;  %19342 = vmatprep.mubr.f32.mxu0 %v12018_v45 }
0x1d01   : > { %19340 = vmatprep.subr.mxu0 %v12053_v11 }
0x1d08   : > { %19341 = vmatpush3.xpose.msra.mxu0 %v12053_v11 }
0x1d09   : > { %20669 = vmatprep.subr.bf16.mxu0 %v20656_v62 }
0x1d0b   : > { %19343 = vmatmul.mubr.f32.vlgmr.msra.gmra.mrb[32].mxu0 %v12028_v10 }
0x1d0c   : > { %20671 = vmatpush3.bf16.xpose.msra.mxu0 %v20656_v62  ;;  %19351 = vmatprep.mubr.f32.mxu0 %v12019_v18 }
0x1d0d   : > { %19349 = vmatprep.subr.mxu0 %v11956_v13 }
0x1d14   : > { %19350 = vmatpush3.xpose.msra.mxu0 %v11956_v13 }
0x1d15   : > { %20673 = vmatprep.subr.bf16.mxu0 %v20672_v51 }
0x1d17   : > { %19352 = vmatmul.mubr.f32.vlgmr.msra.gmra.mrb[32].mxu0 %v12029_v33 }
0x1d18   : > { %20675 = vmatpush3.bf16.xpose.msra.mxu0 %v20672_v51  ;;  %19360 = vmatprep.mubr.f32.mxu0 %v24170_v40 }
0x1d19   : > { %19358 = vmatprep.subr.mxu0 %v12054_v63 }
0x1d20   : > { %19359 = vmatpush3.xpose.msra.mxu0 %v12054_v63 }
0x1d21   : > { %20677 = vmatprep.subr.bf16.mxu0 %v20656_v62 }
0x1d23   : > { %19361 = vmatmul.mubr.f32.vlgmr.msra.gmra.mrb[32].mxu0 %v12027_v29 }
0x1d24   : > { %20679 = vmatpush3.bf16.xpose.msra.mxu0 %v20656_v62  ;;  %19369 = vmatprep.mubr.f32.mxu0 %v24170_v40 }
0x1d25   : > { %19367 = vmatprep.subr.mxu0 %v11956_v13 }
0x1d2c   : > { %19368 = vmatpush3.xpose.msra.mxu0 %v11956_v13 }
0x1d2f   : > { %19370 = vmatmul.mubr.f32.vlgmr.msra.gmra.mrb[32].mxu0 %v12027_v29 }
0x1db7   : > { %v24186_v61 = vpop.f32.mrb[30].mxu0 }
0x1db8   : > { %v24188_v21 = vpop.f32.mrb[31].mxu0 }
0x1e02   : > { %v19371_v59 = vpop.f32.mrb[32].mxu0 }
0x1e03   : > { %v12454_v17 = vpop.f32.mrb[33].mxu0  ;;  %v12467_v1 = vsel %vm2193_vm4, %v19371_v59, -inf }
0x1e04   : > { %12468 = vmax.xlane.f32.xlu0 %v12467_v1  ;;  %v12464_v58 = vsel %vm2189_vm5, %v12454_v17, -inf }
0x1e05   : > { %12465 = vmax.xlane.f32.xlu1 %v12464_v58 }
0x1e16   : > { %12486 = vrot.lane.b32.xlu1 %v24032_v38, %s21588_s25 }
0x1e1a   : > { %12490 = vrot.lane.b32.xlu1 %v24051_v7, %s21588_s25 }
0x1e1e   : > { %13021 = vrot.lane.b32.xlu1 %v24032_v38, %s21589_s26 }
0x1e22   : > { %13023 = vrot.lane.b32.xlu1 %v24040_v49, %s21589_s26 }
0x1e26   : > { %13019 = vrot.lane.b32.xlu1 %v24036_v0, %s21589_s26 }
0x1e91   : > { %v12469_v54 = vpop.xlane.xlu0 %12468 }
0x1e92   : > { %v12471_v55 = vsub.f32 %v19371_v59, %v12469_v54  ;;  %v12466_v27 = vpop.xlane.xlu1 %12465 }
0x1e93   : > { %v12470_v3 = vsub.f32 %v12454_v17, %v12466_v27 }
0x1e94   : > { %v12474_v22 = vmul.f32 1.442695, %v12471_v55 }
0x1e95   : > { %v12472_v56 = vmul.f32 1.442695, %v12470_v3 }
0x1e96   : > { %21532 = vpow2.f32 %v12474_v22  ;;  %v12487_v0 = vpop.permute.xlu1 %12486 }
0x1e97   : > { %21534 = vpow2.f32 %v12472_v56  ;;  %v12503_v40 = vand.u32 4294901760, %v12487_v0 }
0x1e99   : > { %v24210_v45 = vsub.f32 %v12487_v0, %v12503_v40 }
0x1e9a   : > { %v12491_v34 = vpop.permute.xlu1 %12490 }
0x1e9b   : > { %v12593_v48 = vand.u32 4294901760, %v24210_v45  ;;  %v12500_v18 = vsel %vm2227_vm6, %v12491_v34, 0 }
0x1e9c   : > { %v24217_v20 = vand.u32 4294901760, %v12500_v18 }
0x1e9d   : > { %v12594_v57 = vsub.f32 %v24210_v45, %v12593_v48 }
0x1e9e   : > { %v12606_v24 = vsub.f32 %v12500_v18, %v24217_v20  ;;  %v13022_v1 = vpop.permute.xlu1 %13021 }
0x1e9f   : > { %v12595_v31 = vand.u32 4294901760, %v12594_v57  ;;  %v13031_v56 = vsel %vm1658_vm3, %v13022_v1, 0 }
0x1ea0   : > { %v21533_v47 = vpop.eup %21532  ;;  %v12607_v25 = vand.u32 4294901760, %v12606_v24 }
0x1ea1   : > { %v12479_v2 = vsel %vm2193_vm4, %v21533_v47, 0.0  ;;  %v21535_v37 = vpop.eup %21534 }
0x1ea2   : > { %12480 = vadd.xlane.f32.xlu0 %v12479_v2  ;;  %v12476_v12 = vsel %vm2189_vm5, %v21535_v37, 0.0  ;;  %v12608_v35 = vsub.f32 %v12606_v24, %v12607_v25  ;;  %v13024_v27 = vpop.permute.xlu1 %13023 }
0x1ea3   : > { %v13033_v22 = vsel %vm1658_vm3, %v13024_v27, 0 }
0x1ea4   : > { %v12609_v51 = vand.u32 4294901760, %v12608_v35 }
0x1ea6   : > { %12477 = vadd.xlane.f32.xlu0 %v12476_v12  ;;  %v13020_v2 = vpop.permute.xlu1 %13019  ;;  %v13038_v12 = vand.u32 4294901760, %v13031_v56 }
0x1ebc   : > { %12488 = vrot.lane.b32.xlu0 %v24040_v49, %s21588_s25 }
0x1ec0   : > { %13017 = vrot.lane.b32.xlu0 %v24042_v26, %s21589_s26 }
0x1ec4   : > { %13025 = vrot.lane.b32.xlu0 %v24051_v7, %s21589_s26 }
0x1f2f   : > { %v12481_v43 = vpop.xlane.xlu0 %12480 }
0x1f30   : > { %21536 = vrcp.f32 %v12481_v43  ;;  %v13029_v43 = vsel %vm1658_vm3, %v13020_v2, 0 }
0x1f33   : > { %v12478_v28 = vpop.xlane.xlu0 %12477 }
0x1f34   : > { %21538 = vrcp.f32 %v12478_v28 }
0x1f37   : > { %v12489_v23 = vpop.permute.xlu0 %12488 }
0x1f38   : > { %v12506_v60 = vand.u32 4294901760, %v12489_v23 }
0x1f3a   : > { %v21537_v44 = vpop.eup %21536  ;;  %v24214_v26 = vpack.c.bf16 %v12506_v60, %v12503_v40  ;;  %v12599_v53 = vsub.f32 %v12489_v23, %v12506_v60  ;;  %v13127_v23 = vsub.f32 %v13031_v56, %v13038_v12 }
0x1f3b   : > { %v12485_v41 = vmul.f32 %v21537_v44, %v21533_v47  ;;  %v13018_v17 = vpop.permute.xlu0 %13017  ;;  %v13041_v47 = vand.u32 4294901760, %v13033_v22 }
0x1f3c   : > { %v12600_v62 = vand.u32 4294901760, %v12599_v53  ;;  %20681 = vmatprep.subr.bf16.mxu1 %v24214_v26  ;;  %v20688_v59 = vpack.c.bf16 %v12599_v53, %v24210_v45  ;;  %v13027_v58 = vsel %vm1658_vm3, %v13018_v17, 0 }
0x1f3d   : > { %20683 = vmatpush3.bf16.msra.mxu1 %v24214_v26  ;;  %v12498_v50 = vsel %vm2189_vm5, %v12485_v41, 0  ;;  %v24236_v55 = vand.u32 4294901760, %v13027_v58  ;;  %v13134_v40 = vsub.f32 %v13033_v22, %v13041_v47  ;;  %v20704_v45 = vpack.c.bf16 %v13041_v47, %v13038_v12 }
0x1f3e   : > { %v21539_v32 = vpop.eup %21538  ;;  %v12601_v29 = vsub.f32 %v12599_v53, %v12600_v62  ;;  %19376 = vmatprep.subr.mxu1 %v24217_v20  ;;  %v24223_v8 = vand.u32 4294901760, %v12498_v50  ;;  %v20696_v54 = vpack.c.bf16 %v12600_v62, %v12593_v48  ;;  %v13115_v48 = vand.u32 4294901760, %v13029_v43 }
0x1f3f   : > { %v12483_v13 = vmul.f32 %v21539_v32, %v21535_v37  ;;  %v13106_v3 = vsub.f32 %v13027_v58, %v24236_v55  ;;  %v13026_v0 = vpop.permute.xlu0 %13025  ;;  %v13135_v60 = vand.u32 4294901760, %v13134_v40 }
0x1f40   : > { %v12602_v16 = vand.u32 4294901760, %v12601_v29  ;;  %v12581_v10 = vsub.f32 %v12498_v50, %v24223_v8  ;;  %v13035_v34 = vsel %vm1658_vm3, %v13026_v0, 0  ;;  %v13116_v53 = vsub.f32 %v13029_v43, %v13115_v48 }
0x1f41   : > { %19377 = vmatpush3.msra.mxu1 %v24217_v20  ;;  %v12495_v11 = vsel %vm2189_vm5, %v12483_v13, 0  ;;  %v13107_v37 = vand.u32 4294901760, %v13106_v3  ;;  %v13044_v18 = vand.u32 4294901760, %v13035_v34  ;;  %v13136_v41 = vsub.f32 %v13134_v40, %v13135_v60 }
0x1f42   : > { %v20684_v36 = vpack.c.bf16 %v12602_v16, %v12595_v31  ;;  %v12570_v33 = vand.u32 4294901760, %v12495_v11  ;;  %v12582_v46 = vand.u32 4294901760, %v12581_v10  ;;  %v13117_v50 = vand.u32 4294901760, %v13116_v53 }
0x1f43   : > { %v13108_v28 = vsub.f32 %v13106_v3, %v13107_v37  ;;  %v13141_v57 = vsub.f32 %v13035_v34, %v13044_v18  ;;  %v13137_v32 = vand.u32 4294901760, %v13136_v41 }
0x1f44   : > { %20685 = vmatprep.subr.bf16.mxu1 %v20684_v36  ;;  %v12571_v63 = vsub.f32 %v12495_v11, %v12570_v33  ;;  %v12583_v14 = vsub.f32 %v12581_v10, %v12582_v46  ;;  %v13118_v13 = vsub.f32 %v13116_v53, %v13117_v50 }
0x1f45   : > { %v13109_v44 = vand.u32 4294901760, %v13108_v28  ;;  %v13142_v29 = vand.u32 4294901760, %v13141_v57 }
0x1f46   : > { %v12572_v9 = vand.u32 4294901760, %v12571_v63  ;;  %v12584_v30 = vand.u32 4294901760, %v12583_v14 }
0x1f47   : > { %v13143_v16 = vsub.f32 %v13141_v57, %v13142_v29 }
0x1f48   : > { %v12573_v52 = vsub.f32 %v12571_v63, %v12572_v9 }
0x1f4a   : > { %v12574_v5 = vand.u32 4294901760, %v12573_v52 }
0x1f4c   : > { %19378 = vmatprep.mubr.f32.mxu1 %v12574_v5 }
0x1f4d   : > { %19379 = vmatmul.mubr.f32.vlgmr.msra.gmra.mrb[40].mxu1 %v12584_v30 }
0x1f4e   : > { %20687 = vmatpush3.bf16.msra.mxu1 %v20684_v36  ;;  %19387 = vmatprep.mubr.f32.mxu1 %v12570_v33 }
0x1f4f   : > { %19385 = vmatprep.subr.mxu1 %v12609_v51 }
0x1f52   : > { %19386 = vmatpush3.msra.mxu1 %v12609_v51 }
0x1f53   : > { %20689 = vmatprep.subr.bf16.mxu1 %v20688_v59 }
0x1f55   : > { %19388 = vmatmul.mubr.f32.vlgmr.msra.gmra.mrb[40].mxu1 %v24223_v8 }
0x1f56   : > { %20691 = vmatpush3.bf16.msra.mxu1 %v20688_v59  ;;  %19396 = vmatprep.mubr.f32.mxu1 %v12571_v63 }
0x1f57   : > { %19394 = vmatprep.subr.mxu1 %v12606_v24 }
0x1f5a   : > { %19395 = vmatpush3.msra.mxu1 %v12606_v24  ;;  %v20712_v24 = vpack.c.bf16 %v13134_v40, %v13127_v23 }
0x1f5b   : > { %20693 = vmatprep.subr.bf16.mxu1 %v24214_v26 }
0x1f5d   : > { %19397 = vmatmul.mubr.f32.vlgmr.msra.gmra.mrb[40].mxu1 %v12581_v10  ;;  %v13119_v10 = vand.u32 4294901760, %v13118_v13 }
0x1f5e   : > { %20695 = vmatpush3.bf16.msra.mxu1 %v24214_v26  ;;  %19405 = vmatprep.mubr.f32.mxu1 %v12572_v9 }
0x1f5f   : > { %19403 = vmatprep.subr.mxu1 %v24217_v20 }
0x1f62   : > { %19404 = vmatpush3.msra.mxu1 %v24217_v20 }
0x1f63   : > { %20697 = vmatprep.subr.bf16.mxu1 %v20696_v54 }
0x1f65   : > { %19406 = vmatmul.mubr.f32.vlgmr.msra.gmra.mrb[40].mxu1 %v12582_v46 }
0x1f66   : > { %20699 = vmatpush3.bf16.msra.mxu1 %v20696_v54  ;;  %19414 = vmatprep.mubr.f32.mxu1 %v12570_v33 }
0x1f67   : > { %19412 = vmatprep.subr.mxu1 %v12607_v25 }
0x1f6a   : > { %19413 = vmatpush3.msra.mxu1 %v12607_v25 }
0x1f6b   : > { %20701 = vmatprep.subr.bf16.mxu1 %v24214_v26 }
0x1f6d   : > { %19415 = vmatmul.mubr.f32.vlgmr.msra.gmra.mrb[40].mxu1 %v24223_v8 }
0x1f6e   : > { %20703 = vmatpush3.bf16.msra.mxu1 %v24214_v26  ;;  %19423 = vmatprep.mubr.f32.mxu1 %v12570_v33  ;;  %v13128_v26 = vand.u32 4294901760, %v13127_v23 }
0x1f6f   : > { %19421 = vmatprep.subr.mxu1 %v24217_v20 }
0x1f70   : > { %v13129_v62 = vsub.f32 %v13127_v23, %v13128_v26  ;;  %v20720_v11 = vpack.c.bf16 %v13135_v60, %v13128_v26 }
0x1f72   : > { %19422 = vmatpush3.msra.mxu1 %v24217_v20  ;;  %v13130_v31 = vand.u32 4294901760, %v13129_v62 }
0x1f73   : > { %20705 = vmatprep.subr.bf16.mxu1 %v20704_v45 }
0x1f74   : > { %v20708_v20 = vpack.c.bf16 %v13137_v32, %v13130_v31 }
0x1f75   : > { %19424 = vmatmul.mubr.f32.vlgmr.msra.gmra.mrb[40].mxu1 %v24223_v8  ;;  %v13144_v8 = vand.u32 4294901760, %v13143_v16 }
0x1f76   : > { %19432 = vmatprep.mubr.f32.mxu1 %v13109_v44 }
0x1f79   : > { %20707 = vmatpush3.bf16.xpose.msra.mxu1 %v20704_v45 }
0x1f7a   : > { %19430 = vmatprep.subr.mxu1 %v13044_v18 }
0x1f81   : > { %19431 = vmatpush3.xpose.msra.mxu1 %v13044_v18 }
0x1f82   : > { %20709 = vmatprep.subr.bf16.mxu1 %v20708_v20 }
0x1f84   : > { %19433 = vmatmul.mubr.f32.vlgmr.msra.gmra.mrb[42].mxu1 %v13119_v10 }
0x1f85   : > { %20711 = vmatpush3.bf16.xpose.msra.mxu1 %v20708_v20  ;;  %19441 = vmatprep.mubr.f32.mxu1 %v24236_v55 }
0x1f86   : > { %19439 = vmatprep.subr.mxu1 %v13144_v8 }
0x1f8d   : > { %19440 = vmatpush3.xpose.msra.mxu1 %v13144_v8 }
0x1f8e   : > { %20713 = vmatprep.subr.bf16.mxu1 %v20712_v24 }
0x1f90   : > { %19442 = vmatmul.mubr.f32.vlgmr.msra.gmra.mrb[42].mxu1 %v13115_v48 }
0x1f91   : > { %20715 = vmatpush3.bf16.xpose.msra.mxu1 %v20712_v24  ;;  %19450 = vmatprep.mubr.f32.mxu1 %v13106_v3 }
0x1f92   : > { %19448 = vmatprep.subr.mxu1 %v13141_v57 }
0x1f99   : > { %19449 = vmatpush3.xpose.msra.mxu1 %v13141_v57 }
0x1f9a   : > { %20717 = vmatprep.subr.bf16.mxu1 %v20704_v45 }
0x1f9c   : > { %19451 = vmatmul.mubr.f32.vlgmr.msra.gmra.mrb[42].mxu1 %v13116_v53 }
0x1f9d   : > { %20719 = vmatpush3.bf16.xpose.msra.mxu1 %v20704_v45  ;;  %19459 = vmatprep.mubr.f32.mxu1 %v13107_v37 }
0x1f9e   : > { %19457 = vmatprep.subr.mxu1 %v13044_v18 }
0x1fa5   : > { %19458 = vmatpush3.xpose.msra.mxu1 %v13044_v18 }
0x1fa6   : > { %20721 = vmatprep.subr.bf16.mxu1 %v20720_v11 }
0x1fa8   : > { %19460 = vmatmul.mubr.f32.vlgmr.msra.gmra.mrb[42].mxu1 %v13117_v50 }
0x1fa9   : > { %20723 = vmatpush3.bf16.xpose.msra.mxu1 %v20720_v11  ;;  %19468 = vmatprep.mubr.f32.mxu1 %v24236_v55  ;;  %v16659_v11 = vld [vmem:[%s25398_s5 + $0x40] sm:$0xff] }
0x1faa   : > { %19466 = vmatprep.subr.mxu1 %v13142_v29 }
0x1fb1   : > { %19467 = vmatpush3.xpose.msra.mxu1 %v13142_v29 }
0x1fb2   : > { %20725 = vmatprep.subr.bf16.mxu1 %v20704_v45 }
0x1fb4   : > { %19469 = vmatmul.mubr.f32.vlgmr.msra.gmra.mrb[42].mxu1 %v13115_v48 }
0x1fb5   : > { %20727 = vmatpush3.bf16.xpose.msra.mxu1 %v20704_v45  ;;  %19477 = vmatprep.mubr.f32.mxu1 %v24236_v55 }
0x1fb6   : > { %19475 = vmatprep.subr.mxu1 %v13044_v18 }
0x1fbd   : > { %19476 = vmatpush3.xpose.msra.mxu1 %v13044_v18 }
0x1fc0   : > { %19478 = vmatmul.mubr.f32.vlgmr.msra.gmra.mrb[42].mxu1 %v13115_v48 }
0x1fc1   : > { %14905 = vmatprep.mubr.f32.mxu1 %v25734_v6 }
0x2048   : > { %v19425_v36 = vpop.f32.mrb[40].mxu1 }
0x2049   : > { %v13007_v33 = vpop.f32.mrb[41].mxu1 }
0x2093   : > { %v19479_v46 = vpop.f32.mrb[42].mxu1 }
0x2094   : > { %v13542_v63 = vpop.f32.mrb[43].mxu1  ;;  %v13555_v25 = vsel %vm2193_vm4, %v19479_v46, -inf }
0x2095   : > { %13556 = vmax.xlane.f32.xlu0 %v13555_v25  ;;  %v13552_v9 = vsel %vm2189_vm5, %v13542_v63, -inf  ;;  %v16661_v25 = vld [vmem:[%s25398_s5 + $0x50] sm:$0xff] }
0x2096   : > { %13553 = vmax.xlane.f32.xlu1 %v13552_v9  ;;  %v16662_v9 = vld [vmem:[%s25398_s5 + $0x58] sm:$0xff] }
0x20a7   : > { %13574 = vrot.lane.b32.xlu1 %v24032_v38, %s21590_s27 }
0x20ab   : > { %13578 = vrot.lane.b32.xlu1 %v24051_v7, %s21590_s27 }
0x20af   : > { %14107 = vrot.lane.b32.xlu1 %v24188_v21, %s21590_s27 }
0x20b3   : > { %14109 = vrot.lane.b32.xlu1 %v24186_v61, %s21590_s27 }
0x20b7   : > { %14117 = vrot.lane.b32.xlu1 %v19425_v36, %s21588_s25  ;;  %v16660_v36 = vld [vmem:[%s25398_s5 + $0x48] sm:$0xff] }
0x2122   : > { %v13557_v14 = vpop.xlane.xlu0 %13556 }
0x2123   : > { %v13559_v52 = vsub.f32 %v19479_v46, %v13557_v14  ;;  %v13554_v35 = vpop.xlane.xlu1 %13553  ;;  %v14154_v46 = vand.u32 4294901760, %v16660_v36  ;;  %v14157_v14 = vand.u32 4294901760, %v16661_v25 }
0x2124   : > { %v13558_v5 = vsub.f32 %v13542_v63, %v13554_v35 }
0x2125   : > { %v13562_v30 = vmul.f32 1.442695, %v13559_v52  ;;  %v14160_v52 = vand.u32 4294901760, %v16662_v9 }
0x2126   : > { %v13560_v51 = vmul.f32 1.442695, %v13558_v5  ;;  %v16663_v5 = vld [vmem:[%s25398_s5 + $0x60] sm:$0xff] }
0x2127   : > { %21540 = vpow2.f32 %v13562_v30  ;;  %v13575_v61 = vpop.permute.xlu1 %13574  ;;  %v24288_v35 = vpack.c.bf16 %v14160_v52, %v14157_v14  ;;  %v16664_v30 = vld [vmem:[%s25398_s5 + $0x68] sm:$0xff] }
0x2128   : > { %21542 = vpow2.f32 %v13560_v51  ;;  %v13591_v1 = vand.u32 4294901760, %v13575_v61  ;;  %v14163_v51 = vand.u32 4294901760, %v16663_v5 }
0x212a   : > { %v13680_v54 = vsub.f32 %v13575_v61, %v13591_v1  ;;  %v16665_v61 = vld [vmem:[%s25398_s5 + $0x70] sm:$0xff] }
0x212b   : > { %v13579_v55 = vpop.permute.xlu1 %13578 }
0x212c   : > { %v13681_v3 = vand.u32 4294901760, %v13680_v54  ;;  %v13588_v56 = vsel %vm2227_vm6, %v13579_v55, 0 }
0x212d   : > { %v13597_v0 = vand.u32 4294901760, %v13588_v56 }
0x212f   : > { %v13694_v44 = vsub.f32 %v13588_v56, %v13597_v0  ;;  %v14259_v56 = vsub.f32 %v16661_v25, %v14157_v14 }
0x2131   : > { %v21541_v38 = vpop.eup %21540  ;;  %v13695_v50 = vand.u32 4294901760, %v13694_v44 }
0x2132   : > { %v13567_v59 = vsel %vm2193_vm4, %v21541_v38, 0.0  ;;  %v21543_v7 = vpop.eup %21542 }
0x2133   : > { %13568 = vadd.xlane.f32.xlu0 %v13567_v59  ;;  %v13564_v21 = vsel %vm2189_vm5, %v21543_v7, 0.0  ;;  %v13696_v31 = vsub.f32 %v13694_v44, %v13695_v50 }
0x2135   : > { %v13697_v10 = vand.u32 4294901760, %v13696_v31 }
0x2137   : > { %13565 = vadd.xlane.f32.xlu0 %v13564_v21  ;;  %v14252_v21 = vsub.f32 %v16660_v36, %v14154_v46 }
0x2139   : > { %v14253_v55 = vand.u32 4294901760, %v14252_v21 }
0x214d   : > { %13576 = vrot.lane.b32.xlu0 %v24040_v49, %s21590_s27  ;;  %v13682_v49 = vsub.f32 %v13680_v54, %v13681_v3 }
0x214f   : > { %v13683_v48 = vand.u32 4294901760, %v13682_v49 }
0x2151   : > { %14115 = vrot.lane.b32.xlu0 %v13007_v33, %s21588_s25  ;;  %v14151_v33 = vand.u32 4294901760, %v16659_v11 }
0x2153   : > { %v24278_v63 = vpack.c.bf16 %v14154_v46, %v14151_v33 }
0x21c0   : > { %v13569_v17 = vpop.xlane.xlu0 %13568 }
0x21c1   : > { %21544 = vrcp.f32 %v13569_v17  ;;  %v16666_v17 = vld [vmem:[%s25398_s5 + $0x78] sm:$0xff] }
0x21c4   : > { %v13566_v58 = vpop.xlane.xlu0 %13565 }
0x21c5   : > { %21546 = vrcp.f32 %v13566_v58  ;;  %v14172_v58 = vand.u32 4294901760, %v16666_v17 }
0x21c8   : > { %v13577_v27 = vpop.permute.xlu0 %13576 }
0x21c9   : > { %v13594_v22 = vand.u32 4294901760, %v13577_v27 }
0x21cb   : > { %v21545_v47 = vpop.eup %21544  ;;  %v20728_v2 = vpack.c.bf16 %v13594_v22, %v13591_v1  ;;  %v13687_v37 = vsub.f32 %v13577_v27, %v13594_v22  ;;  %v14169_v1 = vand.u32 4294901760, %v16665_v61  ;;  %v14254_v22 = vsub.f32 %v14252_v21, %v14253_v55 }
0x21cc   : > { %v13573_v12 = vmul.f32 %v21545_v47, %v21541_v38  ;;  %v14166_v38 = vand.u32 4294901760, %v16664_v30  ;;  %v14266_v47 = vsub.f32 %v16662_v9, %v14160_v52 }
0x21cd   : > { %v13688_v43 = vand.u32 4294901760, %v13687_v37  ;;  %20729 = vmatprep.subr.bf16.mxu0 %v20728_v2  ;;  %v20736_v8 = vpack.c.bf16 %v13687_v37, %v13680_v54  ;;  %v24308_v27 = vpack.c.bf16 %v14172_v58, %v14169_v1 }
0x21ce   : > { %20731 = vmatpush3.bf16.msra.mxu0 %v20728_v2  ;;  %v13586_v40 = vsel %vm2189_vm5, %v13573_v12, 0  ;;  %v24298_v59 = vpack.c.bf16 %v14166_v38, %v14163_v51  ;;  %v14260_v12 = vand.u32 4294901760, %v14259_v56  ;;  %v14267_v49 = vand.u32 4294901760, %v14266_v47 }
0x21cf   : > { %v21547_v28 = vpop.eup %21546  ;;  %v13689_v45 = vsub.f32 %v13687_v37, %v13688_v43  ;;  %19484 = vmatprep.subr.mxu0 %v13597_v0  ;;  %v13668_v34 = vand.u32 4294901760, %v13586_v40  ;;  %v20744_v24 = vpack.c.bf16 %v13688_v43, %v13681_v3  ;;  %v14255_v37 = vand.u32 4294901760, %v14254_v22 }
0x21d0   : > { %v13571_v23 = vmul.f32 %v21547_v28, %v21543_v7  ;;  %v14245_v7 = vsub.f32 %v16659_v11, %v14151_v33  ;;  %v14273_v28 = vsub.f32 %v16663_v5, %v14163_v51  ;;  %v20788_v36 = vpack.c.bf16 %v14266_v47, %v14259_v56  ;;  %v14108_v5 = vpop.permute.xlu1 %14107 }
0x21d1   : > { %v13690_v60 = vand.u32 4294901760, %v13689_v45  ;;  %v13669_v18 = vsub.f32 %v13586_v40, %v13668_v34  ;;  %v14261_v40 = vsub.f32 %v14259_v56, %v14260_v12  ;;  %v14280_v45 = vsub.f32 %v16664_v30, %v14166_v38  ;;  %v14116_v38 = vpop.permute.xlu0 %14115 }
0x21d2   : > { %19485 = vmatpush3.msra.mxu0 %v13597_v0  ;;  %v13583_v26 = vsel %vm2189_vm5, %v13571_v23, 0  ;;  %v14246_v54 = vand.u32 4294901760, %v14245_v7  ;;  %v14268_v23 = vsub.f32 %v14266_v47, %v14267_v49  ;;  %v20784_v11 = vpack.c.bf16 %v14252_v21, %v14245_v7 }
0x21d3   : > { %v20732_v53 = vpack.c.bf16 %v13690_v60, %v13683_v48  ;;  %v13658_v41 = vand.u32 4294901760, %v13583_v26  ;;  %v13670_v57 = vand.u32 4294901760, %v13669_v18  ;;  %v14262_v48 = vand.u32 4294901760, %v14261_v40 }
0x21d4   : > { %v14247_v3 = vsub.f32 %v14245_v7, %v14246_v54  ;;  %v14274_v60 = vand.u32 4294901760, %v14273_v28  ;;  %v20792_v33 = vpack.c.bf16 %v14280_v45, %v14273_v28  ;;  %v20816_v25 = vpack.c.bf16 %v14253_v55, %v14246_v54  ;;  %v14110_v30 = vpop.permute.xlu1 %14109 }
0x21d5   : > { %20733 = vmatprep.subr.bf16.mxu0 %v20732_v53  ;;  %v13659_v62 = vsub.f32 %v13583_v26, %v13658_v41  ;;  %v13671_v29 = vsub.f32 %v13669_v18, %v13670_v57  ;;  %v20820_v9 = vpack.c.bf16 %v14267_v49, %v14260_v12 }
0x21d6   : > { %v14275_v26 = vsub.f32 %v14273_v28, %v14274_v60 }
0x21d7   : > { %v13660_v32 = vand.u32 4294901760, %v13659_v62  ;;  %v13672_v16 = vand.u32 4294901760, %v13671_v29 }
0x21d8   : > { %v14118_v51 = vpop.permute.xlu1 %14117 }
0x21d9   : > { %v13661_v13 = vsub.f32 %v13659_v62, %v13660_v32 }
0x21db   : > { %v13662_v20 = vand.u32 4294901760, %v13661_v13 }
0x21dd   : > { %19486 = vmatprep.mubr.f32.mxu0 %v13662_v20 }
0x21de   : > { %19487 = vmatmul.mubr.f32.vlgmr.msra.gmra.mrb[34].mxu0 %v13672_v16 }
0x21df   : > { %20735 = vmatpush3.bf16.msra.mxu0 %v20732_v53  ;;  %19495 = vmatprep.mubr.f32.mxu0 %v13658_v41 }
0x21e0   : > { %19493 = vmatprep.subr.mxu0 %v13697_v10 }
0x21e3   : > { %19494 = vmatpush3.msra.mxu0 %v13697_v10 }
0x21e4   : > { %20737 = vmatprep.subr.bf16.mxu0 %v20736_v8 }
0x21e6   : > { %19496 = vmatmul.mubr.f32.vlgmr.msra.gmra.mrb[34].mxu0 %v13668_v34 }
0x21e7   : > { %20739 = vmatpush3.bf16.msra.mxu0 %v20736_v8  ;;  %19504 = vmatprep.mubr.f32.mxu0 %v13659_v62 }
0x21e8   : > { %19502 = vmatprep.subr.mxu0 %v13694_v44 }
0x21eb   : > { %19503 = vmatpush3.msra.mxu0 %v13694_v44  ;;  %v14269_v44 = vand.u32 4294901760, %v14268_v23 }
0x21ec   : > { %20741 = vmatprep.subr.bf16.mxu0 %v20728_v2 }
0x21ed   : > { %v20772_v62 = vpack.c.bf16 %v14269_v44, %v14262_v48 }
0x21ee   : > { %19505 = vmatmul.mubr.f32.vlgmr.msra.gmra.mrb[34].mxu0 %v13669_v18  ;;  %v14281_v18 = vand.u32 4294901760, %v14280_v45 }
0x21ef   : > { %20743 = vmatpush3.bf16.msra.mxu0 %v20728_v2  ;;  %19513 = vmatprep.mubr.f32.mxu0 %v13660_v32 }
0x21f0   : > { %19511 = vmatprep.subr.mxu0 %v13597_v0  ;;  %v14282_v53 = vsub.f32 %v14280_v45, %v14281_v18  ;;  %v20824_v14 = vpack.c.bf16 %v14281_v18, %v14274_v60 }
0x21f2   : > { %v14283_v32 = vand.u32 4294901760, %v14282_v53 }
0x21f3   : > { %19512 = vmatpush3.msra.mxu0 %v13597_v0 }
0x21f4   : > { %20745 = vmatprep.subr.bf16.mxu0 %v20744_v24 }
0x21f6   : > { %19514 = vmatmul.mubr.f32.vlgmr.msra.gmra.mrb[34].mxu0 %v13670_v57  ;;  %v14294_v57 = vsub.f32 %v16666_v17, %v14172_v58  ;;  %v14129_v17 = vsel %vm1658_vm3, %v24122_v42, %v14108_v5 }
0x21f7   : > { %20747 = vmatpush3.bf16.msra.mxu0 %v20744_v24  ;;  %19522 = vmatprep.mubr.f32.mxu0 %v13658_v41 }
0x21f8   : > { %19520 = vmatprep.subr.mxu0 %v13695_v50  ;;  %v14295_v13 = vand.u32 4294901760, %v14294_v57 }
0x21fa   : > { %v14296_v16 = vsub.f32 %v14294_v57, %v14295_v13 }
0x21fb   : > { %19521 = vmatpush3.msra.mxu0 %v13695_v50  ;;  %v14276_v50 = vand.u32 4294901760, %v14275_v26 }
0x21fc   : > { %20749 = vmatprep.subr.bf16.mxu0 %v20728_v2  ;;  %v14297_v8 = vand.u32 4294901760, %v14296_v16 }
0x21fd   : > { %v20776_v31 = vpack.c.bf16 %v14283_v32, %v14276_v50 }
0x21fe   : > { %19523 = vmatmul.mubr.f32.vlgmr.msra.gmra.mrb[34].mxu0 %v13668_v34 }
0x21ff   : > { %20751 = vmatpush3.bf16.msra.mxu0 %v20728_v2  ;;  %19531 = vmatprep.mubr.f32.mxu0 %v13658_v41  ;;  %v14248_v2 = vand.u32 4294901760, %v14247_v3  ;;  %v14287_v41 = vsub.f32 %v16665_v61, %v14169_v1  ;;  %v14130_v61 = vsel %vm1658_vm3, %v24120_v19, %v14110_v30  ;;  %v14131_v1 = vsel %vm6035_vm7, %v14129_v17, %v14116_v38 }
0x2200   : > { %19529 = vmatprep.subr.mxu0 %v13597_v0  ;;  %v14132_v7 = vsel %vm6035_vm7, %v14130_v61, %v14118_v51 }
0x2201   : > { %v20768_v43 = vpack.c.bf16 %v14255_v37, %v14248_v2  ;;  %v14288_v29 = vand.u32 4294901760, %v14287_v41  ;;  %v20796_v46 = vpack.c.bf16 %v14294_v57, %v14287_v41 }
0x2203   : > { %19530 = vmatpush3.msra.mxu0 %v13597_v0  ;;  %v14289_v20 = vsub.f32 %v14287_v41, %v14288_v29  ;;  %v24314_v52 = vpack.c.bf16 %v14295_v13, %v14288_v29  ;;  %v24351_v29 = vld [vmem:[%s25395_s2 + $0x8] sm:$0x7f]  ;;  %v25756_v13 = vsub.s32 4, %v25752_v15 }
0x2204   : > { %20753 = vmatprep.subr.bf16.mxu0 %v24278_v63 }
0x2205   : > { %v14290_v10 = vand.u32 4294901760, %v14289_v20 }
0x2206   : > { %19532 = vmatmul.mubr.f32.vlgmr.msra.gmra.mrb[34].mxu0 %v13668_v34 }
0x2207   : > { %20755 = vmatpush3.bf16.msra.mxu0 %v24278_v63  ;;  %v20780_v24 = vpack.c.bf16 %v14297_v8, %v14290_v10  ;;  %v25757_v10 = vsub.s32 5, %v25752_v15 }
0x2208   : > { %20757 = vmatprep.subr.bf16.mxu0 %v24288_v35 }
0x2209   : > { %v14765_v8 = vrot.slane %v24351_v29, %v25757_v10  ;;  %v16681_v10 = vld [vmem:[%s25399_s6 + $0xf0] sm:$0xff] }
0x220b   : > { %20759 = vmatpush3.bf16.msra.mxu0 %v24288_v35 }
0x220c   : > { %20761 = vmatprep.subr.bf16.mxu0 %v24298_v59 }
0x220f   : > { %20763 = vmatpush3.bf16.msra.mxu0 %v24298_v59 }
0x2210   : > { %20765 = vmatprep.subr.bf16.mxu0 %v24308_v27 }
0x2213   : > { %20767 = vmatpush3.bf16.msra.mxu0 %v24308_v27 }
0x2214   : > { %20769 = vmatprep.subr.bf16.mxu0 %v20768_v43 }
0x22d9   : > { %v19533_v0 = vpop.f32.mrb[34].mxu0 }
0x22da   : > { %14125 = vrot.lane.b32.xlu1 %v19533_v0, %s21586_s23  ;;  %v14095_v34 = vpop.f32.mrb[35].mxu0 }
0x22db   : > { %14123 = vrot.lane.b32.xlu0 %v14095_v34, %s21586_s23 }
0x234c   : > { %v14126_v21 = vpop.permute.xlu1 %14125 }
0x234d   : > { %v14134_v58 = vsel %vm6038_vm8, %v14132_v7, %v14126_v21  ;;  %v14124_v54 = vpop.permute.xlu0 %14123 }
0x234e   : > { %v14148_v55 = vsel %vm354_vm0, %v14134_v58, 0  ;;  %v14133_v3 = vsel %vm6038_vm8, %v14131_v1, %v14124_v54  ;;  %v16668_v58 = vld [vmem:[%s25399_s6 + $0x88] sm:$0xff]  ;;  %v16670_v54 = vld [vmem:[%s25399_s6 + $0x98] sm:$0xff] }
0x234f   : > { %v14233_v22 = vand.u32 4294901760, %v14148_v55  ;;  %v14145_v56 = vsel %vm354_vm0, %v14133_v3, 0  ;;  %v14829_v3 = vand.u32 4294901760, %v16670_v54 }
0x2350   : > { %v14223_v47 = vand.u32 4294901760, %v14145_v56 }
0x2351   : > { %v14234_v19 = vsub.f32 %v14148_v55, %v14233_v22  ;;  %v14825_v55 = vand.u32 4294901760, %v16668_v58 }
0x2352   : > { %v14224_v2 = vsub.f32 %v14145_v56, %v14223_v47  ;;  %v16669_v56 = vld [vmem:[%s25399_s6 + $0x90] sm:$0xff] }
0x2353   : > { %v14235_v37 = vand.u32 4294901760, %v14234_v19 }
0x2354   : > { %v14225_v42 = vand.u32 4294901760, %v14224_v2 }
0x2355   : > { %v14236_v12 = vsub.f32 %v14234_v19, %v14235_v37 }
0x2356   : > { %v14226_v49 = vsub.f32 %v14224_v2, %v14225_v42 }
0x2357   : > { %v14237_v40 = vand.u32 4294901760, %v14236_v12  ;;  %v16674_v12 = vld [vmem:[%s25399_s6 + $0xb8] sm:$0xff] }
0x2358   : > { %v14227_v0 = vand.u32 4294901760, %v14226_v49 }
0x235a   : > { %19550 = vmatprep.mubr.f32.mxu0 %v14227_v0  ;;  %v14837_v0 = vand.u32 4294901760, %v16674_v12 }
0x235b   : > { %19551 = vmatmul.mubr.f32.vlgmr.msra.gmra.mrb[36].mxu0 %v14237_v40  ;;  %v16671_v40 = vld [vmem:[%s25399_s6 + $0xa0] sm:$0xff] }
0x235c   : > { %20771 = vmatpush3.bf16.msra.mxu0 %v20768_v43  ;;  %19569 = vmatprep.mubr.f32.mxu0 %v14223_v47 }
0x235d   : > { %20773 = vmatprep.subr.bf16.mxu0 %v20772_v62 }
0x2360   : > { %20775 = vmatpush3.bf16.msra.mxu0 %v20772_v62 }
0x2361   : > { %20777 = vmatprep.subr.bf16.mxu0 %v20776_v31 }
0x2364   : > { %20779 = vmatpush3.bf16.msra.mxu0 %v20776_v31  ;;  %v14759_v31 = vrot.slane %v24351_v29, %v25756_v13  ;;  %v24445_v13 = vsub.f32 %v16674_v12, %v14837_v0 }
0x2365   : > { %20781 = vmatprep.subr.bf16.mxu0 %v20780_v24 }
0x2368   : > { %20783 = vmatpush3.bf16.msra.mxu0 %v20780_v24 }
0x2369   : > { %20785 = vmatprep.subr.bf16.mxu0 %v20784_v11 }
0x236b   : > { %19570 = vmatmul.mubr.f32.vlgmr.msra.gmra.mrb[36].mxu0 %v14233_v22 }
0x236c   : > { %20787 = vmatpush3.bf16.msra.mxu0 %v20784_v11  ;;  %19588 = vmatprep.mubr.f32.mxu0 %v14224_v2  ;;  %v24393_v2 = vpack.c.bf16 %v14829_v3, %v14825_v55 }
0x236d   : > { %20789 = vmatprep.subr.bf16.mxu0 %v20788_v36 }
0x236e   : > { %20849 = vmatprep.subr.bf16.mxu1 %v24393_v2 }
0x2370   : > { %20791 = vmatpush3.bf16.msra.mxu0 %v20788_v36 }
0x2371   : > { %20793 = vmatprep.subr.bf16.mxu0 %v20792_v33 }
0x2374   : > { %20795 = vmatpush3.bf16.msra.mxu0 %v20792_v33 }
0x2375   : > { %20797 = vmatprep.subr.bf16.mxu0 %v20796_v46 }
0x2378   : > { %20799 = vmatpush3.bf16.msra.mxu0 %v20796_v46 }
0x2379   : > { %20801 = vmatprep.subr.bf16.mxu0 %v24278_v63 }
0x237b   : > { %19589 = vmatmul.mubr.f32.vlgmr.msra.gmra.mrb[36].mxu0 %v14234_v19  ;;  %v14831_v19 = vand.u32 4294901760, %v16669_v56 }
0x237c   : > { %20803 = vmatpush3.bf16.msra.mxu0 %v24278_v63  ;;  %19607 = vmatprep.mubr.f32.mxu0 %v14225_v42  ;;  %v16672_v42 = vld [vmem:[%s25399_s6 + $0xa8] sm:$0xff] }
0x237d   : > { %20805 = vmatprep.subr.bf16.mxu0 %v24288_v35  ;;  %v14833_v49 = vand.u32 4294901760, %v16672_v42 }
0x2380   : > { %20807 = vmatpush3.bf16.msra.mxu0 %v24288_v35 }
0x2381   : > { %20809 = vmatprep.subr.bf16.mxu0 %v24298_v59 }
0x2384   : > { %20811 = vmatpush3.bf16.msra.mxu0 %v24298_v59 }
0x2385   : > { %20813 = vmatprep.subr.bf16.mxu0 %v24308_v27 }
0x2388   : > { %20815 = vmatpush3.bf16.msra.mxu0 %v24308_v27 }
0x2389   : > { %20817 = vmatprep.subr.bf16.mxu0 %v20816_v25 }
0x238b   : > { %19608 = vmatmul.mubr.f32.vlgmr.msra.gmra.mrb[36].mxu0 %v14235_v37 }
0x238c   : > { %20819 = vmatpush3.bf16.msra.mxu0 %v20816_v25  ;;  %19626 = vmatprep.mubr.f32.mxu0 %v14223_v47 }
0x238d   : > { %20821 = vmatprep.subr.bf16.mxu0 %v20820_v9 }
0x2390   : > { %20823 = vmatpush3.bf16.msra.mxu0 %v20820_v9 }
0x2391   : > { %20825 = vmatprep.subr.bf16.mxu0 %v20824_v14 }
0x2394   : > { %20827 = vmatpush3.bf16.msra.mxu0 %v20824_v14 }
0x2395   : > { %20829 = vmatprep.subr.bf16.mxu0 %v24314_v52 }
0x2398   : > { %20831 = vmatpush3.bf16.msra.mxu0 %v24314_v52 }
0x2399   : > { %20833 = vmatprep.subr.bf16.mxu0 %v24278_v63 }
0x239b   : > { %19627 = vmatmul.mubr.f32.vlgmr.msra.gmra.mrb[36].mxu0 %v14233_v22 }
0x239c   : > { %20835 = vmatpush3.bf16.msra.mxu0 %v24278_v63  ;;  %19645 = vmatprep.mubr.f32.mxu0 %v14223_v47 }
0x239d   : > { %20837 = vmatprep.subr.bf16.mxu0 %v24288_v35 }
0x23a0   : > { %20839 = vmatpush3.bf16.msra.mxu0 %v24288_v35 }
0x23a1   : > { %20841 = vmatprep.subr.bf16.mxu0 %v24298_v59 }
0x23a4   : > { %20843 = vmatpush3.bf16.msra.mxu0 %v24298_v59 }
0x23a5   : > { %20845 = vmatprep.subr.bf16.mxu0 %v24308_v27 }
0x23a8   : > { %20847 = vmatpush3.bf16.msra.mxu0 %v24308_v27 }
0x23ab   : > { %19646 = vmatmul.mubr.f32.vlgmr.msra.gmra.mrb[36].mxu0 %v14233_v22  ;;  %v16667_v22 = vld [vmem:[%s25399_s6 + $0x80] sm:$0xff] }
0x23ac   : > { %v14827_v47 = vand.u32 4294901760, %v16667_v22 }
0x23ae   : > { %v24395_v37 = vpack.c.bf16 %v14831_v19, %v14827_v47 }
0x23b0   : > { %20851 = vmatpush1.bf16.msra.mxu1 %v24395_v37 }
0x247e   : > { %v19647_v43 = vpop.f32.mrb[36].mxu0 }
0x247f   : > { %v14720_v28 = vpop.f32.mrb[37].mxu0  ;;  %v14733_v45 = vsel %vm382_vm1, %v19647_v43, 0.0 }
0x2480   : > { %14734 = vadd.xlane.f32.xlu1 %v14733_v45  ;;  %v14730_v63 = vsel %vm354_vm0, %v14720_v28, 0.0 }
0x2481   : > { %14731 = vadd.xlane.f32.xlu0 %v14730_v63  ;;  %v24411_v63 = vpack.c.bf16 %v14837_v0, %v14833_v49 }
0x2483   : > { %20853 = vmatprep.subr.bf16.mxu1 %v24411_v63 }
0x250d   : > { %v14735_v34 = vpop.xlane.xlu1 %14734 }
0x250e   : > { %v14737_v23 = vmul.f32 0.015625, %v14735_v34  ;;  %v14732_v35 = vpop.xlane.xlu0 %14731 }
0x250f   : > { %v14736_v48 = vmul.f32 0.015625, %v14732_v35  ;;  %v16678_v35 = vld [vmem:[%s25399_s6 + $0xd8] sm:$0xff] }
0x2510   : > { %v14739_v60 = vsub.f32 %v19647_v43, %v14737_v23  ;;  %v16673_v43 = vld [vmem:[%s25399_s6 + $0xb0] sm:$0xff]  ;;  %v16676_v23 = vld [vmem:[%s25399_s6 + $0xc8] sm:$0xff] }
0x2511   : > { %v14738_v18 = vsub.f32 %v14720_v28, %v14736_v48  ;;  %v14835_v28 = vand.u32 4294901760, %v16671_v40  ;;  %v14839_v45 = vand.u32 4294901760, %v16673_v43  ;;  %v14841_v48 = vand.u32 4294901760, %v16676_v23 }
0x2512   : > { %v14741_v26 = vmul.f32 %v14739_v60, %v14739_v60 }
0x2513   : > { %v14740_v59 = vmul.f32 %v14738_v18, %v14738_v18  ;;  %v24413_v34 = vpack.c.bf16 %v14839_v45, %v14835_v28 }
0x2514   : > { %v14745_v27 = vsel %vm382_vm1, %v14741_v26, 0.0 }
0x2515   : > { %v14742_v44 = vsel %vm354_vm0, %v14740_v59, 0.0  ;;  %v16677_v59 = vld [vmem:[%s25399_s6 + $0xd0] sm:$0xff]  ;;  %20855 = vmatpush1.bf16.msra.mxu1 %v24413_v34 }
0x2516   : > { %14743 = vadd.xlane.f32.xlu0 %v14742_v44  ;;  %v14847_v26 = vand.u32 4294901760, %v16677_v59 }
0x251a   : > { %14746 = vadd.xlane.f32.xlu0 %v14745_v27  ;;  %v24429_v27 = vsub.f32 %v16668_v58, %v14825_v55 }
0x25a3   : > { %v14744_v53 = vpop.xlane.xlu0 %14743 }
0x25a4   : > { %v14748_v41 = vmul.f32 0.015625, %v14744_v53  ;;  %v24431_v53 = vsub.f32 %v16670_v54, %v14829_v3 }
0x25a6   : > { %v14750_v57 = vadd.f32 1e-05, %v14748_v41  ;;  %v24433_v41 = vsub.f32 %v16667_v22, %v14827_v47 }
0x25a7   : > { %v14747_v62 = vpop.xlane.xlu0 %14746 }
0x25a8   : > { %21548 = vrsqrt.f32 %v14750_v57  ;;  %v14749_v50 = vmul.f32 0.015625, %v14747_v62  ;;  %v24435_v57 = vsub.f32 %v16669_v56, %v14831_v19  ;;  %v16680_v62 = vld [vmem:[%s25399_s6 + $0xe8] sm:$0xff] }
0x25aa   : > { %v14751_v32 = vadd.f32 1e-05, %v14749_v50  ;;  %v16682_v50 = vld [vmem:[%s25399_s6 + $0xf8] sm:$0xff]  ;;  %v14948_v56 = vand.u32 4294901760, %v24435_v57 }
0x25ac   : > { %21550 = vrsqrt.f32 %v14751_v32  ;;  %v24443_v32 = vsub.f32 %v16672_v42, %v14833_v49  ;;  %v14966_v42 = vand.u32 4294901760, %v24445_v13 }
0x25ae   : > { %v14954_v47 = vand.u32 4294901760, %v24443_v32 }
0x25b2   : > { %v21549_v20 = vpop.eup %21548 }
0x25b3   : > { %v14754_v16 = vmul.f32 %v21549_v20, %v14738_v18  ;;  %v16675_v18 = vld [vmem:[%s25399_s6 + $0xc0] sm:$0xff]  ;;  %v24449_v20 = vsub.f32 %v16673_v43, %v14839_v45  ;;  %v14949_v43 = vsub.f32 %v24435_v57, %v14948_v56  ;;  %v14967_v45 = vsub.f32 %v24445_v13, %v14966_v42 }
0x25b4   : > { %v14843_v44 = vand.u32 4294901760, %v16675_v18 }
0x25b5   : > { %v14760_v24 = vmul.f32 %v14759_v31, %v14754_v16  ;;  %v16679_v16 = vld [vmem:[%s25399_s6 + $0xe0] sm:$0xff]  ;;  %v14972_v49 = vand.u32 4294901760, %v24449_v20 }
0x25b6   : > { %v21551_v11 = vpop.eup %21550 }
0x25b7   : > { %v14766_v36 = vadd.f32 %v14765_v8, %v14760_v24  ;;  %v14755_v33 = vmul.f32 %v21551_v11, %v14739_v60  ;;  %v14845_v60 = vand.u32 4294901760, %v16678_v35  ;;  %v24459_v24 = vsub.f32 %v16676_v23, %v14841_v48 }
0x25b9   : > { %v24360_v46 = vadd.f32 %v14766_v36, %v23655_v39  ;;  %v14761_v25 = vmul.f32 %v14759_v31, %v14755_v33  ;;  %v24447_v31 = vsub.f32 %v16671_v40, %v14835_v28  ;;  %v24461_v11 = vsub.f32 %v16678_v35, %v14845_v60 }
0x25ba   : > { %v24463_v36 = vpack.c.bf16 %v14847_v26, %v14843_v44  ;;  %v24465_v33 = vsub.f32 %v16675_v18, %v14843_v44  ;;  %v14955_v28 = vsub.f32 %v24443_v32, %v14954_v47  ;;  %v14973_v35 = vsub.f32 %v24449_v20, %v14972_v49 }
0x25bb   : > { %25758 = vst [vmem:[#allocation14_spill] sm:$0xff] %v24360_v46  ;;  %v14770_v9 = vsel %vm354_vm0, %v24360_v46, 0.0  ;;  %v14767_v14 = vadd.f32 %v14765_v8, %v14761_v25  ;;  %v24457_v8 = vpack.c.bf16 %v14845_v60, %v14841_v48  ;;  %v24467_v25 = vsub.f32 %v16677_v59, %v14847_v26 }
0x25bc   : > { %14771 = vadd.xlane.f32.xlu0 %v14770_v9  ;;  %v14849_v9 = vand.u32 4294901760, %v16680_v62  ;;  %v14960_v12 = vand.u32 4294901760, %v24447_v31  ;;  %v14950_v60 = vand.u32 4294901760, %v14949_v43  ;;  %v14956_v18 = vand.u32 4294901760, %v14955_v28 }
0x25bd   : > { %v24365_v52 = vadd.f32 %v14767_v14, %v23660_v4  ;;  %v14853_v14 = vand.u32 4294901760, %v16682_v50  ;;  %20857 = vmatprep.subr.bf16.mxu1 %v24457_v8  ;;  %v14978_v59 = vand.u32 4294901760, %v24459_v24  ;;  %v14968_v44 = vand.u32 4294901760, %v14967_v45 }
0x25be   : > { %20859 = vmatpush1.bf16.msra.mxu1 %v24463_v36  ;;  %v14961_v23 = vsub.f32 %v24447_v31, %v14960_v12 }
0x25bf   : > { %25759 = vst [vmem:[#allocation8_spill] sm:$0xff] %v24365_v52  ;;  %v14773_v5 = vsel %vm382_vm1, %v24365_v52, 0.0 }
0x25c0   : > { %14774 = vadd.xlane.f32.xlu1 %v14773_v5  ;;  %v14851_v5 = vand.u32 4294901760, %v16679_v16  ;;  %v14962_v26 = vand.u32 4294901760, %v14961_v23 }
0x25c2   : > { %v24482_v58 = vsub.f32 %v16679_v16, %v14851_v5 }
0x25c4   : > { %v15008_v28 = vand.u32 4294901760, %v24482_v58 }
0x2649   : > { %v14772_v30 = vpop.xlane.xlu0 %14771 }
0x264a   : > { %v14776_v51 = vmul.f32 0.015625, %v14772_v30  ;;  %v14855_v30 = vand.u32 4294901760, %v16681_v10 }
0x264c   : > { %v24370_v38 = vsub.f32 %v24360_v46, %v14776_v51  ;;  %v25525_v51 = vand.u32 4294901760, %v24429_v27  ;;  %v24484_v54 = vsub.f32 %v16681_v10, %v14855_v30  ;;  %v14979_v10 = vsub.f32 %v24459_v24, %v14978_v59 }
0x264d   : > { %v14775_v39 = vpop.xlane.xlu1 %14774 }
0x264e   : > { %v14777_v61 = vmul.f32 0.015625, %v14775_v39  ;;  %v14780_v17 = vmul.f32 %v24370_v38, %v24370_v38  ;;  %v25524_v39 = vand.u32 4294901760, %v24431_v53  ;;  %v14931_v55 = vsub.f32 %v24429_v27, %v25525_v51 }
0x264f   : > { %v15020_v45 = vand.u32 4294901760, %v24484_v54 }
0x2650   : > { %v24375_v7 = vsub.f32 %v24365_v52, %v14777_v61  ;;  %v14782_v4 = vsel %vm354_vm0, %v14780_v17, 0.0  ;;  %v24473_v61 = vpack.c.bf16 %v14853_v14, %v14849_v9  ;;  %v24475_v17 = vsub.f32 %v16680_v62, %v14849_v9 }
0x2651   : > { %14783 = vadd.xlane.f32.xlu0 %v14782_v4  ;;  %v24477_v4 = vsub.f32 %v16682_v50, %v14853_v14  ;;  %v14943_v3 = vsub.f32 %v24431_v53, %v25524_v39  ;;  %v14932_v19 = vand.u32 4294901760, %v14931_v55  ;;  %v14974_v62 = vand.u32 4294901760, %v14973_v35 }
0x2652   : > { %v14781_v21 = vmul.f32 %v24375_v7, %v24375_v7  ;;  %20861 = vmatprep.subr.bf16.mxu1 %v24473_v61  ;;  %v14990_v50 = vand.u32 4294901760, %v24461_v11  ;;  %v14984_v9 = vand.u32 4294901760, %v24465_v33  ;;  %v14996_v14 = vand.u32 4294901760, %v24467_v25 }
0x2653   : > { %v14944_v0 = vand.u32 4294901760, %v14943_v3  ;;  %v14980_v3 = vand.u32 4294901760, %v14979_v10  ;;  %v15014_v43 = vand.u32 4294901760, %v24477_v4 }
0x2654   : > { %v14785_v1 = vsel %vm382_vm1, %v14781_v21, 0.0  ;;  %v25523_v21 = vand.u32 4294901760, %v24433_v41  ;;  %v14991_v55 = vsub.f32 %v24461_v11, %v14990_v50 }
0x2655   : > { %14786 = vadd.xlane.f32.xlu1 %v14785_v1  ;;  %v24480_v1 = vpack.c.bf16 %v14855_v30, %v14851_v5  ;;  %v20864_v48 = vpack.c.bf16 %v14944_v0, %v14932_v19  ;;  %v24514_v5 = vpack.c.bf16 %v14968_v44, %v14956_v18  ;;  %v24516_v30 = vpack.c.bf16 %v14974_v62, %v14962_v26 }
0x2656   : > { %v14937_v22 = vsub.f32 %v24433_v41, %v25523_v21  ;;  %v14997_v19 = vsub.f32 %v24467_v25, %v14996_v14  ;;  %v15002_v0 = vand.u32 4294901760, %v24475_v17  ;;  %v15015_v18 = vsub.f32 %v24477_v4, %v15014_v43 }
0x2657   : > { %20863 = vmatpush1.bf16.msra.mxu1 %v24480_v1  ;;  %v15009_v44 = vsub.f32 %v24482_v58, %v15008_v28  ;;  %v15021_v26 = vsub.f32 %v24484_v54, %v15020_v45 }
0x2658   : > { %v14938_v40 = vand.u32 4294901760, %v14937_v22  ;;  %20865 = vmatprep.subr.bf16.mxu1 %v20864_v48  ;;  %v14985_v22 = vsub.f32 %v24465_v33, %v14984_v9  ;;  %v14998_v35 = vand.u32 4294901760, %v14997_v19  ;;  %v15003_v48 = vsub.f32 %v24475_v17, %v15002_v0 }
0x2659   : > { %v15010_v21 = vand.u32 4294901760, %v15009_v44  ;;  %v15022_v39 = vand.u32 4294901760, %v15021_v26  ;;  %v20882_v19 = vpack.c.bf16 %v24435_v57, %v24433_v41  ;;  %v25760_v57 = vand.u32 4294901760, %v24429_v27 }
0x265a   : > { %v24509_v16 = vpack.c.bf16 %v14950_v60, %v14938_v40  ;;  %v14992_v40 = vand.u32 4294901760, %v14991_v55  ;;  %v14986_v23 = vand.u32 4294901760, %v14985_v22  ;;  %v15004_v10 = vand.u32 4294901760, %v15003_v48 }
0x265b   : > { %v15016_v55 = vand.u32 4294901760, %v15015_v18  ;;  %v20878_v52 = vpack.c.bf16 %v15022_v39, %v15010_v21  ;;  %v20880_v22 = vpack.c.bf16 %v24431_v53, %v24429_v27  ;;  %v20892_v39 = vpack.c.bf16 %v24477_v4, %v24475_v17 }
0x265c   : > { %v20872_v60 = vpack.c.bf16 %v14992_v40, %v14980_v3  ;;  %v20874_v62 = vpack.c.bf16 %v14998_v35, %v14986_v23  ;;  %v20884_v3 = vpack.c.bf16 %v24445_v13, %v24443_v32  ;;  %v20886_v40 = vpack.c.bf16 %v24449_v20, %v24447_v31 }
0x265d   : > { %v20876_v51 = vpack.c.bf16 %v15016_v55, %v15004_v10  ;;  %v20888_v23 = vpack.c.bf16 %v24461_v11, %v24459_v24  ;;  %v20890_v35 = vpack.c.bf16 %v24467_v25, %v24465_v33  ;;  %v20894_v21 = vpack.c.bf16 %v24484_v54, %v24482_v58 }
0x265e   : > { %v25761_v48 = vand.u32 4294901760, %v24431_v53  ;;  %v25762_v13 = vand.u32 4294901760, %v24433_v41  ;;  %v24555_v20 = vpack.c.bf16 %v14966_v42, %v14954_v47  ;;  %v24557_v24 = vpack.c.bf16 %v14972_v49, %v14960_v12 }
0x265f   : > { %v24559_v11 = vpack.c.bf16 %v14990_v50, %v14978_v59  ;;  %v24561_v33 = vpack.c.bf16 %v14996_v14, %v14984_v9  ;;  %v24563_v25 = vpack.c.bf16 %v15014_v43, %v15002_v0  ;;  %v24565_v17 = vpack.c.bf16 %v15020_v45, %v15008_v28 }
0x2660   : > { %v24549_v32 = vpack.c.bf16 %v25761_v48, %v25760_v57  ;;  %v24553_v31 = vpack.c.bf16 %v14948_v56, %v25762_v13  ;;  %v25763_v56 = vsub.s32 6, %v25752_v15 }
0x2662   : > { %v14799_v47 = vrot.slane %v24351_v29, %v25763_v56 }
0x26de   : > { %v14784_v27 = vpop.xlane.xlu0 %14783 }
0x26df   : > { %v14788_v53 = vmul.f32 0.015625, %v14784_v27 }
0x26e1   : > { %v14790_v4 = vadd.f32 1e-05, %v14788_v53 }
0x26e2   : > { %v14787_v58 = vpop.xlane.xlu1 %14786 }
0x26e3   : > { %21552 = vrsqrt.f32 %v14790_v4  ;;  %v14789_v41 = vmul.f32 0.015625, %v14787_v58 }
0x26e5   : > { %v14791_v54 = vadd.f32 1e-05, %v14789_v41 }
0x26e7   : > { %21554 = vrsqrt.f32 %v14791_v54 }
0x26ed   : > { %v21553_v42 = vpop.eup %21552 }
0x26ee   : > { %v14794_v12 = vmul.f32 %v21553_v42, %v24370_v38  ;;  %v16701_v42 = vld [vmem:[%s25401_s8 + $0x188] sm:$0xff] }
0x26f0   : > { %v14800_v49 = vmul.f32 %v14799_v47, %v14794_v12  ;;  %v16684_v12 = vld [vmem:[%s25401_s8 + $0x100] sm:$0xff] }
0x26f1   : > { %v21555_v59 = vpop.eup %21554 }
0x26f2   : > { %v14795_v50 = vmul.f32 %v21555_v59, %v24375_v7  ;;  %v14820_v9 = vsel %vm354_vm0, %v14800_v49, 0  ;;  %v15695_v59 = vand.u32 4294901760, %v16701_v42 }
0x26f3   : > { %v24573_v14 = vand.u32 4294901760, %v14820_v9 }
0x26f4   : > { %v14801_v0 = vmul.f32 %v14799_v47, %v14795_v50  ;;  %v16700_v47 = vld [vmem:[%s25401_s8 + $0x180] sm:$0xff]  ;;  %v16685_v50 = vld [vmem:[%s25401_s8 + $0x108] sm:$0xff] }
0x26f5   : > { %v14907_v43 = vsub.f32 %v14820_v9, %v24573_v14  ;;  %v15692_v49 = vand.u32 4294901760, %v16700_v47  ;;  %v15644_v9 = vand.u32 4294901760, %v16684_v12 }
0x26f6   : > { %v14823_v28 = vsel %vm354_vm0, %v14801_v0, 0  ;;  %v24658_v0 = vld [vmem:[%s25401_s8 + $0x198] sm:$0xff] }
0x26f7   : > { %v14908_v45 = vand.u32 4294901760, %v14907_v43  ;;  %v24577_v15 = vand.u32 4294901760, %v14823_v28 }
0x26f9   : > { %v14909_v29 = vsub.f32 %v14907_v43, %v14908_v45  ;;  %v14918_v18 = vsub.f32 %v14823_v28, %v24577_v15 }
0x26fb   : > { %v14910_v38 = vand.u32 4294901760, %v14909_v29  ;;  %v14919_v44 = vand.u32 4294901760, %v14918_v18  ;;  %v24670_v29 = vld [vmem:[%s25401_s8 + $0x118] sm:$0xff] }
0x26fd   : > { %14911 = vmatmul.mubr.f32.vlgmr.msra.gmra.mrb[44].mxu1 %v14910_v38  ;;  %v14920_v26 = vsub.f32 %v14918_v18, %v14919_v44  ;;  %v24674_v38 = vsub.f32 %v16701_v42, %v15695_v59 }
0x26fe   : > { %20867 = vmatpush1.bf16.msra.mxu1 %v24509_v16  ;;  %14916 = vmatprep.mubr.f32.mxu1 %v25734_v6 }
0x26ff   : > { %20869 = vmatprep.subr.bf16.mxu1 %v24514_v5  ;;  %v14921_v7 = vand.u32 4294901760, %v14920_v26 }
0x2701   : > { %14922 = vmatmul.mubr.f32.gmra.mrb[46].mxu1 %v14921_v7 }
0x2702   : > { %20871 = vmatpush1.bf16.msra.mxu1 %v24516_v30  ;;  %15072 = vmatprep.mubr.f32.mxu1 %v25734_v6 }
0x2703   : > { %20873 = vmatprep.subr.bf16.mxu1 %v20872_v60 }
0x2706   : > { %20875 = vmatpush1.bf16.msra.mxu1 %v20874_v62 }
0x2707   : > { %20877 = vmatprep.subr.bf16.mxu1 %v20876_v51 }
0x270a   : > { %20879 = vmatpush1.bf16.msra.mxu1 %v20878_v52 }
0x270b   : > { %20881 = vmatprep.subr.bf16.mxu1 %v20880_v22 }
0x270d   : > { %15074 = vmatmul.mubr.f32.vlgmr.msra.gmra.mrb[44].mxu1 %v24573_v14 }
0x270e   : > { %20883 = vmatpush1.bf16.msra.mxu1 %v20882_v19  ;;  %15079 = vmatprep.mubr.f32.mxu1 %v25734_v6 }
0x270f   : > { %20885 = vmatprep.subr.bf16.mxu1 %v20884_v3 }
0x2711   : > { %15081 = vmatmul.mubr.f32.gmra.mrb[46].mxu1 %v24577_v15 }
0x2712   : > { %20887 = vmatpush1.bf16.msra.mxu1 %v20886_v40  ;;  %15183 = vmatprep.mubr.f32.mxu1 %v25734_v6 }
0x2713   : > { %20889 = vmatprep.subr.bf16.mxu1 %v20888_v23 }
0x2716   : > { %20891 = vmatpush1.bf16.msra.mxu1 %v20890_v35 }
0x2717   : > { %20893 = vmatprep.subr.bf16.mxu1 %v20892_v39 }
0x271a   : > { %20895 = vmatpush1.bf16.msra.mxu1 %v20894_v21 }
0x271b   : > { %20897 = vmatprep.subr.bf16.mxu1 %v24393_v2 }
0x271d   : > { %15186 = vmatmul.mubr.f32.vlgmr.msra.gmra.mrb[44].mxu1 %v14907_v43  ;;  %v15647_v43 = vand.u32 4294901760, %v16685_v50 }
0x271e   : > { %20899 = vmatpush1.bf16.msra.mxu1 %v24395_v37  ;;  %15191 = vmatprep.mubr.f32.mxu1 %v25734_v6 }
0x271f   : > { %20901 = vmatprep.subr.bf16.mxu1 %v24411_v63  ;;  %v24679_v7 = vsub.f32 %v16685_v50, %v15647_v43 }
0x2721   : > { %15194 = vmatmul.mubr.f32.gmra.mrb[46].mxu1 %v14918_v18  ;;  %v24672_v18 = vsub.f32 %v16700_v47, %v15692_v49  ;;  %v24764_v47 = vpack.c.bf16 %v15647_v43, %v15644_v9 }
0x2722   : > { %20903 = vmatpush1.bf16.msra.mxu1 %v24413_v34  ;;  %15280 = vmatprep.mubr.f32.mxu1 %v25734_v6 }
0x2723   : > { %20905 = vmatprep.subr.bf16.mxu1 %v24457_v8 }
0x2726   : > { %20907 = vmatpush1.bf16.msra.mxu1 %v24463_v36 }
0x2727   : > { %20909 = vmatprep.subr.bf16.mxu1 %v24473_v61 }
0x272a   : > { %20911 = vmatpush1.bf16.msra.mxu1 %v24480_v1 }
0x272b   : > { %20913 = vmatprep.subr.bf16.mxu1 %v24549_v32 }
0x272d   : > { %15284 = vmatmul.mubr.f32.vlgmr.msra.gmra.mrb[44].mxu1 %v14908_v45  ;;  %v15701_v45 = vand.u32 4294901760, %v24658_v0 }
0x272e   : > { %20915 = vmatpush1.bf16.msra.mxu1 %v24553_v31  ;;  %15289 = vmatprep.mubr.f32.mxu1 %v25734_v6 }
0x272f   : > { %20917 = vmatprep.subr.bf16.mxu1 %v24555_v20 }
0x2731   : > { %15293 = vmatmul.mubr.f32.gmra.mrb[46].mxu1 %v14919_v44  ;;  %v24676_v44 = vsub.f32 %v16684_v12, %v15644_v9 }
0x2732   : > { %20919 = vmatpush1.bf16.msra.mxu1 %v24557_v24  ;;  %15411 = vmatprep.mubr.f32.mxu1 %v25734_v6 }
0x2733   : > { %20921 = vmatprep.subr.bf16.mxu1 %v24559_v11 }
0x2736   : > { %20923 = vmatpush1.bf16.msra.mxu1 %v24561_v33 }
0x2737   : > { %20925 = vmatprep.subr.bf16.mxu1 %v24563_v25 }
0x273a   : > { %20927 = vmatpush1.bf16.msra.mxu1 %v24565_v17 }
0x273b   : > { %20929 = vmatprep.subr.bf16.mxu1 %v24393_v2 }
0x273d   : > { %15413 = vmatmul.mubr.f32.vlgmr.msra.gmra.mrb[44].mxu1 %v24573_v14 }
0x273e   : > { %20931 = vmatpush1.bf16.msra.mxu1 %v24395_v37  ;;  %15418 = vmatprep.mubr.f32.mxu1 %v25734_v6 }
0x273f   : > { %20933 = vmatprep.subr.bf16.mxu1 %v24411_v63 }
0x2741   : > { %15420 = vmatmul.mubr.f32.gmra.mrb[46].mxu1 %v24577_v15 }
0x2742   : > { %20935 = vmatpush1.bf16.msra.mxu1 %v24413_v34  ;;  %15506 = vmatprep.mubr.f32.mxu1 %v25734_v6 }
0x2743   : > { %20937 = vmatprep.subr.bf16.mxu1 %v24457_v8 }
0x2746   : > { %20939 = vmatpush1.bf16.msra.mxu1 %v24463_v36 }
0x2747   : > { %20941 = vmatprep.subr.bf16.mxu1 %v24473_v61 }
0x274a   : > { %20943 = vmatpush1.bf16.msra.mxu1 %v24480_v1 }
0x274d   : > { %15508 = vmatmul.mubr.f32.vlgmr.msra.gmra.mrb[44].mxu1 %v24573_v14  ;;  %v24653_v14 = vld [vmem:[%s25401_s8 + $0x190] sm:$0xff] }
0x274e   : > { %15513 = vmatprep.mubr.f32.mxu1 %v25734_v6  ;;  %v15698_v28 = vand.u32 4294901760, %v24653_v14 }
0x2751   : > { %15515 = vmatmul.mubr.f32.gmra.mrb[46].mxu1 %v24577_v15  ;;  %v24665_v15 = vld [vmem:[%s25401_s8 + $0x110] sm:$0xff] }
0x2752   : > { %v15650_v26 = vand.u32 4294901760, %v24665_v15 }
0x2820   : > { %v15509_v52 = vpop.f32.mrb[44].mxu1 }
0x2821   : > { %v15525_v2 = vmul.f32 0.044715, %v15509_v52  ;;  %v15511_v37 = vpop.f32.mrb[45].mxu1  ;;  %v15521_v57 = vmul.f32 0.5, %v15509_v52 }
0x2822   : > { %v15526_v63 = vmul.f32 0.044715, %v15511_v37  ;;  %v15522_v32 = vmul.f32 0.5, %v15511_v37 }
0x2823   : > { %v15529_v34 = vmul.f32 %v15525_v2, %v15509_v52  ;;  %v24689_v2 = vsub.f32 %v24658_v0, %v15701_v45 }
0x2824   : > { %v15530_v51 = vmul.f32 %v15526_v63, %v15511_v37  ;;  %v15516_v16 = vpop.f32.mrb[46].mxu1  ;;  %v25538_v63 = vand.u32 4294901760, %v24672_v18 }
0x2825   : > { %v15533_v8 = vmul.f32 %v15529_v34, %v15509_v52  ;;  %v15527_v5 = vmul.f32 0.044715, %v15516_v16  ;;  %v15518_v36 = vpop.f32.mrb[47].mxu1  ;;  %v15523_v33 = vmul.f32 0.5, %v15516_v16  ;;  %v25537_v34 = vand.u32 4294901760, %v24674_v38 }
0x2826   : > { %v15534_v30 = vmul.f32 %v15530_v51, %v15511_v37  ;;  %v15528_v61 = vmul.f32 0.044715, %v15518_v36  ;;  %v15524_v17 = vmul.f32 0.5, %v15518_v36  ;;  %v25536_v51 = vand.u32 4294901760, %v24676_v44 }
0x2827   : > { %v15537_v60 = vadd.f32 %v15533_v8, %v15509_v52  ;;  %v15531_v1 = vmul.f32 %v15527_v5, %v15516_v16  ;;  %v24684_v52 = vsub.f32 %v24653_v14, %v15698_v28  ;;  %v25535_v8 = vand.u32 4294901760, %v24679_v7  ;;  %v24960_v14 = vld [vmem:[%s25401_s8 + $0x158] sm:$0xff] }
0x2828   : > { %v15538_v62 = vadd.f32 %v15534_v30, %v15511_v37  ;;  %v15532_v10 = vmul.f32 %v15528_v61, %v15518_v36  ;;  %v15653_v37 = vand.u32 4294901760, %v24670_v29  ;;  %v15886_v61 = vsub.f32 %v24672_v18, %v25538_v63 }
0x2829   : > { %v15541_v55 = vmul.f32 0.7978846, %v15537_v60  ;;  %v15535_v6 = vmul.f32 %v15531_v1, %v15516_v16  ;;  %v25534_v5 = vand.u32 4294901760, %v24684_v52  ;;  %v15893_v60 = vsub.f32 %v24674_v38, %v25537_v34 }
0x282a   : > { %v15542_v22 = vmul.f32 0.7978846, %v15538_v62  ;;  %v15536_v19 = vmul.f32 %v15532_v10, %v15518_v36  ;;  %v24706_v30 = vsub.f32 %v24670_v29, %v15653_v37  ;;  %v15774_v1 = vsub.f32 %v24676_v44, %v25536_v51 }
0x282b   : > { %21556 = vtanh.f32 %v15541_v55  ;;  %v15539_v3 = vadd.f32 %v15535_v6, %v15516_v16  ;;  %v24698_v16 = vsub.f32 %v24665_v15, %v15650_v26  ;;  %v15781_v10 = vsub.f32 %v24679_v7, %v25535_v8 }
0x282c   : > { %21558 = vtanh.f32 %v15542_v22  ;;  %v15540_v40 = vadd.f32 %v15536_v19, %v15518_v36  ;;  %v25533_v36 = vand.u32 4294901760, %v24689_v2  ;;  %25765 = vst [vmem:[#allocation15_spill] sm:$0xff] %v24706_v30  ;;  %v15900_v55 = vsub.f32 %v24684_v52, %v25534_v5  ;;  %v24731_v19 = vld [vmem:[%s25401_s8 + $0x1a0] sm:$0xff] }
0x282d   : > { %v15543_v23 = vmul.f32 0.7978846, %v15539_v3  ;;  %25764 = vst [vmem:[#allocation9_spill] sm:$0xff] %v24698_v16  ;;  %v25532_v62 = vand.u32 4294901760, %v24698_v16  ;;  %v25531_v22 = vand.u32 4294901760, %v24706_v30  ;;  %v15887_v3 = vand.u32 4294901760, %v15886_v61 }
0x282e   : > { %v15544_v35 = vmul.f32 0.7978846, %v15540_v40  ;;  %v15907_v6 = vsub.f32 %v24689_v2, %v25533_v36  ;;  %v15894_v40 = vand.u32 4294901760, %v15893_v60  ;;  %v24966_v0 = vpack.c.bf16 %v15653_v37, %v15650_v26 }
0x282f   : > { %21560 = vtanh.f32 %v15543_v23  ;;  %v15775_v23 = vand.u32 4294901760, %v15774_v1 }
0x2830   : > { %21562 = vtanh.f32 %v15544_v35  ;;  %v15788_v35 = vsub.f32 %v24698_v16, %v25532_v62 }
0x2835   : > { %v21557_v39 = vpop.eup %21556 }
0x2836   : > { %v21559_v21 = vpop.eup %21558  ;;  %v15549_v48 = vadd.f32 1.0, %v21557_v39  ;;  %v24739_v39 = vld [vmem:[%s25401_s8 + $0x1a8] sm:$0xff] }
0x2837   : > { %v15550_v13 = vadd.f32 1.0, %v21559_v21  ;;  %v15782_v21 = vand.u32 4294901760, %v15781_v10 }
0x2838   : > { %v24624_v31 = vmul.f32 %v15549_v48, %v15521_v57  ;;  %v15901_v57 = vand.u32 4294901760, %v15900_v55  ;;  %v15908_v48 = vand.u32 4294901760, %v15907_v6 }
0x2839   : > { %v21561_v20 = vpop.eup %21560  ;;  %v24626_v24 = vmul.f32 %v15550_v13, %v15522_v32  ;;  %v15795_v32 = vsub.f32 %v24706_v30, %v25531_v22  ;;  %v24747_v13 = vld [vmem:[%s25401_s8 + $0x120] sm:$0xff]  ;;  %v25793_v30 = vand.u32 4294901760, %v24960_v14 }
0x283a   : > { %v21563_v11 = vpop.eup %21562  ;;  %v15551_v25 = vadd.f32 1.0, %v21561_v20  ;;  %v24752_v20 = vld [vmem:[%s25401_s8 + $0x128] sm:$0xff]  ;;  %v25552_v42 = vand.u32 4294901760, %v24747_v13 }
0x283b   : > { %v15559_v27 = vadd.f32 %v24626_v24, %v24624_v31  ;;  %v15552_v53 = vadd.f32 1.0, %v21563_v11  ;;  %v20976_v11 = vpack.c.bf16 %v15894_v40, %v15887_v3  ;;  %v25549_v12 = vand.u32 4294901760, %v24752_v20 }
0x283c   : > { %v24630_v4 = vmul.f32 %v15551_v25, %v15523_v33  ;;  %v15789_v33 = vand.u32 4294901760, %v15788_v35  ;;  %v24754_v25 = vpack.c.bf16 %v15695_v59, %v15692_v49  ;;  %v24778_v9 = vsub.f32 %v24747_v13, %v25552_v42  ;;  %v24955_v42 = vld [vmem:[%s25401_s8 + $0x150] sm:$0xff] }
0x283d   : > { %15560 = vadd.xlane.f32.xlu0 %v15559_v27  ;;  %v24632_v58 = vmul.f32 %v15552_v53, %v15524_v17  ;;  %v15704_v17 = vand.u32 4294901760, %v24731_v19  ;;  %v20978_v27 = vpack.c.bf16 %v15782_v21, %v15775_v23  ;;  %v20980_v53 = vpack.c.bf16 %v15908_v48, %v15901_v57  ;;  %20977 = vmatprep.subr.bf16.mxu1 %v20976_v11 }
0x283e   : > { %v15562_v41 = vsel %vm2227_vm6, %v24630_v4, 0.0  ;;  %20945 = vmatprep.subr.bf16.mxu0 %v24754_v25  ;;  %25768 = vst [vmem:[#allocation16_spill] sm:$0xff] %v24778_v9  ;;  %v24783_v43 = vsub.f32 %v24752_v20, %v25549_v12  ;;  %v25528_v1 = vand.u32 4294901760, %v24778_v9 }
0x283f   : > { %v15563_v54 = vsel %vm2227_vm6, %v24632_v58, 0.0  ;;  %20979 = vmatpush3.bf16.msra.mxu1 %v20978_v27  ;;  %20947 = vmatpush3.bf16.msra.mxu0 %v24764_v47 }
0x2840   : > { %v15564_v56 = vadd.f32 %v15563_v54, %v15562_v41  ;;  %v15796_v41 = vand.u32 4294901760, %v15795_v32  ;;  %v15707_v54 = vand.u32 4294901760, %v24739_v39  ;;  %20981 = vmatprep.subr.bf16.mxu1 %v20980_v53  ;;  %25769 = vst [vmem:[#allocation12_spill] sm:$0xff] %v24783_v43  ;;  %v25527_v10 = vand.u32 4294901760, %v24783_v43 }
0x2841   : > { %v15802_v3 = vsub.f32 %v24778_v9, %v25528_v1  ;;  %v24883_v1 = vld [vmem:[%s25401_s8 + $0x140] sm:$0xff]  ;;  %v16698_v9 = vld [vmem:[%s25401_s8 + $0x170] sm:$0xff] }
0x2842   : > { %15565 = vadd.xlane.f32.xlu1 %v15564_v56  ;;  %v24762_v56 = vsub.f32 %v24731_v19, %v15704_v17  ;;  %v20982_v49 = vpack.c.bf16 %v15796_v41, %v15789_v33  ;;  %v24771_v59 = vsub.f32 %v24739_v39, %v15707_v54  ;;  %v15809_v40 = vsub.f32 %v24783_v43, %v25527_v10  ;;  %v25014_v19 = vld [vmem:[%s25401_s8 + $0x168] sm:$0xff] }
0x2843   : > { %v15803_v35 = vand.u32 4294901760, %v15802_v3  ;;  %v25550_v62 = vand.u32 4294901760, %v24883_v1  ;;  %v25770_v39 = vand.u32 4294901760, %v24747_v13 }
0x2844   : > { %25766 = vst [vmem:[#allocation10_spill] sm:$0xff] %v24762_v56  ;;  %25767 = vst [vmem:[#allocation11_spill] sm:$0xff] %v24771_v59  ;;  %v25530_v50 = vand.u32 4294901760, %v24762_v56  ;;  %v25529_v61 = vand.u32 4294901760, %v24771_v59  ;;  %20983 = vmatpush3.bf16.msra.mxu1 %v20982_v49  ;;  %v15810_v21 = vand.u32 4294901760, %v15809_v40  ;;  %v24823_v40 = vld [vmem:[%s25401_s8 + $0x1b0] sm:$0xff] }
0x2846   : > { %v15914_v60 = vsub.f32 %v24762_v56, %v25530_v50  ;;  %v15921_v55 = vsub.f32 %v24771_v59, %v25529_v61  ;;  %v20986_v48 = vpack.c.bf16 %v15810_v21, %v15803_v35  ;;  %v25547_v35 = vand.u32 4294901760, %v24823_v40  ;;  %v24888_v61 = vld [vmem:[%s25401_s8 + $0x148] sm:$0xff] }
0x2847   : > { %v25551_v36 = vand.u32 4294901760, %v24888_v61 }
0x2848   : > { %v15915_v6 = vand.u32 4294901760, %v15914_v60  ;;  %v15922_v23 = vand.u32 4294901760, %v15921_v55 }
0x284a   : > { %v20984_v57 = vpack.c.bf16 %v15922_v23, %v15915_v6 }
0x284c   : > { %20985 = vmatprep.subr.bf16.mxu1 %v20984_v57  ;;  %v24837_v57 = vld [vmem:[%s25401_s8 + $0x130] sm:$0xff] }
0x284d   : > { %20987 = vmatpush3.bf16.msra.mxu1 %v20986_v48  ;;  %v24842_v48 = vld [vmem:[%s25401_s8 + $0x138] sm:$0xff] }
0x28ca   : > { %v15561_v32 = vpop.xlane.xlu0 %15560 }
0x28cb   : > { %v15567_v11 = vmul.f32 0.00390625, %v15561_v32 }
0x28cd   : > { %v24801_v33 = vsub.f32 %v24624_v31, %v15567_v11  ;;  %v24804_v27 = vsub.f32 %v24626_v24, %v15567_v11  ;;  %v25544_v11 = vand.u32 4294901760, %v24837_v57 }
0x28cf   : > { %v15573_v53 = vmul.f32 %v24801_v33, %v24801_v33  ;;  %v15574_v41 = vmul.f32 %v24804_v27, %v24804_v27  ;;  %v15566_v49 = vpop.xlane.xlu1 %15565 }
0x28d0   : > { %v15568_v60 = vmul.f32 0.00390625, %v15566_v49 }
0x28d1   : > { %v15577_v55 = vadd.f32 %v15574_v41, %v15573_v53  ;;  %v25543_v53 = vand.u32 4294901760, %v24842_v48  ;;  %v24849_v41 = vsub.f32 %v24823_v40, %v25547_v35 }
0x28d2   : > { %v24811_v6 = vsub.f32 %v24630_v4, %v15568_v60  ;;  %v24814_v3 = vsub.f32 %v24632_v58, %v15568_v60  ;;  %v24828_v4 = vld [vmem:[%s25401_s8 + $0x1b8] sm:$0xff]  ;;  %v24859_v60 = vsub.f32 %v24837_v57, %v25544_v11 }
0x28d3   : > { %15578 = vadd.xlane.f32.xlu0 %v15577_v55  ;;  %v25546_v21 = vand.u32 4294901760, %v24828_v4  ;;  %v24864_v55 = vsub.f32 %v24842_v48, %v25543_v53 }
0x28d4   : > { %v15575_v31 = vmul.f32 %v24811_v6, %v24811_v6  ;;  %v15576_v24 = vmul.f32 %v24814_v3, %v24814_v3  ;;  %v25545_v50 = vand.u32 4294901760, %v24859_v60 }
0x28d5   : > { %v24854_v49 = vsub.f32 %v24828_v4, %v25546_v21  ;;  %v25548_v22 = vand.u32 4294901760, %v24864_v55 }
0x28d6   : > { %v15580_v58 = vsel %vm2227_vm6, %v15575_v31, 0.0  ;;  %v15581_v23 = vsel %vm2227_vm6, %v15576_v24, 0.0  ;;  %v24869_v31 = vld [vmem:[%s25401_s8 + $0x1c0] sm:$0xff]  ;;  %v24874_v24 = vld [vmem:[%s25401_s8 + $0x1c8] sm:$0xff]  ;;  %v15816_v63 = vsub.f32 %v24859_v60, %v25545_v50 }
0x28d7   : > { %v15582_v32 = vadd.f32 %v15581_v23, %v15580_v58  ;;  %v25539_v58 = vand.u32 4294901760, %v24849_v41  ;;  %v25540_v23 = vand.u32 4294901760, %v24854_v49  ;;  %v25542_v10 = vand.u32 4294901760, %v24874_v24 }
0x28d8   : > { %v15817_v21 = vand.u32 4294901760, %v15816_v63  ;;  %v24944_v63 = vpack.c.bf16 %v15701_v45, %v15698_v28 }
0x28d9   : > { %15583 = vadd.xlane.f32.xlu1 %v15582_v32  ;;  %v25541_v32 = vand.u32 4294901760, %v24869_v31  ;;  %v15928_v5 = vsub.f32 %v24849_v41, %v25539_v58  ;;  %v15935_v8 = vsub.f32 %v24854_v49, %v25540_v23  ;;  %v24908_v34 = vsub.f32 %v24874_v24, %v25542_v10 }
0x28da   : > { %v15823_v58 = vsub.f32 %v24864_v55, %v25548_v22  ;;  %v24919_v23 = vsub.f32 %v24883_v1, %v25550_v62  ;;  %v24933_v62 = vld [vmem:[%s25401_s8 + $0x1d0] sm:$0xff]  ;;  %20949 = vmatprep.subr.bf16.mxu0 %v24944_v63 }
0x28db   : > { %v24903_v51 = vsub.f32 %v24869_v31, %v25541_v32  ;;  %v24924_v32 = vsub.f32 %v24888_v61, %v25551_v36  ;;  %v15929_v10 = vand.u32 4294901760, %v15928_v5  ;;  %v15936_v53 = vand.u32 4294901760, %v15935_v8  ;;  %v24938_v5 = vld [vmem:[%s25401_s8 + $0x1d8] sm:$0xff]  ;;  %20951 = vmatpush3.bf16.msra.mxu0 %v24966_v0 }
0x28dc   : > { %v25553_v50 = vand.u32 4294901760, %v24908_v34  ;;  %v15824_v35 = vand.u32 4294901760, %v15823_v58  ;;  %v25555_v22 = vand.u32 4294901760, %v24919_v23  ;;  %v25560_v15 = vand.u32 4294901760, %v24933_v62 }
0x28dd   : > { %v25556_v11 = vand.u32 4294901760, %v24903_v51  ;;  %v25554_v12 = vand.u32 4294901760, %v24924_v32  ;;  %v20988_v8 = vpack.c.bf16 %v15936_v53, %v15929_v10  ;;  %v25559_v29 = vand.u32 4294901760, %v24938_v5 }
0x28de   : > { %v15949_v36 = vsub.f32 %v24908_v34, %v25553_v50  ;;  %v20990_v28 = vpack.c.bf16 %v15824_v35, %v15817_v21  ;;  %v15830_v45 = vsub.f32 %v24919_v23, %v25555_v22  ;;  %v25558_v35 = vand.u32 4294901760, %v24955_v42 }
0x28df   : > { %v15942_v58 = vsub.f32 %v24903_v51, %v25556_v11  ;;  %v15837_v10 = vsub.f32 %v24924_v32, %v25554_v12  ;;  %20989 = vmatprep.subr.bf16.mxu1 %v20988_v8  ;;  %v25557_v21 = vand.u32 4294901760, %v24960_v14  ;;  %v24983_v12 = vld [vmem:[%s25401_s8 + $0x1e0] sm:$0xff]  ;;  %v24994_v8 = vpack.c.bf16 %v15707_v54, %v15704_v17 }
0x28e0   : > { %v15950_v50 = vand.u32 4294901760, %v15949_v36  ;;  %20991 = vmatpush3.bf16.msra.mxu1 %v20990_v28  ;;  %v15831_v26 = vand.u32 4294901760, %v15830_v45  ;;  %v24988_v36 = vld [vmem:[%s25401_s8 + $0x1e8] sm:$0xff]  ;;  %v24999_v28 = vsub.f32 %v24933_v62, %v25560_v15  ;;  %v25004_v45 = vsub.f32 %v24938_v5, %v25559_v29 }
0x28e1   : > { %v15943_v53 = vand.u32 4294901760, %v15942_v58  ;;  %v15838_v37 = vand.u32 4294901760, %v15837_v10  ;;  %v25009_v10 = vld [vmem:[%s25401_s8 + $0x160] sm:$0xff]  ;;  %v25771_v17 = vand.u32 4294901760, %v24752_v20  ;;  %v25030_v22 = vsub.f32 %v24960_v14, %v25557_v21  ;;  %20953 = vmatprep.subr.bf16.mxu0 %v24994_v8 }
0x28e2   : > { %v25561_v13 = vand.u32 4294901760, %v24999_v28  ;;  %v25562_v20 = vand.u32 4294901760, %v25004_v45  ;;  %v25775_v11 = vand.u32 4294901760, %v24837_v57  ;;  %v25776_v21 = vand.u32 4294901760, %v24842_v48 }
0x28e3   : > { %v20992_v58 = vpack.c.bf16 %v15950_v50, %v15943_v53  ;;  %v25020_v54 = vpack.c.bf16 %v25771_v17, %v25770_v39  ;;  %v20994_v50 = vpack.c.bf16 %v15838_v37, %v15831_v26  ;;  %v25025_v53 = vsub.f32 %v24955_v42, %v25558_v35 }
0x28e4   : > { %v15728_v39 = vand.u32 4294901760, %v24983_v12  ;;  %v15731_v26 = vand.u32 4294901760, %v24988_v36  ;;  %v25773_v35 = vand.u32 4294901760, %v24828_v4  ;;  %v15956_v15 = vsub.f32 %v24999_v28, %v25561_v13 }
0x28e5   : > { %20993 = vmatprep.subr.bf16.mxu1 %v20992_v58  ;;  %20955 = vmatpush3.bf16.msra.mxu0 %v25020_v54  ;;  %v25563_v37 = vand.u32 4294901760, %v25025_v53  ;;  %v25772_v58 = vand.u32 4294901760, %v24823_v40  ;;  %v25061_v40 = vpack.c.bf16 %v25776_v21, %v25775_v11  ;;  %v25779_v48 = vand.u32 4294901760, %v25009_v10 }
0x28e6   : > { %20995 = vmatpush3.bf16.msra.mxu1 %v20994_v50  ;;  %v15963_v50 = vsub.f32 %v25004_v45, %v25562_v20  ;;  %v25055_v17 = vsub.f32 %v24983_v12, %v15728_v39  ;;  %v25070_v13 = vsub.f32 %v24988_v36, %v15731_v26  ;;  %v15957_v12 = vand.u32 4294901760, %v15956_v15  ;;  %v16714_v15 = vld [vmem:[%s25401_s8 + $0x1f0] sm:$0xff] }
0x28e7   : > { %v25046_v29 = vpack.c.bf16 %v25773_v35, %v25772_v58  ;;  %25777 = vst [vmem:[#allocation17_spill] sm:$0xff] %v25061_v40  ;;  %v15844_v4 = vsub.f32 %v25025_v53, %v25563_v37  ;;  %v25778_v35 = vand.u32 4294901760, %v25030_v22  ;;  %v25077_v11 = vsub.f32 %v25009_v10, %v25779_v48 }
0x28e8   : > { %v15964_v20 = vand.u32 4294901760, %v15963_v50  ;;  %v25780_v36 = vand.u32 4294901760, %v25014_v19  ;;  %v16715_v50 = vld [vmem:[%s25401_s8 + $0x1f8] sm:$0xff]  ;;  %v25781_v57 = vand.u32 4294901760, %v24869_v31  ;;  %v25785_v31 = vand.u32 4294901760, %v25070_v13 }
0x28e9   : > { %25774 = vst [vmem:[#allocation13_spill] sm:$0xff] %v25046_v29  ;;  %v15851_v58 = vsub.f32 %v25030_v22, %v25778_v35  ;;  %20957 = vmatprep.subr.bf16.mxu0 %v25046_v29  ;;  %v15845_v21 = vand.u32 4294901760, %v15844_v4  ;;  %v25782_v4 = vand.u32 4294901760, %v24874_v24  ;;  %v25784_v35 = vand.u32 4294901760, %v25055_v17 }
0x28ea   : > { %20959 = vmatpush3.bf16.msra.mxu0 %v25061_v40  ;;  %v25084_v46 = vsub.f32 %v25014_v19, %v25780_v36  ;;  %v20996_v48 = vpack.c.bf16 %v15964_v20, %v15957_v12  ;;  %v16699_v20 = vld [vmem:[%s25401_s8 + $0x178] sm:$0xff]  ;;  %v15977_v24 = vsub.f32 %v25070_v13, %v25785_v31  ;;  %v25789_v59 = vand.u32 4294901760, %v25077_v11 }
0x28eb   : > { %v15852_v37 = vand.u32 4294901760, %v15851_v58  ;;  %v25096_v58 = vpack.c.bf16 %v25782_v4, %v25781_v57  ;;  %v15970_v36 = vsub.f32 %v25055_v17, %v25784_v35  ;;  %v25786_v57 = vand.u32 4294901760, %v24883_v1 }
0x28ec   : > { %v25787_v4 = vand.u32 4294901760, %v24888_v61  ;;  %v25583_v43 = vand.u32 4294901760, %v25084_v46  ;;  %20997 = vmatprep.subr.bf16.mxu1 %v20996_v48  ;;  %v15737_v56 = vand.u32 4294901760, %v16715_v50  ;;  %v15978_v31 = vand.u32 4294901760, %v15977_v24 }
0x28ed   : > { %25783 = vst [vmem:[#allocation18_spill] sm:$0xff] %v25096_v58  ;;  %v20998_v12 = vpack.c.bf16 %v15852_v37, %v15845_v21  ;;  %20961 = vmatprep.subr.bf16.mxu0 %v25096_v58  ;;  %v15971_v40 = vand.u32 4294901760, %v15970_v36  ;;  %v15858_v37 = vsub.f32 %v25077_v11, %v25789_v59  ;;  %v15734_v21 = vand.u32 4294901760, %v16714_v15 }
0x28ee   : > { %v25115_v35 = vpack.c.bf16 %v25787_v4, %v25786_v57  ;;  %v15865_v61 = vsub.f32 %v25084_v46, %v25583_v43  ;;  %v15686_v1 = vand.u32 4294901760, %v16698_v9  ;;  %v15689_v57 = vand.u32 4294901760, %v16699_v20 }
0x28ef   : > { %20999 = vmatpush3.bf16.msra.mxu1 %v20998_v12  ;;  %v15859_v48 = vand.u32 4294901760, %v15858_v37  ;;  %v25790_v4 = vand.u32 4294901760, %v24933_v62  ;;  %v25791_v36 = vand.u32 4294901760, %v24938_v5  ;;  %v25132_v59 = vsub.f32 %v16714_v15, %v15734_v21 }
0x28f0   : > { %25788 = vst [vmem:[#allocation19_spill] sm:$0xff] %v25115_v35  ;;  %20963 = vmatpush3.bf16.msra.mxu0 %v25115_v35  ;;  %v25134_v29 = vsub.f32 %v16715_v50, %v15737_v56  ;;  %v21000_v12 = vpack.c.bf16 %v15978_v31, %v15971_v40  ;;  %v15866_v24 = vand.u32 4294901760, %v15865_v61  ;;  %v25792_v35 = vand.u32 4294901760, %v24955_v42 }
0x28f1   : > { %v25130_v58 = vpack.c.bf16 %v25791_v36, %v25790_v4  ;;  %v25142_v16 = vsub.f32 %v16698_v9, %v15686_v1  ;;  %v25589_v62 = vand.u32 4294901760, %v25132_v59  ;;  %v25147_v15 = vsub.f32 %v16699_v20, %v15689_v57 }
0x28f2   : > { %v25140_v43 = vpack.c.bf16 %v25793_v30, %v25792_v35  ;;  %v25588_v5 = vand.u32 4294901760, %v25134_v29  ;;  %v25149_v50 = vpack.c.bf16 %v15731_v26, %v15728_v39  ;;  %21001 = vmatprep.subr.bf16.mxu1 %v21000_v12  ;;  %v21002_v40 = vpack.c.bf16 %v15866_v24, %v15859_v48 }
0x28f3   : > { %20965 = vmatprep.subr.bf16.mxu0 %v25130_v58  ;;  %v25587_v42 = vand.u32 4294901760, %v25142_v16  ;;  %v15984_v30 = vsub.f32 %v25132_v59, %v25589_v62  ;;  %v25586_v14 = vand.u32 4294901760, %v25147_v15  ;;  %v25794_v26 = vand.u32 4294901760, %v25009_v10 }
0x28f4   : > { %20967 = vmatpush3.bf16.msra.mxu0 %v25140_v43  ;;  %v15991_v9 = vsub.f32 %v25134_v29, %v25588_v5  ;;  %21003 = vmatpush3.bf16.msra.mxu1 %v21002_v40  ;;  %v25795_v20 = vand.u32 4294901760, %v25014_v19  ;;  %v25174_v12 = vpack.c.bf16 %v15737_v56, %v15734_v21  ;;  %v25176_v24 = vpack.c.bf16 %v15689_v57, %v15686_v1  ;;  %v25803_v57 = vld [vmem:[#allocation13_spill] sm:$0xff]  ;;  %v25804_v1 = vld [vmem:[#allocation10_spill] sm:$0xff]  ;;  %v25805_v21 = vld [vmem:[#allocation11_spill] sm:$0xff] }
0x28f5   : > { %20969 = vmatprep.subr.bf16.mxu0 %v25149_v50  ;;  %v15872_v39 = vsub.f32 %v25142_v16, %v25587_v42  ;;  %v15985_v37 = vand.u32 4294901760, %v15984_v30  ;;  %v15879_v61 = vsub.f32 %v25147_v15, %v25586_v14  ;;  %v21008_v19 = vpack.c.bf16 %v24674_v38, %v24672_v18  ;;  %v25797_v42 = vld [vmem:[#allocation5_spill] sm:$0xff] }
0x28f6   : > { %v25168_v35 = vpack.c.bf16 %v25795_v20, %v25794_v26  ;;  %v15992_v31 = vand.u32 4294901760, %v15991_v9  ;;  %v25806_v40 = vld [vmem:[#allocation17_spill] sm:$0xff] }
0x28f7   : > { %v15873_v48 = vand.u32 4294901760, %v15872_v39  ;;  %v15880_v36 = vand.u32 4294901760, %v15879_v61 }
0x28f8   : > { %20971 = vmatpush3.bf16.msra.mxu0 %v25168_v35  ;;  %v21004_v4 = vpack.c.bf16 %v15992_v31, %v15985_v37 }
0x28f9   : > { %v21006_v10 = vpack.c.bf16 %v15880_v36, %v15873_v48  ;;  %20973 = vmatprep.subr.bf16.mxu0 %v25174_v12 }
0x28fa   : > { %21005 = vmatprep.subr.bf16.mxu1 %v21004_v4 }
0x28fb   : > { %21007 = vmatpush3.bf16.msra.mxu1 %v21006_v10  ;;  %v16683_v10 = vld [vmem:[%s25400_s7 + $0x2] sm:$0x3] }
0x28fc   : > { %20975 = vmatpush3.bf16.msra.mxu0 %v25176_v24  ;;  %21041 = vmatprep.subr.bf16.mxu1 %v24754_v25  ;;  %v15603_v5 = vrot.slane %v16683_v10, %v25797_v42 }
0x28fd   : > { %21009 = vmatprep.subr.bf16.mxu0 %v21008_v19  ;;  %v25796_v19 = vld [vmem:[#allocation4_spill] sm:$0xff] }
0x28fe   : > { %v15599_v14 = vrot.slane %v16683_v10, %v25796_v19 }
0x2960   : > { %v15579_v37 = vpop.xlane.xlu0 %15578 }
0x2961   : > { %v15585_v31 = vmul.f32 0.00390625, %v15579_v37 }
0x2963   : > { %v15587_v61 = vadd.f32 1e-05, %v15585_v31 }
0x2965   : > { %21564 = vrsqrt.f32 %v15587_v61 }
0x2966   : > { %v15584_v48 = vpop.xlane.xlu1 %15583 }
0x2967   : > { %v15586_v4 = vmul.f32 0.00390625, %v15584_v48 }
0x2969   : > { %v15588_v36 = vadd.f32 1e-05, %v15586_v4 }
0x296b   : > { %21566 = vrsqrt.f32 %v15588_v36 }
0x296f   : > { %v21565_v62 = vpop.eup %21564 }
0x2970   : > { %v15591_v26 = vmul.f32 %v21565_v62, %v24801_v33  ;;  %v15592_v20 = vmul.f32 %v21565_v62, %v24804_v27 }
0x2972   : > { %v15607_v37 = vmul.f32 %v15603_v5, %v15592_v20  ;;  %v15606_v31 = vmul.f32 %v15599_v14, %v15591_v26 }
0x2974   : > { %v25210_v61 = vand.u32 4294901760, %v15607_v37  ;;  %v25212_v48 = vand.u32 4294901760, %v15606_v31 }
0x2975   : > { %v21567_v4 = vpop.eup %21566 }
0x2976   : > { %25798 = vst [vmem:[#allocation20_spill] sm:$0xff] %v25212_v48  ;;  %15995 = vmatprep.mubr.f32.mxu1 %v25210_v61  ;;  %v15594_v36 = vmul.f32 %v21567_v4, %v24814_v3  ;;  %v15593_v19 = vmul.f32 %v21567_v4, %v24811_v6  ;;  %v15740_v42 = vsub.f32 %v15607_v37, %v25210_v61 }
0x2977   : > { %v25219_v10 = vsub.f32 %v15606_v31, %v25212_v48  ;;  %15997 = vmatmul.mubr.f32.vlgmr.msra.gmra.mrb[48].mxu1 %v25212_v48  ;;  %v21010_v31 = vpack.c.bf16 %v24679_v7, %v24676_v44  ;;  %v25811_v48 = vpack.c.bf16 %v24854_v49, %v24849_v41 }
0x2978   : > { %21043 = vmatpush3.bf16.msra.mxu1 %v24764_v47  ;;  %v15609_v33 = vmul.f32 %v15603_v5, %v15594_v36  ;;  %v15608_v27 = vmul.f32 %v15599_v14, %v15593_v19  ;;  %v15741_v62 = vand.u32 4294901760, %v15740_v42  ;;  %v21012_v19 = vpack.c.bf16 %v24689_v2, %v24684_v52 }
0x2979   : > { %v15747_v26 = vand.u32 4294901760, %v25219_v10  ;;  %21045 = vmatprep.subr.bf16.mxu1 %v24944_v63 }
0x297a   : > { %v25225_v20 = vand.u32 4294901760, %v15609_v33  ;;  %v25227_v3 = vand.u32 4294901760, %v15608_v27  ;;  %v15742_v6 = vsub.f32 %v15740_v42, %v15741_v62 }
0x297b   : > { %v15748_v37 = vsub.f32 %v25219_v10, %v15747_v26 }
0x297c   : > { %25799 = vst [vmem:[#allocation35_spill] sm:$0xff] %v25225_v20  ;;  %25800 = vst [vmem:[#allocation36_spill] sm:$0xff] %v25227_v3  ;;  %21047 = vmatpush3.bf16.msra.mxu1 %v24966_v0  ;;  %16002 = vmatprep.mubr.f32.mxu1 %v25225_v20  ;;  %v15743_v5 = vand.u32 4294901760, %v15742_v6  ;;  %v15755_v4 = vsub.f32 %v15609_v33, %v25225_v20  ;;  %v25236_v36 = vsub.f32 %v15608_v27, %v25227_v3  ;;  %v25801_v33 = vld [vmem:[#allocation9_spill] sm:$0xff]  ;;  %v25802_v6 = vld [vmem:[#allocation15_spill] sm:$0xff] }
0x297d   : > { %v15749_v14 = vand.u32 4294901760, %v15748_v37  ;;  %16004 = vmatmul.mubr.f32.gmra.mrb[50].mxu1 %v25227_v3  ;;  %21049 = vmatprep.subr.bf16.mxu1 %v24994_v8  ;;  %v21014_v27 = vpack.c.bf16 %v25802_v6, %v25801_v33  ;;  %v25809_v20 = vld [vmem:[#allocation18_spill] sm:$0xff] }
0x297e   : > { %15744 = vmatprep.mubr.f32.mxu0 %v15743_v5  ;;  %16255 = vmatprep.mubr.f32.mxu1 %v15741_v62  ;;  %v15756_v39 = vand.u32 4294901760, %v15755_v4  ;;  %v15762_v9 = vand.u32 4294901760, %v25236_v36  ;;  %v21016_v5 = vpack.c.bf16 %v25805_v21, %v25804_v1 }
0x297f   : > { %15750 = vmatmul.mubr.f32.vlgmr.msra.gmra.mrb[38].mxu0 %v15749_v14  ;;  %v25808_v14 = vld [vmem:[#allocation12_spill] sm:$0xff] }
0x2980   : > { %21011 = vmatpush3.bf16.msra.mxu0 %v21010_v31  ;;  %21051 = vmatpush3.bf16.msra.mxu1 %v25020_v54  ;;  %v15757_v37 = vsub.f32 %v15755_v4, %v15756_v39  ;;  %v15763_v30 = vsub.f32 %v25236_v36, %v15762_v9  ;;  %v25807_v31 = vld [vmem:[#allocation16_spill] sm:$0xff] }
0x2981   : > { %21013 = vmatprep.subr.bf16.mxu0 %v21012_v19  ;;  %21053 = vmatprep.subr.bf16.mxu1 %v25803_v57  ;;  %v21018_v3 = vpack.c.bf16 %v25808_v14, %v25807_v31  ;;  %v25810_v19 = vld [vmem:[#allocation19_spill] sm:$0xff] }
0x2982   : > { %v15758_v62 = vand.u32 4294901760, %v15757_v37  ;;  %v15764_v56 = vand.u32 4294901760, %v15763_v30  ;;  %v25812_v30 = vpack.c.bf16 %v24864_v55, %v24859_v60  ;;  %v25818_v37 = vpack.c.bf16 %v25084_v46, %v25077_v11 }
0x2984   : > { %21015 = vmatpush3.bf16.msra.mxu0 %v21014_v27  ;;  %21055 = vmatpush3.bf16.msra.mxu1 %v25806_v40  ;;  %v25817_v27 = vpack.c.bf16 %v25070_v13, %v25055_v17 }
0x2985   : > { %15759 = vmatprep.mubr.f32.mxu0 %v15758_v62  ;;  %21017 = vmatprep.subr.bf16.mxu0 %v21016_v5  ;;  %v25819_v5 = vpack.c.bf16 %v25134_v29, %v25132_v59  ;;  %v25820_v62 = vand.u32 4294901760, %v24672_v18  ;;  %v25825_v18 = vand.u32 4294901760, %v24684_v52  ;;  %v25830_v52 = vand.u32 4294901760, %v25805_v21 }
0x2986   : > { %15765 = vmatmul.mubr.f32.gmra.mrb[40].mxu0 %v15764_v56  ;;  %21057 = vmatprep.subr.bf16.mxu1 %v25809_v20  ;;  %v25813_v56 = vpack.c.bf16 %v24908_v34, %v24903_v51  ;;  %v25834_v21 = vand.u32 4294901760, %v24854_v49  ;;  %v25840_v49 = vand.u32 4294901760, %v24924_v32 }
0x2987   : > { %16139 = vmatprep.mubr.f32.mxu0 %v15740_v42  ;;  %v25814_v42 = vpack.c.bf16 %v24924_v32, %v24919_v23 }
0x2988   : > { %21019 = vmatpush3.bf16.msra.mxu0 %v21018_v3  ;;  %21059 = vmatpush3.bf16.msra.mxu1 %v25810_v19  ;;  %v25816_v3 = vpack.c.bf16 %v25030_v22, %v25025_v53 }
0x2989   : > { %21021 = vmatprep.subr.bf16.mxu0 %v25811_v48  ;;  %21061 = vmatprep.subr.bf16.mxu1 %v25130_v58  ;;  %v25815_v48 = vpack.c.bf16 %v25004_v45, %v24999_v28 }
0x298c   : > { %21023 = vmatpush3.bf16.msra.mxu0 %v25812_v30  ;;  %21063 = vmatpush3.bf16.msra.mxu1 %v25140_v43  ;;  %v25821_v30 = vand.u32 4294901760, %v24674_v38  ;;  %v25826_v38 = vand.u32 4294901760, %v24689_v2 }
0x298d   : > { %21025 = vmatprep.subr.bf16.mxu0 %v25813_v56  ;;  %21065 = vmatprep.subr.bf16.mxu1 %v25149_v50 }
0x298e   : > { %v21072_v56 = vpack.c.bf16 %v25821_v30, %v25820_v62 }
0x2990   : > { %21027 = vmatpush3.bf16.msra.mxu0 %v25814_v42  ;;  %21067 = vmatpush3.bf16.msra.mxu1 %v25168_v35 }
0x2991   : > { %21029 = vmatprep.subr.bf16.mxu0 %v25815_v48  ;;  %21069 = vmatprep.subr.bf16.mxu1 %v25174_v12 }
0x2994   : > { %21031 = vmatpush3.bf16.msra.mxu0 %v25816_v3  ;;  %21071 = vmatpush3.bf16.msra.mxu1 %v25176_v24 }
0x2995   : > { %21033 = vmatprep.subr.bf16.mxu0 %v25817_v27  ;;  %21105 = vmatprep.subr.bf16.mxu1 %v24754_v25  ;;  %v25822_v25 = vpack.c.bf16 %v25147_v15, %v25142_v16 }
0x2997   : > { %16259 = vmatmul.mubr.f32.vlgmr.msra.gmra.mrb[52].mxu1 %v15747_v26 }
0x2998   : > { %21035 = vmatpush3.bf16.msra.mxu0 %v25818_v37  ;;  %16266 = vmatprep.mubr.f32.mxu1 %v15756_v39  ;;  %v25824_v39 = vand.u32 4294901760, %v24679_v7 }
0x2999   : > { %21107 = vmatpush3.bf16.msra.mxu1 %v24764_v47  ;;  %21037 = vmatprep.subr.bf16.mxu0 %v25819_v5  ;;  %v25823_v47 = vand.u32 4294901760, %v24676_v44  ;;  %v25828_v44 = vand.u32 4294901760, %v25802_v6 }
0x299a   : > { %21109 = vmatprep.subr.bf16.mxu1 %v24944_v63  ;;  %v21076_v63 = vpack.c.bf16 %v25826_v38, %v25825_v18 }
0x299b   : > { %16270 = vmatmul.mubr.f32.gmra.mrb[54].mxu1 %v15762_v9  ;;  %v21074_v26 = vpack.c.bf16 %v25824_v39, %v25823_v47  ;;  %v25827_v9 = vand.u32 4294901760, %v25801_v33  ;;  %v25837_v33 = vand.u32 4294901760, %v24903_v51  ;;  %v25844_v51 = vand.u32 4294901760, %v25030_v22 }
0x299c   : > { %21039 = vmatpush3.bf16.msra.mxu0 %v25822_v25  ;;  %16547 = vmatprep.mubr.f32.mxu1 %v25210_v61  ;;  %v25849_v22 = vand.u32 4294901760, %v25132_v59 }
0x299d   : > { %21111 = vmatpush3.bf16.msra.mxu1 %v24966_v0  ;;  %21073 = vmatprep.subr.bf16.mxu0 %v21072_v56  ;;  %v21078_v7 = vpack.c.bf16 %v25828_v44, %v25827_v9  ;;  %v25829_v0 = vand.u32 4294901760, %v25804_v1 }
0x299e   : > { %21113 = vmatprep.subr.bf16.mxu1 %v24994_v8  ;;  %v25831_v8 = vand.u32 4294901760, %v25807_v31 }
0x299f   : > { %16142 = vmatmul.mubr.f32.vlgmr.msra.gmra.mrb[42].mxu0 %v25219_v10  ;;  %v21080_v2 = vpack.c.bf16 %v25830_v52, %v25829_v0  ;;  %v25832_v10 = vand.u32 4294901760, %v25808_v14 }
0x29a0   : > { %16148 = vmatprep.mubr.f32.mxu0 %v15755_v4  ;;  %21075 = vmatpush3.bf16.msra.mxu0 %v21074_v26 }
0x29a1   : > { %21115 = vmatpush3.bf16.msra.mxu1 %v25020_v54  ;;  %21077 = vmatprep.subr.bf16.mxu0 %v21076_v63  ;;  %v21082_v4 = vpack.c.bf16 %v25832_v10, %v25831_v8  ;;  %v25833_v54 = vand.u32 4294901760, %v24849_v41  ;;  %v25839_v41 = vand.u32 4294901760, %v24919_v23  ;;  %v25845_v23 = vand.u32 4294901760, %v25055_v17  ;;  %v25851_v17 = vld [vmem:[#allocation20_spill] sm:$0xff] }
0x29a2   : > { %21117 = vmatprep.subr.bf16.mxu1 %v25803_v57  ;;  %v25835_v57 = vand.u32 4294901760, %v24859_v60  ;;  %v25841_v60 = vand.u32 4294901760, %v24999_v28  ;;  %v25847_v28 = vand.u32 4294901760, %v25077_v11  ;;  %v25854_v11 = vld [vmem:[#allocation35_spill] sm:$0xff] }
0x29a3   : > { %16151 = vmatmul.mubr.f32.gmra.mrb[44].mxu0 %v25236_v36  ;;  %v21084_v1 = vpack.c.bf16 %v25834_v21, %v25833_v54 }
0x29a4   : > { %21079 = vmatpush3.bf16.msra.mxu0 %v21078_v7  ;;  %16436 = vmatprep.mubr.f32.mxu0 %v25210_v61  ;;  %v25836_v61 = vand.u32 4294901760, %v24864_v55  ;;  %v25842_v55 = vand.u32 4294901760, %v25004_v45  ;;  %v25848_v45 = vand.u32 4294901760, %v25084_v46  ;;  %v25855_v46 = vld [vmem:[#allocation36_spill] sm:$0xff] }
0x29a5   : > { %21119 = vmatpush3.bf16.msra.mxu1 %v25806_v40  ;;  %21081 = vmatprep.subr.bf16.mxu0 %v21080_v2  ;;  %v25838_v40 = vand.u32 4294901760, %v24908_v34  ;;  %v25843_v34 = vand.u32 4294901760, %v25025_v53  ;;  %v25850_v53 = vand.u32 4294901760, %v25134_v29 }
0x29a6   : > { %21121 = vmatprep.subr.bf16.mxu1 %v25809_v20  ;;  %v21086_v36 = vpack.c.bf16 %v25836_v61, %v25835_v57  ;;  %v21090_v20 = vpack.c.bf16 %v25840_v49, %v25839_v41  ;;  %v21092_v31 = vpack.c.bf16 %v25842_v55, %v25841_v60  ;;  %v25856_v55 = vld [vmem:[#allocation14_spill] sm:$0xff] }
0x29a7   : > { %v21088_v6 = vpack.c.bf16 %v25838_v40, %v25837_v33 }
0x29a8   : > { %21083 = vmatpush3.bf16.msra.mxu0 %v21082_v4 }
0x29a9   : > { %21123 = vmatpush3.bf16.msra.mxu1 %v25810_v19  ;;  %21085 = vmatprep.subr.bf16.mxu0 %v21084_v1 }
0x29aa   : > { %21125 = vmatprep.subr.bf16.mxu1 %v25130_v58  ;;  %v21094_v58 = vpack.c.bf16 %v25844_v51, %v25843_v34 }
0x29ac   : > { %21087 = vmatpush3.bf16.msra.mxu0 %v21086_v36 }
0x29ad   : > { %21127 = vmatpush3.bf16.msra.mxu1 %v25140_v43  ;;  %21089 = vmatprep.subr.bf16.mxu0 %v21088_v6  ;;  %v25846_v43 = vand.u32 4294901760, %v25070_v13  ;;  %v25852_v13 = vand.u32 4294901760, %v25142_v16 }
0x29ae   : > { %21129 = vmatprep.subr.bf16.mxu1 %v25149_v50  ;;  %v21098_v50 = vpack.c.bf16 %v25848_v45, %v25847_v28 }
0x29af   : > { %v21096_v32 = vpack.c.bf16 %v25846_v43, %v25845_v23 }
0x29b0   : > { %21091 = vmatpush3.bf16.msra.mxu0 %v21090_v20 }
0x29b1   : > { %21131 = vmatpush3.bf16.msra.mxu1 %v25168_v35  ;;  %21093 = vmatprep.subr.bf16.mxu0 %v21092_v31  ;;  %v21100_v35 = vpack.c.bf16 %v25850_v53, %v25849_v22 }
0x29b2   : > { %21133 = vmatprep.subr.bf16.mxu1 %v25174_v12  ;;  %v25853_v12 = vand.u32 4294901760, %v25147_v15 }
0x29b4   : > { %21095 = vmatpush3.bf16.msra.mxu0 %v21094_v58  ;;  %v21102_v14 = vpack.c.bf16 %v25853_v12, %v25852_v13  ;;  %v25857_v58 = vld [vmem:[#allocation8_spill] sm:$0xff] }
0x29b5   : > { %21135 = vmatpush3.bf16.msra.mxu1 %v25176_v24  ;;  %21097 = vmatprep.subr.bf16.mxu0 %v21096_v32 }
0x29b8   : > { %16549 = vmatmul.mubr.f32.vlgmr.msra.gmra.mrb[56].mxu1 %v25851_v17  ;;  %21099 = vmatpush3.bf16.msra.mxu0 %v21098_v50 }
0x29b9   : > { %16554 = vmatprep.mubr.f32.mxu1 %v25854_v11  ;;  %21101 = vmatprep.subr.bf16.mxu0 %v21100_v35 }
0x29bc   : > { %16556 = vmatmul.mubr.f32.gmra.mrb[58].mxu1 %v25855_v46  ;;  %21103 = vmatpush3.bf16.msra.mxu0 %v21102_v14 }
0x29bf   : > { %16438 = vmatmul.mubr.f32.vlgmr.msra.gmra.mrb[46].mxu0 %v25851_v17 }
0x29c0   : > { %16443 = vmatprep.mubr.f32.mxu0 %v25854_v11 }
0x29c3   : > { %16445 = vmatmul.mubr.f32.gmra.mrb[48].mxu0 %v25855_v46 }
0x2a4a   : > { %v17870_v29 = vpop.f32.mrb[48].mxu1 }
0x2a4b   : > { %v17871_v59 = vpop.f32.mrb[49].mxu1 }
0x2a4c   : > { %v17872_v24 = vadd.f32 %v17871_v59, %v17870_v29 }
0x2a50   : > { %v17873_v19 = vpop.f32.mrb[50].mxu1 }
0x2a51   : > { %v17874_v16 = vpop.f32.mrb[51].mxu1 }
0x2a52   : > { %v17875_v42 = vadd.f32 %v17874_v16, %v17873_v19  ;;  %v17832_v15 = vpop.f32.mrb[38].mxu0 }
0x2a53   : > { %v17833_v48 = vpop.f32.mrb[39].mxu0 }
0x2a54   : > { %v17834_v3 = vadd.f32 %v17833_v48, %v17832_v15 }
0x2a56   : > { %v15999_v27 = vadd.f32 %v17872_v24, %v17834_v3 }
0x2a59   : > { %v17835_v37 = vpop.f32.mrb[40].mxu0 }
0x2a5a   : > { %v17836_v5 = vpop.f32.mrb[41].mxu0 }
0x2a5b   : > { %v17837_v62 = vadd.f32 %v17836_v5, %v17835_v37 }
0x2a5d   : > { %v16006_v30 = vadd.f32 %v17875_v42, %v17837_v62 }
0x2a6a   : > { %v17946_v56 = vpop.f32.mrb[52].mxu1 }
0x2a6b   : > { %v17947_v25 = vpop.f32.mrb[53].mxu1 }
0x2a6c   : > { %v17948_v47 = vadd.f32 %v17947_v25, %v17946_v56 }
0x2a6e   : > { %v17949_v39 = vpop.f32.mrb[54].mxu1 }
0x2a6f   : > { %v17950_v26 = vpop.f32.mrb[55].mxu1 }
0x2a70   : > { %v17951_v18 = vadd.f32 %v17950_v26, %v17949_v39 }
0x2a72   : > { %v17908_v38 = vpop.f32.mrb[42].mxu0 }
0x2a73   : > { %v17909_v63 = vpop.f32.mrb[43].mxu0 }
0x2a74   : > { %v17910_v9 = vadd.f32 %v17909_v63, %v17908_v38 }
0x2a76   : > { %v16144_v44 = vadd.f32 %v17910_v9, %v15999_v27  ;;  %v17911_v7 = vpop.f32.mrb[44].mxu0 }
0x2a77   : > { %v17912_v0 = vpop.f32.mrb[45].mxu0 }
0x2a78   : > { %v17913_v52 = vadd.f32 %v17912_v0, %v17911_v7  ;;  %v16261_v2 = vadd.f32 %v17948_v47, %v16144_v44 }
0x2a7a   : > { %v16153_v8 = vadd.f32 %v17913_v52, %v16006_v30 }
0x2a7c   : > { %v16272_v10 = vadd.f32 %v17951_v18, %v16153_v8 }
0x2a8b   : > { %v18022_v4 = vpop.f32.mrb[56].mxu1 }
0x2a8c   : > { %v18023_v54 = vpop.f32.mrb[57].mxu1 }
0x2a8d   : > { %v18024_v21 = vadd.f32 %v18023_v54, %v18022_v4 }
0x2a8f   : > { %v18025_v1 = vpop.f32.mrb[58].mxu1 }
0x2a90   : > { %v18026_v57 = vpop.f32.mrb[59].mxu1 }
0x2a91   : > { %v18027_v61 = vadd.f32 %v18026_v57, %v18025_v1 }
0x2a92   : > { %v17984_v36 = vpop.f32.mrb[46].mxu0 }
0x2a93   : > { %v17985_v33 = vpop.f32.mrb[47].mxu0 }
0x2a94   : > { %v17986_v40 = vadd.f32 %v17985_v33, %v17984_v36 }
0x2a96   : > { %v16440_v6 = vadd.f32 %v17986_v40, %v16261_v2  ;;  %v17987_v41 = vpop.f32.mrb[48].mxu0 }
0x2a97   : > { %v17988_v49 = vpop.f32.mrb[49].mxu0 }
0x2a98   : > { %v16551_v20 = vadd.f32 %v18024_v21, %v16440_v6  ;;  %v17989_v60 = vadd.f32 %v17988_v49, %v17987_v41 }
0x2a9a   : > { %v16561_v31 = vadd.f32 %v16551_v20, %v25856_v55  ;;  %v16447_v34 = vadd.f32 %v17989_v60, %v16272_v10 }
0x2a9c   : > { %16563 = vst.msk [vmem:[%s349_s29] sm:$0xff] %vm354_vm0, %v16561_v31  ;;  %v16558_v51 = vadd.f32 %v18027_v61, %v16447_v34 }
0x2a9e   : > { %v16562_v23 = vadd.f32 %v16558_v51, %v25857_v58 }
0x2aa0   : > { %16564 = vst.msk [vmem:[%s349_s29 + $0x8] sm:$0xf] %vm382_vm1, %v16562_v23 }
0x2aa1 PF: > { %s19_s30 = sadd.s32 1, %s21579_s30  }
0x2aa2   : > { %p16_p4 = scmp.ge.s32.totalorder %s19_s30, 4  }
0x2aa4   :  { %18 = sbr.rel (!%p16_p4) target bundleno = 1 (0x1), region = 96 }

</bundles_post_ra>
